<compile_context>
chip_gen: v6e
topology: v6e:2x2x1
jax: 0.10.0
libtpu: 0.0.40
codegen_flags: <defaults>
</compile_context>

<pallas_src>
import jax
import jax.numpy as jnp
from jax import lax
from jax.experimental import pallas as pl
from jax.experimental.pallas import tpu as pltpu

# Problem sizes implied by the module (view to [1,14,44,44] => input 1x96x42x42)
C_IN = 96
C_OUT = 14
C_OUT_PAD = 16            # pad output channels to a sublane-friendly 16
K = 3
H_IN = W_IN = 42
H_OUT = H_IN + K - 1      # 44
W_OUT = W_IN + K - 1      # 44
H_PAD = H_IN + 2 * (K - 1)  # 46
W_PAD = W_IN + 2 * (K - 1)  # 46
NREAL = H_PAD * W_PAD       # 2116 real flattened padded pixels
NPAD = 17 * 128             # 2176: lane-aligned flattened length (>= NREAL + 94)


def _convt_sigmoid_kernel(x_ref, w_ref, b_ref, o_ref):
    """Single-invocation body.

    x_ref : (C_IN, NPAD)          bf16  padded, flattened, channels-first input
    w_ref : (K*K, C_OUT_PAD, C_IN) bf16 flipped conv-transpose weights, tap-major
    b_ref : (C_OUT_PAD, 1)        f32   bias (zero-padded rows)
    o_ref : (C_OUT_PAD, NPAD)     f32   output (garbage columns discarded by wrapper)
    """
    acc = jnp.zeros((C_OUT_PAD, NPAD), jnp.float32)
    for k in range(K * K):
        a, b = divmod(k, K)
        d = a * W_PAD + b                      # flat spatial shift for this tap
        p = jnp.dot(w_ref[k], x_ref[...],      # [16,96] @ [96,2176] -> [16,2176]
                    preferred_element_type=jnp.float32)
        if d:
            # acc[:, r] += p[:, r + d]  (wrap-around only hits discarded columns)
            p = pltpu.roll(p, shift=NPAD - d, axis=1)
        acc = acc + p
    o_ref[...] = jax.nn.sigmoid(acc + b_ref[...])


@jax.jit
def conv_transpose_sigmoid(x_nchw, weight, bias):
    """Equivalent of sigmoid(ConvTranspose2d(96, 14, (3,3))(x)).

    x_nchw : [1, 96, 42, 42] f32
    weight : [96, 14, 3, 3]  f32  (PyTorch ConvTranspose2d layout: [Cin, Cout, kH, kW])
    bias   : [14]            f32
    returns: [1, 14, 44, 44] f32 (NCHW, matching PyTorch)
    """
    # --- glue: channels-first pad + flatten (one pass over ~0.8 MB) ---
    x_cf = x_nchw[0]                                            # [96,42,42]
    x_pad = jnp.pad(x_cf, ((0, 0), (K - 1, K - 1), (K - 1, K - 1)))  # [96,46,46]
    x_flat = x_pad.reshape(C_IN, NREAL)                         # [96,2116]
    x_flat = jnp.pad(x_flat, ((0, 0), (0, NPAD - NREAL)))       # [96,2176]
    x_bf16 = x_flat.astype(jnp.bfloat16)

    # flipped kernel, tap-major, transposed for lhs: [9, Cout_pad, Cin]
    w_flip = jnp.flip(weight, axis=(2, 3))                      # [Cin,Cout,kH,kW] flipped
    w_eff = jnp.transpose(w_flip, (2, 3, 1, 0))                 # [kH,kW,Cout,Cin]
    w_eff = w_eff.reshape(K * K, C_OUT, C_IN)                   # [9,14,96]
    w_eff = jnp.pad(w_eff, ((0, 0), (0, C_OUT_PAD - C_OUT), (0, 0)))
    w_eff = w_eff.astype(jnp.bfloat16)                          # [9,16,96]

    b2 = jnp.pad(bias, (0, C_OUT_PAD - C_OUT)).reshape(C_OUT_PAD, 1).astype(jnp.float32)

    # --- hot path: one Pallas invocation, everything VMEM-resident ---
    out_flat = pl.pallas_call(
        _convt_sigmoid_kernel,
        out_shape=jax.ShapeDtypeStruct((C_OUT_PAD, NPAD), jnp.float32),
        in_specs=[
            pl.BlockSpec(memory_space=pltpu.MemorySpace.VMEM),
            pl.BlockSpec(memory_space=pltpu.MemorySpace.VMEM),
            pl.BlockSpec(memory_space=pltpu.MemorySpace.VMEM),
        ],
        out_specs=pl.BlockSpec(memory_space=pltpu.MemorySpace.VMEM),
    )(x_bf16, w_eff, b2)

    # --- glue: drop padded channels / padded columns, back to NCHW ---
    out = out_flat[:C_OUT, :H_OUT * W_PAD]                      # [14, 44*46]
    out = out.reshape(C_OUT, H_OUT, W_PAD)[:, :, :W_OUT]        # [14,44,44]
    return out[None]                                            # [1,14,44,44]


def _reference(x_nchw, weight, bias):
    """Independent f32 XLA-conv reference (transposed conv = flipped-kernel conv)."""
    w_oihw = jnp.transpose(jnp.flip(weight, axis=(2, 3)), (1, 0, 2, 3))  # [14,96,3,3]
    y = lax.conv_general_dilated(
        x_nchw, w_oihw,
        window_strides=(1, 1),
        padding=((K - 1, K - 1), (K - 1, K - 1)),
        dimension_numbers=("NCHW", "OIHW", "NCHW"),
    )
    return jax.nn.sigmoid(y + bias.reshape(1, C_OUT, 1, 1))     # [1,14,44,44]


if __name__ == "__main__":
    key = jax.random.PRNGKey(0)
    kx, kw, kb = jax.random.split(key, 3)

    # Deterministic parameter init (PyTorch-style uniform(-1/sqrt(fan), 1/sqrt(fan)))
    fan = C_OUT * K * K
    bound = 1.0 / (fan ** 0.5)
    weight = jax.random.uniform(kw, (C_IN, C_OUT, K, K), jnp.float32, -bound, bound)
    bias = jax.random.uniform(kb, (C_OUT,), jnp.float32, -bound, bound)

    x = jax.random.normal(kx, (1, C_IN, H_IN, W_IN), jnp.float32)

    out = jax.block_until_ready(conv_transpose_sigmoid(x, weight, bias))
    ref = jax.block_until_ready(_reference(x, weight, bias))

    assert out.shape == (1, C_OUT, H_OUT, W_OUT), out.shape
    max_err = float(jnp.max(jnp.abs(out - ref)))
    # bf16 inputs / f32 accumulation vs. f32 reference => relaxed tolerance
    assert max_err < 2e-2, max_err

    print("KERNEL_OK")
</pallas_src>

<mosaic_0001>
module attributes {stable_mosaic.version = 11 : i64} {
  func.func @_convt_sigmoid_kernel(%arg0: memref<96x2176xbf16, #tpu.memory_space<vmem>>, %arg1: memref<9x16x96xbf16, #tpu.memory_space<vmem>>, %arg2: memref<16x1xf32, #tpu.memory_space<vmem>>, %arg3: memref<16x2176xf32, #tpu.memory_space<vmem>>) attributes {dimension_semantics = [], scalar_prefetch = 0 : i64, scratch_operands = 0 : i64, tpu.core_type = #tpu.core_type<tc>} {
    %cst = arith.constant 0.000000e+00 : f32
    %0 = vector.broadcast %cst : f32 to vector<16x2176xf32>
    %c0 = arith.constant 0 : index
    %c0_0 = arith.constant 0 : index
    %c0_1 = arith.constant 0 : index
    %1 = vector.load %arg1[%c0, %c0_0, %c0_1] : memref<9x16x96xbf16, #tpu.memory_space<vmem>>, vector<1x16x96xbf16>
    %2 = vector.shape_cast %1 : vector<1x16x96xbf16> to vector<16x96xbf16>
    %c0_2 = arith.constant 0 : index
    %c0_3 = arith.constant 0 : index
    %3 = vector.load %arg0[%c0_2, %c0_3] : memref<96x2176xbf16, #tpu.memory_space<vmem>>, vector<96x2176xbf16>
    %cst_4 = arith.constant dense<0.000000e+00> : vector<16x2176xf32>
    %4 = tpu.matmul %2, %3, %cst_4 {dimension_numbers = #tpu.dot_dimension_numbers<[1], [0], [0], [1], [0, 0, 1, 1], [], []>} : vector<16x96xbf16>, vector<96x2176xbf16>, vector<16x2176xf32> -> vector<16x2176xf32>
    %5 = arith.addf %0, %4 : vector<16x2176xf32>
    %c1 = arith.constant 1 : index
    %c0_5 = arith.constant 0 : index
    %c0_6 = arith.constant 0 : index
    %6 = vector.load %arg1[%c1, %c0_5, %c0_6] : memref<9x16x96xbf16, #tpu.memory_space<vmem>>, vector<1x16x96xbf16>
    %7 = vector.shape_cast %6 : vector<1x16x96xbf16> to vector<16x96xbf16>
    %c0_7 = arith.constant 0 : index
    %c0_8 = arith.constant 0 : index
    %8 = vector.load %arg0[%c0_7, %c0_8] : memref<96x2176xbf16, #tpu.memory_space<vmem>>, vector<96x2176xbf16>
    %cst_9 = arith.constant dense<0.000000e+00> : vector<16x2176xf32>
    %9 = tpu.matmul %7, %8, %cst_9 {dimension_numbers = #tpu.dot_dimension_numbers<[1], [0], [0], [1], [0, 0, 1, 1], [], []>} : vector<16x96xbf16>, vector<96x2176xbf16>, vector<16x2176xf32> -> vector<16x2176xf32>
    %c2175_i32 = arith.constant 2175 : i32
    %10 = tpu.dynamic_rotate %9 by %c2175_i32 dim 1 : vector<16x2176xf32>, i32 -> vector<16x2176xf32>
    %11 = arith.addf %5, %10 : vector<16x2176xf32>
    %c2 = arith.constant 2 : index
    %c0_10 = arith.constant 0 : index
    %c0_11 = arith.constant 0 : index
    %12 = vector.load %arg1[%c2, %c0_10, %c0_11] : memref<9x16x96xbf16, #tpu.memory_space<vmem>>, vector<1x16x96xbf16>
    %13 = vector.shape_cast %12 : vector<1x16x96xbf16> to vector<16x96xbf16>
    %c0_12 = arith.constant 0 : index
    %c0_13 = arith.constant 0 : index
    %14 = vector.load %arg0[%c0_12, %c0_13] : memref<96x2176xbf16, #tpu.memory_space<vmem>>, vector<96x2176xbf16>
    %cst_14 = arith.constant dense<0.000000e+00> : vector<16x2176xf32>
    %15 = tpu.matmul %13, %14, %cst_14 {dimension_numbers = #tpu.dot_dimension_numbers<[1], [0], [0], [1], [0, 0, 1, 1], [], []>} : vector<16x96xbf16>, vector<96x2176xbf16>, vector<16x2176xf32> -> vector<16x2176xf32>
    %c2174_i32 = arith.constant 2174 : i32
    %16 = tpu.dynamic_rotate %15 by %c2174_i32 dim 1 : vector<16x2176xf32>, i32 -> vector<16x2176xf32>
    %17 = arith.addf %11, %16 : vector<16x2176xf32>
    %c3 = arith.constant 3 : index
    %c0_15 = arith.constant 0 : index
    %c0_16 = arith.constant 0 : index
    %18 = vector.load %arg1[%c3, %c0_15, %c0_16] : memref<9x16x96xbf16, #tpu.memory_space<vmem>>, vector<1x16x96xbf16>
    %19 = vector.shape_cast %18 : vector<1x16x96xbf16> to vector<16x96xbf16>
    %c0_17 = arith.constant 0 : index
    %c0_18 = arith.constant 0 : index
    %20 = vector.load %arg0[%c0_17, %c0_18] : memref<96x2176xbf16, #tpu.memory_space<vmem>>, vector<96x2176xbf16>
    %cst_19 = arith.constant dense<0.000000e+00> : vector<16x2176xf32>
    %21 = tpu.matmul %19, %20, %cst_19 {dimension_numbers = #tpu.dot_dimension_numbers<[1], [0], [0], [1], [0, 0, 1, 1], [], []>} : vector<16x96xbf16>, vector<96x2176xbf16>, vector<16x2176xf32> -> vector<16x2176xf32>
    %c2130_i32 = arith.constant 2130 : i32
    %22 = tpu.dynamic_rotate %21 by %c2130_i32 dim 1 : vector<16x2176xf32>, i32 -> vector<16x2176xf32>
    %23 = arith.addf %17, %22 : vector<16x2176xf32>
    %c4 = arith.constant 4 : index
    %c0_20 = arith.constant 0 : index
    %c0_21 = arith.constant 0 : index
    %24 = vector.load %arg1[%c4, %c0_20, %c0_21] : memref<9x16x96xbf16, #tpu.memory_space<vmem>>, vector<1x16x96xbf16>
    %25 = vector.shape_cast %24 : vector<1x16x96xbf16> to vector<16x96xbf16>
    %c0_22 = arith.constant 0 : index
    %c0_23 = arith.constant 0 : index
    %26 = vector.load %arg0[%c0_22, %c0_23] : memref<96x2176xbf16, #tpu.memory_space<vmem>>, vector<96x2176xbf16>
    %cst_24 = arith.constant dense<0.000000e+00> : vector<16x2176xf32>
    %27 = tpu.matmul %25, %26, %cst_24 {dimension_numbers = #tpu.dot_dimension_numbers<[1], [0], [0], [1], [0, 0, 1, 1], [], []>} : vector<16x96xbf16>, vector<96x2176xbf16>, vector<16x2176xf32> -> vector<16x2176xf32>
    %c2129_i32 = arith.constant 2129 : i32
    %28 = tpu.dynamic_rotate %27 by %c2129_i32 dim 1 : vector<16x2176xf32>, i32 -> vector<16x2176xf32>
    %29 = arith.addf %23, %28 : vector<16x2176xf32>
    %c5 = arith.constant 5 : index
    %c0_25 = arith.constant 0 : index
    %c0_26 = arith.constant 0 : index
    %30 = vector.load %arg1[%c5, %c0_25, %c0_26] : memref<9x16x96xbf16, #tpu.memory_space<vmem>>, vector<1x16x96xbf16>
    %31 = vector.shape_cast %30 : vector<1x16x96xbf16> to vector<16x96xbf16>
    %c0_27 = arith.constant 0 : index
    %c0_28 = arith.constant 0 : index
    %32 = vector.load %arg0[%c0_27, %c0_28] : memref<96x2176xbf16, #tpu.memory_space<vmem>>, vector<96x2176xbf16>
    %cst_29 = arith.constant dense<0.000000e+00> : vector<16x2176xf32>
    %33 = tpu.matmul %31, %32, %cst_29 {dimension_numbers = #tpu.dot_dimension_numbers<[1], [0], [0], [1], [0, 0, 1, 1], [], []>} : vector<16x96xbf16>, vector<96x2176xbf16>, vector<16x2176xf32> -> vector<16x2176xf32>
    %c2128_i32 = arith.constant 2128 : i32
    %34 = tpu.dynamic_rotate %33 by %c2128_i32 dim 1 : vector<16x2176xf32>, i32 -> vector<16x2176xf32>
    %35 = arith.addf %29, %34 : vector<16x2176xf32>
    %c6 = arith.constant 6 : index
    %c0_30 = arith.constant 0 : index
    %c0_31 = arith.constant 0 : index
    %36 = vector.load %arg1[%c6, %c0_30, %c0_31] : memref<9x16x96xbf16, #tpu.memory_space<vmem>>, vector<1x16x96xbf16>
    %37 = vector.shape_cast %36 : vector<1x16x96xbf16> to vector<16x96xbf16>
    %c0_32 = arith.constant 0 : index
    %c0_33 = arith.constant 0 : index
    %38 = vector.load %arg0[%c0_32, %c0_33] : memref<96x2176xbf16, #tpu.memory_space<vmem>>, vector<96x2176xbf16>
    %cst_34 = arith.constant dense<0.000000e+00> : vector<16x2176xf32>
    %39 = tpu.matmul %37, %38, %cst_34 {dimension_numbers = #tpu.dot_dimension_numbers<[1], [0], [0], [1], [0, 0, 1, 1], [], []>} : vector<16x96xbf16>, vector<96x2176xbf16>, vector<16x2176xf32> -> vector<16x2176xf32>
    %c2084_i32 = arith.constant 2084 : i32
    %40 = tpu.dynamic_rotate %39 by %c2084_i32 dim 1 : vector<16x2176xf32>, i32 -> vector<16x2176xf32>
    %41 = arith.addf %35, %40 : vector<16x2176xf32>
    %c7 = arith.constant 7 : index
    %c0_35 = arith.constant 0 : index
    %c0_36 = arith.constant 0 : index
    %42 = vector.load %arg1[%c7, %c0_35, %c0_36] : memref<9x16x96xbf16, #tpu.memory_space<vmem>>, vector<1x16x96xbf16>
    %43 = vector.shape_cast %42 : vector<1x16x96xbf16> to vector<16x96xbf16>
    %c0_37 = arith.constant 0 : index
    %c0_38 = arith.constant 0 : index
    %44 = vector.load %arg0[%c0_37, %c0_38] : memref<96x2176xbf16, #tpu.memory_space<vmem>>, vector<96x2176xbf16>
    %cst_39 = arith.constant dense<0.000000e+00> : vector<16x2176xf32>
    %45 = tpu.matmul %43, %44, %cst_39 {dimension_numbers = #tpu.dot_dimension_numbers<[1], [0], [0], [1], [0, 0, 1, 1], [], []>} : vector<16x96xbf16>, vector<96x2176xbf16>, vector<16x2176xf32> -> vector<16x2176xf32>
    %c2083_i32 = arith.constant 2083 : i32
    %46 = tpu.dynamic_rotate %45 by %c2083_i32 dim 1 : vector<16x2176xf32>, i32 -> vector<16x2176xf32>
    %47 = arith.addf %41, %46 : vector<16x2176xf32>
    %c8 = arith.constant 8 : index
    %c0_40 = arith.constant 0 : index
    %c0_41 = arith.constant 0 : index
    %48 = vector.load %arg1[%c8, %c0_40, %c0_41] : memref<9x16x96xbf16, #tpu.memory_space<vmem>>, vector<1x16x96xbf16>
    %49 = vector.shape_cast %48 : vector<1x16x96xbf16> to vector<16x96xbf16>
    %c0_42 = arith.constant 0 : index
    %c0_43 = arith.constant 0 : index
    %50 = vector.load %arg0[%c0_42, %c0_43] : memref<96x2176xbf16, #tpu.memory_space<vmem>>, vector<96x2176xbf16>
    %cst_44 = arith.constant dense<0.000000e+00> : vector<16x2176xf32>
    %51 = tpu.matmul %49, %50, %cst_44 {dimension_numbers = #tpu.dot_dimension_numbers<[1], [0], [0], [1], [0, 0, 1, 1], [], []>} : vector<16x96xbf16>, vector<96x2176xbf16>, vector<16x2176xf32> -> vector<16x2176xf32>
    %c2082_i32 = arith.constant 2082 : i32
    %52 = tpu.dynamic_rotate %51 by %c2082_i32 dim 1 : vector<16x2176xf32>, i32 -> vector<16x2176xf32>
    %53 = arith.addf %47, %52 : vector<16x2176xf32>
    %c0_45 = arith.constant 0 : index
    %c0_46 = arith.constant 0 : index
    %54 = vector.load %arg2[%c0_45, %c0_46] : memref<16x1xf32, #tpu.memory_space<vmem>>, vector<16x1xf32>
    %55 = vector.broadcast %54 : vector<16x1xf32> to vector<16x2176xf32>
    %56 = arith.addf %53, %55 : vector<16x2176xf32>
    %57 = arith.negf %56 : vector<16x2176xf32>
    %58 = math.exp %57 : vector<16x2176xf32>
    %cst_47 = arith.constant 1.000000e+00 : f32
    %59 = vector.broadcast %cst_47 : f32 to vector<16x2176xf32>
    %60 = arith.addf %59, %58 : vector<16x2176xf32>
    %61 = arith.divf %59, %60 : vector<16x2176xf32>
    %c0_48 = arith.constant 0 : index
    %c0_49 = arith.constant 0 : index
    %62 = vector.load %arg3[%c0_48, %c0_49] : memref<16x2176xf32, #tpu.memory_space<vmem>>, vector<16x2176xf32>
    tpu.vector_store %arg3[%c0_48, %c0_49], %61 {strides = array<i32>} : memref<16x2176xf32, #tpu.memory_space<vmem>>, vector<16x2176xf32>,
    return
  }
}

</mosaic_0001>

<bundles_post_ra>
// kernel: conv_transpose_sigmoid.1
= control target key start
LH: loop header
LB: loop body
LE: loop exit
PB: predicated region body
PF: predicated region fallthrough
CT: control target
= control target key end

     0   :  { %v11339_v1 = vmov 0   ;;  %vm649_vm0 = vcmask 785408   ;;  %vm6518_vm1 = vmmov 0   ;;  %s6519_s6 = smov 127   ;;  %s6520_s15 = smov 126   ;;  %s11335_s0 = inlined_call_operand.vmem [shape: bf16[96,2176], index: 0, kind: input, shape index: {}]   ;;  %s11336_s1 = inlined_call_operand.vmem [shape: bf16[9,16,96], index: 1, kind: input, shape index: {}]   ;;  %s11337_s2 = inlined_call_operand.vmem [shape: f32[16,1], index: 2, kind: input, shape index: {}]   ;;  %s11338_s3 = inlined_call_operand.vmem [shape: f32[16,2176], index: 3, kind: output, shape index: {}]  }
   0x1   :  { %v6550_v0 = vld [vmem:[%s11335_s0 + $0x2ac] ss:$68 sps:$4 sm:$0xff]   ;;  %685 = vmatprep.mubr.bf16.mxu0 %v11339_v1  ;;  %728 = vmatprep.mubr.bf16.mxu1 %v11339_v1  ;;  %v6565_v3 = vld [vmem:[%s11335_s0 + $0x2b4] ss:$68 sps:$4 sm:$0xff]   ;;  %v6576_v5 = vld [vmem:[%s11335_s0 + $0x224] ss:$68 sps:$4 sm:$0xff]  }
   0x2   :  { %11784 = vst [vmem:[#allocation2_spill] sm:$0xff] %v6550_v0  ;;  %v6557_v2 = vld [vmem:[%s11335_s0 + $0x2a8] ss:$68 sps:$4 sm:$0xff]   ;;  %6015 = vset.pattern.permute.xlu0 %v11339_v1  ;;  %6016 = vset.pattern.permute.xlu1 %v11339_v1  ;;  %v6570_v4 = vld [vmem:[%s11335_s0 + $0x2b0] ss:$68 sps:$4 sm:$0xff]   ;;  %s6521_s14 = smov 82  }
   0x3   :  { %11785 = vst [vmem:[#allocation3_spill] sm:$0xff] %v6557_v2  ;;  %657 = vmatprep.subr.bf16.mxu0 %v6550_v0  ;;  %v6581_v6 = vld [vmem:[%s11335_s0 + $0x220] ss:$68 sps:$4 sm:$0xff]   ;;  %700 = vmatprep.subr.bf16.mxu1 %v6565_v3  ;;  %v6587_v7 = vld [vmem:[%s11335_s0 + $0x22c] ss:$68 sps:$4 sm:$0xff]   ;;  %s6522_s30 = smov 81  }
   0x4   :  { %658 = vmatpush1.bf16.msra.mxu0 %v6557_v2  ;;  %11786 = vst [vmem:[#allocation4_spill] sm:$0xff] %v6581_v6  ;;  %701 = vmatpush1.bf16.msra.mxu1 %v6570_v4  ;;  %v6594_v8 = vld [vmem:[%s11335_s0 + $0x228] ss:$68 sps:$4 sm:$0xff]   ;;  %v6600_v9 = vld [vmem:[%s11335_s0 + $0x19c] ss:$68 sps:$4 sm:$0xff]   ;;  %s6523_s10 = smov 80  }
   0x5   :  { %659 = vmatprep.subr.bf16.mxu0 %v6576_v5  ;;  %702 = vmatprep.subr.bf16.mxu1 %v6587_v7  ;;  %v6606_v10 = vld [vmem:[%s11335_s0 + $0x198] ss:$68 sps:$4 sm:$0xff]   ;;  %v6611_v11 = vld [vmem:[%s11335_s0 + $0x1a4] ss:$68 sps:$4 sm:$0xff]   ;;  %v6635_v15 = vld [vmem:[%s11335_s0 + $0x110] ss:$68 sps:$4 sm:$0xff]  }
   0x6   :  { %11787 = vst [vmem:[#allocation5_spill] sm:$0xff] %v6606_v10  ;;  %v6617_v12 = vld [vmem:[%s11335_s0 + $0x114] ss:$68 sps:$4 sm:$0xff]   ;;  %v6623_v13 = vld [vmem:[%s11335_s0 + $0x1a0] ss:$68 sps:$4 sm:$0xff]   ;;  %v6700_v26 = vld [vmem:[%s11336_s1 + $0x8] sm:$0xff]  }
   0x7   :  { %v6629_v14 = vld [vmem:[%s11335_s0 + $0x11c] ss:$68 sps:$4 sm:$0xff]   ;;  %v6641_v16 = vld [vmem:[%s11335_s0 + $0x8c] ss:$68 sps:$4 sm:$0xff]   ;;  %v6653_v18 = vld [vmem:[%s11335_s0 + $0x94] ss:$68 sps:$4 sm:$0xff]  }
   0x8   :  { %660 = vmatpush1.bf16.msra.mxu0 %v6581_v6  ;;  %703 = vmatpush1.bf16.msra.mxu1 %v6594_v8  ;;  %11788 = vst [vmem:[#allocation6_spill] sm:$0xff] %v6641_v16  ;;  %v6647_v17 = vld [vmem:[%s11335_s0 + $0x118] ss:$68 sps:$4 sm:$0xff]   ;;  %v6659_v19 = vld [vmem:[%s11335_s0 + $0x88] ss:$68 sps:$4 sm:$0xff]   ;;  %s6524_s17 = smov 36  }
   0x9   :  { %661 = vmatprep.subr.bf16.mxu0 %v6600_v9  ;;  %704 = vmatprep.subr.bf16.mxu1 %v6611_v11  ;;  %v6665_v20 = vld [vmem:[%s11335_s0 + $0x4] ss:$68 sps:$4 sm:$0xff]   ;;  %v6671_v21 = vld [vmem:[%s11335_s0 + $0x90] ss:$68 sps:$4 sm:$0xff]   ;;  %v6694_v25 = vld [vmem:[%s11335_s0 + $0x2bc] ss:$68 sps:$4 sm:$0xff]  }
   0xa   :  { %v6677_v22 = vld [vmem:[%s11335_s0 + $0xc] ss:$68 sps:$4 sm:$0xff]   ;;  %v6683_v23 = vld [vmem:[%s11335_s0] ss:$68 sps:$4 sm:$0xff]   ;;  %v6712_v28 = vld [vmem:[%s11335_s0 + $0x2b8] ss:$68 sps:$4 sm:$0xff]  }
   0xb   :  { %v6689_v24 = vld [vmem:[%s11335_s0 + $0x8] ss:$68 sps:$4 sm:$0xff]   ;;  %v6718_v29 = vld [vmem:[%s11335_s0 + $0x234] ss:$68 sps:$4 sm:$0xff]   ;;  %v6724_v30 = vld [vmem:[%s11335_s0 + $0x2c0] ss:$68 sps:$4 sm:$0xff]  }
   0xc   :  { %662 = vmatpush1.bf16.msra.mxu0 %v6606_v10  ;;  %705 = vmatpush1.bf16.msra.mxu1 %v6623_v13  ;;  %v6706_v27 = vld [vmem:[%s11335_s0 + $0x2c4] ss:$68 sps:$4 sm:$0xff]   ;;  %v6732_v31 = vld [vmem:[%s11335_s0 + $0x23c] ss:$68 sps:$4 sm:$0xff]   ;;  %v6738_v32 = vld [vmem:[%s11335_s0 + $0x230] ss:$68 sps:$4 sm:$0xff]  }
   0xd   :  { %663 = vmatprep.subr.bf16.mxu0 %v6617_v12  ;;  %706 = vmatprep.subr.bf16.mxu1 %v6629_v14  ;;  %v6747_v33 = vld [vmem:[%s11335_s0 + $0x1ac] ss:$68 sps:$4 sm:$0xff]   ;;  %v6753_v34 = vld [vmem:[%s11335_s0 + $0x238] ss:$68 sps:$4 sm:$0xff]   ;;  %v6772_v37 = vld [vmem:[%s11335_s0 + $0x124] ss:$68 sps:$4 sm:$0xff]  }
   0xe   :  { %v6760_v35 = vld [vmem:[%s11335_s0 + $0x1b4] ss:$68 sps:$4 sm:$0xff]   ;;  %v6766_v36 = vld [vmem:[%s11335_s0 + $0x1a8] ss:$68 sps:$4 sm:$0xff]   ;;  %v6790_v40 = vld [vmem:[%s11335_s0 + $0x120] ss:$68 sps:$4 sm:$0xff]  }
   0xf   :  { %v6778_v38 = vld [vmem:[%s11335_s0 + $0x1b0] ss:$68 sps:$4 sm:$0xff]   ;;  %v6796_v41 = vld [vmem:[%s11335_s0 + $0x9c] ss:$68 sps:$4 sm:$0xff]   ;;  %v6802_v42 = vld [vmem:[%s11335_s0 + $0x128] ss:$68 sps:$4 sm:$0xff]  }
  0x10   :  { %664 = vmatpush1.bf16.msra.mxu0 %v6635_v15  ;;  %707 = vmatpush1.bf16.msra.mxu1 %v6647_v17  ;;  %v6784_v39 = vld [vmem:[%s11335_s0 + $0x12c] ss:$68 sps:$4 sm:$0xff]   ;;  %v6808_v43 = vld [vmem:[%s11335_s0 + $0xa4] ss:$68 sps:$4 sm:$0xff]   ;;  %v6814_v44 = vld [vmem:[%s11335_s0 + $0x98] ss:$68 sps:$4 sm:$0xff]  }
  0x11   :  { %665 = vmatprep.subr.bf16.mxu0 %v6641_v16  ;;  %708 = vmatprep.subr.bf16.mxu1 %v6653_v18  ;;  %v6820_v45 = vld [vmem:[%s11335_s0 + $0x14] ss:$68 sps:$4 sm:$0xff]   ;;  %v6826_v46 = vld [vmem:[%s11335_s0 + $0xa0] ss:$68 sps:$4 sm:$0xff]   ;;  %v6844_v49 = vld [vmem:[%s11335_s0 + $0x2cc] ss:$68 sps:$4 sm:$0xff]  }
  0x12   :  { %11789 = vst [vmem:[#allocation7_spill] sm:$0xff] %v6826_v46  ;;  %v6832_v47 = vld [vmem:[%s11335_s0 + $0x1c] ss:$68 sps:$4 sm:$0xff]   ;;  %v6838_v48 = vld [vmem:[%s11335_s0 + $0x10] ss:$68 sps:$4 sm:$0xff]   ;;  %11792 = vst [vmem:[#allocation10_spill] sm:$0xff] %v6844_v49 }
  0x13   :  { %11790 = vst [vmem:[#allocation8_spill] sm:$0xff] %v6832_v47  ;;  %11791 = vst [vmem:[#allocation9_spill] sm:$0xff] %v6838_v48  ;;  %v6850_v50 = vld [vmem:[%s11335_s0 + $0x18] ss:$68 sps:$4 sm:$0xff]   ;;  %v6862_v52 = vld [vmem:[%s11335_s0 + $0x2c8] ss:$68 sps:$4 sm:$0xff]  }
  0x14   :  { %666 = vmatpush1.bf16.msra.mxu0 %v6659_v19  ;;  %709 = vmatpush1.bf16.msra.mxu1 %v6671_v21  ;;  %11793 = vst [vmem:[#allocation11_spill] sm:$0xff] %v6850_v50  ;;  %v6856_v51 = vld [vmem:[%s11335_s0 + $0x2d4] ss:$68 sps:$4 sm:$0xff]   ;;  %11795 = vst [vmem:[#allocation13_spill] sm:$0xff] %v6862_v52  ;;  %v6868_v53 = vld [vmem:[%s11335_s0 + $0x244] ss:$68 sps:$4 sm:$0xff]  }
  0x15   :  { %667 = vmatprep.subr.bf16.mxu0 %v6665_v20  ;;  %710 = vmatprep.subr.bf16.mxu1 %v6677_v22  ;;  %11794 = vst [vmem:[#allocation12_spill] sm:$0xff] %v6856_v51  ;;  %11796 = vst [vmem:[#allocation14_spill] sm:$0xff] %v6868_v53  ;;  %v6874_v54 = vld [vmem:[%s11335_s0 + $0x2d0] ss:$68 sps:$4 sm:$0xff]   ;;  %v6888_v56 = vld [vmem:[%s11335_s0 + $0x240] ss:$68 sps:$4 sm:$0xff]  }
  0x16   :  { %11797 = vst [vmem:[#allocation15_spill] sm:$0xff] %v6874_v54  ;;  %v6882_v55 = vld [vmem:[%s11335_s0 + $0x24c] ss:$68 sps:$4 sm:$0xff]   ;;  %11799 = vst [vmem:[#allocation17_spill] sm:$0xff] %v6888_v56  ;;  %v6897_v57 = vld [vmem:[%s11335_s0 + $0x1bc] ss:$68 sps:$4 sm:$0xff]  }
  0x17   :  { %11798 = vst [vmem:[#allocation16_spill] sm:$0xff] %v6882_v55  ;;  %11800 = vst [vmem:[#allocation18_spill] sm:$0xff] %v6897_v57  ;;  %v6903_v58 = vld [vmem:[%s11335_s0 + $0x248] ss:$68 sps:$4 sm:$0xff]   ;;  %v6916_v60 = vld [vmem:[%s11335_s0 + $0x1b8] ss:$68 sps:$4 sm:$0xff]  }
  0x18   :  { %668 = vmatpush1.bf16.msra.mxu0 %v6683_v23  ;;  %711 = vmatpush1.bf16.msra.mxu1 %v6689_v24  ;;  %11801 = vst [vmem:[#allocation19_spill] sm:$0xff] %v6903_v58  ;;  %v6910_v59 = vld [vmem:[%s11335_s0 + $0x1c4] ss:$68 sps:$4 sm:$0xff]   ;;  %11803 = vst [vmem:[#allocation21_spill] sm:$0xff] %v6916_v60  ;;  %v6922_v61 = vld [vmem:[%s11335_s0 + $0x134] ss:$68 sps:$4 sm:$0xff]  }
  0x19   :  { %743 = vmatprep.subr.bf16.mxu0 %v6694_v25  ;;  %786 = vmatprep.subr.bf16.mxu1 %v6706_v27  ;;  %11802 = vst [vmem:[#allocation20_spill] sm:$0xff] %v6910_v59  ;;  %11804 = vst [vmem:[#allocation22_spill] sm:$0xff] %v6922_v61  ;;  %v6928_v62 = vld [vmem:[%s11335_s0 + $0x1c0] ss:$68 sps:$4 sm:$0xff]   ;;  %s6526_s18 = smov 34  }
  0x1a   :  { %11805 = vst [vmem:[#allocation23_spill] sm:$0xff] %v6928_v62  ;;  %v6934_v63 = vld [vmem:[%s11335_s0 + $0x13c] ss:$68 sps:$4 sm:$0xff]  }
  0x1b   :  { %5660 = vmatmul.mubr.msk.bf16.vlgmr.msra.gmra.mxu0 %vm649_vm0, %v6700_v26  ;;  %5661 = vmatmul.mubr.msk.bf16.vlgmr.msra.gmra.mxu1 %vm649_vm0, %v6700_v26  ;;  %11806 = vst [vmem:[#allocation24_spill] sm:$0xff] %v6934_v63 }
  0x1c   :  { %744 = vmatpush1.bf16.msra.mxu0 %v6712_v28  ;;  %771 = vmatprep.mubr.bf16.mxu0 %v11339_v1 }
  0x1d   :  { %745 = vmatprep.subr.bf16.mxu0 %v6718_v29  ;;  %787 = vmatpush1.bf16.msra.mxu1 %v6724_v30 }
  0x1e   :  { %814 = vmatprep.mubr.bf16.mxu1 %v11339_v1  ;;  %788 = vmatprep.subr.bf16.mxu1 %v6732_v31 }
  0x20   :  { %746 = vmatpush1.bf16.msra.mxu0 %v6738_v32 }
  0x21   :  { %747 = vmatprep.subr.bf16.mxu0 %v6747_v33  ;;  %789 = vmatpush1.bf16.msra.mxu1 %v6753_v34 }
  0x22   :  { %790 = vmatprep.subr.bf16.mxu1 %v6760_v35 }
  0x24   :  { %748 = vmatpush1.bf16.msra.mxu0 %v6766_v36 }
  0x25   :  { %749 = vmatprep.subr.bf16.mxu0 %v6772_v37  ;;  %791 = vmatpush1.bf16.msra.mxu1 %v6778_v38 }
  0x26   :  { %792 = vmatprep.subr.bf16.mxu1 %v6784_v39 }
  0x28   :  { %750 = vmatpush1.bf16.msra.mxu0 %v6790_v40 }
  0x29   :  { %751 = vmatprep.subr.bf16.mxu0 %v6796_v41  ;;  %793 = vmatpush1.bf16.msra.mxu1 %v6802_v42 }
  0x2a   :  { %794 = vmatprep.subr.bf16.mxu1 %v6808_v43 }
  0x2c   :  { %752 = vmatpush1.bf16.msra.mxu0 %v6814_v44 }
  0x2d   :  { %753 = vmatprep.subr.bf16.mxu0 %v6820_v45  ;;  %795 = vmatpush1.bf16.msra.mxu1 %v6826_v46  ;;  %v7034_v46 = vld [vmem:[%s11335_s0 + $0x250] ss:$68 sps:$4 sm:$0xff]  }
  0x2e   :  { %796 = vmatprep.subr.bf16.mxu1 %v6832_v47  ;;  %v6999_v47 = vld [vmem:[%s11335_s0 + $0x28] ss:$68 sps:$4 sm:$0xff]   ;;  %11823 = vst [vmem:[#allocation41_spill] sm:$0xff] %v7034_v46 }
  0x2f   :  { %11817 = vst [vmem:[#allocation35_spill] sm:$0xff] %v6999_v47 }
  0x30   :  { %754 = vmatpush1.bf16.msra.mxu0 %v6838_v48 }
  0x31   :  { %829 = vmatprep.subr.bf16.mxu0 %v6844_v49  ;;  %797 = vmatpush1.bf16.msra.mxu1 %v6850_v50  ;;  %v6987_v50 = vld [vmem:[%s11335_s0 + $0x2c] ss:$68 sps:$4 sm:$0xff]  }
  0x32   :  { %872 = vmatprep.subr.bf16.mxu1 %v6856_v51  ;;  %v6981_v51 = vld [vmem:[%s11335_s0 + $0xb0] ss:$68 sps:$4 sm:$0xff]   ;;  %11815 = vst [vmem:[#allocation33_spill] sm:$0xff] %v6987_v50 }
  0x33   :  { %5662 = vmatmul.mubr.msk.bf16.vlgmr.msra.gmra.mxu0 %vm649_vm0, %v6700_v26  ;;  %11814 = vst [vmem:[#allocation32_spill] sm:$0xff] %v6981_v51 }
  0x34   :  { %830 = vmatpush1.bf16.msra.mxu0 %v6862_v52  ;;  %857 = vmatprep.mubr.bf16.mxu0 %v11339_v1 }
  0x35   :  { %5663 = vmatmul.mubr.msk.bf16.vlgmr.msra.gmra.mxu1 %vm649_vm0, %v6700_v26  ;;  %831 = vmatprep.subr.bf16.mxu0 %v6868_v53 }
  0x36   :  { %873 = vmatpush1.bf16.msra.mxu1 %v6874_v54  ;;  %900 = vmatprep.mubr.bf16.mxu1 %v11339_v1  ;;  %v6940_v1 = vld [vmem:[%s11335_s0 + $0x130] ss:$68 sps:$4 sm:$0xff]   ;;  %v6964_v54 = vld [vmem:[%s11335_s0 + $0xa8] ss:$68 sps:$4 sm:$0xff]  }
  0x37   :  { %874 = vmatprep.subr.bf16.mxu1 %v6882_v55  ;;  %11807 = vst [vmem:[#allocation25_spill] sm:$0xff] %v6940_v1  ;;  %v6958_v55 = vld [vmem:[%s11335_s0 + $0xb4] ss:$68 sps:$4 sm:$0xff]   ;;  %11811 = vst [vmem:[#allocation29_spill] sm:$0xff] %v6964_v54 }
  0x38   :  { %832 = vmatpush1.bf16.msra.mxu0 %v6888_v56  ;;  %11810 = vst [vmem:[#allocation28_spill] sm:$0xff] %v6958_v55 }
  0x39   :  { %833 = vmatprep.subr.bf16.mxu0 %v6897_v57 }
  0x3a   :  { %875 = vmatpush1.bf16.msra.mxu1 %v6903_v58  ;;  %v6946_v58 = vld [vmem:[%s11335_s0 + $0xac] ss:$68 sps:$4 sm:$0xff]  }
  0x3b   :  { %876 = vmatprep.subr.bf16.mxu1 %v6910_v59  ;;  %11808 = vst [vmem:[#allocation26_spill] sm:$0xff] %v6946_v58  ;;  %v6952_v59 = vld [vmem:[%s11335_s0 + $0x138] ss:$68 sps:$4 sm:$0xff]  }
  0x3c   :  { %834 = vmatpush1.bf16.msra.mxu0 %v6916_v60  ;;  %11809 = vst [vmem:[#allocation27_spill] sm:$0xff] %v6952_v59 }
  0x3d   :  { %835 = vmatprep.subr.bf16.mxu0 %v6922_v61 }
  0x3e   :  { %877 = vmatpush1.bf16.msra.mxu1 %v6928_v62  ;;  %v6970_v62 = vld [vmem:[%s11335_s0 + $0x24] ss:$68 sps:$4 sm:$0xff]  }
  0x3f   :  { %878 = vmatprep.subr.bf16.mxu1 %v6934_v63  ;;  %11812 = vst [vmem:[#allocation30_spill] sm:$0xff] %v6970_v62  ;;  %v6976_v63 = vld [vmem:[%s11335_s0 + $0x20] ss:$68 sps:$4 sm:$0xff]  }
  0x40   :  { %836 = vmatpush1.bf16.msra.mxu0 %v6940_v1  ;;  %11813 = vst [vmem:[#allocation31_spill] sm:$0xff] %v6976_v63 }
  0x41   :  { %837 = vmatprep.subr.bf16.mxu0 %v6946_v58 }
  0x42   :  { %879 = vmatpush1.bf16.msra.mxu1 %v6952_v59  ;;  %v6993_v59 = vld [vmem:[%s11335_s0 + $0x2dc] ss:$68 sps:$4 sm:$0xff]  }
  0x43   :  { %880 = vmatprep.subr.bf16.mxu1 %v6958_v55  ;;  %11816 = vst [vmem:[#allocation34_spill] sm:$0xff] %v6993_v59  ;;  %v7005_v55 = vld [vmem:[%s11335_s0 + $0x2d8] ss:$68 sps:$4 sm:$0xff]  }
  0x44   :  { %838 = vmatpush1.bf16.msra.mxu0 %v6964_v54  ;;  %11818 = vst [vmem:[#allocation36_spill] sm:$0xff] %v7005_v55  ;;  %v7011_v54 = vld [vmem:[%s11335_s0 + $0x254] ss:$68 sps:$4 sm:$0xff]  }
  0x45   :  { %839 = vmatprep.subr.bf16.mxu0 %v6970_v62  ;;  %11819 = vst [vmem:[#allocation37_spill] sm:$0xff] %v7011_v54  ;;  %v7016_v62 = vld [vmem:[%s11335_s0 + $0x2e4] ss:$68 sps:$4 sm:$0xff]  }
  0x46   :  { %881 = vmatpush1.bf16.msra.mxu1 %v6981_v51  ;;  %11820 = vst [vmem:[#allocation38_spill] sm:$0xff] %v7016_v62  ;;  %v7022_v51 = vld [vmem:[%s11335_s0 + $0x2e0] ss:$68 sps:$4 sm:$0xff]  }
  0x47   :  { %882 = vmatprep.subr.bf16.mxu1 %v6987_v50  ;;  %11821 = vst [vmem:[#allocation39_spill] sm:$0xff] %v7022_v51  ;;  %v7028_v50 = vld [vmem:[%s11335_s0 + $0x25c] ss:$68 sps:$4 sm:$0xff]  }
  0x48   :  { %840 = vmatpush1.bf16.msra.mxu0 %v6976_v63  ;;  %11822 = vst [vmem:[#allocation40_spill] sm:$0xff] %v7028_v50  ;;  %v11825_v63 = vmov 0  }
  0x49   :  { %915 = vmatprep.subr.bf16.mxu0 %v6993_v59  ;;  %v7042_v59 = vld [vmem:[%s11335_s0 + $0x1cc] ss:$68 sps:$4 sm:$0xff]  }
  0x4a   :  { %883 = vmatpush1.bf16.msra.mxu1 %v6999_v47  ;;  %11824 = vst [vmem:[#allocation42_spill] sm:$0xff] %v7042_v59  ;;  %v5267_v47 = vld [vmem:[%s11337_s2] sm:$0xff] }
  0x4b   :  { %5664 = vmatmul.mubr.msk.bf16.vlgmr.msra.gmra.mxu0 %vm649_vm0, %v6700_v26  ;;  %958 = vmatprep.subr.bf16.mxu1 %v7016_v62  ;;  %v7056_v62 = vld [vmem:[%s11335_s0 + $0x258] ss:$68 sps:$4 sm:$0xff]  }
  0x4c   :  { %916 = vmatpush1.bf16.msra.mxu0 %v7005_v55  ;;  %943 = vmatprep.mubr.bf16.mxu0 %v11825_v63  ;;  %11826 = vst [vmem:[#allocation43_spill] sm:$0xff] %v7056_v62  ;;  %v7063_v55 = vld [vmem:[%s11335_s0 + $0x1d4] ss:$68 sps:$4 sm:$0xff]  }
  0x4d   :  { %5665 = vmatmul.mubr.msk.bf16.vlgmr.msra.gmra.mxu1 %vm649_vm0, %v6700_v26  ;;  %917 = vmatprep.subr.bf16.mxu0 %v7011_v54  ;;  %11827 = vst [vmem:[#allocation44_spill] sm:$0xff] %v7063_v55  ;;  %v5268_v54 = vld [vmem:[%s11337_s2 + $0x8] sm:$0xff] }
  0x4e   :  { %959 = vmatpush1.bf16.msra.mxu1 %v7022_v51  ;;  %986 = vmatprep.mubr.bf16.mxu1 %v11825_v63  ;;  %v7069_v51 = vld [vmem:[%s11335_s0 + $0x1c8] ss:$68 sps:$4 sm:$0xff]  }
  0x4f   :  { %960 = vmatprep.subr.bf16.mxu1 %v7028_v50  ;;  %5271 = vperm.xlu0 %6015, %v5267_v47   ;;  %11828 = vst [vmem:[#allocation45_spill] sm:$0xff] %v7069_v51  ;;  %v7078_v50 = vld [vmem:[%s11335_s0 + $0x144] ss:$68 sps:$4 sm:$0xff]   ;;  %v7084_v47 = vld [vmem:[%s11335_s0 + $0x1d0] ss:$68 sps:$4 sm:$0xff]  }
  0x50   :  { %918 = vmatpush1.bf16.msra.mxu0 %v7034_v46  ;;  %11829 = vst [vmem:[#allocation46_spill] sm:$0xff] %v7078_v50  ;;  %5276 = vperm.xlu1 %6016, %v5268_v54   ;;  %11830 = vst [vmem:[#allocation47_spill] sm:$0xff] %v7084_v47  ;;  %v7090_v46 = vld [vmem:[%s11335_s0 + $0x14c] ss:$68 sps:$4 sm:$0xff]   ;;  %v7096_v54 = vld [vmem:[%s11335_s0 + $0x140] ss:$68 sps:$4 sm:$0xff]  }
  0x51   :  { %919 = vmatprep.subr.bf16.mxu0 %v7042_v59  ;;  %11831 = vst [vmem:[#allocation48_spill] sm:$0xff] %v7090_v46  ;;  %11832 = vst [vmem:[#allocation49_spill] sm:$0xff] %v7096_v54 }
  0x52   :  { %961 = vmatpush1.bf16.msra.mxu1 %v7056_v62  ;;  %v7102_v62 = vld [vmem:[%s11335_s0 + $0xbc] ss:$68 sps:$4 sm:$0xff]  }
  0x53   :  { %962 = vmatprep.subr.bf16.mxu1 %v7063_v55  ;;  %11833 = vst [vmem:[#allocation50_spill] sm:$0xff] %v7102_v62  ;;  %v7108_v55 = vld [vmem:[%s11335_s0 + $0x148] ss:$68 sps:$4 sm:$0xff]  }
  0x54   :  { %920 = vmatpush1.bf16.msra.mxu0 %v7069_v51  ;;  %11834 = vst [vmem:[#allocation51_spill] sm:$0xff] %v7108_v55  ;;  %v7114_v51 = vld [vmem:[%s11335_s0 + $0xc4] ss:$68 sps:$4 sm:$0xff]  }
  0x55   :  { %921 = vmatprep.subr.bf16.mxu0 %v7078_v50  ;;  %11835 = vst [vmem:[#allocation52_spill] sm:$0xff] %v7114_v51  ;;  %v7120_v50 = vld [vmem:[%s11335_s0 + $0xb8] ss:$68 sps:$4 sm:$0xff]  }
  0x56   :  { %963 = vmatpush1.bf16.msra.mxu1 %v7084_v47  ;;  %11836 = vst [vmem:[#allocation53_spill] sm:$0xff] %v7120_v50  ;;  %v7126_v47 = vld [vmem:[%s11335_s0 + $0x34] ss:$68 sps:$4 sm:$0xff]  }
  0x57   :  { %964 = vmatprep.subr.bf16.mxu1 %v7090_v46  ;;  %11837 = vst [vmem:[#allocation54_spill] sm:$0xff] %v7126_v47  ;;  %v7132_v46 = vld [vmem:[%s11335_s0 + $0xc0] ss:$68 sps:$4 sm:$0xff]  }
  0x58   :  { %922 = vmatpush1.bf16.msra.mxu0 %v7096_v54  ;;  %v7138_v54 = vld [vmem:[%s11335_s0 + $0x3c] ss:$68 sps:$4 sm:$0xff]  }
  0x59   :  { %923 = vmatprep.subr.bf16.mxu0 %v7102_v62  ;;  %11838 = vst [vmem:[#allocation55_spill] sm:$0xff] %v7138_v54  ;;  %v7144_v62 = vld [vmem:[%s11335_s0 + $0x30] ss:$68 sps:$4 sm:$0xff]  }
  0x5a   :  { %965 = vmatpush1.bf16.msra.mxu1 %v7108_v55  ;;  %11839 = vst [vmem:[#allocation56_spill] sm:$0xff] %v7144_v62  ;;  %v7158_v55 = vld [vmem:[%s11335_s0 + $0x2e8] ss:$68 sps:$4 sm:$0xff]  }
  0x5b   :  { %966 = vmatprep.subr.bf16.mxu1 %v7114_v51  ;;  %v7151_v51 = vld [vmem:[%s11335_s0 + $0x38] ss:$68 sps:$4 sm:$0xff]   ;;  %11840 = vst [vmem:[#allocation57_spill] sm:$0xff] %v7158_v55 }
  0x5c   :  { %924 = vmatpush1.bf16.msra.mxu0 %v7120_v50  ;;  %v11420_v50 = vmov 0.0  }
  0x5d   :  { %925 = vmatprep.subr.bf16.mxu0 %v7126_v47 }
  0x5e   :  { %967 = vmatpush1.bf16.msra.mxu1 %v7132_v46 }
  0x5f   :  { %968 = vmatprep.subr.bf16.mxu1 %v7138_v54  ;;  %v7169_v54 = vld [vmem:[%s11335_s0 + $0x260] ss:$68 sps:$4 sm:$0xff]  }
  0x60   :  { %926 = vmatpush1.bf16.msra.mxu0 %v7144_v62  ;;  %11841 = vst [vmem:[#allocation58_spill] sm:$0xff] %v7169_v54 }
  0x61   :  { %5860 = vmatprep.subr.bf16.mxu0 %v11420_v50 }
  0x62   :  { %969 = vmatpush1.bf16.msra.mxu1 %v7151_v51 }
  0x63   :  { %5666 = vmatmul.mubr.msk.bf16.vlgmr.msra.gmra.mxu0 %vm649_vm0, %v6700_v26  ;;  %1155 = vmatprep.subr.bf16.mxu1 %v6550_v0  ;;  %v7183_v0 = vld [vmem:[%s11335_s0 + $0x1d8] ss:$68 sps:$4 sm:$0xff]  }
  0x64   :  { %5861 = vmatpush3.bf16.msra.mxu0 %v7158_v55  ;;  %5872 = vmatprep.mubr.msk.bf16.mxu0 %vm6518_vm1, %v11420_v50  ;;  %11842 = vst [vmem:[#allocation59_spill] sm:$0xff] %v7183_v0 }
  0x65   :  { %5667 = vmatmul.mubr.msk.bf16.vlgmr.msra.gmra.mxu1 %vm649_vm0, %v6700_v26  ;;  %5862 = vmatprep.subr.bf16.mxu0 %v11420_v50 }
  0x66   :  { %1156 = vmatpush1.bf16.msra.mxu1 %v6557_v2  ;;  %1183 = vmatprep.mubr.bf16.mxu1 %v11825_v63  ;;  %v7192_v2 = vld [vmem:[%s11335_s0 + $0x150] ss:$68 sps:$4 sm:$0xff]  }
  0x67   :  { %1157 = vmatprep.subr.bf16.mxu1 %v6576_v5  ;;  %11843 = vst [vmem:[#allocation60_spill] sm:$0xff] %v7192_v2 }
  0x68   :  { %5863 = vmatpush3.bf16.msra.mxu0 %v7169_v54 }
  0x69   :  { %5864 = vmatprep.subr.bf16.mxu0 %v11420_v50 }
  0x6a   :  { %1158 = vmatpush1.bf16.msra.mxu1 %v6581_v6  ;;  %v7201_v6 = vld [vmem:[%s11335_s0 + $0xc8] ss:$68 sps:$4 sm:$0xff]  }
  0x6b   :  { %1159 = vmatprep.subr.bf16.mxu1 %v6600_v9  ;;  %11844 = vst [vmem:[#allocation61_spill] sm:$0xff] %v7201_v6 }
  0x6c   :  { %5865 = vmatpush3.bf16.msra.mxu0 %v7183_v0 }
  0x6d   :  { %5866 = vmatprep.subr.bf16.mxu0 %v11420_v50 }
  0x6e   :  { %1160 = vmatpush1.bf16.msra.mxu1 %v6606_v10  ;;  %v7210_v10 = vld [vmem:[%s11335_s0 + $0x40] ss:$68 sps:$4 sm:$0xff]  }
  0x6f   :  { %1161 = vmatprep.subr.bf16.mxu1 %v6617_v12 }
  0x70   :  { %5867 = vmatpush3.bf16.msra.mxu0 %v7192_v2 }
  0x71   :  { %5868 = vmatprep.subr.bf16.mxu0 %v11420_v50 }
  0x72   :  { %1162 = vmatpush1.bf16.msra.mxu1 %v6635_v15 }
  0x73   :  { %1163 = vmatprep.subr.bf16.mxu1 %v6641_v16  ;;  %v7220_v16 = vld [vmem:[%s11336_s1] sm:$0xff]  }
  0x74   :  { %5869 = vmatpush3.bf16.msra.mxu0 %v7201_v6 }
  0x75   :  { %5870 = vmatprep.subr.bf16.mxu0 %v11420_v50  ;;  %v11846_v50 = vld [vmem:[#allocation8_spill] sm:$0xff] }
  0x76   :  { %1164 = vmatpush1.bf16.msra.mxu1 %v6659_v19 }
  0x77   :  { %1165 = vmatprep.subr.bf16.mxu1 %v6665_v20 }
  0x78   :  { %5871 = vmatpush3.bf16.msra.mxu0 %v7210_v10 }
  0x79   :  { %1198 = vmatprep.subr.bf16.mxu0 %v6565_v3 }
  0x7a   :  { %1166 = vmatpush1.bf16.msra.mxu1 %v6683_v23 }
  0x7b   :  { %5873 = vmatmul.mubr.msk.bf16.vlgmr.msra.gmra.mxu0 %vm649_vm0, %v6700_v26  ;;  %1241 = vmatprep.subr.bf16.mxu1 %v6694_v25  ;;  %v11845_v26 = vld [vmem:[#allocation7_spill] sm:$0xff] }
  0x7c   :  { %1199 = vmatpush1.bf16.msra.mxu0 %v6570_v4  ;;  %1226 = vmatprep.mubr.bf16.mxu0 %v11825_v63 }
  0x7d   :  { %1200 = vmatprep.subr.bf16.mxu0 %v6587_v7  ;;  %5670 = vmatmul.mubr.msk.bf16.vlgmr.msra.gmra.mxu1 %vm649_vm0, %v7220_v16 }
  0x7e   :  { %1242 = vmatpush1.bf16.msra.mxu1 %v6712_v28  ;;  %1269 = vmatprep.mubr.bf16.mxu1 %v11825_v63 }
  0x7f   :  { %1243 = vmatprep.subr.bf16.mxu1 %v6718_v29 }
  0x80   :  { %1201 = vmatpush1.bf16.msra.mxu0 %v6594_v8 }
  0x81   :  { %1202 = vmatprep.subr.bf16.mxu0 %v6611_v11 }
  0x82   :  { %1244 = vmatpush1.bf16.msra.mxu1 %v6738_v32 }
  0x83   :  { %1245 = vmatprep.subr.bf16.mxu1 %v6747_v33 }
  0x84   :  { %1203 = vmatpush1.bf16.msra.mxu0 %v6623_v13 }
  0x85   :  { %1204 = vmatprep.subr.bf16.mxu0 %v6629_v14 }
  0x86   :  { %1246 = vmatpush1.bf16.msra.mxu1 %v6766_v36 }
  0x87   :  { %1247 = vmatprep.subr.bf16.mxu1 %v6772_v37 }
  0x88   :  { %1205 = vmatpush1.bf16.msra.mxu0 %v6647_v17 }
  0x89   :  { %1206 = vmatprep.subr.bf16.mxu0 %v6653_v18 }
  0x8a   :  { %1248 = vmatpush1.bf16.msra.mxu1 %v6790_v40 }
  0x8b   :  { %1249 = vmatprep.subr.bf16.mxu1 %v6796_v41 }
  0x8c   :  { %1207 = vmatpush1.bf16.msra.mxu0 %v6671_v21 }
  0x8d   :  { %1208 = vmatprep.subr.bf16.mxu0 %v6677_v22 }
  0x8e   :  { %1250 = vmatpush1.bf16.msra.mxu1 %v6814_v44 }
  0x8f   :  { %1251 = vmatprep.subr.bf16.mxu1 %v6820_v45 }
  0x90   :  { %1209 = vmatpush1.bf16.msra.mxu0 %v6689_v24 }
  0x91   :  { %1284 = vmatprep.subr.bf16.mxu0 %v6706_v27 }
  0x92   :  { %1252 = vmatpush1.bf16.msra.mxu1 %v6838_v48  ;;  %v11865_v48 = vld [vmem:[#allocation28_spill] sm:$0xff] }
  0x93   :  { %5671 = vmatmul.mubr.msk.bf16.vlgmr.msra.gmra.mxu0 %vm649_vm0, %v7220_v16  ;;  %1327 = vmatprep.subr.bf16.mxu1 %v6844_v49  ;;  %v11863_v49 = vld [vmem:[#allocation46_spill] sm:$0xff] }
  0x94   :  { %1285 = vmatpush1.bf16.msra.mxu0 %v6724_v30  ;;  %1312 = vmatprep.mubr.bf16.mxu0 %v11825_v63 }
  0x95   :  { %1286 = vmatprep.subr.bf16.mxu0 %v6732_v31  ;;  %5672 = vmatmul.mubr.msk.bf16.vlgmr.msra.gmra.mxu1 %vm649_vm0, %v7220_v16 }
  0x96   :  { %1328 = vmatpush1.bf16.msra.mxu1 %v6862_v52  ;;  %1355 = vmatprep.mubr.bf16.mxu1 %v11825_v63  ;;  %v11854_v52 = vld [vmem:[#allocation16_spill] sm:$0xff] }
  0x97   :  { %1329 = vmatprep.subr.bf16.mxu1 %v6868_v53  ;;  %v11849_v53 = vld [vmem:[#allocation11_spill] sm:$0xff] }
  0x98   :  { %1287 = vmatpush1.bf16.msra.mxu0 %v6753_v34 }
  0x99   :  { %1288 = vmatprep.subr.bf16.mxu0 %v6760_v35 }
  0x9a   :  { %1330 = vmatpush1.bf16.msra.mxu1 %v6888_v56  ;;  %v11848_v56 = vld [vmem:[#allocation30_spill] sm:$0xff] }
  0x9b   :  { %1331 = vmatprep.subr.bf16.mxu1 %v6897_v57  ;;  %v11847_v57 = vld [vmem:[#allocation29_spill] sm:$0xff] }
  0x9c   :  { %1289 = vmatpush1.bf16.msra.mxu0 %v6778_v38 }
  0x9d   :  { %1290 = vmatprep.subr.bf16.mxu0 %v6784_v39 }
  0x9e   :  { %1332 = vmatpush1.bf16.msra.mxu1 %v6916_v60  ;;  %v11850_v60 = vld [vmem:[#allocation12_spill] sm:$0xff] }
  0x9f   :  { %1333 = vmatprep.subr.bf16.mxu1 %v6922_v61  ;;  %v11851_v61 = vld [vmem:[#allocation31_spill] sm:$0xff] }
  0xa0   :  { %1291 = vmatpush1.bf16.msra.mxu0 %v6802_v42 }
  0xa1   :  { %1292 = vmatprep.subr.bf16.mxu0 %v6808_v43 }
  0xa2   :  { %1334 = vmatpush1.bf16.msra.mxu1 %v6940_v1  ;;  %v11852_v1 = vld [vmem:[#allocation34_spill] sm:$0xff] }
  0xa3   :  { %1335 = vmatprep.subr.bf16.mxu1 %v6946_v58  ;;  %v11853_v58 = vld [vmem:[#allocation15_spill] sm:$0xff] }
  0xa4   :  { %1293 = vmatpush1.bf16.msra.mxu0 %v11845_v26 }
  0xa5   :  { %1294 = vmatprep.subr.bf16.mxu0 %v11846_v50 }
  0xa6   :  { %1336 = vmatpush1.bf16.msra.mxu1 %v11847_v57  ;;  %v11856_v57 = vld [vmem:[#allocation37_spill] sm:$0xff] }
  0xa7   :  { %1337 = vmatprep.subr.bf16.mxu1 %v11848_v56  ;;  %v11855_v56 = vld [vmem:[#allocation36_spill] sm:$0xff] }
  0xa8   :  { %1295 = vmatpush1.bf16.msra.mxu0 %v11849_v53  ;;  %v11862_v53 = vld [vmem:[#allocation45_spill] sm:$0xff] }
  0xa9   :  { %1370 = vmatprep.subr.bf16.mxu0 %v11850_v60  ;;  %v11858_v60 = vld [vmem:[#allocation20_spill] sm:$0xff] }
  0xaa   :  { %1338 = vmatpush1.bf16.msra.mxu1 %v11851_v61  ;;  %v11857_v61 = vld [vmem:[#allocation19_spill] sm:$0xff] }
  0xab   :  { %5673 = vmatmul.mubr.msk.bf16.vlgmr.msra.gmra.mxu0 %vm649_vm0, %v7220_v16  ;;  %1413 = vmatprep.subr.bf16.mxu1 %v11852_v1  ;;  %v11859_v1 = vld [vmem:[#allocation41_spill] sm:$0xff] }
  0xac   :  { %1371 = vmatpush1.bf16.msra.mxu0 %v11853_v58  ;;  %1398 = vmatprep.mubr.bf16.mxu0 %v11825_v63  ;;  %v11860_v58 = vld [vmem:[#allocation23_spill] sm:$0xff] }
  0xad   :  { %1372 = vmatprep.subr.bf16.mxu0 %v11854_v52  ;;  %5674 = vmatmul.mubr.msk.bf16.vlgmr.msra.gmra.mxu1 %vm649_vm0, %v7220_v16  ;;  %v11861_v52 = vld [vmem:[#allocation24_spill] sm:$0xff] }
  0xae   :  { %1414 = vmatpush1.bf16.msra.mxu1 %v11855_v56  ;;  %1441 = vmatprep.mubr.bf16.mxu1 %v11825_v63  ;;  %v11864_v56 = vld [vmem:[#allocation27_spill] sm:$0xff] }
  0xaf   :  { %1415 = vmatprep.subr.bf16.mxu1 %v11856_v57  ;;  %v11866_v57 = vld [vmem:[#allocation49_spill] sm:$0xff] }
  0xb0   :  { %1373 = vmatpush1.bf16.msra.mxu0 %v11857_v61  ;;  %v11867_v61 = vld [vmem:[#allocation50_spill] sm:$0xff] }
  0xb1   :  { %1374 = vmatprep.subr.bf16.mxu0 %v11858_v60  ;;  %v11868_v60 = vld [vmem:[#allocation32_spill] sm:$0xff] }
  0xb2   :  { %1416 = vmatpush1.bf16.msra.mxu1 %v11859_v1  ;;  %v11869_v1 = vld [vmem:[#allocation33_spill] sm:$0xff] }
  0xb3   :  { %1417 = vmatprep.subr.bf16.mxu1 %v7042_v59  ;;  %v11870_v59 = vld [vmem:[#allocation53_spill] sm:$0xff] }
  0xb4   :  { %1375 = vmatpush1.bf16.msra.mxu0 %v11860_v58 }
  0xb5   :  { %1376 = vmatprep.subr.bf16.mxu0 %v11861_v52  ;;  %v11871_v52 = vld [vmem:[#allocation35_spill] sm:$0xff] }
  0xb6   :  { %1418 = vmatpush1.bf16.msra.mxu1 %v11862_v53  ;;  %v11872_v53 = vld [vmem:[#allocation38_spill] sm:$0xff] }
  0xb7   :  { %1419 = vmatprep.subr.bf16.mxu1 %v11863_v49  ;;  %v11875_v49 = vld [vmem:[#allocation40_spill] sm:$0xff] }
  0xb8   :  { %1377 = vmatpush1.bf16.msra.mxu0 %v11864_v56 }
  0xb9   :  { %1378 = vmatprep.subr.bf16.mxu0 %v11865_v48 }
  0xba   :  { %1420 = vmatpush1.bf16.msra.mxu1 %v11866_v57  ;;  %v11873_v57 = vmov 0.0  }
  0xbb   :  { %1421 = vmatprep.subr.bf16.mxu1 %v11867_v61  ;;  %v11874_v61 = vld [vmem:[#allocation39_spill] sm:$0xff] }
  0xbc   :  { %1379 = vmatpush1.bf16.msra.mxu0 %v11868_v60 }
  0xbd   :  { %1380 = vmatprep.subr.bf16.mxu0 %v11869_v1 }
  0xbe   :  { %1422 = vmatpush1.bf16.msra.mxu1 %v11870_v59  ;;  %v11878_v59 = vld [vmem:[#allocation47_spill] sm:$0xff] }
  0xbf   :  { %1423 = vmatprep.subr.bf16.mxu1 %v7126_v47  ;;  %v11877_v47 = vld [vmem:[#allocation44_spill] sm:$0xff] }
  0xc0   :  { %1381 = vmatpush1.bf16.msra.mxu0 %v11871_v52 }
  0xc1   :  { %1456 = vmatprep.subr.bf16.mxu0 %v11872_v53 }
  0xc2   :  { %1424 = vmatpush1.bf16.msra.mxu1 %v7144_v62  ;;  %v11876_v62 = vld [vmem:[#allocation43_spill] sm:$0xff] }
  0xc3   :  { %5675 = vmatmul.mubr.msk.bf16.vlgmr.msra.gmra.mxu0 %vm649_vm0, %v7220_v16  ;;  %5876 = vmatprep.subr.bf16.mxu1 %v11873_v57 }
  0xc4   :  { %1457 = vmatpush1.bf16.msra.mxu0 %v11874_v61  ;;  %1484 = vmatprep.mubr.bf16.mxu0 %v11825_v63  ;;  %v11881_v61 = vld [vmem:[#allocation52_spill] sm:$0xff] }
  0xc5   :  { %1458 = vmatprep.subr.bf16.mxu0 %v11875_v49  ;;  %5676 = vmatmul.mubr.msk.bf16.vlgmr.msra.gmra.mxu1 %vm649_vm0, %v7220_v16  ;;  %v11879_v49 = vld [vmem:[#allocation48_spill] sm:$0xff] }
  0xc6   :  { %5877 = vmatpush3.bf16.msra.mxu1 %v7158_v55  ;;  %5888 = vmatprep.mubr.msk.bf16.mxu1 %vm6518_vm1, %v11873_v57  ;;  %v11880_v55 = vld [vmem:[#allocation51_spill] sm:$0xff] }
  0xc7   :  { %5878 = vmatprep.subr.bf16.mxu1 %v11873_v57 }
  0xc8   :  { %1459 = vmatpush1.bf16.msra.mxu0 %v11876_v62 }
  0xc9   :  { %1460 = vmatprep.subr.bf16.mxu0 %v11877_v47 }
  0xca   :  { %5879 = vmatpush3.bf16.msra.mxu1 %v7169_v54  ;;  %v11882_v54 = vld [vmem:[#allocation55_spill] sm:$0xff] }
  0xcb   :  { %5880 = vmatprep.subr.bf16.mxu1 %v11873_v57 }
  0xcc   :  { %1461 = vmatpush1.bf16.msra.mxu0 %v11878_v59 }
  0xcd   :  { %1462 = vmatprep.subr.bf16.mxu0 %v11879_v49 }
  0xce   :  { %5881 = vmatpush3.bf16.msra.mxu1 %v7183_v0  ;;  %v11883_v0 = vld [vmem:[#allocation2_spill] sm:$0xff] }
  0xcf   :  { %5882 = vmatprep.subr.bf16.mxu1 %v11873_v57 }
  0xd0   :  { %1463 = vmatpush1.bf16.msra.mxu0 %v11880_v55 }
  0xd1   :  { %1464 = vmatprep.subr.bf16.mxu0 %v11881_v61 }
  0xd2   :  { %5883 = vmatpush3.bf16.msra.mxu1 %v7192_v2  ;;  %v11884_v2 = vld [vmem:[#allocation3_spill] sm:$0xff] }
  0xd3   :  { %5884 = vmatprep.subr.bf16.mxu1 %v11873_v57 }
  0xd4   :  { %1465 = vmatpush1.bf16.msra.mxu0 %v7132_v46 }
  0xd5   :  { %1466 = vmatprep.subr.bf16.mxu0 %v11882_v54 }
  0xd6   :  { %5885 = vmatpush3.bf16.msra.mxu1 %v7201_v6 }
  0xd7   :  { %5886 = vmatprep.subr.bf16.mxu1 %v11873_v57 }
  0xd8   :  { %1467 = vmatpush1.bf16.msra.mxu0 %v7151_v51 }
  0xd9   :  { %1551 = vmatprep.subr.bf16.mxu0 %v11883_v0 }
  0xda   :  { %5887 = vmatpush3.bf16.msra.mxu1 %v7210_v10 }
  0xdb   :  { %v687_v55 = vpop.f32.mrf.mxu0  ;;  %5677 = vmatmul.mubr.msk.bf16.vlgmr.msra.gmra.mxu0 %vm649_vm0, %v7220_v16  ;;  %1594 = vmatprep.subr.bf16.mxu1 %v6565_v3  ;;  %v730_v54 = vpop.f32.mrf.mxu1 }
  0xdc   :  { %1552 = vmatpush1.bf16.msra.mxu0 %v11884_v2  ;;  %1038 = vrot.lane.b32.xlu0 %v687_v55, %s6519_s6  ;;  %v11885_v2 = vld [vmem:[#allocation4_spill] sm:$0xff] }
  0xdd   :  { %v689_v6 = vpop.f32.mrf.mxu0  ;;  %1553 = vmatprep.subr.bf16.mxu0 %v6576_v5  ;;  %5889 = vmatmul.mubr.msk.bf16.vlgmr.msra.gmra.mxu1 %vm649_vm0, %v7220_v16  ;;  %v732_v0 = vpop.f32.mrf.mxu1 }
  0xde   :  { %1042 = vrot.lane.b32.xlu1 %v689_v6, %s6519_s6  ;;  %1595 = vmatpush1.bf16.msra.mxu1 %v6570_v4  ;;  %v11886_v4 = vld [vmem:[#allocation5_spill] sm:$0xff] }
  0xdf   :  { %1596 = vmatprep.subr.bf16.mxu1 %v6587_v7  ;;  %1579 = vmatprep.mubr.bf16.mxu0 %v11825_v63  ;;  %v691_v3 = vpop.f32.mrf.mxu0  ;;  %v734_v55 = vpop.f32.mrf.mxu1  ;;  %v11887_v7 = vld [vmem:[#allocation6_spill] sm:$0xff] }
  0xe0   :  { %1554 = vmatpush1.bf16.msra.mxu0 %v11885_v2  ;;  %1046 = vrot.lane.b32.xlu0 %v730_v54, %s6519_s6  ;;  %v11912_v2 = vld [vmem:[#allocation40_spill] sm:$0xff] }
  0xe1   :  { %1555 = vmatprep.subr.bf16.mxu0 %v6600_v9  ;;  %1622 = vmatprep.mubr.bf16.mxu1 %v11825_v63  ;;  %v693_v5 = vpop.f32.mrf.mxu0  ;;  %v736_v6 = vpop.f32.mrf.mxu1 }
  0xe2   :  { %1048 = vrot.lane.b32.xlu1 %v734_v55, %s6519_s6  ;;  %1597 = vmatpush1.bf16.msra.mxu1 %v6594_v8  ;;  %v7381_v8 = vld [vmem:[%s11336_s1 + $0x10] sm:$0xff]  }
  0xe3   :  { %1598 = vmatprep.subr.bf16.mxu1 %v6611_v11 }
  0xe4   :  { %1556 = vmatpush1.bf16.msra.mxu0 %v11886_v4  ;;  %1050 = vrot.lane.b32.xlu0 %v732_v0, %s6519_s6  ;;  %v11915_v4 = vld [vmem:[#allocation45_spill] sm:$0xff] }
  0xe5   :  { %1557 = vmatprep.subr.bf16.mxu0 %v6617_v12 }
  0xe6   :  { %1044 = vrot.lane.b32.xlu1 %v693_v5, %s6519_s6  ;;  %1599 = vmatpush1.bf16.msra.mxu1 %v6623_v13  ;;  %v11916_v5 = vld [vmem:[#allocation46_spill] sm:$0xff] }
  0xe7   :  { %1600 = vmatprep.subr.bf16.mxu1 %v6629_v14 }
  0xe8   :  { %1558 = vmatpush1.bf16.msra.mxu0 %v6635_v15  ;;  %1040 = vrot.lane.b32.xlu0 %v691_v3, %s6519_s6  ;;  %v11914_v3 = vld [vmem:[#allocation42_spill] sm:$0xff] }
  0xe9   :  { %1559 = vmatprep.subr.bf16.mxu0 %v11887_v7  ;;  %v11917_v7 = vld [vmem:[#allocation49_spill] sm:$0xff] }
  0xea   :  { %1052 = vrot.lane.b32.xlu1 %v736_v6, %s6519_s6  ;;  %1601 = vmatpush1.bf16.msra.mxu1 %v6647_v17 }
  0xeb   :  { %1602 = vmatprep.subr.bf16.mxu1 %v6653_v18  ;;  %v11888_v18 = vld [vmem:[#allocation9_spill] sm:$0xff] }
  0xec   :  { %1560 = vmatpush1.bf16.msra.mxu0 %v6659_v19  ;;  %v11889_v19 = vld [vmem:[#allocation10_spill] sm:$0xff] }
  0xed   :  { %1561 = vmatprep.subr.bf16.mxu0 %v6665_v20  ;;  %v11890_v20 = vld [vmem:[#allocation11_spill] sm:$0xff] }
  0xee   :  { %1603 = vmatpush1.bf16.msra.mxu1 %v6671_v21 }
  0xef   :  { %1604 = vmatprep.subr.bf16.mxu1 %v6677_v22  ;;  %v11891_v22 = vld [vmem:[#allocation12_spill] sm:$0xff] }
  0xf0   :  { %1562 = vmatpush1.bf16.msra.mxu0 %v6683_v23  ;;  %v11892_v23 = vld [vmem:[#allocation13_spill] sm:$0xff] }
  0xf1   :  { %1637 = vmatprep.subr.bf16.mxu0 %v6694_v25 }
  0xf2   :  { %1605 = vmatpush1.bf16.msra.mxu1 %v6689_v24 }
  0xf3   :  { %v773_v9 = vpop.f32.mrf.mxu0  ;;  %5682 = vmatmul.mubr.msk.bf16.vlgmr.msra.gmra.mxu0 %vm649_vm0, %v7381_v8  ;;  %1680 = vmatprep.subr.bf16.mxu1 %v6706_v27  ;;  %v11893_v27 = vld [vmem:[#allocation14_spill] sm:$0xff] }
  0xf4   :  { %1638 = vmatpush1.bf16.msra.mxu0 %v6712_v28  ;;  %1054 = vrot.lane.b32.xlu0 %v773_v9, %s6519_s6  ;;  %v11894_v28 = vld [vmem:[#allocation15_spill] sm:$0xff] }
  0xf5   :  { %v775_v11 = vpop.f32.mrf.mxu0  ;;  %v816_v12 = vpop.f32.mrf.mxu1  ;;  %5683 = vmatmul.mubr.msk.bf16.vlgmr.msra.gmra.mxu1 %vm649_vm0, %v7381_v8  ;;  %1639 = vmatprep.subr.bf16.mxu0 %v6718_v29 }
  0xf6   :  { %1681 = vmatpush1.bf16.msra.mxu1 %v6724_v30  ;;  %1665 = vmatprep.mubr.bf16.mxu0 %v11825_v63 }
  0xf7   :  { %v777_v13 = vpop.f32.mrf.mxu0  ;;  %v818_v14 = vpop.f32.mrf.mxu1  ;;  %1682 = vmatprep.subr.bf16.mxu1 %v6732_v31  ;;  %1708 = vmatprep.mubr.bf16.mxu1 %v11825_v63  ;;  %v11895_v31 = vld [vmem:[#allocation16_spill] sm:$0xff] }
  0xf8   :  { %1640 = vmatpush1.bf16.msra.mxu0 %v6738_v32  ;;  %1062 = vrot.lane.b32.xlu0 %v816_v12, %s6519_s6  ;;  %v11896_v32 = vld [vmem:[#allocation17_spill] sm:$0xff]  ;;  %v11923_v12 = vld [vmem:[#allocation56_spill] sm:$0xff] }
  0xf9   :  { %1056 = vrot.lane.b32.xlu1 %v777_v13, %s6519_s6  ;;  %1641 = vmatprep.subr.bf16.mxu0 %v6747_v33  ;;  %v820_v15 = vpop.f32.mrf.mxu1  ;;  %v779_v16 = vpop.f32.mrf.mxu0  ;;  %v11897_v33 = vld [vmem:[#allocation18_spill] sm:$0xff] }
  0xfa   :  { %1683 = vmatpush1.bf16.msra.mxu1 %v6753_v34 }
  0xfb   :  { %1684 = vmatprep.subr.bf16.mxu1 %v6760_v35  ;;  %v822_v17 = vpop.f32.mrf.mxu1  ;;  %v11898_v35 = vld [vmem:[#allocation19_spill] sm:$0xff] }
  0xfc   :  { %1642 = vmatpush1.bf16.msra.mxu0 %v6766_v36  ;;  %1058 = vrot.lane.b32.xlu0 %v775_v11, %s6519_s6  ;;  %v11899_v36 = vld [vmem:[#allocation20_spill] sm:$0xff]  ;;  %v11920_v11 = vld [vmem:[#allocation53_spill] sm:$0xff] }
  0xfd   :  { %1064 = vrot.lane.b32.xlu1 %v820_v15, %s6519_s6  ;;  %1643 = vmatprep.subr.bf16.mxu0 %v6772_v37  ;;  %v11900_v37 = vld [vmem:[#allocation21_spill] sm:$0xff]  ;;  %v7517_v15 = vld [vmem:[%s11335_s0 + $0x2a8] ss:$68 sps:$4 sm:$0xff]  }
  0xfe   :  { %1685 = vmatpush1.bf16.msra.mxu1 %v6778_v38  ;;  %v11901_v38 = vld [vmem:[#allocation22_spill] sm:$0xff] }
  0xff   :  { %1686 = vmatprep.subr.bf16.mxu1 %v6784_v39  ;;  %v11902_v39 = vld [vmem:[#allocation24_spill] sm:$0xff] }
 0x100   :  { %1644 = vmatpush1.bf16.msra.mxu0 %v6790_v40  ;;  %1066 = vrot.lane.b32.xlu0 %v818_v14, %s6519_s6 }
 0x101   :  { %1060 = vrot.lane.b32.xlu1 %v779_v16, %s6519_s6  ;;  %1645 = vmatprep.subr.bf16.mxu0 %v6796_v41  ;;  %v11903_v41 = vld [vmem:[#allocation25_spill] sm:$0xff] }
 0x102   :  { %1687 = vmatpush1.bf16.msra.mxu1 %v6802_v42  ;;  %v11904_v42 = vld [vmem:[#allocation26_spill] sm:$0xff] }
 0x103   :  { %1688 = vmatprep.subr.bf16.mxu1 %v6808_v43 }
 0x104   :  { %1646 = vmatpush1.bf16.msra.mxu0 %v6814_v44  ;;  %v11905_v44 = vld [vmem:[#allocation29_spill] sm:$0xff] }
 0x105   :  { %1068 = vrot.lane.b32.xlu1 %v822_v17, %s6519_s6  ;;  %1647 = vmatprep.subr.bf16.mxu0 %v6820_v45  ;;  %v11906_v45 = vld [vmem:[#allocation30_spill] sm:$0xff] }
 0x106   :  { %1689 = vmatpush1.bf16.msra.mxu1 %v11845_v26  ;;  %v11911_v26 = vld [vmem:[#allocation39_spill] sm:$0xff] }
 0x107   :  { %1690 = vmatprep.subr.bf16.mxu1 %v11846_v50  ;;  %v11907_v50 = vld [vmem:[#allocation31_spill] sm:$0xff] }
 0x108   :  { %1648 = vmatpush1.bf16.msra.mxu0 %v11888_v18  ;;  %v7525_v17 = vld [vmem:[%s11335_s0 + $0x224] ss:$68 sps:$4 sm:$0xff]  }
 0x109   :  { %1723 = vmatprep.subr.bf16.mxu0 %v11889_v19  ;;  %v11925_v18 = vld [vmem:[#allocation58_spill] sm:$0xff] }
 0x10a   :  { %1691 = vmatpush1.bf16.msra.mxu1 %v11890_v20  ;;  %v7535_v20 = vld [vmem:[%s11335_s0 + $0x220] ss:$68 sps:$4 sm:$0xff]  }
 0x10b   :  { %v859_v21 = vpop.f32.mrf.mxu0  ;;  %5684 = vmatmul.mubr.msk.bf16.vlgmr.msra.gmra.mxu0 %vm649_vm0, %v7381_v8  ;;  %1766 = vmatprep.subr.bf16.mxu1 %v11891_v22  ;;  %v11926_v22 = vld [vmem:[#allocation59_spill] sm:$0xff] }
 0x10c   :  { %1724 = vmatpush1.bf16.msra.mxu0 %v11892_v23  ;;  %1070 = vrot.lane.b32.xlu0 %v859_v21, %s6519_s6  ;;  %v7541_v21 = vld [vmem:[%s11335_s0 + $0x19c] ss:$68 sps:$4 sm:$0xff]  }
 0x10d   :  { %v861_v24 = vpop.f32.mrf.mxu0  ;;  %v902_v25 = vpop.f32.mrf.mxu1  ;;  %5685 = vmatmul.mubr.msk.bf16.vlgmr.msra.gmra.mxu1 %vm649_vm0, %v7381_v8  ;;  %1725 = vmatprep.subr.bf16.mxu0 %v11893_v27  ;;  %v7549_v23 = vld [vmem:[%s11335_s0 + $0x198] ss:$68 sps:$4 sm:$0xff]   ;;  %v7563_v27 = vld [vmem:[%s11335_s0 + $0x110] ss:$68 sps:$4 sm:$0xff]  }
 0x10e   :  { %1767 = vmatpush1.bf16.msra.mxu1 %v11894_v28  ;;  %1751 = vmatprep.mubr.bf16.mxu0 %v11825_v63  ;;  %v7569_v28 = vld [vmem:[%s11335_s0 + $0x8c] ss:$68 sps:$4 sm:$0xff]  }
 0x10f   :  { %v863_v29 = vpop.f32.mrf.mxu0  ;;  %v904_v30 = vpop.f32.mrf.mxu1  ;;  %1768 = vmatprep.subr.bf16.mxu1 %v11895_v31  ;;  %1794 = vmatprep.mubr.bf16.mxu1 %v11825_v63  ;;  %v7583_v31 = vld [vmem:[%s11335_s0 + $0x4] ss:$68 sps:$4 sm:$0xff]  }
 0x110   :  { %1726 = vmatpush1.bf16.msra.mxu0 %v11896_v32  ;;  %1078 = vrot.lane.b32.xlu0 %v902_v25, %s6519_s6  ;;  %v11927_v25 = vld [vmem:[#allocation60_spill] sm:$0xff] }
 0x111   :  { %1072 = vrot.lane.b32.xlu1 %v863_v29, %s6519_s6  ;;  %1727 = vmatprep.subr.bf16.mxu0 %v11897_v33  ;;  %v906_v34 = vpop.f32.mrf.mxu1  ;;  %v865_v40 = vpop.f32.mrf.mxu0  ;;  %v11928_v29 = vld [vmem:[#allocation61_spill] sm:$0xff] }
 0x112   :  { %1769 = vmatpush1.bf16.msra.mxu1 %v11898_v35  ;;  %v7590_v32 = vld [vmem:[%s11335_s0 + $0x2b4] ss:$68 sps:$4 sm:$0xff]   ;;  %v7609_v35 = vld [vmem:[%s11335_s0 + $0x2bc] ss:$68 sps:$4 sm:$0xff]  }
 0x113   :  { %1770 = vmatprep.subr.bf16.mxu1 %v11899_v36  ;;  %v908_v43 = vpop.f32.mrf.mxu1  ;;  %v7596_v33 = vld [vmem:[%s11336_s1 + $0x18] sm:$0xff]   ;;  %v7615_v36 = vld [vmem:[%s11335_s0 + $0x2b0] ss:$68 sps:$4 sm:$0xff]  }
 0x114   :  { %1728 = vmatpush1.bf16.msra.mxu0 %v11900_v37  ;;  %1074 = vrot.lane.b32.xlu0 %v861_v24, %s6519_s6  ;;  %v7555_v24 = vld [vmem:[%s11335_s0 + $0x114] ss:$68 sps:$4 sm:$0xff]  }
 0x115   :  { %1080 = vrot.lane.b32.xlu1 %v906_v34, %s6519_s6  ;;  %1729 = vmatprep.subr.bf16.mxu0 %v11901_v38  ;;  %v7601_v34 = vld [vmem:[%s11335_s0] ss:$68 sps:$4 sm:$0xff]   ;;  %v7630_v37 = vld [vmem:[%s11335_s0 + $0x2b8] ss:$68 sps:$4 sm:$0xff]  }
 0x116   :  { %1771 = vmatpush1.bf16.msra.mxu1 %v11860_v58  ;;  %v11908_v58 = vld [vmem:[#allocation34_spill] sm:$0xff]  ;;  %v7637_v38 = vld [vmem:[%s11335_s0 + $0x234] ss:$68 sps:$4 sm:$0xff]  }
 0x117   :  { %1772 = vmatprep.subr.bf16.mxu1 %v11902_v39  ;;  %v7643_v39 = vld [vmem:[%s11335_s0 + $0x228] ss:$68 sps:$4 sm:$0xff]  }
 0x118   :  { %1730 = vmatpush1.bf16.msra.mxu0 %v11903_v41  ;;  %1082 = vrot.lane.b32.xlu0 %v904_v30, %s6519_s6  ;;  %v7577_v30 = vld [vmem:[%s11335_s0 + $0x88] ss:$68 sps:$4 sm:$0xff]   ;;  %v7655_v41 = vld [vmem:[%s11335_s0 + $0x230] ss:$68 sps:$4 sm:$0xff]  }
 0x119   :  { %1076 = vrot.lane.b32.xlu1 %v865_v40, %s6519_s6  ;;  %1731 = vmatprep.subr.bf16.mxu0 %v11904_v42  ;;  %v7649_v40 = vld [vmem:[%s11335_s0 + $0x1a4] ss:$68 sps:$4 sm:$0xff]   ;;  %v7661_v42 = vld [vmem:[%s11335_s0 + $0x1ac] ss:$68 sps:$4 sm:$0xff]  }
 0x11a   :  { %1773 = vmatpush1.bf16.msra.mxu1 %v11864_v56 }
 0x11b   :  { %1774 = vmatprep.subr.bf16.mxu1 %v11865_v48  ;;  %v11909_v48 = vld [vmem:[#allocation36_spill] sm:$0xff] }
 0x11c   :  { %1732 = vmatpush1.bf16.msra.mxu0 %v11905_v44  ;;  %v7673_v44 = vld [vmem:[%s11335_s0 + $0x11c] ss:$68 sps:$4 sm:$0xff]  }
 0x11d   :  { %1084 = vrot.lane.b32.xlu1 %v908_v43, %s6519_s6  ;;  %1733 = vmatprep.subr.bf16.mxu0 %v11906_v45  ;;  %v7667_v43 = vld [vmem:[%s11335_s0 + $0x1a0] ss:$68 sps:$4 sm:$0xff]   ;;  %v7679_v45 = vld [vmem:[%s11335_s0 + $0x1a8] ss:$68 sps:$4 sm:$0xff]  }
 0x11e   :  { %1775 = vmatpush1.bf16.msra.mxu1 %v11868_v60 }
 0x11f   :  { %1776 = vmatprep.subr.bf16.mxu1 %v11869_v1  ;;  %v11910_v1 = vld [vmem:[#allocation37_spill] sm:$0xff] }
 0x120   :  { %1734 = vmatpush1.bf16.msra.mxu0 %v11907_v50  ;;  %v7685_v50 = vld [vmem:[%s11335_s0 + $0x124] ss:$68 sps:$4 sm:$0xff]  }
 0x121   :  { %1809 = vmatprep.subr.bf16.mxu0 %v11908_v58  ;;  %v7691_v58 = vld [vmem:[%s11335_s0 + $0x118] ss:$68 sps:$4 sm:$0xff]  }
 0x122   :  { %1777 = vmatpush1.bf16.msra.mxu1 %v11871_v52 }
 0x123   :  { %v945_v56 = vpop.f32.mrf.mxu0  ;;  %5686 = vmatmul.mubr.msk.bf16.vlgmr.msra.gmra.mxu0 %vm649_vm0, %v7381_v8  ;;  %1852 = vmatprep.subr.bf16.mxu1 %v11872_v53  ;;  %v11913_v53 = vld [vmem:[#allocation41_spill] sm:$0xff] }
 0x124   :  { %1810 = vmatpush1.bf16.msra.mxu0 %v11909_v48  ;;  %1086 = vrot.lane.b32.xlu0 %v945_v56, %s6519_s6  ;;  %v7697_v56 = vld [vmem:[%s11335_s0 + $0x94] ss:$68 sps:$4 sm:$0xff]   ;;  %v7703_v48 = vld [vmem:[%s11335_s0 + $0x120] ss:$68 sps:$4 sm:$0xff]  }
 0x125   :  { %v947_v54 = vpop.f32.mrf.mxu0  ;;  %v988_v60 = vpop.f32.mrf.mxu1  ;;  %5687 = vmatmul.mubr.msk.bf16.vlgmr.msra.gmra.mxu1 %vm649_vm0, %v7381_v8  ;;  %1811 = vmatprep.subr.bf16.mxu0 %v11910_v1 }
 0x126   :  { %1853 = vmatpush1.bf16.msra.mxu1 %v11911_v26  ;;  %1837 = vmatprep.mubr.bf16.mxu0 %v11825_v63  ;;  %v7723_v26 = vld [vmem:[%s11335_s0 + $0xc] ss:$68 sps:$4 sm:$0xff]  }
 0x127   :  { %v949_v52 = vpop.f32.mrf.mxu0  ;;  %v990_v0 = vpop.f32.mrf.mxu1  ;;  %1854 = vmatprep.subr.bf16.mxu1 %v11912_v2  ;;  %1880 = vmatprep.mubr.bf16.mxu1 %v11825_v63  ;;  %v7741_v2 = vld [vmem:[%s11335_s0 + $0x8] ss:$68 sps:$4 sm:$0xff]  }
 0x128   :  { %1812 = vmatpush1.bf16.msra.mxu0 %v11913_v53  ;;  %1094 = vrot.lane.b32.xlu0 %v988_v60, %s6519_s6  ;;  %v7715_v60 = vld [vmem:[%s11335_s0 + $0x90] ss:$68 sps:$4 sm:$0xff]  }
 0x129   :  { %1088 = vrot.lane.b32.xlu1 %v949_v52, %s6519_s6  ;;  %1813 = vmatprep.subr.bf16.mxu0 %v11914_v3  ;;  %v992_v55 = vpop.f32.mrf.mxu1  ;;  %v951_v6 = vpop.f32.mrf.mxu0  ;;  %v7729_v52 = vld [vmem:[%s11335_s0 + $0x98] ss:$68 sps:$4 sm:$0xff]  }
 0x12a   :  { %1855 = vmatpush1.bf16.msra.mxu1 %v11876_v62  ;;  %v11918_v62 = vld [vmem:[#allocation50_spill] sm:$0xff]  ;;  %11931 = vst [vmem:[#allocation23_spill] sm:$0xff] %v7729_v52 }
 0x12b   :  { %1856 = vmatprep.subr.bf16.mxu1 %v11877_v47  ;;  %v11919_v47 = vld [vmem:[#allocation51_spill] sm:$0xff]  ;;  %v994_v9 = vpop.f32.mrf.mxu1 }
 0x12c   :  { %1814 = vmatpush1.bf16.msra.mxu0 %v11915_v4  ;;  %1090 = vrot.lane.b32.xlu0 %v947_v54, %s6519_s6  ;;  %v7709_v54 = vld [vmem:[%s11335_s0 + $0x9c] ss:$68 sps:$4 sm:$0xff]  }
 0x12d   :  { %1096 = vrot.lane.b32.xlu1 %v992_v55, %s6519_s6  ;;  %1815 = vmatprep.subr.bf16.mxu0 %v11916_v5  ;;  %11929 = vst [vmem:[#allocation7_spill] sm:$0xff] %v7709_v54 }
 0x12e   :  { %1857 = vmatpush1.bf16.msra.mxu1 %v11878_v59  ;;  %v11921_v59 = vld [vmem:[#allocation54_spill] sm:$0xff] }
 0x12f   :  { %1858 = vmatprep.subr.bf16.mxu1 %v11879_v49  ;;  %v11922_v49 = vld [vmem:[#allocation55_spill] sm:$0xff] }
 0x130   :  { %1816 = vmatpush1.bf16.msra.mxu0 %v11917_v7  ;;  %1098 = vrot.lane.b32.xlu0 %v990_v0, %s6519_s6  ;;  %v7735_v0 = vld [vmem:[%s11335_s0 + $0x14] ss:$68 sps:$4 sm:$0xff]  }
 0x131   :  { %1092 = vrot.lane.b32.xlu1 %v951_v6, %s6519_s6  ;;  %1817 = vmatprep.subr.bf16.mxu0 %v11918_v62  ;;  %11932 = vst [vmem:[#allocation27_spill] sm:$0xff] %v7735_v0  ;;  %v7749_v6 = vld [vmem:[%s11335_s0 + $0x2c4] ss:$68 sps:$4 sm:$0xff]  }
 0x132   :  { %1859 = vmatpush1.bf16.msra.mxu1 %v11919_v47  ;;  %v7755_v47 = vld [vmem:[%s11335_s0 + $0x10] ss:$68 sps:$4 sm:$0xff]  }
 0x133   :  { %1860 = vmatprep.subr.bf16.mxu1 %v11881_v61  ;;  %v7506_v61 = vld [vmem:[%s11335_s0 + $0x2ac] ss:$68 sps:$4 sm:$0xff]   ;;  %11934 = vst [vmem:[#allocation32_spill] sm:$0xff] %v7755_v47 }
 0x134   :  { %1818 = vmatpush1.bf16.msra.mxu0 %v11920_v11 }
 0x135   :  { %1100 = vrot.lane.b32.xlu1 %v994_v9, %s6519_s6  ;;  %1819 = vmatprep.subr.bf16.mxu0 %v11921_v59  ;;  %v7763_v9 = vld [vmem:[%s11335_s0 + $0x2cc] ss:$68 sps:$4 sm:$0xff]  }
 0x136   :  { %1861 = vmatpush1.bf16.msra.mxu1 %v7132_v46  ;;  %v11924_v46 = vld [vmem:[#allocation57_spill] sm:$0xff]  ;;  %11935 = vst [vmem:[#allocation33_spill] sm:$0xff] %v7763_v9 }
 0x137   :  { %1862 = vmatprep.subr.bf16.mxu1 %v11922_v49  ;;  %v7769_v49 = vld [vmem:[%s11335_s0 + $0x2c0] ss:$68 sps:$4 sm:$0xff]  }
 0x138   :  { %1820 = vmatpush1.bf16.msra.mxu0 %v11923_v12  ;;  %11936 = vst [vmem:[#allocation35_spill] sm:$0xff] %v7769_v49 }
 0x139   :  { %5892 = vmatprep.subr.bf16.mxu0 %v11873_v57 }
 0x13a   :  { %1863 = vmatpush1.bf16.msra.mxu1 %v7151_v51 }
 0x13b   :  { %v1031_v13 = vpop.f32.mrf.mxu0  ;;  %5688 = vmatmul.mubr.msk.bf16.vlgmr.msra.gmra.mxu0 %vm649_vm0, %v7381_v8  ;;  %2084 = vmatprep.subr.bf16.mxu1 %v7506_v61 }
 0x13c   :  { %5893 = vmatpush3.bf16.msra.mxu0 %v11924_v46  ;;  %1102 = vrot.lane.b32.xlu0 %v1031_v13, %s6519_s6 }
 0x13d   :  { %v5874_v14 = vpop.f32.mrf.mxu0  ;;  %5689 = vmatmul.mubr.msk.bf16.vlgmr.msra.gmra.mxu1 %vm649_vm0, %v7381_v8  ;;  %5894 = vmatprep.subr.bf16.mxu0 %v11873_v57  ;;  %v7718_v1 = vpop.f32.mrf.mxu1 }
 0x13e   :  { %2085 = vmatpush1.bf16.msra.mxu1 %v7517_v15  ;;  %5904 = vmatprep.mubr.msk.bf16.mxu0 %vm6518_vm1, %v11873_v57  ;;  %11930 = vst [vmem:[#allocation8_spill] sm:$0xff] %v7718_v1  ;;  %v7780_v14 = vld [vmem:[%s11335_s0 + $0x23c] ss:$68 sps:$4 sm:$0xff]   ;;  %v7807_v1 = vld [vmem:[%s11335_s0 + $0x1b4] ss:$68 sps:$4 sm:$0xff]  }
 0x13f   :  { %v1034_v16 = vpop.f32.mrf.mxu0  ;;  %2086 = vmatprep.subr.bf16.mxu1 %v7525_v17  ;;  %2112 = vmatprep.mubr.bf16.mxu1 %v11825_v63  ;;  %v7744_v55 = vpop.f32.mrf.mxu1  ;;  %11938 = vst [vmem:[#allocation43_spill] sm:$0xff] %v7780_v14  ;;  %11943 = vst [vmem:[#allocation2_spill] sm:$0xff] %v7807_v1 }
 0x140   :  { %5895 = vmatpush3.bf16.msra.mxu0 %v11925_v18  ;;  %1104 = vrot.lane.b32.xlu1 %v1034_v16, %s6519_s6  ;;  %11933 = vst [vmem:[#allocation28_spill] sm:$0xff] %v7744_v55  ;;  %v7786_v16 = vld [vmem:[%s11335_s0 + $0x2c8] ss:$68 sps:$4 sm:$0xff]  }
 0x141   :  { %v5875_v19 = vpop.f32.mrf.mxu0  ;;  %5896 = vmatprep.subr.bf16.mxu0 %v11873_v57  ;;  %v7773_v13 = vpop.f32.mrf.mxu1  ;;  %11939 = vst [vmem:[#allocation44_spill] sm:$0xff] %v7786_v16 }
 0x142   :  { %2087 = vmatpush1.bf16.msra.mxu1 %v7535_v20  ;;  %11937 = vst [vmem:[#allocation38_spill] sm:$0xff] %v7773_v13  ;;  %v7793_v19 = vld [vmem:[%s11335_s0 + $0x244] ss:$68 sps:$4 sm:$0xff]   ;;  %v7799_v13 = vld [vmem:[%s11335_s0 + $0x238] ss:$68 sps:$4 sm:$0xff]  }
 0x143   :  { %2088 = vmatprep.subr.bf16.mxu1 %v7541_v21  ;;  %11940 = vst [vmem:[#allocation47_spill] sm:$0xff] %v7793_v19  ;;  %11941 = vst [vmem:[#allocation48_spill] sm:$0xff] %v7799_v13  ;;  %v7802_v55 = vpop.f32.mrf.mxu1 }
 0x144   :  { %5897 = vmatpush3.bf16.msra.mxu0 %v11926_v22  ;;  %11942 = vst [vmem:[#allocation52_spill] sm:$0xff] %v7802_v55  ;;  %v7821_v55 = vld [vmem:[%s11335_s0 + $0x1bc] ss:$68 sps:$4 sm:$0xff]  }
 0x145   :  { %5898 = vmatprep.subr.bf16.mxu0 %v11873_v57  ;;  %11946 = vst [vmem:[#allocation5_spill] sm:$0xff] %v7821_v55 }
 0x146   :  { %2089 = vmatpush1.bf16.msra.mxu1 %v7549_v23 }
 0x147   :  { %2090 = vmatprep.subr.bf16.mxu1 %v7555_v24 }
 0x148   :  { %5899 = vmatpush3.bf16.msra.mxu0 %v11927_v25 }
 0x149   :  { %5900 = vmatprep.subr.bf16.mxu0 %v11873_v57 }
 0x14a   :  { %2091 = vmatpush1.bf16.msra.mxu1 %v7563_v27 }
 0x14b   :  { %2092 = vmatprep.subr.bf16.mxu1 %v7569_v28 }
 0x14c   :  { %5901 = vmatpush3.bf16.msra.mxu0 %v11928_v29 }
 0x14d   :  { %5902 = vmatprep.subr.bf16.mxu0 %v11873_v57 }
 0x14e   :  { %2093 = vmatpush1.bf16.msra.mxu1 %v7577_v30 }
 0x14f   :  { %2094 = vmatprep.subr.bf16.mxu1 %v7583_v31 }
 0x150   :  { %5903 = vmatpush3.bf16.msra.mxu0 %v7210_v10 }
 0x151   :  { %2127 = vmatprep.subr.bf16.mxu0 %v7590_v32 }
 0x152   :  { %2095 = vmatpush1.bf16.msra.mxu1 %v7601_v34 }
 0x153   :  { %5905 = vmatmul.mubr.msk.bf16.vlgmr.msra.gmra.mxu0 %vm649_vm0, %v7381_v8  ;;  %2170 = vmatprep.subr.bf16.mxu1 %v7609_v35  ;;  %v7624_v8 = vld [vmem:[%s11335_s0 + $0x22c] ss:$68 sps:$4 sm:$0xff]  }
 0x154   :  { %2128 = vmatpush1.bf16.msra.mxu0 %v7615_v36  ;;  %2155 = vmatprep.mubr.bf16.mxu0 %v11825_v63 }
 0x155   :  { %5694 = vmatmul.mubr.msk.bf16.vlgmr.msra.gmra.mxu1 %vm649_vm0, %v7596_v33  ;;  %2129 = vmatprep.subr.bf16.mxu0 %v7624_v8 }
 0x156   :  { %2171 = vmatpush1.bf16.msra.mxu1 %v7630_v37  ;;  %2198 = vmatprep.mubr.bf16.mxu1 %v11825_v63 }
 0x157   :  { %2172 = vmatprep.subr.bf16.mxu1 %v7637_v38 }
 0x158   :  { %2130 = vmatpush1.bf16.msra.mxu0 %v7643_v39 }
 0x159   :  { %2131 = vmatprep.subr.bf16.mxu0 %v7649_v40 }
 0x15a   :  { %2173 = vmatpush1.bf16.msra.mxu1 %v7655_v41 }
 0x15b   :  { %2174 = vmatprep.subr.bf16.mxu1 %v7661_v42 }
 0x15c   :  { %2132 = vmatpush1.bf16.msra.mxu0 %v7667_v43 }
 0x15d   :  { %2133 = vmatprep.subr.bf16.mxu0 %v7673_v44 }
 0x15e   :  { %2175 = vmatpush1.bf16.msra.mxu1 %v7679_v45 }
 0x15f   :  { %2176 = vmatprep.subr.bf16.mxu1 %v7685_v50 }
 0x160   :  { %2134 = vmatpush1.bf16.msra.mxu0 %v7691_v58 }
 0x161   :  { %2135 = vmatprep.subr.bf16.mxu0 %v7697_v56 }
 0x162   :  { %2177 = vmatpush1.bf16.msra.mxu1 %v7703_v48 }
 0x163   :  { %2178 = vmatprep.subr.bf16.mxu1 %v7709_v54 }
 0x164   :  { %2136 = vmatpush1.bf16.msra.mxu0 %v7715_v60 }
 0x165   :  { %2137 = vmatprep.subr.bf16.mxu0 %v7723_v26 }
 0x166   :  { %2179 = vmatpush1.bf16.msra.mxu1 %v7729_v52 }
 0x167   :  { %2180 = vmatprep.subr.bf16.mxu1 %v7735_v0  ;;  %v7853_v0 = vld [vmem:[%s11335_s0 + $0x128] ss:$68 sps:$4 sm:$0xff]  }
 0x168   :  { %2138 = vmatpush1.bf16.msra.mxu0 %v7741_v2  ;;  %11952 = vst [vmem:[#allocation13_spill] sm:$0xff] %v7853_v0 }
 0x169   :  { %2213 = vmatprep.subr.bf16.mxu0 %v7749_v6 }
 0x16a   :  { %2181 = vmatpush1.bf16.msra.mxu1 %v7755_v47  ;;  %v7847_v47 = vld [vmem:[%s11335_s0 + $0x134] ss:$68 sps:$4 sm:$0xff]  }
 0x16b   :  { %5695 = vmatmul.mubr.msk.bf16.vlgmr.msra.gmra.mxu0 %vm649_vm0, %v7596_v33  ;;  %2256 = vmatprep.subr.bf16.mxu1 %v7763_v9  ;;  %v7827_v9 = vld [vmem:[%s11335_s0 + $0x1b0] ss:$68 sps:$4 sm:$0xff]   ;;  %11951 = vst [vmem:[#allocation12_spill] sm:$0xff] %v7847_v47 }
 0x16c   :  { %2214 = vmatpush1.bf16.msra.mxu0 %v7769_v49  ;;  %2241 = vmatprep.mubr.bf16.mxu0 %v11825_v63  ;;  %11947 = vst [vmem:[#allocation6_spill] sm:$0xff] %v7827_v9 }
 0x16d   :  { %5696 = vmatmul.mubr.msk.bf16.vlgmr.msra.gmra.mxu1 %vm649_vm0, %v7596_v33  ;;  %2215 = vmatprep.subr.bf16.mxu0 %v7780_v14 }
 0x16e   :  { %2257 = vmatpush1.bf16.msra.mxu1 %v7786_v16  ;;  %2284 = vmatprep.mubr.bf16.mxu1 %v11825_v63  ;;  %v7816_v16 = vpop.f32.mrf.mxu1 }
 0x16f   :  { %2258 = vmatprep.subr.bf16.mxu1 %v7793_v19  ;;  %v7813_v19 = vld [vmem:[%s11335_s0 + $0x240] ss:$68 sps:$4 sm:$0xff]   ;;  %11945 = vst [vmem:[#allocation4_spill] sm:$0xff] %v7816_v16  ;;  %v7839_v16 = vld [vmem:[%s11335_s0 + $0x1b8] ss:$68 sps:$4 sm:$0xff]  }
 0x170   :  { %2216 = vmatpush1.bf16.msra.mxu0 %v7799_v13  ;;  %11944 = vst [vmem:[#allocation3_spill] sm:$0xff] %v7813_v19  ;;  %11949 = vst [vmem:[#allocation10_spill] sm:$0xff] %v7839_v16 }
 0x171   :  { %2217 = vmatprep.subr.bf16.mxu0 %v7807_v1 }
 0x172   :  { %2259 = vmatpush1.bf16.msra.mxu1 %v7813_v19  ;;  %v7833_v19 = vld [vmem:[%s11335_s0 + $0x12c] ss:$68 sps:$4 sm:$0xff]  }
 0x173   :  { %2260 = vmatprep.subr.bf16.mxu1 %v7821_v55  ;;  %11948 = vst [vmem:[#allocation9_spill] sm:$0xff] %v7833_v19  ;;  %v7842_v55 = vpop.f32.mrf.mxu1 }
 0x174   :  { %2218 = vmatpush1.bf16.msra.mxu0 %v7827_v9  ;;  %11950 = vst [vmem:[#allocation11_spill] sm:$0xff] %v7842_v55  ;;  %v7865_v55 = vld [vmem:[%s11335_s0 + $0x130] ss:$68 sps:$4 sm:$0xff]  }
 0x175   :  { %2219 = vmatprep.subr.bf16.mxu0 %v7833_v19  ;;  %11954 = vst [vmem:[#allocation15_spill] sm:$0xff] %v7865_v55  ;;  %v7870_v52 = vpop.f32.mrf.mxu1 }
 0x176   :  { %2261 = vmatpush1.bf16.msra.mxu1 %v7839_v16  ;;  %v7859_v16 = vld [vmem:[%s11335_s0 + $0xa4] ss:$68 sps:$4 sm:$0xff]   ;;  %11956 = vst [vmem:[#allocation17_spill] sm:$0xff] %v7870_v52 }
 0x177   :  { %2262 = vmatprep.subr.bf16.mxu1 %v7847_v47  ;;  %11953 = vst [vmem:[#allocation14_spill] sm:$0xff] %v7859_v16  ;;  %v7868_v47 = vpop.f32.mrf.mxu0  ;;  %v7893_v52 = vld [vmem:[%s11335_s0 + $0xa8] ss:$68 sps:$4 sm:$0xff]  }
 0x178   :  { %2220 = vmatpush1.bf16.msra.mxu0 %v7853_v0  ;;  %11955 = vst [vmem:[#allocation16_spill] sm:$0xff] %v7868_v47  ;;  %v7875_v0 = vld [vmem:[%s11335_s0 + $0xac] ss:$68 sps:$4 sm:$0xff]   ;;  %v7887_v47 = vld [vmem:[%s11335_s0 + $0x1c] ss:$68 sps:$4 sm:$0xff]   ;;  %11960 = vst [vmem:[#allocation21_spill] sm:$0xff] %v7893_v52 }
 0x179   :  { %2221 = vmatprep.subr.bf16.mxu0 %v7859_v16  ;;  %11957 = vst [vmem:[#allocation18_spill] sm:$0xff] %v7875_v0  ;;  %v7881_v16 = vld [vmem:[%s11335_s0 + $0xa0] ss:$68 sps:$4 sm:$0xff]   ;;  %11959 = vst [vmem:[#allocation20_spill] sm:$0xff] %v7887_v47 }
 0x17a   :  { %2263 = vmatpush1.bf16.msra.mxu1 %v7865_v55  ;;  %11958 = vst [vmem:[#allocation19_spill] sm:$0xff] %v7881_v16  ;;  %v7898_v55 = vpop.f32.mrf.mxu1 }
 0x17b   :  { %2264 = vmatprep.subr.bf16.mxu1 %v7875_v0  ;;  %v7896_v0 = vpop.f32.mrf.mxu0  ;;  %11962 = vst [vmem:[#allocation24_spill] sm:$0xff] %v7898_v55  ;;  %v7917_v55 = vld [vmem:[%s11335_s0 + $0x2d4] ss:$68 sps:$4 sm:$0xff]  }
 0x17c   :  { %2222 = vmatpush1.bf16.msra.mxu0 %v7881_v16  ;;  %11961 = vst [vmem:[#allocation22_spill] sm:$0xff] %v7896_v0  ;;  %v7903_v16 = vld [vmem:[%s11335_s0 + $0x24] ss:$68 sps:$4 sm:$0xff]   ;;  %v7912_v54 = vpop.f32.mrf.mxu1  ;;  %11966 = vst [vmem:[#allocation30_spill] sm:$0xff] %v7917_v55 }
 0x17d   :  { %2223 = vmatprep.subr.bf16.mxu0 %v7887_v47  ;;  %11963 = vst [vmem:[#allocation25_spill] sm:$0xff] %v7903_v16  ;;  %v7909_v47 = vld [vmem:[%s11335_s0 + $0x18] ss:$68 sps:$4 sm:$0xff]   ;;  %11965 = vst [vmem:[#allocation29_spill] sm:$0xff] %v7912_v54  ;;  %v7923_v0 = vld [vmem:[%s11335_s0 + $0x20] ss:$68 sps:$4 sm:$0xff]  }
 0x17e   :  { %2265 = vmatpush1.bf16.msra.mxu1 %v7893_v52  ;;  %11964 = vst [vmem:[#allocation26_spill] sm:$0xff] %v7909_v47  ;;  %11967 = vst [vmem:[#allocation31_spill] sm:$0xff] %v7923_v0  ;;  %v7933_v54 = vld [vmem:[%s11335_s0 + $0x2dc] ss:$68 sps:$4 sm:$0xff]   ;;  %v7939_v52 = vld [vmem:[%s11335_s0 + $0x2d0] ss:$68 sps:$4 sm:$0xff]  }
 0x17f   :  { %2266 = vmatprep.subr.bf16.mxu1 %v7903_v16  ;;  %v7926_v16 = vpop.f32.mrf.mxu0  ;;  %11969 = vst [vmem:[#allocation36_spill] sm:$0xff] %v7933_v54  ;;  %11970 = vst [vmem:[#allocation37_spill] sm:$0xff] %v7939_v52 }
 0x180   :  { %2224 = vmatpush1.bf16.msra.mxu0 %v7909_v47  ;;  %11968 = vst [vmem:[#allocation34_spill] sm:$0xff] %v7926_v16  ;;  %v7943_v16 = vpop.f32.mrf.mxu1 }
 0x181   :  { %2299 = vmatprep.subr.bf16.mxu0 %v7917_v55  ;;  %11971 = vst [vmem:[#allocation39_spill] sm:$0xff] %v7943_v16  ;;  %v7960_v16 = vpop.f32.mrf.mxu0 }
 0x182   :  { %2267 = vmatpush1.bf16.msra.mxu1 %v7923_v0  ;;  %v7950_v0 = vld [vmem:[%s11335_s0 + $0x24c] ss:$68 sps:$4 sm:$0xff]   ;;  %11974 = vst [vmem:[#allocation42_spill] sm:$0xff] %v7960_v16  ;;  %v7981_v16 = vld [vmem:[%s11335_s0 + $0x1c4] ss:$68 sps:$4 sm:$0xff]  }
 0x183   :  { %5697 = vmatmul.mubr.msk.bf16.vlgmr.msra.gmra.mxu0 %vm649_vm0, %v7596_v33  ;;  %2342 = vmatprep.subr.bf16.mxu1 %v7933_v54  ;;  %11972 = vst [vmem:[#allocation40_spill] sm:$0xff] %v7950_v0  ;;  %v7956_v54 = vld [vmem:[%s11335_s0 + $0x2d8] ss:$68 sps:$4 sm:$0xff]   ;;  %v7974_v55 = vpop.f32.mrf.mxu0  ;;  %11979 = vst [vmem:[#allocation51_spill] sm:$0xff] %v7981_v16 }
 0x184   :  { %2300 = vmatpush1.bf16.msra.mxu0 %v7939_v52  ;;  %2327 = vmatprep.mubr.bf16.mxu0 %v11825_v63  ;;  %11973 = vst [vmem:[#allocation41_spill] sm:$0xff] %v7956_v54  ;;  %v7965_v52 = vld [vmem:[%s11335_s0 + $0x254] ss:$68 sps:$4 sm:$0xff]   ;;  %11977 = vst [vmem:[#allocation49_spill] sm:$0xff] %v7974_v55 }
 0x185   :  { %5698 = vmatmul.mubr.msk.bf16.vlgmr.msra.gmra.mxu1 %vm649_vm0, %v7596_v33  ;;  %2301 = vmatprep.subr.bf16.mxu0 %v7950_v0  ;;  %11975 = vst [vmem:[#allocation45_spill] sm:$0xff] %v7965_v52  ;;  %v7971_v0 = vld [vmem:[%s11335_s0 + $0x248] ss:$68 sps:$4 sm:$0xff]   ;;  %v7992_v55 = vpop.f32.mrf.mxu0 }
 0x186   :  { %2343 = vmatpush1.bf16.msra.mxu1 %v7956_v54  ;;  %2370 = vmatprep.mubr.bf16.mxu1 %v11825_v63  ;;  %11976 = vst [vmem:[#allocation46_spill] sm:$0xff] %v7971_v0  ;;  %v7976_v54 = vpop.f32.mrf.mxu1  ;;  %11981 = vst [vmem:[#allocation54_spill] sm:$0xff] %v7992_v55  ;;  %v8017_v55 = vld [vmem:[%s11335_s0 + $0xb4] ss:$68 sps:$4 sm:$0xff]  }
 0x187   :  { %2344 = vmatprep.subr.bf16.mxu1 %v7965_v52  ;;  %11978 = vst [vmem:[#allocation50_spill] sm:$0xff] %v7976_v54  ;;  %v7989_v52 = vld [vmem:[%s11335_s0 + $0x1c0] ss:$68 sps:$4 sm:$0xff]   ;;  %11987 = vst [vmem:[#allocation60_spill] sm:$0xff] %v8017_v55 }
 0x188   :  { %2302 = vmatpush1.bf16.msra.mxu0 %v7971_v0  ;;  %11980 = vst [vmem:[#allocation53_spill] sm:$0xff] %v7989_v52  ;;  %v7994_v54 = vpop.f32.mrf.mxu1  ;;  %v7999_v0 = vld [vmem:[%s11335_s0 + $0x13c] ss:$68 sps:$4 sm:$0xff]  }
 0x189   :  { %2303 = vmatprep.subr.bf16.mxu0 %v7981_v16  ;;  %11982 = vst [vmem:[#allocation55_spill] sm:$0xff] %v7994_v54  ;;  %11983 = vst [vmem:[#allocation56_spill] sm:$0xff] %v7999_v0  ;;  %v8012_v54 = vpop.f32.mrf.mxu0 }
 0x18a   :  { %2345 = vmatpush1.bf16.msra.mxu1 %v11913_v53  ;;  %v8003_v53 = vpop.f32.mrf.mxu1  ;;  %11986 = vst [vmem:[#allocation59_spill] sm:$0xff] %v8012_v54  ;;  %v8035_v54 = vld [vmem:[%s11335_s0 + $0x2c] ss:$68 sps:$4 sm:$0xff]  }
 0x18b   :  { %2346 = vmatprep.subr.bf16.mxu1 %v11914_v3  ;;  %11984 = vst [vmem:[#allocation57_spill] sm:$0xff] %v8003_v53  ;;  %v8009_v3 = vld [vmem:[%s11335_s0 + $0x138] ss:$68 sps:$4 sm:$0xff]   ;;  %v8030_v53 = vpop.f32.mrf.mxu0  ;;  %11991 = vst [vmem:[#allocation64_spill] sm:$0xff] %v8035_v54 }
 0x18c   :  { %2304 = vmatpush1.bf16.msra.mxu0 %v7989_v52  ;;  %11985 = vst [vmem:[#allocation58_spill] sm:$0xff] %v8009_v3  ;;  %11990 = vst [vmem:[#allocation63_spill] sm:$0xff] %v8030_v53  ;;  %v8053_v53 = vld [vmem:[%s11335_s0 + $0x2e4] ss:$68 sps:$4 sm:$0xff]  }
 0x18d   :  { %2305 = vmatprep.subr.bf16.mxu0 %v7999_v0  ;;  %11995 = vst [vmem:[#allocation68_spill] sm:$0xff] %v8053_v53 }
 0x18e   :  { %2347 = vmatpush1.bf16.msra.mxu1 %v11915_v4  ;;  %v8021_v4 = vpop.f32.mrf.mxu1 }
 0x18f   :  { %2348 = vmatprep.subr.bf16.mxu1 %v11916_v5  ;;  %11988 = vst [vmem:[#allocation61_spill] sm:$0xff] %v8021_v4  ;;  %v8027_v5 = vld [vmem:[%s11335_s0 + $0xb0] ss:$68 sps:$4 sm:$0xff]   ;;  %v8047_v4 = vld [vmem:[%s11335_s0 + $0x28] ss:$68 sps:$4 sm:$0xff]  }
 0x190   :  { %2306 = vmatpush1.bf16.msra.mxu0 %v8009_v3  ;;  %11989 = vst [vmem:[#allocation62_spill] sm:$0xff] %v8027_v5  ;;  %11994 = vst [vmem:[#allocation67_spill] sm:$0xff] %v8047_v4 }
 0x191   :  { %2307 = vmatprep.subr.bf16.mxu0 %v8017_v55 }
 0x192   :  { %2349 = vmatpush1.bf16.msra.mxu1 %v11917_v7  ;;  %v8039_v7 = vpop.f32.mrf.mxu0 }
 0x193   :  { %2350 = vmatprep.subr.bf16.mxu1 %v11918_v62  ;;  %11992 = vst [vmem:[#allocation65_spill] sm:$0xff] %v8039_v7  ;;  %v8041_v62 = vpop.f32.mrf.mxu1  ;;  %v8090_v7 = vld [vmem:[%s11335_s0 + $0x258] ss:$68 sps:$4 sm:$0xff]  }
 0x194   :  { %2308 = vmatpush1.bf16.msra.mxu0 %v8027_v5  ;;  %11993 = vst [vmem:[#allocation66_spill] sm:$0xff] %v8041_v62  ;;  %12002 = vst [vmem:[#allocation75_spill] sm:$0xff] %v8090_v7 }
 0x195   :  { %2309 = vmatprep.subr.bf16.mxu0 %v8035_v54  ;;  %v8059_v62 = vpop.f32.mrf.mxu1 }
 0x196   :  { %2351 = vmatpush1.bf16.msra.mxu1 %v11920_v11  ;;  %v8057_v11 = vpop.f32.mrf.mxu0  ;;  %11997 = vst [vmem:[#allocation70_spill] sm:$0xff] %v8059_v62 }
 0x197   :  { %2352 = vmatprep.subr.bf16.mxu1 %v11921_v59  ;;  %11996 = vst [vmem:[#allocation69_spill] sm:$0xff] %v8057_v11  ;;  %v8067_v59 = vld [vmem:[%s11335_s0 + $0x2e0] ss:$68 sps:$4 sm:$0xff]  }
 0x198   :  { %2310 = vmatpush1.bf16.msra.mxu0 %v8047_v4  ;;  %11998 = vst [vmem:[#allocation71_spill] sm:$0xff] %v8067_v59  ;;  %v8084_v11 = vpop.f32.mrf.mxu0 }
 0x199   :  { %2385 = vmatprep.subr.bf16.mxu0 %v8053_v53  ;;  %12001 = vst [vmem:[#allocation74_spill] sm:$0xff] %v8084_v11 }
 0x19a   :  { %2353 = vmatpush1.bf16.msra.mxu1 %v11923_v12  ;;  %v8076_v12 = vld [vmem:[%s11335_s0 + $0x25c] ss:$68 sps:$4 sm:$0xff]   ;;  %v8102_v11 = vpop.f32.mrf.mxu0 }
 0x19b   :  { %5699 = vmatmul.mubr.msk.bf16.vlgmr.msra.gmra.mxu0 %vm649_vm0, %v7596_v33  ;;  %5908 = vmatprep.subr.bf16.mxu1 %v11873_v57  ;;  %11999 = vst [vmem:[#allocation72_spill] sm:$0xff] %v8076_v12  ;;  %12005 = vst [vmem:[#allocation78_spill] sm:$0xff] %v8102_v11  ;;  %v8124_v11 = vld [vmem:[%s11335_s0 + $0x148] ss:$68 sps:$4 sm:$0xff]  }
 0x19c   :  { %2386 = vmatpush1.bf16.msra.mxu0 %v8067_v59  ;;  %2413 = vmatprep.mubr.bf16.mxu0 %v11825_v63  ;;  %12009 = vst [vmem:[#allocation82_spill] sm:$0xff] %v8124_v11 }
 0x19d   :  { %5700 = vmatmul.mubr.msk.bf16.vlgmr.msra.gmra.mxu1 %vm649_vm0, %v7596_v33  ;;  %2387 = vmatprep.subr.bf16.mxu0 %v8076_v12  ;;  %v8079_v62 = vpop.f32.mrf.mxu1  ;;  %v8111_v12 = vpop.f32.mrf.mxu0 }
 0x19e   :  { %12000 = vst [vmem:[#allocation73_spill] sm:$0xff] %v8079_v62  ;;  %5909 = vmatpush3.bf16.msra.mxu1 %v11924_v46  ;;  %5920 = vmatprep.mubr.msk.bf16.mxu1 %vm6518_vm1, %v11873_v57  ;;  %v8096_v62 = vld [vmem:[%s11335_s0 + $0x1d4] ss:$68 sps:$4 sm:$0xff]   ;;  %12007 = vst [vmem:[#allocation80_spill] sm:$0xff] %v8111_v12 }
 0x19f   :  { %5910 = vmatprep.subr.bf16.mxu1 %v11873_v57  ;;  %v5890_v59 = vpop.f32.mrf.mxu1  ;;  %12003 = vst [vmem:[#allocation76_spill] sm:$0xff] %v8096_v62 }
 0x1a0   :  { %2388 = vmatpush1.bf16.msra.mxu0 %v8090_v7  ;;  %v8108_v7 = vld [vmem:[%s11335_s0 + $0x1d0] ss:$68 sps:$4 sm:$0xff]  }
 0x1a1   :  { %2389 = vmatprep.subr.bf16.mxu0 %v8096_v62  ;;  %v8100_v46 = vpop.f32.mrf.mxu1  ;;  %12006 = vst [vmem:[#allocation79_spill] sm:$0xff] %v8108_v7 }
 0x1a2   :  { %5911 = vmatpush3.bf16.msra.mxu1 %v11925_v18  ;;  %12004 = vst [vmem:[#allocation77_spill] sm:$0xff] %v8100_v46  ;;  %v8116_v18 = vld [vmem:[%s11335_s0 + $0x14c] ss:$68 sps:$4 sm:$0xff]   ;;  %v8132_v46 = vld [vmem:[%s11335_s0 + $0xc4] ss:$68 sps:$4 sm:$0xff]  }
 0x1a3   :  { %5912 = vmatprep.subr.bf16.mxu1 %v11873_v57  ;;  %v5891_v59 = vpop.f32.mrf.mxu1  ;;  %12008 = vst [vmem:[#allocation81_spill] sm:$0xff] %v8116_v18  ;;  %12011 = vst [vmem:[#allocation84_spill] sm:$0xff] %v8132_v46 }
 0x1a4   :  { %2390 = vmatpush1.bf16.msra.mxu0 %v8108_v7  ;;  %v8127_v59 = vpop.f32.mrf.mxu0 }
 0x1a5   :  { %2391 = vmatprep.subr.bf16.mxu0 %v8116_v18  ;;  %12010 = vst [vmem:[#allocation83_spill] sm:$0xff] %v8127_v59  ;;  %v8148_v59 = vld [vmem:[%s11335_s0 + $0x3c] ss:$68 sps:$4 sm:$0xff]  }
 0x1a6   :  { %5913 = vmatpush3.bf16.msra.mxu1 %v11926_v22  ;;  %v8140_v22 = vld [vmem:[%s11335_s0 + $0xc0] ss:$68 sps:$4 sm:$0xff]   ;;  %v8143_v12 = vpop.f32.mrf.mxu0  ;;  %12014 = vst [vmem:[#allocation87_spill] sm:$0xff] %v8148_v59 }
 0x1a7   :  { %5914 = vmatprep.subr.bf16.mxu1 %v11873_v57  ;;  %12012 = vst [vmem:[#allocation85_spill] sm:$0xff] %v8140_v22  ;;  %12013 = vst [vmem:[#allocation86_spill] sm:$0xff] %v8143_v12 }
 0x1a8   :  { %2392 = vmatpush1.bf16.msra.mxu0 %v8124_v11 }
 0x1a9   :  { %2393 = vmatprep.subr.bf16.mxu0 %v8132_v46 }
 0x1aa   :  { %5915 = vmatpush3.bf16.msra.mxu1 %v11927_v25  ;;  %v8154_v25 = vpop.f32.mrf.mxu0 }
 0x1ab   :  { %5916 = vmatprep.subr.bf16.mxu1 %v11873_v57  ;;  %12015 = vst [vmem:[#allocation88_spill] sm:$0xff] %v8154_v25  ;;  %v12017_v25 = vld [vmem:[#allocation13_spill] sm:$0xff] }
 0x1ac   :  { %2394 = vmatpush1.bf16.msra.mxu0 %v8140_v22 }
 0x1ad   :  { %2395 = vmatprep.subr.bf16.mxu0 %v8148_v59 }
 0x1ae   :  { %5917 = vmatpush3.bf16.msra.mxu1 %v11928_v29 }
 0x1af   :  { %5918 = vmatprep.subr.bf16.mxu1 %v11873_v57 }
 0x1b0   :  { %2396 = vmatpush1.bf16.msra.mxu0 %v7151_v51 }
 0x1b1   :  { %2617 = vmatprep.subr.bf16.mxu0 %v7506_v61 }
 0x1b2   :  { %5919 = vmatpush3.bf16.msra.mxu1 %v7210_v10 }
 0x1b3   :  { %v1581_v12 = vpop.f32.mrf.mxu0  ;;  %5701 = vmatmul.mubr.msk.bf16.vlgmr.msra.gmra.mxu0 %vm649_vm0, %v7596_v33  ;;  %2660 = vmatprep.subr.bf16.mxu1 %v7590_v32 }
 0x1b4   :  { %2618 = vmatpush1.bf16.msra.mxu0 %v7517_v15  ;;  %1932 = vrot.lane.b32.xlu0 %v1581_v12, %s6520_s15 }
 0x1b5   :  { %v1583_v29 = vpop.f32.mrf.mxu0  ;;  %v1624_v57 = vpop.f32.mrf.mxu1  ;;  %5921 = vmatmul.mubr.msk.bf16.vlgmr.msra.gmra.mxu1 %vm649_vm0, %v7596_v33  ;;  %2619 = vmatprep.subr.bf16.mxu0 %v7525_v17 }
 0x1b6   :  { %2661 = vmatpush1.bf16.msra.mxu1 %v7615_v36  ;;  %2645 = vmatprep.mubr.bf16.mxu0 %v11825_v63 }
 0x1b7   :  { %v1585_v10 = vpop.f32.mrf.mxu0  ;;  %v1626_v51 = vpop.f32.mrf.mxu1  ;;  %2662 = vmatprep.subr.bf16.mxu1 %v7624_v8  ;;  %2688 = vmatprep.mubr.bf16.mxu1 %v11825_v63 }
 0x1b8   :  { %2620 = vmatpush1.bf16.msra.mxu0 %v7535_v20  ;;  %1940 = vrot.lane.b32.xlu0 %v1624_v57, %s6520_s15 }
 0x1b9   :  { %1934 = vrot.lane.b32.xlu1 %v1585_v10, %s6520_s15  ;;  %2621 = vmatprep.subr.bf16.mxu0 %v7541_v21  ;;  %v1628_v33 = vpop.f32.mrf.mxu1  ;;  %v1587_v57 = vpop.f32.mrf.mxu0 }
 0x1ba   :  { %2663 = vmatpush1.bf16.msra.mxu1 %v7643_v39 }
 0x1bb   :  { %2664 = vmatprep.subr.bf16.mxu1 %v7649_v40  ;;  %v1630_v12 = vpop.f32.mrf.mxu1 }
 0x1bc   :  { %2622 = vmatpush1.bf16.msra.mxu0 %v7549_v23  ;;  %1936 = vrot.lane.b32.xlu0 %v1583_v29, %s6520_s15  ;;  %v8195_v29 = vld [vmem:[%s11336_s1 + $0x20] sm:$0xff]  }
 0x1bd   :  { %1942 = vrot.lane.b32.xlu1 %v1628_v33, %s6520_s15  ;;  %2623 = vmatprep.subr.bf16.mxu0 %v7555_v24 }
 0x1be   :  { %2665 = vmatpush1.bf16.msra.mxu1 %v7667_v43 }
 0x1bf   :  { %2666 = vmatprep.subr.bf16.mxu1 %v7673_v44 }
 0x1c0   :  { %2624 = vmatpush1.bf16.msra.mxu0 %v7563_v27  ;;  %1944 = vrot.lane.b32.xlu0 %v1626_v51, %s6520_s15 }
 0x1c1   :  { %1938 = vrot.lane.b32.xlu1 %v1587_v57, %s6520_s15  ;;  %2625 = vmatprep.subr.bf16.mxu0 %v7569_v28 }
 0x1c2   :  { %2667 = vmatpush1.bf16.msra.mxu1 %v7691_v58 }
 0x1c3   :  { %2668 = vmatprep.subr.bf16.mxu1 %v7697_v56 }
 0x1c4   :  { %2626 = vmatpush1.bf16.msra.mxu0 %v7577_v30 }
 0x1c5   :  { %1946 = vrot.lane.b32.xlu1 %v1630_v12, %s6520_s15  ;;  %2627 = vmatprep.subr.bf16.mxu0 %v7583_v31 }
 0x1c6   :  { %2669 = vmatpush1.bf16.msra.mxu1 %v7715_v60 }
 0x1c7   :  { %2670 = vmatprep.subr.bf16.mxu1 %v7723_v26 }
 0x1c8   :  { %2628 = vmatpush1.bf16.msra.mxu0 %v7601_v34 }
 0x1c9   :  { %2703 = vmatprep.subr.bf16.mxu0 %v7609_v35 }
 0x1ca   :  { %2671 = vmatpush1.bf16.msra.mxu1 %v7741_v2 }
 0x1cb   :  { %v1667_v10 = vpop.f32.mrf.mxu0  ;;  %5706 = vmatmul.mubr.msk.bf16.vlgmr.msra.gmra.mxu0 %vm649_vm0, %v8195_v29  ;;  %2746 = vmatprep.subr.bf16.mxu1 %v7749_v6 }
 0x1cc   :  { %2704 = vmatpush1.bf16.msra.mxu0 %v7630_v37  ;;  %1948 = vrot.lane.b32.xlu0 %v1667_v10, %s6520_s15 }
 0x1cd   :  { %v1669_v51 = vpop.f32.mrf.mxu0  ;;  %v1710_v33 = vpop.f32.mrf.mxu1  ;;  %5707 = vmatmul.mubr.msk.bf16.vlgmr.msra.gmra.mxu1 %vm649_vm0, %v8195_v29  ;;  %2705 = vmatprep.subr.bf16.mxu0 %v7637_v38 }
 0x1ce   :  { %2747 = vmatpush1.bf16.msra.mxu1 %v7769_v49  ;;  %2731 = vmatprep.mubr.bf16.mxu0 %v11825_v63  ;;  %v12028_v49 = vld [vmem:[#allocation37_spill] sm:$0xff] }
 0x1cf   :  { %v1671_v57 = vpop.f32.mrf.mxu0  ;;  %v1712_v12 = vpop.f32.mrf.mxu1  ;;  %2748 = vmatprep.subr.bf16.mxu1 %v7780_v14  ;;  %2774 = vmatprep.mubr.bf16.mxu1 %v11825_v63  ;;  %v12026_v14 = vld [vmem:[#allocation44_spill] sm:$0xff] }
 0x1d0   :  { %2706 = vmatpush1.bf16.msra.mxu0 %v7655_v41  ;;  %1956 = vrot.lane.b32.xlu0 %v1710_v33, %s6520_s15 }
 0x1d1   :  { %1950 = vrot.lane.b32.xlu1 %v1671_v57, %s6520_s15  ;;  %2707 = vmatprep.subr.bf16.mxu0 %v7661_v42  ;;  %v1714_v10 = vpop.f32.mrf.mxu1  ;;  %v1673_v33 = vpop.f32.mrf.mxu0  ;;  %v12016_v57 = vld [vmem:[#allocation7_spill] sm:$0xff] }
 0x1d2   :  { %2749 = vmatpush1.bf16.msra.mxu1 %v7799_v13  ;;  %v12022_v13 = vld [vmem:[#allocation20_spill] sm:$0xff] }
 0x1d3   :  { %2750 = vmatprep.subr.bf16.mxu1 %v7807_v1  ;;  %v12019_v1 = vld [vmem:[#allocation23_spill] sm:$0xff] }
 0x1d4   :  { %2708 = vmatpush1.bf16.msra.mxu0 %v7679_v45  ;;  %1952 = vrot.lane.b32.xlu0 %v1669_v51, %s6520_s15  ;;  %v12018_v51 = vld [vmem:[#allocation14_spill] sm:$0xff] }
 0x1d5   :  { %1958 = vrot.lane.b32.xlu1 %v1714_v10, %s6520_s15  ;;  %2709 = vmatprep.subr.bf16.mxu0 %v7685_v50  ;;  %v1716_v10 = vpop.f32.mrf.mxu1 }
 0x1d6   :  { %2751 = vmatpush1.bf16.msra.mxu1 %v7827_v9  ;;  %v12020_v9 = vld [vmem:[#allocation27_spill] sm:$0xff] }
 0x1d7   :  { %2752 = vmatprep.subr.bf16.mxu1 %v7833_v19  ;;  %v12021_v19 = vld [vmem:[#allocation19_spill] sm:$0xff] }
 0x1d8   :  { %2710 = vmatpush1.bf16.msra.mxu0 %v7703_v48  ;;  %1960 = vrot.lane.b32.xlu0 %v1712_v12, %s6520_s15  ;;  %v12023_v12 = vld [vmem:[#allocation32_spill] sm:$0xff] }
 0x1d9   :  { %1954 = vrot.lane.b32.xlu1 %v1673_v33, %s6520_s15  ;;  %2711 = vmatprep.subr.bf16.mxu0 %v12016_v57  ;;  %v12024_v33 = vld [vmem:[#allocation33_spill] sm:$0xff] }
 0x1da   :  { %2753 = vmatpush1.bf16.msra.mxu1 %v12017_v25 }
 0x1db   :  { %2754 = vmatprep.subr.bf16.mxu1 %v12018_v51  ;;  %v12025_v51 = vld [vmem:[#allocation30_spill] sm:$0xff] }
 0x1dc   :  { %2712 = vmatpush1.bf16.msra.mxu0 %v12019_v1 }
 0x1dd   :  { %1962 = vrot.lane.b32.xlu1 %v1716_v10, %s6520_s15  ;;  %2713 = vmatprep.subr.bf16.mxu0 %v12020_v9 }
 0x1de   :  { %2755 = vmatpush1.bf16.msra.mxu1 %v12021_v19 }
 0x1df   :  { %2756 = vmatprep.subr.bf16.mxu1 %v12022_v13  ;;  %v12027_v13 = vld [vmem:[#allocation47_spill] sm:$0xff] }
 0x1e0   :  { %2714 = vmatpush1.bf16.msra.mxu0 %v12023_v12  ;;  %v12029_v12 = vld [vmem:[#allocation40_spill] sm:$0xff] }
 0x1e1   :  { %2789 = vmatprep.subr.bf16.mxu0 %v12024_v33 }
 0x1e2   :  { %2757 = vmatpush1.bf16.msra.mxu1 %v7909_v47 }
 0x1e3   :  { %v1753_v25 = vpop.f32.mrf.mxu0  ;;  %5708 = vmatmul.mubr.msk.bf16.vlgmr.msra.gmra.mxu0 %vm649_vm0, %v8195_v29  ;;  %2832 = vmatprep.subr.bf16.mxu1 %v12025_v51  ;;  %v12030_v51 = vld [vmem:[#allocation3_spill] sm:$0xff] }
 0x1e4   :  { %2790 = vmatpush1.bf16.msra.mxu0 %v12026_v14  ;;  %1964 = vrot.lane.b32.xlu0 %v1753_v25, %s6520_s15  ;;  %v12031_v25 = vld [vmem:[#allocation5_spill] sm:$0xff] }
 0x1e5   :  { %v1755_v10 = vpop.f32.mrf.mxu0  ;;  %v1796_v19 = vpop.f32.mrf.mxu1  ;;  %5709 = vmatmul.mubr.msk.bf16.vlgmr.msra.gmra.mxu1 %vm649_vm0, %v8195_v29  ;;  %2791 = vmatprep.subr.bf16.mxu0 %v12027_v13  ;;  %v12032_v13 = vld [vmem:[#allocation46_spill] sm:$0xff] }
 0x1e6   :  { %2833 = vmatpush1.bf16.msra.mxu1 %v12028_v49  ;;  %2817 = vmatprep.mubr.bf16.mxu0 %v11825_v63  ;;  %v12033_v49 = vld [vmem:[#allocation10_spill] sm:$0xff] }
 0x1e7   :  { %v1757_v47 = vpop.f32.mrf.mxu0  ;;  %v1798_v33 = vpop.f32.mrf.mxu1  ;;  %2834 = vmatprep.subr.bf16.mxu1 %v12029_v12  ;;  %2860 = vmatprep.mubr.bf16.mxu1 %v11825_v63  ;;  %v12034_v12 = vld [vmem:[#allocation12_spill] sm:$0xff] }
 0x1e8   :  { %2792 = vmatpush1.bf16.msra.mxu0 %v12030_v51  ;;  %1972 = vrot.lane.b32.xlu0 %v1796_v19, %s6520_s15  ;;  %v12035_v19 = vld [vmem:[#allocation15_spill] sm:$0xff] }
 0x1e9   :  { %1966 = vrot.lane.b32.xlu1 %v1757_v47, %s6520_s15  ;;  %2793 = vmatprep.subr.bf16.mxu0 %v12031_v25  ;;  %v1800_v14 = vpop.f32.mrf.mxu1  ;;  %v1759_v47 = vpop.f32.mrf.mxu0 }
 0x1ea   :  { %2835 = vmatpush1.bf16.msra.mxu1 %v12032_v13 }
 0x1eb   :  { %2836 = vmatprep.subr.bf16.mxu1 %v7981_v16  ;;  %v12036_v16 = vld [vmem:[#allocation18_spill] sm:$0xff] }
 0x1ec   :  { %2794 = vmatpush1.bf16.msra.mxu0 %v12033_v49  ;;  %1968 = vrot.lane.b32.xlu0 %v1755_v10, %s6520_s15  ;;  %v12037_v10 = vld [vmem:[#allocation21_spill] sm:$0xff] }
 0x1ed   :  { %1974 = vrot.lane.b32.xlu1 %v1800_v14, %s6520_s15  ;;  %2795 = vmatprep.subr.bf16.mxu0 %v12034_v12  ;;  %v1802_v14 = vpop.f32.mrf.mxu1 }
 0x1ee   :  { %2837 = vmatpush1.bf16.msra.mxu1 %v7989_v52  ;;  %v12038_v52 = vld [vmem:[#allocation25_spill] sm:$0xff] }
 0x1ef   :  { %2838 = vmatprep.subr.bf16.mxu1 %v7999_v0  ;;  %v12043_v0 = vld [vmem:[#allocation71_spill] sm:$0xff] }
 0x1f0   :  { %2796 = vmatpush1.bf16.msra.mxu0 %v12035_v19  ;;  %1976 = vrot.lane.b32.xlu0 %v1798_v33, %s6520_s15  ;;  %v12039_v33 = vld [vmem:[#allocation31_spill] sm:$0xff] }
 0x1f1   :  { %1970 = vrot.lane.b32.xlu1 %v1759_v47, %s6520_s15  ;;  %2797 = vmatprep.subr.bf16.mxu0 %v12036_v16  ;;  %v12040_v47 = vld [vmem:[#allocation36_spill] sm:$0xff] }
 0x1f2   :  { %2839 = vmatpush1.bf16.msra.mxu1 %v8009_v3 }
 0x1f3   :  { %2840 = vmatprep.subr.bf16.mxu1 %v8017_v55  ;;  %v12041_v55 = vld [vmem:[#allocation41_spill] sm:$0xff] }
 0x1f4   :  { %2798 = vmatpush1.bf16.msra.mxu0 %v12037_v10 }
 0x1f5   :  { %1978 = vrot.lane.b32.xlu1 %v1802_v14, %s6520_s15  ;;  %2799 = vmatprep.subr.bf16.mxu0 %v12038_v52 }
 0x1f6   :  { %2841 = vmatpush1.bf16.msra.mxu1 %v8027_v5 }
 0x1f7   :  { %2842 = vmatprep.subr.bf16.mxu1 %v8035_v54  ;;  %v12042_v54 = vld [vmem:[#allocation45_spill] sm:$0xff] }
 0x1f8   :  { %2800 = vmatpush1.bf16.msra.mxu0 %v12039_v33 }
 0x1f9   :  { %2875 = vmatprep.subr.bf16.mxu0 %v12040_v47  ;;  %v12044_v47 = vld [vmem:[#allocation72_spill] sm:$0xff] }
 0x1fa   :  { %2843 = vmatpush1.bf16.msra.mxu1 %v8047_v4 }
 0x1fb   :  { %v1839_v3 = vpop.f32.mrf.mxu0  ;;  %5710 = vmatmul.mubr.msk.bf16.vlgmr.msra.gmra.mxu0 %vm649_vm0, %v8195_v29  ;;  %2918 = vmatprep.subr.bf16.mxu1 %v8053_v53  ;;  %v8289_v53 = vpop.permute.xlu0 %5271 }
 0x1fc   :  { %2876 = vmatpush1.bf16.msra.mxu0 %v12041_v55  ;;  %1980 = vrot.lane.b32.xlu0 %v1839_v3, %s6520_s15  ;;  %12045 = vst [vmem:[#allocation7_spill] sm:$0xff] %v8289_v53  ;;  %v8294_v3 = vld [vmem:[%s11335_s0 + $0x250] ss:$68 sps:$4 sm:$0xff]  }
 0x1fd   :  { %v1841_v14 = vpop.f32.mrf.mxu0  ;;  %v1882_v5 = vpop.f32.mrf.mxu1  ;;  %5711 = vmatmul.mubr.msk.bf16.vlgmr.msra.gmra.mxu1 %vm649_vm0, %v8195_v29  ;;  %2877 = vmatprep.subr.bf16.mxu0 %v12042_v54  ;;  %v12047_v54 = vld [vmem:[#allocation75_spill] sm:$0xff] }
 0x1fe   :  { %2919 = vmatpush1.bf16.msra.mxu1 %v12043_v0  ;;  %2903 = vmatprep.mubr.bf16.mxu0 %v11825_v63  ;;  %v8302_v0 = vld [vmem:[%s11335_s0 + $0x1cc] ss:$68 sps:$4 sm:$0xff]  }
 0x1ff   :  { %v1843_v4 = vpop.f32.mrf.mxu0  ;;  %v1884_v13 = vpop.f32.mrf.mxu1  ;;  %2920 = vmatprep.subr.bf16.mxu1 %v12044_v47  ;;  %2946 = vmatprep.mubr.bf16.mxu1 %v11825_v63 }
 0x200   :  { %2878 = vmatpush1.bf16.msra.mxu0 %v8294_v3  ;;  %1988 = vrot.lane.b32.xlu0 %v1882_v5, %s6520_s15  ;;  %v8305_v47 = vpop.permute.xlu1 %5276  ;;  %v8312_v5 = vld [vmem:[%s11335_s0 + $0x1c8] ss:$68 sps:$4 sm:$0xff]  }
 0x201   :  { %1982 = vrot.lane.b32.xlu1 %v1843_v4, %s6520_s15  ;;  %2879 = vmatprep.subr.bf16.mxu0 %v8302_v0  ;;  %12046 = vst [vmem:[#allocation23_spill] sm:$0xff] %v8305_v47  ;;  %v1886_v53 = vpop.f32.mrf.mxu1  ;;  %v8320_v4 = vld [vmem:[%s11335_s0 + $0x144] ss:$68 sps:$4 sm:$0xff]   ;;  %v8323_v47 = vpop.permute.xlu0 %1038 }
 0x202   :  { %2921 = vmatpush1.bf16.msra.mxu1 %v12047_v54  ;;  %12048 = vst [vmem:[#allocation27_spill] sm:$0xff] %v8323_v47  ;;  %v1845_v54 = vpop.f32.mrf.mxu0 }
 0x203   :  { %2922 = vmatprep.subr.bf16.mxu1 %v8096_v62 }
 0x204   :  { %2880 = vmatpush1.bf16.msra.mxu0 %v8312_v5  ;;  %1984 = vrot.lane.b32.xlu0 %v1841_v14, %s6520_s15  ;;  %v8327_v62 = vpop.permute.xlu1 %1042  ;;  %v8340_v14 = vld [vmem:[%s11335_s0 + $0xbc] ss:$68 sps:$4 sm:$0xff]  }
 0x205   :  { %1990 = vrot.lane.b32.xlu1 %v1886_v53, %s6520_s15  ;;  %2881 = vmatprep.subr.bf16.mxu0 %v8320_v4  ;;  %12049 = vst [vmem:[#allocation3_spill] sm:$0xff] %v8327_v62  ;;  %v8332_v53 = vld [vmem:[%s11335_s0 + $0x140] ss:$68 sps:$4 sm:$0xff]   ;;  %v8345_v47 = vpop.permute.xlu0 %1046  ;;  %v1888_v62 = vpop.f32.mrf.mxu1 }
 0x206   :  { %2923 = vmatpush1.bf16.msra.mxu1 %v8108_v7  ;;  %12050 = vst [vmem:[#allocation5_spill] sm:$0xff] %v8345_v47  ;;  %v8367_v47 = vld [vmem:[%s11335_s0 + $0x30] ss:$68 sps:$4 sm:$0xff]  }
 0x207   :  { %2924 = vmatprep.subr.bf16.mxu1 %v8116_v18  ;;  %v8376_v18 = vld [vmem:[%s11335_s0 + $0x38] ss:$68 sps:$4 sm:$0xff]  }
 0x208   :  { %2882 = vmatpush1.bf16.msra.mxu0 %v8332_v53  ;;  %1992 = vrot.lane.b32.xlu0 %v1884_v13, %s6520_s15  ;;  %v8350_v13 = vld [vmem:[%s11335_s0 + $0xb8] ss:$68 sps:$4 sm:$0xff]   ;;  %12054 = vst [vmem:[#allocation15_spill] sm:$0xff] %v8376_v18 }
 0x209   :  { %1986 = vrot.lane.b32.xlu1 %v1845_v54, %s6520_s15  ;;  %2883 = vmatprep.subr.bf16.mxu0 %v8340_v14  ;;  %v8357_v54 = vld [vmem:[%s11335_s0 + $0x34] ss:$68 sps:$4 sm:$0xff]  }
 0x20a   :  { %2925 = vmatpush1.bf16.msra.mxu1 %v8124_v11  ;;  %v8371_v11 = vpop.permute.xlu0 %1050 }
 0x20b   :  { %2926 = vmatprep.subr.bf16.mxu1 %v8132_v46  ;;  %v8360_v46 = vpop.permute.xlu1 %1048  ;;  %12053 = vst [vmem:[#allocation12_spill] sm:$0xff] %v8371_v11 }
 0x20c   :  { %2884 = vmatpush1.bf16.msra.mxu0 %v8350_v13  ;;  %12051 = vst [vmem:[#allocation10_spill] sm:$0xff] %v8360_v46 }
 0x20d   :  { %1994 = vrot.lane.b32.xlu1 %v1888_v62, %s6520_s15  ;;  %2885 = vmatprep.subr.bf16.mxu0 %v8357_v54  ;;  %v12052_v62 = vmov 0.0  }
 0x20e   :  { %2927 = vmatpush1.bf16.msra.mxu1 %v8140_v22  ;;  %v8387_v22 = vld [vmem:[%s11335_s0 + $0x2e8] ss:$68 sps:$4 sm:$0xff]  }
 0x20f   :  { %2928 = vmatprep.subr.bf16.mxu1 %v8148_v59  ;;  %v8382_v59 = vpop.permute.xlu1 %1044 }
 0x210   :  { %2886 = vmatpush1.bf16.msra.mxu0 %v8367_v47  ;;  %12055 = vst [vmem:[#allocation18_spill] sm:$0xff] %v8382_v59 }
 0x211   :  { %5924 = vmatprep.subr.bf16.mxu0 %v12052_v62 }
 0x212   :  { %2929 = vmatpush1.bf16.msra.mxu1 %v8376_v18  ;;  %v8399_v18 = vpop.permute.xlu0 %1040 }
 0x213   :  { %v1925_v46 = vpop.f32.mrf.mxu0  ;;  %5712 = vmatmul.mubr.msk.bf16.vlgmr.msra.gmra.mxu0 %vm649_vm0, %v8195_v29  ;;  %3150 = vmatprep.subr.bf16.mxu1 %v7506_v61  ;;  %12056 = vst [vmem:[#allocation21_spill] sm:$0xff] %v8399_v18 }
 0x214   :  { %5925 = vmatpush3.bf16.msra.mxu0 %v8387_v22  ;;  %1996 = vrot.lane.b32.xlu0 %v1925_v46, %s6520_s15 }
 0x215   :  { %v5906_v11 = vpop.f32.mrf.mxu0  ;;  %v2114_v7 = vpop.f32.mrf.mxu1  ;;  %5713 = vmatmul.mubr.msk.bf16.vlgmr.msra.gmra.mxu1 %vm649_vm0, %v8195_v29  ;;  %5926 = vmatprep.subr.bf16.mxu0 %v12052_v62 }
 0x216   :  { %3151 = vmatpush1.bf16.msra.mxu1 %v7517_v15  ;;  %5936 = vmatprep.mubr.msk.bf16.mxu0 %vm6518_vm1, %v12052_v62  ;;  %v8404_v11 = vld [vmem:[%s11335_s0 + $0x260] ss:$68 sps:$4 sm:$0xff]   ;;  %v8414_v18 = vpop.permute.xlu0 %1054 }
 0x217   :  { %v1928_v61 = vpop.f32.mrf.mxu0  ;;  %v2116_v59 = vpop.f32.mrf.mxu1  ;;  %3152 = vmatprep.subr.bf16.mxu1 %v7525_v17  ;;  %3178 = vmatprep.mubr.bf16.mxu1 %v11825_v63  ;;  %12057 = vst [vmem:[#allocation25_spill] sm:$0xff] %v8404_v11  ;;  %12059 = vst [vmem:[#allocation41_spill] sm:$0xff] %v8414_v18  ;;  %v8928_v18 = vld [vmem:[%s11335_s0 + $0x1ac] ss:$68 sps:$4 sm:$0xff]  }
 0x218   :  { %5927 = vmatpush3.bf16.msra.mxu0 %v8404_v11  ;;  %2465 = vrot.lane.b32.xlu0 %v2114_v7, %s6521_s14  ;;  %v8410_v17 = vpop.permute.xlu1 %1052  ;;  %v8419_v11 = vld [vmem:[%s11335_s0 + $0x1d8] ss:$68 sps:$4 sm:$0xff]  }
 0x219   :  { %1998 = vrot.lane.b32.xlu1 %v1928_v61, %s6520_s15  ;;  %v5907_v15 = vpop.f32.mrf.mxu0  ;;  %5928 = vmatprep.subr.bf16.mxu0 %v12052_v62  ;;  %12058 = vst [vmem:[#allocation31_spill] sm:$0xff] %v8410_v17  ;;  %v2118_v46 = vpop.f32.mrf.mxu1  ;;  %v8936_v17 = vld [vmem:[%s11335_s0 + $0x238] ss:$68 sps:$4 sm:$0xff]  }
 0x21a   :  { %3153 = vmatpush1.bf16.msra.mxu1 %v7535_v20 }
 0x21b   :  { %3154 = vmatprep.subr.bf16.mxu1 %v7541_v21  ;;  %v2120_v20 = vpop.f32.mrf.mxu1  ;;  %v8432_v21 = vld [vmem:[%s11335_s0 + $0x150] ss:$68 sps:$4 sm:$0xff]  }
 0x21c   :  { %5929 = vmatpush3.bf16.msra.mxu0 %v8419_v11  ;;  %2469 = vrot.lane.b32.xlu0 %v2116_v59, %s6521_s14  ;;  %v8425_v7 = vpop.permute.xlu1 %1056  ;;  %v8437_v59 = vpop.permute.xlu0 %1062 }
 0x21d   :  { %2467 = vrot.lane.b32.xlu1 %v2118_v46, %s6521_s14  ;;  %5930 = vmatprep.subr.bf16.mxu0 %v12052_v62  ;;  %12060 = vst [vmem:[#allocation89_spill] sm:$0xff] %v8425_v7  ;;  %12061 = vst [vmem:[#allocation90_spill] sm:$0xff] %v8437_v59  ;;  %v8881_v7 = vld [vmem:[%s11335_s0 + $0x2c4] ss:$68 sps:$4 sm:$0xff]  }
 0x21e   :  { %3155 = vmatpush1.bf16.msra.mxu1 %v7549_v23  ;;  %v8906_v59 = vld [vmem:[%s11335_s0 + $0x2c0] ss:$68 sps:$4 sm:$0xff]  }
 0x21f   :  { %3156 = vmatprep.subr.bf16.mxu1 %v7555_v24  ;;  %v8446_v24 = vld [vmem:[%s11335_s0 + $0xc8] ss:$68 sps:$4 sm:$0xff]  }
 0x220   :  { %5931 = vmatpush3.bf16.msra.mxu0 %v8432_v21  ;;  %v8441_v23 = vpop.permute.xlu1 %1064  ;;  %v8452_v61 = vpop.permute.xlu0 %1058 }
 0x221   :  { %2471 = vrot.lane.b32.xlu1 %v2120_v20, %s6521_s14  ;;  %5932 = vmatprep.subr.bf16.mxu0 %v12052_v62  ;;  %12062 = vst [vmem:[#allocation91_spill] sm:$0xff] %v8441_v23  ;;  %12063 = vst [vmem:[#allocation92_spill] sm:$0xff] %v8452_v61  ;;  %v12082_v20 = vld [vmem:[#allocation48_spill] sm:$0xff]  ;;  %v8913_v61 = vld [vmem:[%s11335_s0 + $0x23c] ss:$68 sps:$4 sm:$0xff]  }
 0x222   :  { %3157 = vmatpush1.bf16.msra.mxu1 %v7563_v27  ;;  %v8457_v27 = vld [vmem:[%s11335_s0 + $0x40] ss:$68 sps:$4 sm:$0xff]  }
 0x223   :  { %3158 = vmatprep.subr.bf16.mxu1 %v7569_v28  ;;  %v8464_v28 = vld [vmem:[%s11336_s1 + $0x28] sm:$0xff]  }
 0x224   :  { %5933 = vmatpush3.bf16.msra.mxu0 %v8446_v24  ;;  %v8466_v15 = vpop.permute.xlu1 %1060  ;;  %v8477_v46 = vpop.permute.xlu0 %1066 }
 0x225   :  { %5934 = vmatprep.subr.bf16.mxu0 %v12052_v62  ;;  %12064 = vst [vmem:[#allocation93_spill] sm:$0xff] %v8466_v15  ;;  %12065 = vst [vmem:[#allocation94_spill] sm:$0xff] %v8477_v46  ;;  %v8898_v46 = vld [vmem:[%s11335_s0 + $0x234] ss:$68 sps:$4 sm:$0xff]  }
 0x226   :  { %3159 = vmatpush1.bf16.msra.mxu1 %v7577_v30 }
 0x227   :  { %3160 = vmatprep.subr.bf16.mxu1 %v7583_v31 }
 0x228   :  { %5935 = vmatpush3.bf16.msra.mxu0 %v8457_v27 }
 0x229   :  { %3193 = vmatprep.subr.bf16.mxu0 %v7590_v32 }
 0x22a   :  { %3161 = vmatpush1.bf16.msra.mxu1 %v7601_v34 }
 0x22b   :  { %v2157_v30 = vpop.f32.mrf.mxu0  ;;  %5937 = vmatmul.mubr.msk.bf16.vlgmr.msra.gmra.mxu0 %vm649_vm0, %v8195_v29  ;;  %3236 = vmatprep.subr.bf16.mxu1 %v7609_v35  ;;  %v8483_v35 = vpop.permute.xlu1 %1068  ;;  %v12080_v29 = vld [vmem:[#allocation47_spill] sm:$0xff] }
 0x22c   :  { %3194 = vmatpush1.bf16.msra.mxu0 %v7615_v36  ;;  %2473 = vrot.lane.b32.xlu0 %v2157_v30, %s6521_s14  ;;  %12066 = vst [vmem:[#allocation95_spill] sm:$0xff] %v8483_v35  ;;  %v8859_v35 = vld [vmem:[%s11335_s0] ss:$68 sps:$4 sm:$0xff]  }
 0x22d   :  { %v2159_v31 = vpop.f32.mrf.mxu0  ;;  %v2200_v32 = vpop.f32.mrf.mxu1  ;;  %5718 = vmatmul.mubr.msk.bf16.vlgmr.msra.gmra.mxu1 %vm649_vm0, %v8464_v28  ;;  %3195 = vmatprep.subr.bf16.mxu0 %v7624_v8 }
 0x22e   :  { %3237 = vmatpush1.bf16.msra.mxu1 %v7630_v37  ;;  %3221 = vmatprep.mubr.bf16.mxu0 %v11825_v63  ;;  %v8489_v8 = vpop.permute.xlu0 %1070 }
 0x22f   :  { %v2161_v34 = vpop.f32.mrf.mxu0  ;;  %3238 = vmatprep.subr.bf16.mxu1 %v7637_v38  ;;  %3264 = vmatprep.mubr.bf16.mxu1 %v11825_v63  ;;  %v2202_v36 = vpop.f32.mrf.mxu1  ;;  %12067 = vst [vmem:[#allocation96_spill] sm:$0xff] %v8489_v8 }
 0x230   :  { %3196 = vmatpush1.bf16.msra.mxu0 %v7643_v39  ;;  %2481 = vrot.lane.b32.xlu0 %v2200_v32, %s6521_s14  ;;  %v8493_v38 = vpop.permute.xlu1 %1072 }
 0x231   :  { %2475 = vrot.lane.b32.xlu1 %v2161_v34, %s6521_s14  ;;  %3197 = vmatprep.subr.bf16.mxu0 %v7649_v40  ;;  %v2204_v37 = vpop.f32.mrf.mxu1  ;;  %12068 = vst [vmem:[#allocation97_spill] sm:$0xff] %v8493_v38  ;;  %v2163_v40 = vpop.f32.mrf.mxu0  ;;  %v8769_v38 = vld [vmem:[%s11335_s0 + $0x198] ss:$68 sps:$4 sm:$0xff]  }
 0x232   :  { %3239 = vmatpush1.bf16.msra.mxu1 %v7655_v41  ;;  %v8501_v39 = vpop.permute.xlu0 %1078 }
 0x233   :  { %3240 = vmatprep.subr.bf16.mxu1 %v7661_v42  ;;  %12069 = vst [vmem:[#allocation98_spill] sm:$0xff] %v8501_v39  ;;  %v2206_v42 = vpop.f32.mrf.mxu1  ;;  %v8797_v39 = vld [vmem:[%s11335_s0 + $0x110] ss:$68 sps:$4 sm:$0xff]  }
 0x234   :  { %3198 = vmatpush1.bf16.msra.mxu0 %v7667_v43  ;;  %2477 = vrot.lane.b32.xlu0 %v2159_v31, %s6521_s14  ;;  %v8507_v41 = vpop.permute.xlu1 %1080  ;;  %v12083_v31 = vld [vmem:[#allocation2_spill] sm:$0xff] }
 0x235   :  { %2483 = vrot.lane.b32.xlu1 %v2204_v37, %s6521_s14  ;;  %3199 = vmatprep.subr.bf16.mxu0 %v7673_v44  ;;  %12070 = vst [vmem:[#allocation99_spill] sm:$0xff] %v8507_v41  ;;  %v12086_v37 = vld [vmem:[#allocation9_spill] sm:$0xff] }
 0x236   :  { %3241 = vmatpush1.bf16.msra.mxu1 %v7679_v45  ;;  %v8514_v43 = vpop.permute.xlu0 %1074  ;;  %v12073_v45 = vld [vmem:[#allocation32_spill] sm:$0xff]  ;;  %v8749_v41 = vld [vmem:[%s11335_s0 + $0x19c] ss:$68 sps:$4 sm:$0xff]  }
 0x237   :  { %3242 = vmatprep.subr.bf16.mxu1 %v7685_v50  ;;  %12071 = vst [vmem:[#allocation100_spill] sm:$0xff] %v8514_v43 }
 0x238   :  { %3200 = vmatpush1.bf16.msra.mxu0 %v7691_v58  ;;  %2485 = vrot.lane.b32.xlu0 %v2202_v36, %s6521_s14  ;;  %v8518_v44 = vpop.permute.xlu1 %1076  ;;  %v12074_v58 = vld [vmem:[#allocation33_spill] sm:$0xff]  ;;  %v12085_v36 = vld [vmem:[#allocation6_spill] sm:$0xff] }
 0x239   :  { %2479 = vrot.lane.b32.xlu1 %v2163_v40, %s6521_s14  ;;  %3201 = vmatprep.subr.bf16.mxu0 %v7697_v56  ;;  %12072 = vst [vmem:[#allocation101_spill] sm:$0xff] %v8518_v44  ;;  %v8777_v44 = vld [vmem:[%s11335_s0 + $0x114] ss:$68 sps:$4 sm:$0xff]  }
 0x23a   :  { %3243 = vmatpush1.bf16.msra.mxu1 %v7703_v48  ;;  %v8526_v56 = vpop.permute.xlu0 %1082  ;;  %v12076_v48 = vld [vmem:[#allocation35_spill] sm:$0xff] }
 0x23b   :  { %3244 = vmatprep.subr.bf16.mxu1 %v12016_v57  ;;  %12075 = vst [vmem:[#allocation32_spill] sm:$0xff] %v8526_v56 }
 0x23c   :  { %3202 = vmatpush1.bf16.msra.mxu0 %v7715_v60 }
 0x23d   :  { %2487 = vrot.lane.b32.xlu1 %v2206_v42, %s6521_s14  ;;  %3203 = vmatprep.subr.bf16.mxu0 %v7723_v26  ;;  %v12077_v26 = vld [vmem:[#allocation43_spill] sm:$0xff] }
 0x23e   :  { %3245 = vmatpush1.bf16.msra.mxu1 %v12019_v1  ;;  %v8539_v57 = vpop.permute.xlu0 %1086 }
 0x23f   :  { %3246 = vmatprep.subr.bf16.mxu1 %v12020_v9  ;;  %12081 = vst [vmem:[#allocation35_spill] sm:$0xff] %v8539_v57 }
 0x240   :  { %3204 = vmatpush1.bf16.msra.mxu0 %v7741_v2  ;;  %v8533_v2 = vpop.permute.xlu1 %1084 }
 0x241   :  { %3279 = vmatprep.subr.bf16.mxu0 %v7749_v6  ;;  %12078 = vst [vmem:[#allocation33_spill] sm:$0xff] %v8533_v2  ;;  %v12079_v6 = vld [vmem:[#allocation44_spill] sm:$0xff] }
 0x242   :  { %3247 = vmatpush1.bf16.msra.mxu1 %v12073_v45  ;;  %v8553_v40 = vpop.permute.xlu0 %1094 }
 0x243   :  { %v2243_v50 = vpop.f32.mrf.mxu0  ;;  %5719 = vmatmul.mubr.msk.bf16.vlgmr.msra.gmra.mxu0 %vm649_vm0, %v8464_v28  ;;  %3322 = vmatprep.subr.bf16.mxu1 %v12074_v58  ;;  %12087 = vst [vmem:[#allocation44_spill] sm:$0xff] %v8553_v40  ;;  %v12092_v58 = vld [vmem:[#allocation19_spill] sm:$0xff] }
 0x244   :  { %3280 = vmatpush1.bf16.msra.mxu0 %v12076_v48  ;;  %2489 = vrot.lane.b32.xlu0 %v2243_v50, %s6521_s14  ;;  %v8545_v32 = vpop.permute.xlu1 %1088 }
 0x245   :  { %v2245_v60 = vpop.f32.mrf.mxu0  ;;  %v2286_v1 = vpop.f32.mrf.mxu1  ;;  %5720 = vmatmul.mubr.msk.bf16.vlgmr.msra.gmra.mxu1 %vm649_vm0, %v8464_v28  ;;  %3281 = vmatprep.subr.bf16.mxu0 %v12077_v26  ;;  %12084 = vst [vmem:[#allocation43_spill] sm:$0xff] %v8545_v32  ;;  %v12098_v26 = vld [vmem:[#allocation36_spill] sm:$0xff]  ;;  %v8717_v32 = vld [vmem:[%s11335_s0 + $0x224] ss:$68 sps:$4 sm:$0xff]  }
 0x246   :  { %3323 = vmatpush1.bf16.msra.mxu1 %v12079_v6  ;;  %3307 = vmatprep.mubr.bf16.mxu0 %v11825_v63  ;;  %v8565_v50 = vpop.permute.xlu0 %1090 }
 0x247   :  { %v2247_v9 = vpop.f32.mrf.mxu0  ;;  %3324 = vmatprep.subr.bf16.mxu1 %v12080_v29  ;;  %3350 = vmatprep.mubr.bf16.mxu1 %v11825_v63  ;;  %v2288_v30 = vpop.f32.mrf.mxu1  ;;  %12091 = vst [vmem:[#allocation48_spill] sm:$0xff] %v8565_v50  ;;  %v12101_v29 = vld [vmem:[#allocation40_spill] sm:$0xff]  ;;  %v8741_v50 = vld [vmem:[%s11335_s0 + $0x220] ss:$68 sps:$4 sm:$0xff]  }
 0x248   :  { %3282 = vmatpush1.bf16.msra.mxu0 %v12082_v20  ;;  %2497 = vrot.lane.b32.xlu0 %v2286_v1, %s6521_s14  ;;  %v8557_v42 = vpop.permute.xlu1 %1096 }
 0x249   :  { %2491 = vrot.lane.b32.xlu1 %v2247_v9, %s6521_s14  ;;  %3283 = vmatprep.subr.bf16.mxu0 %v12083_v31  ;;  %v2290_v34 = vpop.f32.mrf.mxu1  ;;  %12088 = vst [vmem:[#allocation47_spill] sm:$0xff] %v8557_v42  ;;  %v2249_v45 = vpop.f32.mrf.mxu0  ;;  %v12100_v9 = vld [vmem:[#allocation37_spill] sm:$0xff] }
 0x24a   :  { %3325 = vmatpush1.bf16.msra.mxu1 %v12030_v51  ;;  %v12089_v51 = vld [vmem:[#allocation13_spill] sm:$0xff] }
 0x24b   :  { %3326 = vmatprep.subr.bf16.mxu1 %v12031_v25  ;;  %v12090_v25 = vld [vmem:[#allocation14_spill] sm:$0xff] }
 0x24c   :  { %3284 = vmatpush1.bf16.msra.mxu0 %v12085_v36  ;;  %2493 = vrot.lane.b32.xlu0 %v2245_v60, %s6521_s14  ;;  %v8570_v48 = vpop.permute.xlu1 %1092  ;;  %v12095_v60 = vld [vmem:[#allocation26_spill] sm:$0xff] }
 0x24d   :  { %2499 = vrot.lane.b32.xlu1 %v2290_v34, %s6521_s14  ;;  %3285 = vmatprep.subr.bf16.mxu0 %v12086_v37  ;;  %12094 = vst [vmem:[#allocation2_spill] sm:$0xff] %v8570_v48  ;;  %v12105_v34 = vld [vmem:[#allocation46_spill] sm:$0xff]  ;;  %v12106_v37 = vld [vmem:[#allocation51_spill] sm:$0xff] }
 0x24e   :  { %3327 = vmatpush1.bf16.msra.mxu1 %v12033_v49  ;;  %v2292_v49 = vpop.f32.mrf.mxu1 }
 0x24f   :  { %3328 = vmatprep.subr.bf16.mxu1 %v12034_v12  ;;  %v12093_v12 = vld [vmem:[#allocation20_spill] sm:$0xff] }
 0x250   :  { %3286 = vmatpush1.bf16.msra.mxu0 %v12089_v51  ;;  %2501 = vrot.lane.b32.xlu0 %v2288_v30, %s6521_s14  ;;  %v8582_v6 = vpop.permute.xlu1 %1100  ;;  %v12103_v30 = vld [vmem:[#allocation45_spill] sm:$0xff] }
 0x251   :  { %2495 = vrot.lane.b32.xlu1 %v2249_v45, %s6521_s14  ;;  %3287 = vmatprep.subr.bf16.mxu0 %v12090_v25  ;;  %12099 = vst [vmem:[#allocation9_spill] sm:$0xff] %v8582_v6  ;;  %v12109_v25 = vld [vmem:[#allocation53_spill] sm:$0xff] }
 0x252   :  { %3329 = vmatpush1.bf16.msra.mxu1 %v12035_v19  ;;  %v12096_v19 = vld [vmem:[#allocation30_spill] sm:$0xff] }
 0x253   :  { %3330 = vmatprep.subr.bf16.mxu1 %v12036_v16  ;;  %v8576_v16 = vpop.permute.xlu0 %1098 }
 0x254   :  { %3288 = vmatpush1.bf16.msra.mxu0 %v12092_v58  ;;  %12097 = vst [vmem:[#allocation6_spill] sm:$0xff] %v8576_v16  ;;  %v8595_v31 = vpop.permute.xlu1 %1104  ;;  %v8725_v16 = vld [vmem:[%s11335_s0 + $0x2b0] ss:$68 sps:$4 sm:$0xff]  }
 0x255   :  { %2503 = vrot.lane.b32.xlu1 %v2292_v49, %s6521_s14  ;;  %3289 = vmatprep.subr.bf16.mxu0 %v12093_v12  ;;  %12104 = vst [vmem:[#allocation14_spill] sm:$0xff] %v8595_v31  ;;  %v12110_v49 = vld [vmem:[#allocation56_spill] sm:$0xff] }
 0x256   :  { %3331 = vmatpush1.bf16.msra.mxu1 %v12037_v10 }
 0x257   :  { %3332 = vmatprep.subr.bf16.mxu1 %v12038_v52 }
 0x258   :  { %3290 = vmatpush1.bf16.msra.mxu0 %v12095_v60  ;;  %v8605_v51 = vpop.permute.xlu1 %1934  ;;  %v12112_v60 = vld [vmem:[#allocation58_spill] sm:$0xff] }
 0x259   :  { %3365 = vmatprep.subr.bf16.mxu0 %v12096_v19  ;;  %12108 = vst [vmem:[#allocation20_spill] sm:$0xff] %v8605_v51  ;;  %v12113_v19 = vld [vmem:[#allocation60_spill] sm:$0xff]  ;;  %v8958_v51 = vld [vmem:[%s11335_s0 + $0x124] ss:$68 sps:$4 sm:$0xff]  }
 0x25a   :  { %3333 = vmatpush1.bf16.msra.mxu1 %v12039_v33  ;;  %v8589_v33 = vpop.permute.xlu0 %1102 }
 0x25b   :  { %v2329_v1 = vpop.f32.mrf.mxu0  ;;  %5721 = vmatmul.mubr.msk.bf16.vlgmr.msra.gmra.mxu0 %vm649_vm0, %v8464_v28  ;;  %3408 = vmatprep.subr.bf16.mxu1 %v12098_v26  ;;  %12102 = vst [vmem:[#allocation13_spill] sm:$0xff] %v8589_v33  ;;  %v8708_v33 = vld [vmem:[%s11335_s0 + $0x2a8] ss:$68 sps:$4 sm:$0xff]  }
 0x25c   :  { %3366 = vmatpush1.bf16.msra.mxu0 %v12100_v9  ;;  %2505 = vrot.lane.b32.xlu0 %v2329_v1, %s6521_s14  ;;  %v8619_v1 = vpop.permute.xlu1 %1942  ;;  %v12115_v9 = vld [vmem:[#allocation62_spill] sm:$0xff] }
 0x25d   :  { %v2331_v52 = vpop.f32.mrf.mxu0  ;;  %v2372_v10 = vpop.f32.mrf.mxu1  ;;  %5722 = vmatmul.mubr.msk.bf16.vlgmr.msra.gmra.mxu1 %vm649_vm0, %v8464_v28  ;;  %3367 = vmatprep.subr.bf16.mxu0 %v12101_v29  ;;  %12114 = vst [vmem:[#allocation30_spill] sm:$0xff] %v8619_v1 }
 0x25e   :  { %3409 = vmatpush1.bf16.msra.mxu1 %v12041_v55  ;;  %3393 = vmatprep.mubr.bf16.mxu0 %v11825_v63  ;;  %v8601_v45 = vpop.permute.xlu0 %1932 }
 0x25f   :  { %v2333_v20 = vpop.f32.mrf.mxu0  ;;  %3410 = vmatprep.subr.bf16.mxu1 %v12103_v30  ;;  %3436 = vmatprep.mubr.bf16.mxu1 %v11825_v63  ;;  %v2374_v36 = vpop.f32.mrf.mxu1  ;;  %12107 = vst [vmem:[#allocation19_spill] sm:$0xff] %v8601_v45  ;;  %v12120_v30 = vld [vmem:[#allocation68_spill] sm:$0xff]  ;;  %v8994_v45 = vld [vmem:[%s11335_s0 + $0x128] ss:$68 sps:$4 sm:$0xff]  }
 0x260   :  { %3368 = vmatpush1.bf16.msra.mxu0 %v12105_v34  ;;  %2513 = vrot.lane.b32.xlu0 %v2372_v10, %s6521_s14  ;;  %v8630_v29 = vpop.permute.xlu1 %1938  ;;  %12163 = vst [vmem:[#allocation108_spill] sm:$0xff] %v8994_v45 }
 0x261   :  { %2507 = vrot.lane.b32.xlu1 %v2333_v20, %s6521_s14  ;;  %3369 = vmatprep.subr.bf16.mxu0 %v12106_v37  ;;  %v2376_v55 = vpop.f32.mrf.mxu1  ;;  %v2335_v12 = vpop.f32.mrf.mxu0  ;;  %12118 = vst [vmem:[#allocation37_spill] sm:$0xff] %v8630_v29  ;;  %v12119_v20 = vld [vmem:[#allocation67_spill] sm:$0xff] }
 0x262   :  { %3411 = vmatpush1.bf16.msra.mxu1 %v8294_v3  ;;  %v8613_v58 = vpop.permute.xlu0 %1940  ;;  %v12122_v37 = vld [vmem:[#allocation71_spill] sm:$0xff] }
 0x263   :  { %3412 = vmatprep.subr.bf16.mxu1 %v8302_v0  ;;  %12111 = vst [vmem:[#allocation26_spill] sm:$0xff] %v8613_v58  ;;  %v2378_v26 = vpop.f32.mrf.mxu1  ;;  %v8986_v58 = vld [vmem:[%s11335_s0 + $0x9c] ss:$68 sps:$4 sm:$0xff]  }
 0x264   :  { %3370 = vmatpush1.bf16.msra.mxu0 %v12109_v25  ;;  %2509 = vrot.lane.b32.xlu0 %v2331_v52, %s6521_s14  ;;  %v12116_v52 = vld [vmem:[#allocation64_spill] sm:$0xff] }
 0x265   :  { %2515 = vrot.lane.b32.xlu1 %v2376_v55, %s6521_s14  ;;  %3371 = vmatprep.subr.bf16.mxu0 %v12110_v49  ;;  %v12123_v49 = vld [vmem:[#allocation72_spill] sm:$0xff] }
 0x266   :  { %3413 = vmatpush1.bf16.msra.mxu1 %v8312_v5  ;;  %v8626_v10 = vpop.permute.xlu0 %1936 }
 0x267   :  { %3414 = vmatprep.subr.bf16.mxu1 %v8320_v4  ;;  %12117 = vst [vmem:[#allocation36_spill] sm:$0xff] %v8626_v10  ;;  %v9006_v10 = vld [vmem:[%s11335_s0 + $0x98] ss:$68 sps:$4 sm:$0xff]  }
 0x268   :  { %3372 = vmatpush1.bf16.msra.mxu0 %v12112_v60  ;;  %2517 = vrot.lane.b32.xlu0 %v2374_v36, %s6521_s14  ;;  %12165 = vst [vmem:[#allocation110_spill] sm:$0xff] %v9006_v10 }
 0x269   :  { %2511 = vrot.lane.b32.xlu1 %v2335_v12, %s6521_s14  ;;  %3373 = vmatprep.subr.bf16.mxu0 %v12113_v19  ;;  %v8645_v12 = vpop.permute.xlu1 %1946 }
 0x26a   :  { %3415 = vmatpush1.bf16.msra.mxu1 %v8332_v53  ;;  %v8638_v36 = vpop.permute.xlu0 %1944  ;;  %12124 = vst [vmem:[#allocation45_spill] sm:$0xff] %v8645_v12 }
 0x26b   :  { %3416 = vmatprep.subr.bf16.mxu1 %v8340_v14  ;;  %12121 = vst [vmem:[#allocation40_spill] sm:$0xff] %v8638_v36  ;;  %v8978_v36 = vld [vmem:[%s11335_s0 + $0x120] ss:$68 sps:$4 sm:$0xff]  }
 0x26c   :  { %3374 = vmatpush1.bf16.msra.mxu0 %v12115_v9 }
 0x26d   :  { %2519 = vrot.lane.b32.xlu1 %v2378_v26, %s6521_s14  ;;  %3375 = vmatprep.subr.bf16.mxu0 %v12116_v52  ;;  %v12126_v26 = vld [vmem:[#allocation75_spill] sm:$0xff]  ;;  %v12127_v52 = vld [vmem:[#allocation76_spill] sm:$0xff] }
 0x26e   :  { %3417 = vmatpush1.bf16.msra.mxu1 %v8350_v13  ;;  %v8652_v19 = vpop.permute.xlu0 %1948 }
 0x26f   :  { %3418 = vmatprep.subr.bf16.mxu1 %v8357_v54  ;;  %12125 = vst [vmem:[#allocation46_spill] sm:$0xff] %v8652_v19 }
 0x270   :  { %3376 = vmatpush1.bf16.msra.mxu0 %v12119_v20  ;;  %v8658_v20 = vpop.permute.xlu1 %1950 }
 0x271   :  { %3451 = vmatprep.subr.bf16.mxu0 %v12120_v30  ;;  %12128 = vst [vmem:[#allocation51_spill] sm:$0xff] %v8658_v20  ;;  %v8865_v20 = vld [vmem:[%s11335_s0 + $0x2bc] ss:$68 sps:$4 sm:$0xff]  }
 0x272   :  { %3419 = vmatpush1.bf16.msra.mxu1 %v8367_v47 }
 0x273   :  { %v2415_v34 = vpop.f32.mrf.mxu0  ;;  %5723 = vmatmul.mubr.msk.bf16.vlgmr.msra.gmra.mxu0 %vm649_vm0, %v8464_v28  ;;  %5940 = vmatprep.subr.bf16.mxu1 %v12052_v62 }
 0x274   :  { %3452 = vmatpush1.bf16.msra.mxu0 %v12122_v37  ;;  %2521 = vrot.lane.b32.xlu0 %v2415_v34, %s6521_s14  ;;  %v12129_v34 = vld [vmem:[#allocation25_spill] sm:$0xff]  ;;  %v12130_v37 = vld [vmem:[#allocation79_spill] sm:$0xff] }
 0x275   :  { %v2417_v55 = vpop.f32.mrf.mxu0  ;;  %v2458_v25 = vpop.f32.mrf.mxu1  ;;  %5724 = vmatmul.mubr.msk.bf16.vlgmr.msra.gmra.mxu1 %vm649_vm0, %v8464_v28  ;;  %3453 = vmatprep.subr.bf16.mxu0 %v12123_v49 }
 0x276   :  { %5941 = vmatpush3.bf16.msra.mxu1 %v8387_v22  ;;  %3479 = vmatprep.mubr.bf16.mxu0 %v11825_v63 }
 0x277   :  { %v2419_v60 = vpop.f32.mrf.mxu0  ;;  %5942 = vmatprep.subr.bf16.mxu1 %v12052_v62  ;;  %5952 = vmatprep.mubr.msk.bf16.mxu1 %vm6518_vm1, %v12052_v62  ;;  %v5922_v9 = vpop.f32.mrf.mxu1 }
 0x278   :  { %3454 = vmatpush1.bf16.msra.mxu0 %v12126_v26  ;;  %2529 = vrot.lane.b32.xlu0 %v2458_v25, %s6521_s14  ;;  %v12131_v25 = vld [vmem:[#allocation81_spill] sm:$0xff]  ;;  %v8666_v26 = vpop.permute.xlu0 %1956 }
 0x279   :  { %2523 = vrot.lane.b32.xlu1 %v2419_v60, %s6521_s14  ;;  %3455 = vmatprep.subr.bf16.mxu0 %v12127_v52  ;;  %v2461_v30 = vpop.f32.mrf.mxu1  ;;  %12132 = vst [vmem:[#allocation53_spill] sm:$0xff] %v8666_v26  ;;  %v8670_v60 = vpop.permute.xlu1 %1958  ;;  %v12134_v52 = vld [vmem:[#allocation82_spill] sm:$0xff] }
 0x27a   :  { %5943 = vmatpush3.bf16.msra.mxu1 %v12129_v34  ;;  %12133 = vst [vmem:[#allocation56_spill] sm:$0xff] %v8670_v60  ;;  %v2421_v9 = vpop.f32.mrf.mxu0  ;;  %v8834_v60 = vld [vmem:[%s11335_s0 + $0x4] ss:$68 sps:$4 sm:$0xff]  }
 0x27b   :  { %5944 = vmatprep.subr.bf16.mxu1 %v12052_v62  ;;  %v5923_v49 = vpop.f32.mrf.mxu1 }
 0x27c   :  { %3456 = vmatpush1.bf16.msra.mxu0 %v12130_v37  ;;  %2525 = vrot.lane.b32.xlu0 %v2417_v55, %s6521_s14  ;;  %v12135_v37 = vld [vmem:[#allocation84_spill] sm:$0xff]  ;;  %v8677_v55 = vpop.permute.xlu0 %1952  ;;  %v12138_v49 = vld [vmem:[#allocation87_spill] sm:$0xff] }
 0x27d   :  { %2531 = vrot.lane.b32.xlu1 %v2461_v30, %s6521_s14  ;;  %3457 = vmatprep.subr.bf16.mxu0 %v12131_v25  ;;  %12136 = vst [vmem:[#allocation58_spill] sm:$0xff] %v8677_v55  ;;  %v12137_v30 = vld [vmem:[#allocation85_spill] sm:$0xff]  ;;  %v8681_v25 = vpop.permute.xlu1 %1954  ;;  %12153 = vst [vmem:[#allocation84_spill] sm:$0xff] %v8906_v59 }
 0x27e   :  { %5945 = vmatpush3.bf16.msra.mxu1 %v8419_v11  ;;  %12139 = vst [vmem:[#allocation60_spill] sm:$0xff] %v8681_v25  ;;  %12154 = vst [vmem:[#allocation85_spill] sm:$0xff] %v8913_v61 }
 0x27f   :  { %5946 = vmatprep.subr.bf16.mxu1 %v12052_v62 }
 0x280   :  { %3458 = vmatpush1.bf16.msra.mxu0 %v12134_v52  ;;  %v12140_v52 = vld [vmem:[#allocation15_spill] sm:$0xff] }
 0x281   :  { %2527 = vrot.lane.b32.xlu1 %v2421_v9, %s6521_s14  ;;  %3459 = vmatprep.subr.bf16.mxu0 %v12135_v37  ;;  %v8689_v9 = vld [vmem:[%s11335_s0 + $0x2ac] ss:$68 sps:$4 sm:$0xff]   ;;  %v8692_v37 = vpop.permute.xlu0 %1960  ;;  %v8703_v31 = vpop.permute.xlu1 %1962  ;;  %12156 = vst [vmem:[#allocation15_spill] sm:$0xff] %v8936_v17 }
 0x282   :  { %5947 = vmatpush3.bf16.msra.mxu1 %v8432_v21  ;;  %12141 = vst [vmem:[#allocation62_spill] sm:$0xff] %v8692_v37  ;;  %12142 = vst [vmem:[#allocation64_spill] sm:$0xff] %v8703_v31  ;;  %v8846_v31 = vld [vmem:[%s11336_s1 + $0x30] sm:$0xff]  }
 0x283   :  { %5948 = vmatprep.subr.bf16.mxu1 %v12052_v62 }
 0x284   :  { %3460 = vmatpush1.bf16.msra.mxu0 %v12137_v30 }
 0x285   :  { %3461 = vmatprep.subr.bf16.mxu0 %v12138_v49  ;;  %v8700_v49 = vld [vmem:[%s11335_s0 + $0x2b4] ss:$68 sps:$4 sm:$0xff]   ;;  %v8720_v48 = vpop.permute.xlu0 %1964  ;;  %v8736_v40 = vpop.permute.xlu1 %1966 }
 0x286   :  { %5949 = vmatpush3.bf16.msra.mxu1 %v8446_v24  ;;  %12143 = vst [vmem:[#allocation67_spill] sm:$0xff] %v8720_v48  ;;  %12144 = vst [vmem:[#allocation68_spill] sm:$0xff] %v8736_v40  ;;  %v8755_v40 = vld [vmem:[%s11335_s0 + $0x228] ss:$68 sps:$4 sm:$0xff]   ;;  %v8813_v48 = vld [vmem:[%s11335_s0 + $0x118] ss:$68 sps:$4 sm:$0xff]  }
 0x287   :  { %5950 = vmatprep.subr.bf16.mxu1 %v12052_v62 }
 0x288   :  { %3462 = vmatpush1.bf16.msra.mxu0 %v12140_v52 }
 0x289   :  { %3683 = vmatprep.subr.bf16.mxu0 %v8689_v9  ;;  %v8780_v56 = vpop.permute.xlu1 %1974 }
 0x28a   :  { %5951 = vmatpush3.bf16.msra.mxu1 %v8457_v27  ;;  %12146 = vst [vmem:[#allocation72_spill] sm:$0xff] %v8780_v56  ;;  %v8805_v56 = vld [vmem:[%s11335_s0 + $0x8c] ss:$68 sps:$4 sm:$0xff]  }
 0x28b   :  { %v2647_v30 = vpop.f32.mrf.mxu0  ;;  %5725 = vmatmul.mubr.msk.bf16.vlgmr.msra.gmra.mxu0 %vm649_vm0, %v8464_v28  ;;  %3726 = vmatprep.subr.bf16.mxu1 %v8700_v49 }
 0x28c   :  { %3684 = vmatpush1.bf16.msra.mxu0 %v8708_v33  ;;  %2998 = vrot.lane.b32.xlu0 %v2647_v30, %s6522_s30 }
 0x28d   :  { %v2649_v42 = vpop.f32.mrf.mxu0  ;;  %v2690_v6 = vpop.f32.mrf.mxu1  ;;  %5953 = vmatmul.mubr.msk.bf16.vlgmr.msra.gmra.mxu1 %vm649_vm0, %v8464_v28  ;;  %3685 = vmatprep.subr.bf16.mxu0 %v8717_v32  ;;  %v8732_v28 = vld [vmem:[%s11335_s0 + $0x22c] ss:$68 sps:$4 sm:$0xff]  }
 0x28e   :  { %3727 = vmatpush1.bf16.msra.mxu1 %v8725_v16  ;;  %3711 = vmatprep.mubr.bf16.mxu0 %v11825_v63 }
 0x28f   :  { %v2651_v30 = vpop.f32.mrf.mxu0  ;;  %3728 = vmatprep.subr.bf16.mxu1 %v8732_v28  ;;  %3754 = vmatprep.mubr.bf16.mxu1 %v11825_v63  ;;  %v2692_v57 = vpop.f32.mrf.mxu1 }
 0x290   :  { %3686 = vmatpush1.bf16.msra.mxu0 %v8741_v50  ;;  %3006 = vrot.lane.b32.xlu0 %v2690_v6, %s6522_s30  ;;  %v8761_v6 = vld [vmem:[%s11335_s0 + $0x1a4] ss:$68 sps:$4 sm:$0xff]  }
 0x291   :  { %3000 = vrot.lane.b32.xlu1 %v2651_v30, %s6522_s30  ;;  %3687 = vmatprep.subr.bf16.mxu0 %v8749_v41  ;;  %v2694_v2 = vpop.f32.mrf.mxu1  ;;  %v8764_v30 = vpop.permute.xlu0 %1972 }
 0x292   :  { %3729 = vmatpush1.bf16.msra.mxu1 %v8755_v40  ;;  %12145 = vst [vmem:[#allocation71_spill] sm:$0xff] %v8764_v30  ;;  %v8785_v30 = vld [vmem:[%s11335_s0 + $0x1a0] ss:$68 sps:$4 sm:$0xff]  }
 0x293   :  { %3730 = vmatprep.subr.bf16.mxu1 %v8761_v6  ;;  %v2696_v8 = vpop.f32.mrf.mxu1 }
 0x294   :  { %3688 = vmatpush1.bf16.msra.mxu0 %v8769_v38  ;;  %3002 = vrot.lane.b32.xlu0 %v2649_v42, %s6522_s30  ;;  %v2653_v42 = vpop.f32.mrf.mxu0 }
 0x295   :  { %3008 = vrot.lane.b32.xlu1 %v2694_v2, %s6522_s30  ;;  %3689 = vmatprep.subr.bf16.mxu0 %v8777_v44  ;;  %v8791_v2 = vld [vmem:[%s11335_s0 + $0x11c] ss:$68 sps:$4 sm:$0xff]   ;;  %v8808_v43 = vpop.permute.xlu0 %1968 }
 0x296   :  { %3731 = vmatpush1.bf16.msra.mxu1 %v8785_v30  ;;  %12147 = vst [vmem:[#allocation75_spill] sm:$0xff] %v8808_v43  ;;  %v8827_v43 = vld [vmem:[%s11335_s0 + $0x88] ss:$68 sps:$4 sm:$0xff]  }
 0x297   :  { %3732 = vmatprep.subr.bf16.mxu1 %v8791_v2 }
 0x298   :  { %3690 = vmatpush1.bf16.msra.mxu0 %v8797_v39  ;;  %3010 = vrot.lane.b32.xlu0 %v2692_v57, %s6522_s30  ;;  %v8819_v57 = vld [vmem:[%s11335_s0 + $0x94] ss:$68 sps:$4 sm:$0xff]  }
 0x299   :  { %3004 = vrot.lane.b32.xlu1 %v2653_v42, %s6522_s30  ;;  %3691 = vmatprep.subr.bf16.mxu0 %v8805_v56  ;;  %v8822_v42 = vpop.permute.xlu1 %1970  ;;  %v8854_v23 = vpop.permute.xlu0 %1976 }
 0x29a   :  { %3733 = vmatpush1.bf16.msra.mxu1 %v8813_v48  ;;  %12148 = vst [vmem:[#allocation76_spill] sm:$0xff] %v8822_v42  ;;  %v8840_v42 = vld [vmem:[%s11335_s0 + $0x90] ss:$68 sps:$4 sm:$0xff]   ;;  %12149 = vst [vmem:[#allocation25_spill] sm:$0xff] %v8854_v23  ;;  %v8873_v23 = vld [vmem:[%s11335_s0 + $0x8] ss:$68 sps:$4 sm:$0xff]  }
 0x29b   :  { %3734 = vmatprep.subr.bf16.mxu1 %v8819_v57 }
 0x29c   :  { %3692 = vmatpush1.bf16.msra.mxu0 %v8827_v43 }
 0x29d   :  { %3012 = vrot.lane.b32.xlu1 %v2696_v8, %s6522_s30  ;;  %3693 = vmatprep.subr.bf16.mxu0 %v8834_v60  ;;  %v8851_v8 = vld [vmem:[%s11335_s0 + $0xc] ss:$68 sps:$4 sm:$0xff]   ;;  %v8868_v25 = vpop.permute.xlu1 %1978  ;;  %v8884_v15 = vpop.permute.xlu0 %1980 }
 0x29e   :  { %3735 = vmatpush1.bf16.msra.mxu1 %v8840_v42  ;;  %12150 = vst [vmem:[#allocation79_spill] sm:$0xff] %v8868_v25  ;;  %12151 = vst [vmem:[#allocation81_spill] sm:$0xff] %v8884_v15  ;;  %v8889_v25 = vld [vmem:[%s11335_s0 + $0x2b8] ss:$68 sps:$4 sm:$0xff]  }
 0x29f   :  { %3736 = vmatprep.subr.bf16.mxu1 %v8851_v8 }
 0x2a0   :  { %3694 = vmatpush1.bf16.msra.mxu0 %v8859_v35 }
 0x2a1   :  { %3769 = vmatprep.subr.bf16.mxu0 %v8865_v20  ;;  %v8901_v15 = vpop.permute.xlu1 %1982  ;;  %v8931_v1 = vpop.permute.xlu0 %1988 }
 0x2a2   :  { %3737 = vmatpush1.bf16.msra.mxu1 %v8873_v23  ;;  %12152 = vst [vmem:[#allocation82_spill] sm:$0xff] %v8901_v15  ;;  %v8920_v15 = vld [vmem:[%s11335_s0 + $0x230] ss:$68 sps:$4 sm:$0xff]   ;;  %12155 = vst [vmem:[#allocation87_spill] sm:$0xff] %v8931_v1  ;;  %v8950_v1 = vld [vmem:[%s11335_s0 + $0x1a8] ss:$68 sps:$4 sm:$0xff]  }
 0x2a3   :  { %v2733_v37 = vpop.f32.mrf.mxu0  ;;  %5730 = vmatmul.mubr.msk.bf16.vlgmr.msra.gmra.mxu0 %vm649_vm0, %v8846_v31  ;;  %3812 = vmatprep.subr.bf16.mxu1 %v8881_v7 }
 0x2a4   :  { %3770 = vmatpush1.bf16.msra.mxu0 %v8889_v25  ;;  %3014 = vrot.lane.b32.xlu0 %v2733_v37, %s6522_s30 }
 0x2a5   :  { %v2735_v26 = vpop.f32.mrf.mxu0  ;;  %v2776_v55 = vpop.f32.mrf.mxu1  ;;  %5731 = vmatmul.mubr.msk.bf16.vlgmr.msra.gmra.mxu1 %vm649_vm0, %v8846_v31  ;;  %3771 = vmatprep.subr.bf16.mxu0 %v8898_v46 }
 0x2a6   :  { %3813 = vmatpush1.bf16.msra.mxu1 %v8906_v59  ;;  %3797 = vmatprep.mubr.bf16.mxu0 %v11825_v63  ;;  %v9096_v59 = vld [vmem:[%s11335_s0 + $0x240] ss:$68 sps:$4 sm:$0xff]  }
 0x2a7   :  { %v2737_v37 = vpop.f32.mrf.mxu0  ;;  %3814 = vmatprep.subr.bf16.mxu1 %v8913_v61  ;;  %3840 = vmatprep.mubr.bf16.mxu1 %v11825_v63  ;;  %v2778_v19 = vpop.f32.mrf.mxu1  ;;  %12182 = vst [vmem:[#allocation127_spill] sm:$0xff] %v9096_v59 }
 0x2a8   :  { %3772 = vmatpush1.bf16.msra.mxu0 %v8920_v15  ;;  %3022 = vrot.lane.b32.xlu0 %v2776_v55, %s6522_s30  ;;  %v8942_v55 = vld [vmem:[%s11335_s0 + $0x1b4] ss:$68 sps:$4 sm:$0xff]  }
 0x2a9   :  { %3016 = vrot.lane.b32.xlu1 %v2737_v37, %s6522_s30  ;;  %3773 = vmatprep.subr.bf16.mxu0 %v8928_v18  ;;  %v2780_v12 = vpop.f32.mrf.mxu1  ;;  %12157 = vst [vmem:[#allocation102_spill] sm:$0xff] %v8942_v55  ;;  %v8945_v37 = vpop.permute.xlu1 %1990 }
 0x2aa   :  { %3815 = vmatpush1.bf16.msra.mxu1 %v8936_v17  ;;  %12158 = vst [vmem:[#allocation103_spill] sm:$0xff] %v8945_v37  ;;  %v8964_v37 = vld [vmem:[%s11335_s0 + $0x1b0] ss:$68 sps:$4 sm:$0xff]   ;;  %v2739_v29 = vpop.f32.mrf.mxu0 }
 0x2ab   :  { %3816 = vmatprep.subr.bf16.mxu1 %v8942_v55  ;;  %12159 = vst [vmem:[#allocation104_spill] sm:$0xff] %v8964_v37  ;;  %v9057_v55 = vld [vmem:[%s11335_s0 + $0x2d4] ss:$68 sps:$4 sm:$0xff]  }
 0x2ac   :  { %3774 = vmatpush1.bf16.msra.mxu0 %v8950_v1  ;;  %3018 = vrot.lane.b32.xlu0 %v2735_v26, %s6522_s30  ;;  %v8970_v26 = vld [vmem:[%s11335_s0 + $0x12c] ss:$68 sps:$4 sm:$0xff]   ;;  %12175 = vst [vmem:[#allocation120_spill] sm:$0xff] %v9057_v55 }
 0x2ad   :  { %3024 = vrot.lane.b32.xlu1 %v2780_v12, %s6522_s30  ;;  %3775 = vmatprep.subr.bf16.mxu0 %v8958_v51  ;;  %12160 = vst [vmem:[#allocation105_spill] sm:$0xff] %v8970_v26  ;;  %v8973_v12 = vpop.permute.xlu0 %1984 }
 0x2ae   :  { %3817 = vmatpush1.bf16.msra.mxu1 %v8964_v37  ;;  %12161 = vst [vmem:[#allocation106_spill] sm:$0xff] %v8973_v12  ;;  %v8989_v12 = vpop.permute.xlu1 %1986 }
 0x2af   :  { %3818 = vmatprep.subr.bf16.mxu1 %v8970_v26  ;;  %12162 = vst [vmem:[#allocation107_spill] sm:$0xff] %v8989_v12  ;;  %v9013_v12 = vld [vmem:[%s11335_s0 + $0x14] ss:$68 sps:$4 sm:$0xff]  }
 0x2b0   :  { %3776 = vmatpush1.bf16.msra.mxu0 %v8978_v36  ;;  %3026 = vrot.lane.b32.xlu0 %v2778_v19, %s6522_s30  ;;  %v2782_v19 = vpop.f32.mrf.mxu1  ;;  %12166 = vst [vmem:[#allocation111_spill] sm:$0xff] %v9013_v12 }
 0x2b1   :  { %3020 = vrot.lane.b32.xlu1 %v2739_v29, %s6522_s30  ;;  %3777 = vmatprep.subr.bf16.mxu0 %v8986_v58  ;;  %v9000_v29 = vld [vmem:[%s11335_s0 + $0xa4] ss:$68 sps:$4 sm:$0xff]  }
 0x2b2   :  { %3819 = vmatpush1.bf16.msra.mxu1 %v8994_v45  ;;  %12164 = vst [vmem:[#allocation109_spill] sm:$0xff] %v9000_v29  ;;  %v9016_v45 = vpop.permute.xlu0 %1992  ;;  %v9030_v26 = vpop.permute.xlu1 %1994 }
 0x2b3   :  { %3820 = vmatprep.subr.bf16.mxu1 %v9000_v29  ;;  %12167 = vst [vmem:[#allocation112_spill] sm:$0xff] %v9016_v45  ;;  %v9021_v29 = vld [vmem:[%s11335_s0 + $0xa0] ss:$68 sps:$4 sm:$0xff]   ;;  %12170 = vst [vmem:[#allocation115_spill] sm:$0xff] %v9030_v26  ;;  %v9035_v45 = vld [vmem:[%s11335_s0 + $0x10] ss:$68 sps:$4 sm:$0xff]  }
 0x2b4   :  { %3778 = vmatpush1.bf16.msra.mxu0 %v9006_v10  ;;  %12168 = vst [vmem:[#allocation113_spill] sm:$0xff] %v9021_v29  ;;  %12171 = vst [vmem:[#allocation116_spill] sm:$0xff] %v9035_v45  ;;  %v9049_v26 = vld [vmem:[%s11335_s0 + $0x18] ss:$68 sps:$4 sm:$0xff]  }
 0x2b5   :  { %3028 = vrot.lane.b32.xlu1 %v2782_v19, %s6522_s30  ;;  %3779 = vmatprep.subr.bf16.mxu0 %v9013_v12  ;;  %v9027_v19 = vld [vmem:[%s11335_s0 + $0x1c] ss:$68 sps:$4 sm:$0xff]   ;;  %12174 = vst [vmem:[#allocation119_spill] sm:$0xff] %v9049_v26 }
 0x2b6   :  { %3821 = vmatpush1.bf16.msra.mxu1 %v9021_v29  ;;  %12169 = vst [vmem:[#allocation114_spill] sm:$0xff] %v9027_v19  ;;  %v9041_v29 = vld [vmem:[%s11335_s0 + $0x2cc] ss:$68 sps:$4 sm:$0xff]   ;;  %v9044_v37 = vpop.permute.xlu0 %1996  ;;  %v9060_v17 = vpop.permute.xlu1 %1998 }
 0x2b7   :  { %3822 = vmatprep.subr.bf16.mxu1 %v9027_v19  ;;  %12172 = vst [vmem:[#allocation117_spill] sm:$0xff] %v9041_v29  ;;  %12173 = vst [vmem:[#allocation118_spill] sm:$0xff] %v9044_v37  ;;  %v9065_v37 = vld [vmem:[%s11335_s0 + $0x2c8] ss:$68 sps:$4 sm:$0xff]  }
 0x2b8   :  { %3780 = vmatpush1.bf16.msra.mxu0 %v9035_v45  ;;  %12176 = vst [vmem:[#allocation121_spill] sm:$0xff] %v9060_v17  ;;  %12177 = vst [vmem:[#allocation122_spill] sm:$0xff] %v9065_v37  ;;  %v9080_v17 = vld [vmem:[%s11335_s0 + $0x2d0] ss:$68 sps:$4 sm:$0xff]   ;;  %v9112_v45 = vld [vmem:[%s11335_s0 + $0x248] ss:$68 sps:$4 sm:$0xff]  }
 0x2b9   :  { %3855 = vmatprep.subr.bf16.mxu0 %v9041_v29  ;;  %12179 = vst [vmem:[#allocation124_spill] sm:$0xff] %v9080_v17  ;;  %12185 = vst [vmem:[#allocation130_spill] sm:$0xff] %v9112_v45 }
 0x2ba   :  { %3823 = vmatpush1.bf16.msra.mxu1 %v9049_v26 }
 0x2bb   :  { %v2819_v19 = vpop.f32.mrf.mxu0  ;;  %5732 = vmatmul.mubr.msk.bf16.vlgmr.msra.gmra.mxu0 %vm649_vm0, %v8846_v31  ;;  %3898 = vmatprep.subr.bf16.mxu1 %v9057_v55  ;;  %v9074_v55 = vld [vmem:[%s11335_s0 + $0x244] ss:$68 sps:$4 sm:$0xff]  }
 0x2bc   :  { %3856 = vmatpush1.bf16.msra.mxu0 %v9065_v37  ;;  %3030 = vrot.lane.b32.xlu0 %v2819_v19, %s6522_s30  ;;  %12178 = vst [vmem:[#allocation123_spill] sm:$0xff] %v9074_v55  ;;  %v9087_v37 = vld [vmem:[%s11335_s0 + $0x24c] ss:$68 sps:$4 sm:$0xff]  }
 0x2bd   :  { %v2821_v26 = vpop.f32.mrf.mxu0  ;;  %v2862_v61 = vpop.f32.mrf.mxu1  ;;  %5733 = vmatmul.mubr.msk.bf16.vlgmr.msra.gmra.mxu1 %vm649_vm0, %v8846_v31  ;;  %3857 = vmatprep.subr.bf16.mxu0 %v9074_v55  ;;  %12180 = vst [vmem:[#allocation125_spill] sm:$0xff] %v9087_v37 }
 0x2be   :  { %3899 = vmatpush1.bf16.msra.mxu1 %v9080_v17  ;;  %3883 = vmatprep.mubr.bf16.mxu0 %v11825_v63  ;;  %v9091_v55 = vpop.permute.xlu0 %2465 }
 0x2bf   :  { %v2823_v19 = vpop.f32.mrf.mxu0  ;;  %3900 = vmatprep.subr.bf16.mxu1 %v9087_v37  ;;  %3926 = vmatprep.mubr.bf16.mxu1 %v11825_v63  ;;  %12181 = vst [vmem:[#allocation126_spill] sm:$0xff] %v9091_v55  ;;  %v2864_v17 = vpop.f32.mrf.mxu1  ;;  %v9104_v37 = vld [vmem:[%s11335_s0 + $0x1bc] ss:$68 sps:$4 sm:$0xff]  }
 0x2c0   :  { %3858 = vmatpush1.bf16.msra.mxu0 %v9096_v59  ;;  %3038 = vrot.lane.b32.xlu0 %v2862_v61, %s6522_s30  ;;  %12183 = vst [vmem:[#allocation128_spill] sm:$0xff] %v9104_v37  ;;  %v9107_v55 = vpop.permute.xlu1 %2467  ;;  %v9118_v61 = vld [vmem:[%s11335_s0 + $0x1c4] ss:$68 sps:$4 sm:$0xff]  }
 0x2c1   :  { %3032 = vrot.lane.b32.xlu1 %v2823_v19, %s6522_s30  ;;  %3859 = vmatprep.subr.bf16.mxu0 %v9104_v37  ;;  %12184 = vst [vmem:[#allocation129_spill] sm:$0xff] %v9107_v55  ;;  %v2866_v29 = vpop.f32.mrf.mxu1  ;;  %12186 = vst [vmem:[#allocation131_spill] sm:$0xff] %v9118_v61  ;;  %v9124_v19 = vld [vmem:[%s11335_s0 + $0x1b8] ss:$68 sps:$4 sm:$0xff]  }
 0x2c2   :  { %3901 = vmatpush1.bf16.msra.mxu1 %v9112_v45  ;;  %12187 = vst [vmem:[#allocation132_spill] sm:$0xff] %v9124_v19  ;;  %v9132_v55 = vld [vmem:[%s11335_s0 + $0x134] ss:$68 sps:$4 sm:$0xff]   ;;  %v9135_v45 = vpop.permute.xlu0 %2469 }
 0x2c3   :  { %3902 = vmatprep.subr.bf16.mxu1 %v9118_v61  ;;  %12188 = vst [vmem:[#allocation133_spill] sm:$0xff] %v9132_v55  ;;  %12189 = vst [vmem:[#allocation134_spill] sm:$0xff] %v9135_v45  ;;  %v9140_v61 = vld [vmem:[%s11335_s0 + $0x1c0] ss:$68 sps:$4 sm:$0xff]   ;;  %v9154_v45 = vld [vmem:[%s11335_s0 + $0x130] ss:$68 sps:$4 sm:$0xff]  }
 0x2c4   :  { %3860 = vmatpush1.bf16.msra.mxu0 %v9124_v19  ;;  %3034 = vrot.lane.b32.xlu0 %v2821_v26, %s6522_s30  ;;  %12190 = vst [vmem:[#allocation135_spill] sm:$0xff] %v9140_v61  ;;  %v9146_v26 = vld [vmem:[%s11335_s0 + $0x13c] ss:$68 sps:$4 sm:$0xff]   ;;  %v2825_v19 = vpop.f32.mrf.mxu0  ;;  %12193 = vst [vmem:[#allocation138_spill] sm:$0xff] %v9154_v45 }
 0x2c5   :  { %3040 = vrot.lane.b32.xlu1 %v2866_v29, %s6522_s30  ;;  %3861 = vmatprep.subr.bf16.mxu0 %v9132_v55  ;;  %12191 = vst [vmem:[#allocation136_spill] sm:$0xff] %v9146_v26  ;;  %v9149_v29 = vpop.permute.xlu1 %2471  ;;  %v9263_v55 = vld [vmem:[%s11335_s0 + $0x25c] ss:$68 sps:$4 sm:$0xff]  }
 0x2c6   :  { %3903 = vmatpush1.bf16.msra.mxu1 %v9140_v61  ;;  %12192 = vst [vmem:[#allocation137_spill] sm:$0xff] %v9149_v29  ;;  %v9162_v61 = vld [vmem:[%s11335_s0 + $0xac] ss:$68 sps:$4 sm:$0xff]   ;;  %v9165_v29 = vpop.permute.xlu0 %2473  ;;  %12213 = vst [vmem:[#allocation158_spill] sm:$0xff] %v9263_v55  ;;  %v9276_v37 = vld [vmem:[%s11335_s0 + $0x258] ss:$68 sps:$4 sm:$0xff]  }
 0x2c7   :  { %3904 = vmatprep.subr.bf16.mxu1 %v9146_v26  ;;  %12194 = vst [vmem:[#allocation139_spill] sm:$0xff] %v9162_v61  ;;  %12195 = vst [vmem:[#allocation140_spill] sm:$0xff] %v9165_v29  ;;  %v9170_v26 = vld [vmem:[%s11335_s0 + $0x138] ss:$68 sps:$4 sm:$0xff]   ;;  %v9184_v29 = vld [vmem:[%s11335_s0 + $0xa8] ss:$68 sps:$4 sm:$0xff]  }
 0x2c8   :  { %3862 = vmatpush1.bf16.msra.mxu0 %v9154_v45  ;;  %3042 = vrot.lane.b32.xlu0 %v2864_v17, %s6522_s30  ;;  %12196 = vst [vmem:[#allocation141_spill] sm:$0xff] %v9170_v26  ;;  %v9176_v17 = vld [vmem:[%s11335_s0 + $0xb4] ss:$68 sps:$4 sm:$0xff]   ;;  %v2868_v45 = vpop.f32.mrf.mxu1  ;;  %12199 = vst [vmem:[#allocation144_spill] sm:$0xff] %v9184_v29 }
 0x2c9   :  { %3036 = vrot.lane.b32.xlu1 %v2825_v19, %s6522_s30  ;;  %3863 = vmatprep.subr.bf16.mxu0 %v9162_v61  ;;  %12197 = vst [vmem:[#allocation142_spill] sm:$0xff] %v9176_v17  ;;  %v9179_v19 = vpop.permute.xlu1 %2475  ;;  %v9248_v61 = vld [vmem:[%s11335_s0 + $0x254] ss:$68 sps:$4 sm:$0xff]   ;;  %12215 = vst [vmem:[#allocation160_spill] sm:$0xff] %v9276_v37 }
 0x2ca   :  { %3905 = vmatpush1.bf16.msra.mxu1 %v9170_v26  ;;  %12198 = vst [vmem:[#allocation143_spill] sm:$0xff] %v9179_v19  ;;  %v9191_v26 = vld [vmem:[%s11335_s0 + $0x24] ss:$68 sps:$4 sm:$0xff]   ;;  %v9197_v19 = vld [vmem:[%s11335_s0 + $0xb0] ss:$68 sps:$4 sm:$0xff]   ;;  %12210 = vst [vmem:[#allocation155_spill] sm:$0xff] %v9248_v61 }
 0x2cb   :  { %3906 = vmatprep.subr.bf16.mxu1 %v9176_v17  ;;  %12200 = vst [vmem:[#allocation145_spill] sm:$0xff] %v9191_v26  ;;  %12201 = vst [vmem:[#allocation146_spill] sm:$0xff] %v9197_v19  ;;  %v9203_v17 = vld [vmem:[%s11335_s0 + $0x2c] ss:$68 sps:$4 sm:$0xff]  }
 0x2cc   :  { %3864 = vmatpush1.bf16.msra.mxu0 %v9184_v29  ;;  %12202 = vst [vmem:[#allocation147_spill] sm:$0xff] %v9203_v17 }
 0x2cd   :  { %3044 = vrot.lane.b32.xlu1 %v2868_v45, %s6522_s30  ;;  %3865 = vmatprep.subr.bf16.mxu0 %v9191_v26  ;;  %v9206_v45 = vpop.permute.xlu0 %2481  ;;  %v9211_v26 = vld [vmem:[%s11335_s0 + $0x20] ss:$68 sps:$4 sm:$0xff]   ;;  %v9220_v29 = vpop.permute.xlu1 %2483 }
 0x2ce   :  { %3907 = vmatpush1.bf16.msra.mxu1 %v9197_v19  ;;  %12203 = vst [vmem:[#allocation148_spill] sm:$0xff] %v9206_v45  ;;  %12204 = vst [vmem:[#allocation149_spill] sm:$0xff] %v9211_v26  ;;  %v9217_v19 = vld [vmem:[%s11335_s0 + $0x2dc] ss:$68 sps:$4 sm:$0xff]   ;;  %v9225_v45 = vld [vmem:[%s11335_s0 + $0x28] ss:$68 sps:$4 sm:$0xff]  }
 0x2cf   :  { %3908 = vmatprep.subr.bf16.mxu1 %v9203_v17  ;;  %12205 = vst [vmem:[#allocation150_spill] sm:$0xff] %v9217_v19  ;;  %12206 = vst [vmem:[#allocation151_spill] sm:$0xff] %v9220_v29  ;;  %v9239_v29 = vld [vmem:[%s11335_s0 + $0x2d8] ss:$68 sps:$4 sm:$0xff]  }
 0x2d0   :  { %3866 = vmatpush1.bf16.msra.mxu0 %v9211_v26  ;;  %12207 = vst [vmem:[#allocation152_spill] sm:$0xff] %v9225_v45  ;;  %v9233_v26 = vld [vmem:[%s11335_s0 + $0x2e4] ss:$68 sps:$4 sm:$0xff]   ;;  %12209 = vst [vmem:[#allocation154_spill] sm:$0xff] %v9239_v29 }
 0x2d1   :  { %3941 = vmatprep.subr.bf16.mxu0 %v9217_v19  ;;  %12208 = vst [vmem:[#allocation153_spill] sm:$0xff] %v9233_v26 }
 0x2d2   :  { %3909 = vmatpush1.bf16.msra.mxu1 %v9225_v45 }
 0x2d3   :  { %v2905_v17 = vpop.f32.mrf.mxu0  ;;  %5734 = vmatmul.mubr.msk.bf16.vlgmr.msra.gmra.mxu0 %vm649_vm0, %v8846_v31  ;;  %3984 = vmatprep.subr.bf16.mxu1 %v9233_v26  ;;  %v9251_v26 = vpop.permute.xlu0 %2477 }
 0x2d4   :  { %3942 = vmatpush1.bf16.msra.mxu0 %v9239_v29  ;;  %3046 = vrot.lane.b32.xlu0 %v2905_v17, %s6522_s30  ;;  %12211 = vst [vmem:[#allocation156_spill] sm:$0xff] %v9251_v26  ;;  %v9256_v29 = vld [vmem:[%s11335_s0 + $0x2e0] ss:$68 sps:$4 sm:$0xff]   ;;  %v9267_v26 = vpop.permute.xlu1 %2479 }
 0x2d5   :  { %v2907_v45 = vpop.f32.mrf.mxu0  ;;  %v2948_v19 = vpop.f32.mrf.mxu1  ;;  %5735 = vmatmul.mubr.msk.bf16.vlgmr.msra.gmra.mxu1 %vm649_vm0, %v8846_v31  ;;  %3943 = vmatprep.subr.bf16.mxu0 %v9248_v61  ;;  %12212 = vst [vmem:[#allocation157_spill] sm:$0xff] %v9256_v29  ;;  %12214 = vst [vmem:[#allocation159_spill] sm:$0xff] %v9267_v26  ;;  %v9282_v26 = vld [vmem:[%s11335_s0 + $0x1d4] ss:$68 sps:$4 sm:$0xff]  }
 0x2d6   :  { %3985 = vmatpush1.bf16.msra.mxu1 %v9256_v29  ;;  %3969 = vmatprep.mubr.bf16.mxu0 %v11825_v63 }
 0x2d7   :  { %v2909_v17 = vpop.f32.mrf.mxu0  ;;  %3986 = vmatprep.subr.bf16.mxu1 %v9263_v55  ;;  %4012 = vmatprep.mubr.bf16.mxu1 %v11825_v63  ;;  %v2950_v61 = vpop.f32.mrf.mxu1 }
 0x2d8   :  { %3944 = vmatpush1.bf16.msra.mxu0 %v8294_v3  ;;  %3054 = vrot.lane.b32.xlu0 %v2948_v19, %s6522_s30  ;;  %v9285_v3 = vpop.permute.xlu0 %2485  ;;  %v9296_v19 = vld [vmem:[%s11335_s0 + $0x1d0] ss:$68 sps:$4 sm:$0xff]  }
 0x2d9   :  { %3048 = vrot.lane.b32.xlu1 %v2909_v17, %s6522_s30  ;;  %3945 = vmatprep.subr.bf16.mxu0 %v8302_v0  ;;  %v2952_v29 = vpop.f32.mrf.mxu1  ;;  %12216 = vst [vmem:[#allocation161_spill] sm:$0xff] %v9285_v3  ;;  %v9291_v0 = vpop.permute.xlu1 %2487  ;;  %v9302_v17 = vld [vmem:[%s11335_s0 + $0x14c] ss:$68 sps:$4 sm:$0xff]  }
 0x2da   :  { %3987 = vmatpush1.bf16.msra.mxu1 %v9276_v37  ;;  %12217 = vst [vmem:[#allocation162_spill] sm:$0xff] %v9291_v0  ;;  %v9322_v0 = vld [vmem:[%s11335_s0 + $0xc4] ss:$68 sps:$4 sm:$0xff]  }
 0x2db   :  { %3988 = vmatprep.subr.bf16.mxu1 %v9282_v26 }
 0x2dc   :  { %3946 = vmatpush1.bf16.msra.mxu0 %v8312_v5  ;;  %3050 = vrot.lane.b32.xlu0 %v2907_v45, %s6522_s30  ;;  %v9305_v5 = vpop.permute.xlu0 %2489  ;;  %v9316_v45 = vld [vmem:[%s11335_s0 + $0x148] ss:$68 sps:$4 sm:$0xff]  }
 0x2dd   :  { %3056 = vrot.lane.b32.xlu1 %v2952_v29, %s6522_s30  ;;  %3947 = vmatprep.subr.bf16.mxu0 %v8320_v4  ;;  %12218 = vst [vmem:[#allocation163_spill] sm:$0xff] %v9305_v5  ;;  %v2911_v29 = vpop.f32.mrf.mxu0  ;;  %v9311_v4 = vpop.permute.xlu1 %2491  ;;  %v12249_v5 = vld [vmem:[#allocation102_spill] sm:$0xff] }
 0x2de   :  { %3989 = vmatpush1.bf16.msra.mxu1 %v9296_v19  ;;  %12219 = vst [vmem:[#allocation164_spill] sm:$0xff] %v9311_v4 }
 0x2df   :  { %3990 = vmatprep.subr.bf16.mxu1 %v9302_v17 }
 0x2e0   :  { %3948 = vmatpush1.bf16.msra.mxu0 %v8332_v53  ;;  %3058 = vrot.lane.b32.xlu0 %v2950_v61, %s6522_s30  ;;  %v2954_v53 = vpop.f32.mrf.mxu1  ;;  %v9333_v61 = vld [vmem:[%s11335_s0 + $0xc0] ss:$68 sps:$4 sm:$0xff]  }
 0x2e1   :  { %3052 = vrot.lane.b32.xlu1 %v2911_v29, %s6522_s30  ;;  %3949 = vmatprep.subr.bf16.mxu0 %v8340_v14  ;;  %v9328_v14 = vpop.permute.xlu0 %2497  ;;  %v9339_v29 = vld [vmem:[%s11335_s0 + $0x3c] ss:$68 sps:$4 sm:$0xff]  }
 0x2e2   :  { %3991 = vmatpush1.bf16.msra.mxu1 %v9316_v45  ;;  %12220 = vst [vmem:[#allocation165_spill] sm:$0xff] %v9328_v14 }
 0x2e3   :  { %3992 = vmatprep.subr.bf16.mxu1 %v9322_v0 }
 0x2e4   :  { %3950 = vmatpush1.bf16.msra.mxu0 %v8350_v13  ;;  %v9342_v13 = vpop.permute.xlu1 %2499 }
 0x2e5   :  { %3060 = vrot.lane.b32.xlu1 %v2954_v53, %s6522_s30  ;;  %3951 = vmatprep.subr.bf16.mxu0 %v8357_v54  ;;  %12221 = vst [vmem:[#allocation166_spill] sm:$0xff] %v9342_v13  ;;  %v9350_v53 = vpop.permute.xlu0 %2493 }
 0x2e6   :  { %3993 = vmatpush1.bf16.msra.mxu1 %v9333_v61  ;;  %12222 = vst [vmem:[#allocation167_spill] sm:$0xff] %v9350_v53  ;;  %v12248_v53 = vld [vmem:[#allocation15_spill] sm:$0xff] }
 0x2e7   :  { %3994 = vmatprep.subr.bf16.mxu1 %v9339_v29 }
 0x2e8   :  { %3952 = vmatpush1.bf16.msra.mxu0 %v8367_v47  ;;  %v9357_v47 = vpop.permute.xlu1 %2495 }
 0x2e9   :  { %5956 = vmatprep.subr.bf16.mxu0 %v12052_v62  ;;  %12223 = vst [vmem:[#allocation168_spill] sm:$0xff] %v9357_v47 }
 0x2ea   :  { %3995 = vmatpush1.bf16.msra.mxu1 %v12140_v52 }
 0x2eb   :  { %v2991_v54 = vpop.f32.mrf.mxu0  ;;  %5736 = vmatmul.mubr.msk.bf16.vlgmr.msra.gmra.mxu0 %vm649_vm0, %v8846_v31  ;;  %4216 = vmatprep.subr.bf16.mxu1 %v8689_v9 }
 0x2ec   :  { %5957 = vmatpush3.bf16.msra.mxu0 %v8387_v22  ;;  %3062 = vrot.lane.b32.xlu0 %v2991_v54, %s6522_s30  ;;  %v9368_v54 = vpop.permute.xlu0 %2501  ;;  %v9372_v47 = vpop.permute.xlu1 %2503 }
 0x2ed   :  { %v5938_v14 = vpop.f32.mrf.mxu0  ;;  %v3180_v13 = vpop.f32.mrf.mxu1  ;;  %5737 = vmatmul.mubr.msk.bf16.vlgmr.msra.gmra.mxu1 %vm649_vm0, %v8846_v31  ;;  %5958 = vmatprep.subr.bf16.mxu0 %v12052_v62  ;;  %12224 = vst [vmem:[#allocation169_spill] sm:$0xff] %v9368_v54  ;;  %12225 = vst [vmem:[#allocation170_spill] sm:$0xff] %v9372_v47  ;;  %v12246_v47 = vld [vmem:[#allocation122_spill] sm:$0xff]  ;;  %v12247_v54 = vld [vmem:[#allocation123_spill] sm:$0xff] }
 0x2ee   :  { %4217 = vmatpush1.bf16.msra.mxu1 %v8708_v33  ;;  %5968 = vmatprep.mubr.msk.bf16.mxu0 %vm6518_vm1, %v12052_v62 }
 0x2ef   :  { %v2994_v52 = vpop.f32.mrf.mxu0  ;;  %4218 = vmatprep.subr.bf16.mxu1 %v8717_v32  ;;  %4244 = vmatprep.mubr.bf16.mxu1 %v11825_v63  ;;  %v3182_v22 = vpop.f32.mrf.mxu1 }
 0x2f0   :  { %5959 = vmatpush3.bf16.msra.mxu0 %v12129_v34  ;;  %3531 = vrot.lane.b32.xlu0 %v3180_v13, %s6523_s10  ;;  %v9378_v34 = vpop.permute.xlu0 %2505 }
 0x2f1   :  { %3064 = vrot.lane.b32.xlu1 %v2994_v52, %s6522_s30  ;;  %v5939_v14 = vpop.f32.mrf.mxu0  ;;  %5960 = vmatprep.subr.bf16.mxu0 %v12052_v62  ;;  %v3184_v4 = vpop.f32.mrf.mxu1  ;;  %12226 = vst [vmem:[#allocation171_spill] sm:$0xff] %v9378_v34 }
 0x2f2   :  { %4219 = vmatpush1.bf16.msra.mxu1 %v8741_v50  ;;  %v9382_v52 = vpop.permute.xlu1 %2507 }
 0x2f3   :  { %4220 = vmatprep.subr.bf16.mxu1 %v8749_v41  ;;  %v3186_v13 = vpop.f32.mrf.mxu1  ;;  %12227 = vst [vmem:[#allocation172_spill] sm:$0xff] %v9382_v52 }
 0x2f4   :  { %5961 = vmatpush3.bf16.msra.mxu0 %v8419_v11  ;;  %3535 = vrot.lane.b32.xlu0 %v3182_v22, %s6523_s10  ;;  %v9389_v11 = vpop.permute.xlu0 %2513 }
 0x2f5   :  { %3533 = vrot.lane.b32.xlu1 %v3184_v4, %s6523_s10  ;;  %5962 = vmatprep.subr.bf16.mxu0 %v12052_v62  ;;  %12228 = vst [vmem:[#allocation173_spill] sm:$0xff] %v9389_v11 }
 0x2f6   :  { %4221 = vmatpush1.bf16.msra.mxu1 %v8769_v38  ;;  %v9393_v4 = vpop.permute.xlu1 %2515 }
 0x2f7   :  { %4222 = vmatprep.subr.bf16.mxu1 %v8777_v44  ;;  %12229 = vst [vmem:[#allocation174_spill] sm:$0xff] %v9393_v4 }
 0x2f8   :  { %5963 = vmatpush3.bf16.msra.mxu0 %v8432_v21  ;;  %v9402_v21 = vld [vmem:[%s11336_s1 + $0x38] sm:$0xff]   ;;  %v9404_v22 = vpop.permute.xlu0 %2509 }
 0x2f9   :  { %3537 = vrot.lane.b32.xlu1 %v3186_v13, %s6523_s10  ;;  %5964 = vmatprep.subr.bf16.mxu0 %v12052_v62  ;;  %12230 = vst [vmem:[#allocation175_spill] sm:$0xff] %v9404_v22 }
 0x2fa   :  { %4223 = vmatpush1.bf16.msra.mxu1 %v8797_v39  ;;  %v9410_v14 = vpop.permute.xlu1 %2511 }
 0x2fb   :  { %4224 = vmatprep.subr.bf16.mxu1 %v8805_v56  ;;  %12231 = vst [vmem:[#allocation176_spill] sm:$0xff] %v9410_v14 }
 0x2fc   :  { %5965 = vmatpush3.bf16.msra.mxu0 %v8446_v24  ;;  %v9421_v4 = vpop.permute.xlu0 %2517 }
 0x2fd   :  { %5966 = vmatprep.subr.bf16.mxu0 %v12052_v62  ;;  %12232 = vst [vmem:[#allocation177_spill] sm:$0xff] %v9421_v4 }
 0x2fe   :  { %4225 = vmatpush1.bf16.msra.mxu1 %v8827_v43  ;;  %v9427_v11 = vpop.permute.xlu1 %2519 }
 0x2ff   :  { %4226 = vmatprep.subr.bf16.mxu1 %v8834_v60  ;;  %12233 = vst [vmem:[#allocation178_spill] sm:$0xff] %v9427_v11 }
 0x300   :  { %5967 = vmatpush3.bf16.msra.mxu0 %v8457_v27  ;;  %v9431_v14 = vpop.permute.xlu0 %2521 }
 0x301   :  { %4259 = vmatprep.subr.bf16.mxu0 %v8700_v49  ;;  %12234 = vst [vmem:[#allocation179_spill] sm:$0xff] %v9431_v14  ;;  %v12243_v14 = vld [vmem:[#allocation84_spill] sm:$0xff] }
 0x302   :  { %4227 = vmatpush1.bf16.msra.mxu1 %v8859_v35 }
 0x303   :  { %v3223_v24 = vpop.f32.mrf.mxu0  ;;  %5969 = vmatmul.mubr.msk.bf16.vlgmr.msra.gmra.mxu0 %vm649_vm0, %v8846_v31  ;;  %4302 = vmatprep.subr.bf16.mxu1 %v8865_v20 }
 0x304   :  { %4260 = vmatpush1.bf16.msra.mxu0 %v8725_v16  ;;  %3539 = vrot.lane.b32.xlu0 %v3223_v24, %s6523_s10 }
 0x305   :  { %v3225_v27 = vpop.f32.mrf.mxu0  ;;  %v3266_v13 = vpop.f32.mrf.mxu1  ;;  %5742 = vmatmul.mubr.msk.bf16.vlgmr.msra.gmra.mxu1 %vm649_vm0, %v9402_v21  ;;  %4261 = vmatprep.subr.bf16.mxu0 %v8732_v28 }
 0x306   :  { %4303 = vmatpush1.bf16.msra.mxu1 %v8889_v25  ;;  %4287 = vmatprep.mubr.bf16.mxu0 %v11825_v63 }
 0x307   :  { %v3227_v31 = vpop.f32.mrf.mxu0  ;;  %4304 = vmatprep.subr.bf16.mxu1 %v8898_v46  ;;  %4330 = vmatprep.mubr.bf16.mxu1 %v11825_v63  ;;  %v3268_v24 = vpop.f32.mrf.mxu1 }
 0x308   :  { %4262 = vmatpush1.bf16.msra.mxu0 %v8755_v40  ;;  %3547 = vrot.lane.b32.xlu0 %v3266_v13, %s6523_s10  ;;  %v9437_v13 = vpop.permute.xlu1 %2523 }
 0x309   :  { %3541 = vrot.lane.b32.xlu1 %v3227_v31, %s6523_s10  ;;  %4263 = vmatprep.subr.bf16.mxu0 %v8761_v6  ;;  %v3270_v52 = vpop.f32.mrf.mxu1  ;;  %12235 = vst [vmem:[#allocation180_spill] sm:$0xff] %v9437_v13  ;;  %v3229_v31 = vpop.f32.mrf.mxu0 }
 0x30a   :  { %4305 = vmatpush1.bf16.msra.mxu1 %v8920_v15 }
 0x30b   :  { %4306 = vmatprep.subr.bf16.mxu1 %v8928_v18  ;;  %v3272_v13 = vpop.f32.mrf.mxu1 }
 0x30c   :  { %4264 = vmatpush1.bf16.msra.mxu0 %v8785_v30  ;;  %3543 = vrot.lane.b32.xlu0 %v3225_v27, %s6523_s10  ;;  %v9445_v27 = vpop.permute.xlu0 %2529 }
 0x30d   :  { %3549 = vrot.lane.b32.xlu1 %v3270_v52, %s6523_s10  ;;  %4265 = vmatprep.subr.bf16.mxu0 %v8791_v2  ;;  %12236 = vst [vmem:[#allocation181_spill] sm:$0xff] %v9445_v27  ;;  %v9449_v52 = vpop.permute.xlu1 %2531 }
 0x30e   :  { %4307 = vmatpush1.bf16.msra.mxu1 %v8950_v1  ;;  %12237 = vst [vmem:[#allocation182_spill] sm:$0xff] %v9449_v52  ;;  %v12240_v52 = vld [vmem:[#allocation116_spill] sm:$0xff] }
 0x30f   :  { %4308 = vmatprep.subr.bf16.mxu1 %v8958_v51 }
 0x310   :  { %4266 = vmatpush1.bf16.msra.mxu0 %v8813_v48  ;;  %3551 = vrot.lane.b32.xlu0 %v3268_v24, %s6523_s10  ;;  %v9456_v24 = vpop.permute.xlu0 %2525 }
 0x311   :  { %3545 = vrot.lane.b32.xlu1 %v3229_v31, %s6523_s10  ;;  %4267 = vmatprep.subr.bf16.mxu0 %v8819_v57  ;;  %12238 = vst [vmem:[#allocation183_spill] sm:$0xff] %v9456_v24  ;;  %v9460_v31 = vpop.permute.xlu1 %2527 }
 0x312   :  { %4309 = vmatpush1.bf16.msra.mxu1 %v8978_v36  ;;  %12239 = vst [vmem:[#allocation184_spill] sm:$0xff] %v9460_v31  ;;  %v12244_v31 = vld [vmem:[#allocation85_spill] sm:$0xff] }
 0x313   :  { %4310 = vmatprep.subr.bf16.mxu1 %v8986_v58 }
 0x314   :  { %4268 = vmatpush1.bf16.msra.mxu0 %v8840_v42  ;;  %v9466_v11 = vpop.permute.xlu0 %2998 }
 0x315   :  { %3553 = vrot.lane.b32.xlu1 %v3272_v13, %s6523_s10  ;;  %4269 = vmatprep.subr.bf16.mxu0 %v8851_v8  ;;  %v12241_v13 = vld [vmem:[#allocation117_spill] sm:$0xff]  ;;  %12242 = vst [vmem:[#allocation185_spill] sm:$0xff] %v9466_v11  ;;  %v9473_v22 = vpop.permute.xlu1 %3000  ;;  %v12251_v11 = vld [vmem:[#allocation128_spill] sm:$0xff] }
 0x316   :  { %4311 = vmatpush1.bf16.msra.mxu1 %v9006_v10  ;;  %12245 = vst [vmem:[#allocation84_spill] sm:$0xff] %v9473_v22 }
 0x317   :  { %4312 = vmatprep.subr.bf16.mxu1 %v9013_v12  ;;  %v12263_v12 = vld [vmem:[#allocation113_spill] sm:$0xff] }
 0x318   :  { %4270 = vmatpush1.bf16.msra.mxu0 %v8873_v23  ;;  %v9483_v3 = vpop.permute.xlu0 %3006 }
 0x319   :  { %4345 = vmatprep.subr.bf16.mxu0 %v8881_v7  ;;  %12250 = vst [vmem:[#allocation85_spill] sm:$0xff] %v9483_v3 }
 0x31a   :  { %4313 = vmatpush1.bf16.msra.mxu1 %v12240_v52 }
 0x31b   :  { %v3309_v27 = vpop.f32.mrf.mxu0  ;;  %5743 = vmatmul.mubr.msk.bf16.vlgmr.msra.gmra.mxu0 %vm649_vm0, %v9402_v21  ;;  %4388 = vmatprep.subr.bf16.mxu1 %v12241_v13  ;;  %v12256_v13 = vld [vmem:[#allocation133_spill] sm:$0xff] }
 0x31c   :  { %4346 = vmatpush1.bf16.msra.mxu0 %v12243_v14  ;;  %3555 = vrot.lane.b32.xlu0 %v3309_v27, %s6523_s10  ;;  %v9495_v3 = vpop.permute.xlu0 %3002 }
 0x31d   :  { %v3311_v24 = vpop.f32.mrf.mxu0  ;;  %v3352_v4 = vpop.f32.mrf.mxu1  ;;  %5744 = vmatmul.mubr.msk.bf16.vlgmr.msra.gmra.mxu1 %vm649_vm0, %v9402_v21  ;;  %4347 = vmatprep.subr.bf16.mxu0 %v12244_v31  ;;  %12257 = vst [vmem:[#allocation102_spill] sm:$0xff] %v9495_v3  ;;  %v12264_v3 = vld [vmem:[#allocation114_spill] sm:$0xff] }
 0x31e   :  { %4389 = vmatpush1.bf16.msra.mxu1 %v12246_v47  ;;  %4373 = vmatprep.mubr.bf16.mxu0 %v11825_v63  ;;  %v9487_v47 = vpop.permute.xlu1 %3008 }
 0x31f   :  { %v3313_v34 = vpop.f32.mrf.mxu0  ;;  %4390 = vmatprep.subr.bf16.mxu1 %v12247_v54  ;;  %4416 = vmatprep.mubr.bf16.mxu1 %v11825_v63  ;;  %v3354_v27 = vpop.f32.mrf.mxu1  ;;  %12252 = vst [vmem:[#allocation15_spill] sm:$0xff] %v9487_v47  ;;  %v12253_v54 = vld [vmem:[#allocation104_spill] sm:$0xff]  ;;  %v12259_v47 = vld [vmem:[#allocation109_spill] sm:$0xff] }
 0x320   :  { %4348 = vmatpush1.bf16.msra.mxu0 %v12248_v53  ;;  %3563 = vrot.lane.b32.xlu0 %v3352_v4, %s6523_s10  ;;  %v12254_v4 = vld [vmem:[#allocation105_spill] sm:$0xff] }
 0x321   :  { %3557 = vrot.lane.b32.xlu1 %v3313_v34, %s6523_s10  ;;  %4349 = vmatprep.subr.bf16.mxu0 %v12249_v5  ;;  %v3356_v22 = vpop.f32.mrf.mxu1  ;;  %v12255_v34 = vld [vmem:[#allocation132_spill] sm:$0xff]  ;;  %v3315_v52 = vpop.f32.mrf.mxu0 }
 0x322   :  { %4391 = vmatpush1.bf16.msra.mxu1 %v9096_v59  ;;  %v12258_v59 = vld [vmem:[#allocation108_spill] sm:$0xff] }
 0x323   :  { %4392 = vmatprep.subr.bf16.mxu1 %v12251_v11  ;;  %v12262_v11 = vld [vmem:[#allocation139_spill] sm:$0xff] }
 0x324   :  { %4350 = vmatpush1.bf16.msra.mxu0 %v12253_v54  ;;  %3559 = vrot.lane.b32.xlu0 %v3311_v24, %s6523_s10  ;;  %v9501_v24 = vpop.permute.xlu1 %3004 }
 0x325   :  { %3565 = vrot.lane.b32.xlu1 %v3356_v22, %s6523_s10  ;;  %4351 = vmatprep.subr.bf16.mxu0 %v12254_v4  ;;  %12260 = vst [vmem:[#allocation104_spill] sm:$0xff] %v9501_v24  ;;  %v12261_v22 = vld [vmem:[#allocation138_spill] sm:$0xff]  ;;  %v12269_v24 = vld [vmem:[#allocation119_spill] sm:$0xff] }
 0x326   :  { %4393 = vmatpush1.bf16.msra.mxu1 %v12255_v34  ;;  %v3358_v34 = vpop.f32.mrf.mxu1 }
 0x327   :  { %4394 = vmatprep.subr.bf16.mxu1 %v12256_v13  ;;  %v9508_v13 = vpop.permute.xlu0 %3010 }
 0x328   :  { %4352 = vmatpush1.bf16.msra.mxu0 %v12258_v59  ;;  %3567 = vrot.lane.b32.xlu0 %v3354_v27, %s6523_s10  ;;  %12265 = vst [vmem:[#allocation105_spill] sm:$0xff] %v9508_v13  ;;  %v12266_v27 = vld [vmem:[#allocation144_spill] sm:$0xff]  ;;  %v9512_v10 = vpop.permute.xlu1 %3012 }
 0x329   :  { %3561 = vrot.lane.b32.xlu1 %v3315_v52, %s6523_s10  ;;  %4353 = vmatprep.subr.bf16.mxu0 %v12259_v47  ;;  %v12267_v52 = vld [vmem:[#allocation145_spill] sm:$0xff]  ;;  %12268 = vst [vmem:[#allocation108_spill] sm:$0xff] %v9512_v10 }
 0x32a   :  { %4395 = vmatpush1.bf16.msra.mxu1 %v12261_v22  ;;  %v12270_v22 = vld [vmem:[#allocation120_spill] sm:$0xff]  ;;  %v12272_v47 = vld [vmem:[#allocation149_spill] sm:$0xff] }
 0x32b   :  { %4396 = vmatprep.subr.bf16.mxu1 %v12262_v11  ;;  %v9516_v11 = vpop.permute.xlu0 %3014 }
 0x32c   :  { %4354 = vmatpush1.bf16.msra.mxu0 %v12263_v12  ;;  %12271 = vst [vmem:[#allocation114_spill] sm:$0xff] %v9516_v11  ;;  %v9522_v13 = vpop.permute.xlu1 %3016  ;;  %v12276_v11 = vld [vmem:[#allocation125_spill] sm:$0xff] }
 0x32d   :  { %3569 = vrot.lane.b32.xlu1 %v3358_v34, %s6523_s10  ;;  %4355 = vmatprep.subr.bf16.mxu0 %v12264_v3  ;;  %v12273_v34 = vld [vmem:[#allocation150_spill] sm:$0xff]  ;;  %12274 = vst [vmem:[#allocation186_spill] sm:$0xff] %v9522_v13 }
 0x32e   :  { %4397 = vmatpush1.bf16.msra.mxu1 %v12266_v27  ;;  %v12275_v27 = vld [vmem:[#allocation124_spill] sm:$0xff] }
 0x32f   :  { %4398 = vmatprep.subr.bf16.mxu1 %v12267_v52  ;;  %v9533_v13 = vpop.permute.xlu0 %3022 }
 0x330   :  { %4356 = vmatpush1.bf16.msra.mxu0 %v12269_v24  ;;  %v12278_v24 = vld [vmem:[#allocation155_spill] sm:$0xff]  ;;  %12279 = vst [vmem:[#allocation187_spill] sm:$0xff] %v9533_v13 }
 0x331   :  { %4431 = vmatprep.subr.bf16.mxu0 %v12270_v22  ;;  %v9550_v13 = vld [vmem:[%s11335_s0 + $0x1cc] ss:$68 sps:$4 sm:$0xff]  }
 0x332   :  { %4399 = vmatpush1.bf16.msra.mxu1 %v12272_v47  ;;  %v12277_v47 = vld [vmem:[#allocation154_spill] sm:$0xff]  ;;  %12284 = vst [vmem:[#allocation189_spill] sm:$0xff] %v9550_v13 }
 0x333   :  { %v3395_v12 = vpop.f32.mrf.mxu0  ;;  %5745 = vmatmul.mubr.msk.bf16.vlgmr.msra.gmra.mxu0 %vm649_vm0, %v9402_v21  ;;  %4474 = vmatprep.subr.bf16.mxu1 %v12273_v34  ;;  %v12280_v34 = vld [vmem:[#allocation130_spill] sm:$0xff] }
 0x334   :  { %4432 = vmatpush1.bf16.msra.mxu0 %v12275_v27  ;;  %3571 = vrot.lane.b32.xlu0 %v3395_v12, %s6523_s10  ;;  %v12281_v27 = vld [vmem:[#allocation131_spill] sm:$0xff] }
 0x335   :  { %v3397_v10 = vpop.f32.mrf.mxu0  ;;  %v3438_v52 = vpop.f32.mrf.mxu1  ;;  %5746 = vmatmul.mubr.msk.bf16.vlgmr.msra.gmra.mxu1 %vm649_vm0, %v9402_v21  ;;  %4433 = vmatprep.subr.bf16.mxu0 %v12276_v11 }
 0x336   :  { %4475 = vmatpush1.bf16.msra.mxu1 %v12277_v47  ;;  %4459 = vmatprep.mubr.bf16.mxu0 %v11825_v63  ;;  %v9542_v47 = vld [vmem:[%s11335_s0 + $0x250] ss:$68 sps:$4 sm:$0xff]  }
 0x337   :  { %v3399_v22 = vpop.f32.mrf.mxu0  ;;  %4476 = vmatprep.subr.bf16.mxu1 %v12278_v24  ;;  %4502 = vmatprep.mubr.bf16.mxu1 %v11825_v63  ;;  %v3440_v12 = vpop.f32.mrf.mxu1  ;;  %12282 = vst [vmem:[#allocation130_spill] sm:$0xff] %v9542_v47 }
 0x338   :  { %4434 = vmatpush1.bf16.msra.mxu0 %v12280_v34  ;;  %3579 = vrot.lane.b32.xlu0 %v3438_v52, %s6523_s10  ;;  %v9545_v24 = vpop.permute.xlu1 %3024  ;;  %v12286_v52 = vld [vmem:[#allocation136_spill] sm:$0xff] }
 0x339   :  { %3573 = vrot.lane.b32.xlu1 %v3399_v22, %s6523_s10  ;;  %4435 = vmatprep.subr.bf16.mxu0 %v12281_v27  ;;  %v3442_v11 = vpop.f32.mrf.mxu1  ;;  %12283 = vst [vmem:[#allocation188_spill] sm:$0xff] %v9545_v24  ;;  %v12285_v22 = vld [vmem:[#allocation135_spill] sm:$0xff]  ;;  %v9557_v27 = vpop.permute.xlu0 %3018 }
 0x33a   :  { %4477 = vmatpush1.bf16.msra.mxu1 %v9542_v47  ;;  %12287 = vst [vmem:[#allocation135_spill] sm:$0xff] %v9557_v27  ;;  %v9562_v24 = vld [vmem:[%s11335_s0 + $0x1c8] ss:$68 sps:$4 sm:$0xff]   ;;  %v12292_v47 = vld [vmem:[#allocation142_spill] sm:$0xff] }
 0x33b   :  { %4478 = vmatprep.subr.bf16.mxu1 %v9550_v13  ;;  %12288 = vst [vmem:[#allocation136_spill] sm:$0xff] %v9562_v24  ;;  %v9568_v13 = vld [vmem:[%s11335_s0 + $0x144] ss:$68 sps:$4 sm:$0xff]  }
 0x33c   :  { %4436 = vmatpush1.bf16.msra.mxu0 %v12285_v22  ;;  %3575 = vrot.lane.b32.xlu0 %v3397_v10, %s6523_s10  ;;  %12289 = vst [vmem:[#allocation190_spill] sm:$0xff] %v9568_v13  ;;  %v3401_v10 = vpop.f32.mrf.mxu0  ;;  %v9573_v27 = vpop.permute.xlu1 %3020 }
 0x33d   :  { %3581 = vrot.lane.b32.xlu1 %v3442_v11, %s6523_s10  ;;  %4437 = vmatprep.subr.bf16.mxu0 %v12286_v52  ;;  %v12290_v11 = vld [vmem:[#allocation141_spill] sm:$0xff]  ;;  %12291 = vst [vmem:[#allocation191_spill] sm:$0xff] %v9573_v27  ;;  %v3444_v27 = vpop.f32.mrf.mxu1 }
 0x33e   :  { %4479 = vmatpush1.bf16.msra.mxu1 %v9562_v24  ;;  %v9580_v24 = vld [vmem:[%s11335_s0 + $0x140] ss:$68 sps:$4 sm:$0xff]  }
 0x33f   :  { %4480 = vmatprep.subr.bf16.mxu1 %v9568_v13  ;;  %12293 = vst [vmem:[#allocation192_spill] sm:$0xff] %v9580_v24  ;;  %v9586_v13 = vld [vmem:[%s11335_s0 + $0xbc] ss:$68 sps:$4 sm:$0xff]  }
 0x340   :  { %4438 = vmatpush1.bf16.msra.mxu0 %v12290_v11  ;;  %3583 = vrot.lane.b32.xlu0 %v3440_v12, %s6523_s10  ;;  %12294 = vst [vmem:[#allocation193_spill] sm:$0xff] %v9586_v13  ;;  %v9589_v12 = vpop.permute.xlu0 %3026  ;;  %v9600_v11 = vpop.permute.xlu1 %3028 }
 0x341   :  { %3577 = vrot.lane.b32.xlu1 %v3401_v10, %s6523_s10  ;;  %4439 = vmatprep.subr.bf16.mxu0 %v12292_v47  ;;  %12295 = vst [vmem:[#allocation194_spill] sm:$0xff] %v9589_v12  ;;  %v12296_v10 = vld [vmem:[#allocation146_spill] sm:$0xff]  ;;  %v12297_v47 = vld [vmem:[#allocation147_spill] sm:$0xff]  ;;  %12299 = vst [vmem:[#allocation196_spill] sm:$0xff] %v9600_v11 }
 0x342   :  { %4481 = vmatpush1.bf16.msra.mxu1 %v9580_v24  ;;  %v9597_v24 = vld [vmem:[%s11335_s0 + $0xb8] ss:$68 sps:$4 sm:$0xff]  }
 0x343   :  { %4482 = vmatprep.subr.bf16.mxu1 %v9586_v13  ;;  %12298 = vst [vmem:[#allocation195_spill] sm:$0xff] %v9597_v24  ;;  %v9605_v12 = vld [vmem:[%s11335_s0 + $0x34] ss:$68 sps:$4 sm:$0xff]  }
 0x344   :  { %4440 = vmatpush1.bf16.msra.mxu0 %v12296_v10  ;;  %12300 = vst [vmem:[#allocation197_spill] sm:$0xff] %v9605_v12  ;;  %v9608_v13 = vpop.permute.xlu0 %3030  ;;  %v9615_v10 = vld [vmem:[%s11335_s0 + $0x30] ss:$68 sps:$4 sm:$0xff]   ;;  %v9618_v11 = vpop.permute.xlu1 %3032 }
 0x345   :  { %3585 = vrot.lane.b32.xlu1 %v3444_v27, %s6523_s10  ;;  %4441 = vmatprep.subr.bf16.mxu0 %v12297_v47  ;;  %12301 = vst [vmem:[#allocation198_spill] sm:$0xff] %v9608_v13  ;;  %v12302_v27 = vld [vmem:[#allocation152_spill] sm:$0xff]  ;;  %v12303_v47 = vld [vmem:[#allocation153_spill] sm:$0xff]  ;;  %12305 = vst [vmem:[#allocation199_spill] sm:$0xff] %v9618_v11 }
 0x346   :  { %4483 = vmatpush1.bf16.msra.mxu1 %v9597_v24  ;;  %12304 = vst [vmem:[#allocation152_spill] sm:$0xff] %v9615_v10  ;;  %v12306_v13 = vld [vmem:[#allocation157_spill] sm:$0xff]  ;;  %v9633_v11 = vld [vmem:[%s11335_s0 + $0x2e8] ss:$68 sps:$4 sm:$0xff]  }
 0x347   :  { %4484 = vmatprep.subr.bf16.mxu1 %v9605_v12  ;;  %12308 = vst [vmem:[#allocation201_spill] sm:$0xff] %v9633_v11 }
 0x348   :  { %4442 = vmatpush1.bf16.msra.mxu0 %v12302_v27 }
 0x349   :  { %4517 = vmatprep.subr.bf16.mxu0 %v12303_v47 }
 0x34a   :  { %4485 = vmatpush1.bf16.msra.mxu1 %v9615_v10  ;;  %v9628_v10 = vpop.permute.xlu0 %3038 }
 0x34b   :  { %v3481_v24 = vpop.f32.mrf.mxu0  ;;  %5747 = vmatmul.mubr.msk.bf16.vlgmr.msra.gmra.mxu0 %vm649_vm0, %v9402_v21  ;;  %5972 = vmatprep.subr.bf16.mxu1 %v12052_v62  ;;  %12307 = vst [vmem:[#allocation200_spill] sm:$0xff] %v9628_v10  ;;  %v9642_v10 = vpop.permute.xlu1 %3040 }
 0x34c   :  { %4518 = vmatpush1.bf16.msra.mxu0 %v12306_v13  ;;  %3587 = vrot.lane.b32.xlu0 %v3481_v24, %s6523_s10  ;;  %12309 = vst [vmem:[#allocation202_spill] sm:$0xff] %v9642_v10 }
 0x34d   :  { %v3483_v12 = vpop.f32.mrf.mxu0  ;;  %v3524_v47 = vpop.f32.mrf.mxu1  ;;  %5748 = vmatmul.mubr.msk.bf16.vlgmr.msra.gmra.mxu1 %vm649_vm0, %v9402_v21  ;;  %4519 = vmatprep.subr.bf16.mxu0 %v9263_v55  ;;  %v9649_v55 = vld [vmem:[%s11335_s0 + $0x260] ss:$68 sps:$4 sm:$0xff]  }
 0x34e   :  { %5973 = vmatpush3.bf16.msra.mxu1 %v9633_v11  ;;  %4545 = vmatprep.mubr.bf16.mxu0 %v11825_v63 }
 0x34f   :  { %v3485_v13 = vpop.f32.mrf.mxu0  ;;  %5974 = vmatprep.subr.bf16.mxu1 %v12052_v62  ;;  %5984 = vmatprep.mubr.msk.bf16.mxu1 %vm6518_vm1, %v12052_v62  ;;  %v5954_v24 = vpop.f32.mrf.mxu1 }
 0x350   :  { %4520 = vmatpush1.bf16.msra.mxu0 %v9276_v37  ;;  %3595 = vrot.lane.b32.xlu0 %v3524_v47, %s6523_s10  ;;  %v9653_v37 = vpop.permute.xlu0 %3034  ;;  %v9665_v24 = vpop.permute.xlu1 %3036 }
 0x351   :  { %3589 = vrot.lane.b32.xlu1 %v3485_v13, %s6523_s10  ;;  %4521 = vmatprep.subr.bf16.mxu0 %v9282_v26  ;;  %v3527_v11 = vpop.f32.mrf.mxu1  ;;  %12310 = vst [vmem:[#allocation203_spill] sm:$0xff] %v9653_v37  ;;  %v9662_v13 = vld [vmem:[%s11335_s0 + $0x1d8] ss:$68 sps:$4 sm:$0xff]   ;;  %12311 = vst [vmem:[#allocation204_spill] sm:$0xff] %v9665_v24  ;;  %v3487_v10 = vpop.f32.mrf.mxu0  ;;  %v9689_v24 = vld [vmem:[%s11335_s0 + $0xc8] ss:$68 sps:$4 sm:$0xff]  }
 0x352   :  { %5975 = vmatpush3.bf16.msra.mxu1 %v9649_v55  ;;  %12315 = vst [vmem:[#allocation208_spill] sm:$0xff] %v9689_v24 }
 0x353   :  { %5976 = vmatprep.subr.bf16.mxu1 %v12052_v62  ;;  %v5955_v47 = vpop.f32.mrf.mxu1 }
 0x354   :  { %4522 = vmatpush1.bf16.msra.mxu0 %v9296_v19  ;;  %3591 = vrot.lane.b32.xlu0 %v3483_v12, %s6523_s10  ;;  %v9676_v12 = vld [vmem:[%s11335_s0 + $0x150] ss:$68 sps:$4 sm:$0xff]   ;;  %v9681_v47 = vpop.permute.xlu1 %3044 }
 0x355   :  { %3597 = vrot.lane.b32.xlu1 %v3527_v11, %s6523_s10  ;;  %4523 = vmatprep.subr.bf16.mxu0 %v9302_v17  ;;  %v9671_v11 = vpop.permute.xlu0 %3042  ;;  %12313 = vst [vmem:[#allocation206_spill] sm:$0xff] %v9681_v47 }
 0x356   :  { %5977 = vmatpush3.bf16.msra.mxu1 %v9662_v13  ;;  %12312 = vst [vmem:[#allocation205_spill] sm:$0xff] %v9671_v11  ;;  %v9696_v11 = vld [vmem:[%s11335_s0 + $0x38] ss:$68 sps:$4 sm:$0xff]  }
 0x357   :  { %5978 = vmatprep.subr.bf16.mxu1 %v12052_v62 }
 0x358   :  { %4524 = vmatpush1.bf16.msra.mxu0 %v9316_v45  ;;  %v9699_v47 = vpop.permute.xlu1 %3048 }
 0x359   :  { %3593 = vrot.lane.b32.xlu1 %v3487_v10, %s6523_s10  ;;  %4525 = vmatprep.subr.bf16.mxu0 %v9322_v0  ;;  %v9684_v10 = vpop.permute.xlu0 %3046  ;;  %12316 = vst [vmem:[#allocation209_spill] sm:$0xff] %v9699_v47 }
 0x35a   :  { %5979 = vmatpush3.bf16.msra.mxu1 %v9676_v12  ;;  %12314 = vst [vmem:[#allocation207_spill] sm:$0xff] %v9684_v10  ;;  %v9705_v10 = vld [vmem:[%s11335_s0 + $0x40] ss:$68 sps:$4 sm:$0xff]  }
 0x35b   :  { %5980 = vmatprep.subr.bf16.mxu1 %v12052_v62  ;;  %12317 = vst [vmem:[#allocation210_spill] sm:$0xff] %v9705_v10 }
 0x35c   :  { %4526 = vmatpush1.bf16.msra.mxu0 %v9333_v61 }
 0x35d   :  { %4527 = vmatprep.subr.bf16.mxu0 %v9339_v29 }
 0x35e   :  { %5981 = vmatpush3.bf16.msra.mxu1 %v9689_v24  ;;  %v9711_v24 = vpop.permute.xlu0 %3054 }
 0x35f   :  { %5982 = vmatprep.subr.bf16.mxu1 %v12052_v62 }
 0x360   :  { %4528 = vmatpush1.bf16.msra.mxu0 %v9696_v11 }
 0x361   :  { %4749 = vmatprep.subr.bf16.mxu0 %v8689_v9 }
 0x362   :  { %5983 = vmatpush3.bf16.msra.mxu1 %v9705_v10  ;;  %v9720_v10 = vpop.permute.xlu1 %3056 }
 0x363   :  { %v3713_v37 = vpop.f32.mrf.mxu0  ;;  %5749 = vmatmul.mubr.msk.bf16.vlgmr.msra.gmra.mxu0 %vm649_vm0, %v9402_v21  ;;  %4792 = vmatprep.subr.bf16.mxu1 %v8700_v49  ;;  %12318 = vst [vmem:[#allocation211_spill] sm:$0xff] %v9720_v10  ;;  %v12408_v10 = vld [vmem:[#allocation156_spill] sm:$0xff] }
 0x364   :  { %4750 = vmatpush1.bf16.msra.mxu0 %v8708_v33  ;;  %4064 = vrot.lane.b32.xlu0 %v3713_v37, %s6524_s17  ;;  %v12329_v37 = vld [vmem:[#allocation116_spill] sm:$0xff] }
 0x365   :  { %v3715_v9 = vpop.f32.mrf.mxu0  ;;  %v3756_v47 = vpop.f32.mrf.mxu1  ;;  %5985 = vmatmul.mubr.msk.bf16.vlgmr.msra.gmra.mxu1 %vm649_vm0, %v9402_v21  ;;  %4751 = vmatprep.subr.bf16.mxu0 %v8717_v32 }
 0x366   :  { %4793 = vmatpush1.bf16.msra.mxu1 %v8725_v16  ;;  %4777 = vmatprep.mubr.bf16.mxu0 %v11825_v63  ;;  %v9728_v32 = vpop.permute.xlu0 %3050 }
 0x367   :  { %v3717_v49 = vpop.f32.mrf.mxu0  ;;  %4794 = vmatprep.subr.bf16.mxu1 %v8732_v28  ;;  %4820 = vmatprep.mubr.bf16.mxu1 %v11825_v63  ;;  %v3758_v33 = vpop.f32.mrf.mxu1 }
 0x368   :  { %4752 = vmatpush1.bf16.msra.mxu0 %v8741_v50  ;;  %4072 = vrot.lane.b32.xlu0 %v3756_v47, %s6524_s17  ;;  %v9734_v28 = vpop.permute.xlu1 %3052 }
 0x369   :  { %4066 = vrot.lane.b32.xlu1 %v3717_v49, %s6524_s17  ;;  %4753 = vmatprep.subr.bf16.mxu0 %v8749_v41  ;;  %v3760_v16 = vpop.f32.mrf.mxu1  ;;  %v3719_v50 = vpop.f32.mrf.mxu0 }
 0x36a   :  { %4795 = vmatpush1.bf16.msra.mxu1 %v8755_v40  ;;  %v9740_v41 = vpop.permute.xlu0 %3058 }
 0x36b   :  { %4796 = vmatprep.subr.bf16.mxu1 %v8761_v6  ;;  %v3762_v40 = vpop.f32.mrf.mxu1 }
 0x36c   :  { %4754 = vmatpush1.bf16.msra.mxu0 %v8769_v38  ;;  %4068 = vrot.lane.b32.xlu0 %v3715_v9, %s6524_s17  ;;  %v9747_v38 = vpop.permute.xlu1 %3060  ;;  %v12336_v9 = vld [vmem:[#allocation124_spill] sm:$0xff] }
 0x36d   :  { %4074 = vrot.lane.b32.xlu1 %v3760_v16, %s6524_s17  ;;  %4755 = vmatprep.subr.bf16.mxu0 %v8777_v44  ;;  %12319 = vst [vmem:[#allocation212_spill] sm:$0xff] %v9747_v38  ;;  %v12338_v16 = vld [vmem:[#allocation127_spill] sm:$0xff] }
 0x36e   :  { %4797 = vmatpush1.bf16.msra.mxu1 %v8785_v30  ;;  %v9750_v44 = vpop.permute.xlu0 %3062 }
 0x36f   :  { %4798 = vmatprep.subr.bf16.mxu1 %v8791_v2  ;;  %12320 = vst [vmem:[#allocation213_spill] sm:$0xff] %v9750_v44  ;;  %v12400_v44 = vld [vmem:[#allocation38_spill] sm:$0xff] }
 0x370   :  { %4756 = vmatpush1.bf16.msra.mxu0 %v8797_v39  ;;  %4076 = vrot.lane.b32.xlu0 %v3758_v33, %s6524_s17  ;;  %v9759_v39 = vld [vmem:[%s11336_s1 + $0x40] sm:$0xff]   ;;  %v12337_v33 = vld [vmem:[#allocation125_spill] sm:$0xff]  ;;  %s6525_s1 = smov 35  }
 0x371   :  { %4070 = vrot.lane.b32.xlu1 %v3719_v50, %s6524_s17  ;;  %4757 = vmatprep.subr.bf16.mxu0 %v8805_v56  ;;  %v9762_v56 = vpop.permute.xlu1 %3064 }
 0x372   :  { %4799 = vmatpush1.bf16.msra.mxu1 %v8813_v48  ;;  %12321 = vst [vmem:[#allocation214_spill] sm:$0xff] %v9762_v56  ;;  %v12396_v56 = vld [vmem:[#allocation40_spill] sm:$0xff] }
 0x373   :  { %4800 = vmatprep.subr.bf16.mxu1 %v8819_v57  ;;  %v12326_v57 = vld [vmem:[#allocation110_spill] sm:$0xff] }
 0x374   :  { %4758 = vmatpush1.bf16.msra.mxu0 %v8827_v43  ;;  %v9766_v43 = vpop.permute.xlu0 %3531 }
 0x375   :  { %4078 = vrot.lane.b32.xlu1 %v3762_v40, %s6524_s17  ;;  %4759 = vmatprep.subr.bf16.mxu0 %v8834_v60  ;;  %12322 = vst [vmem:[#allocation215_spill] sm:$0xff] %v9766_v43  ;;  %v12339_v40 = vld [vmem:[#allocation128_spill] sm:$0xff] }
 0x376   :  { %4801 = vmatpush1.bf16.msra.mxu1 %v8840_v42  ;;  %v12327_v42 = vld [vmem:[#allocation111_spill] sm:$0xff] }
 0x377   :  { %4802 = vmatprep.subr.bf16.mxu1 %v8851_v8  ;;  %v12328_v8 = vld [vmem:[#allocation113_spill] sm:$0xff] }
 0x378   :  { %4760 = vmatpush1.bf16.msra.mxu0 %v8859_v35  ;;  %v9777_v35 = vpop.permute.xlu1 %3533 }
 0x379   :  { %4835 = vmatprep.subr.bf16.mxu0 %v8865_v20 }
 0x37a   :  { %4803 = vmatpush1.bf16.msra.mxu1 %v8873_v23 }
 0x37b   :  { %v3799_v48 = vpop.f32.mrf.mxu0  ;;  %5754 = vmatmul.mubr.msk.bf16.vlgmr.msra.gmra.mxu0 %vm649_vm0, %v9759_v39  ;;  %4878 = vmatprep.subr.bf16.mxu1 %v8881_v7  ;;  %v9783_v7 = vpop.permute.xlu0 %3535 }
 0x37c   :  { %4836 = vmatpush1.bf16.msra.mxu0 %v8889_v25  ;;  %4080 = vrot.lane.b32.xlu0 %v3799_v48, %s6524_s17  ;;  %v9791_v25 = vpop.permute.xlu1 %3537 }
 0x37d   :  { %v3801_v60 = vpop.f32.mrf.mxu0  ;;  %v3842_v6 = vpop.f32.mrf.mxu1  ;;  %5755 = vmatmul.mubr.msk.bf16.vlgmr.msra.gmra.mxu1 %vm649_vm0, %v9759_v39  ;;  %4837 = vmatprep.subr.bf16.mxu0 %v8898_v46  ;;  %12323 = vst [vmem:[#allocation216_spill] sm:$0xff] %v9791_v25 }
 0x37e   :  { %4879 = vmatpush1.bf16.msra.mxu1 %v12243_v14  ;;  %4863 = vmatprep.mubr.bf16.mxu0 %v11825_v63  ;;  %v12334_v14 = vld [vmem:[#allocation122_spill] sm:$0xff] }
 0x37f   :  { %v3803_v23 = vpop.f32.mrf.mxu0  ;;  %4880 = vmatprep.subr.bf16.mxu1 %v12244_v31  ;;  %4906 = vmatprep.mubr.bf16.mxu1 %v11825_v63  ;;  %v3844_v20 = vpop.f32.mrf.mxu1 }
 0x380   :  { %4838 = vmatpush1.bf16.msra.mxu0 %v8920_v15  ;;  %4088 = vrot.lane.b32.xlu0 %v3842_v6, %s6524_s17  ;;  %v9793_v30 = vpop.permute.xlu0 %3539 }
 0x381   :  { %4082 = vrot.lane.b32.xlu1 %v3803_v23, %s6524_s17  ;;  %4839 = vmatprep.subr.bf16.mxu0 %v8928_v18  ;;  %v3846_v46 = vpop.f32.mrf.mxu1  ;;  %v9801_v18 = vpop.permute.xlu1 %3541  ;;  %v12341_v23 = vld [vmem:[#allocation131_spill] sm:$0xff] }
 0x382   :  { %4881 = vmatpush1.bf16.msra.mxu1 %v12248_v53  ;;  %12324 = vst [vmem:[#allocation217_spill] sm:$0xff] %v9801_v18  ;;  %v3805_v15 = vpop.f32.mrf.mxu0 }
 0x383   :  { %4882 = vmatprep.subr.bf16.mxu1 %v12249_v5  ;;  %v3848_v2 = vpop.f32.mrf.mxu1  ;;  %v12331_v5 = vld [vmem:[#allocation119_spill] sm:$0xff] }
 0x384   :  { %4840 = vmatpush1.bf16.msra.mxu0 %v8950_v1  ;;  %4084 = vrot.lane.b32.xlu0 %v3801_v60, %s6524_s17  ;;  %v9807_v1 = vpop.permute.xlu0 %3547 }
 0x385   :  { %4090 = vrot.lane.b32.xlu1 %v3846_v46, %s6524_s17  ;;  %4841 = vmatprep.subr.bf16.mxu0 %v8958_v51  ;;  %v12325_v51 = vld [vmem:[#allocation109_spill] sm:$0xff] }
 0x386   :  { %4883 = vmatpush1.bf16.msra.mxu1 %v12253_v54  ;;  %v12332_v54 = vld [vmem:[#allocation120_spill] sm:$0xff]  ;;  %v12343_v46 = vld [vmem:[#allocation133_spill] sm:$0xff] }
 0x387   :  { %4884 = vmatprep.subr.bf16.mxu1 %v12254_v4  ;;  %v12335_v4 = vld [vmem:[#allocation123_spill] sm:$0xff] }
 0x388   :  { %4842 = vmatpush1.bf16.msra.mxu0 %v8978_v36  ;;  %4092 = vrot.lane.b32.xlu0 %v3844_v20, %s6524_s17  ;;  %v9814_v36 = vpop.permute.xlu1 %3549  ;;  %v12342_v20 = vld [vmem:[#allocation132_spill] sm:$0xff] }
 0x389   :  { %4086 = vrot.lane.b32.xlu1 %v3805_v15, %s6524_s17  ;;  %4843 = vmatprep.subr.bf16.mxu0 %v8986_v58  ;;  %v9818_v58 = vpop.permute.xlu0 %3543 }
 0x38a   :  { %4885 = vmatpush1.bf16.msra.mxu1 %v12258_v59  ;;  %v12330_v59 = vld [vmem:[#allocation117_spill] sm:$0xff] }
 0x38b   :  { %4886 = vmatprep.subr.bf16.mxu1 %v12325_v51 }
 0x38c   :  { %4844 = vmatpush1.bf16.msra.mxu0 %v12326_v57  ;;  %v9826_v21 = vpop.permute.xlu1 %3545  ;;  %v12346_v57 = vld [vmem:[#allocation139_spill] sm:$0xff] }
 0x38d   :  { %4094 = vrot.lane.b32.xlu1 %v3848_v2, %s6524_s17  ;;  %4845 = vmatprep.subr.bf16.mxu0 %v12327_v42  ;;  %12333 = vst [vmem:[#allocation109_spill] sm:$0xff] %v9826_v21  ;;  %v9833_v47 = vpop.permute.xlu0 %3551  ;;  %v12345_v2 = vld [vmem:[#allocation138_spill] sm:$0xff]  ;;  %v12347_v42 = vld [vmem:[#allocation141_spill] sm:$0xff] }
 0x38e   :  { %4887 = vmatpush1.bf16.msra.mxu1 %v12328_v8  ;;  %v12348_v8 = vld [vmem:[#allocation142_spill] sm:$0xff] }
 0x38f   :  { %4888 = vmatprep.subr.bf16.mxu1 %v12264_v3 }
 0x390   :  { %4846 = vmatpush1.bf16.msra.mxu0 %v12329_v37  ;;  %v9846_v6 = vpop.permute.xlu1 %3553  ;;  %v12349_v37 = vld [vmem:[#allocation144_spill] sm:$0xff] }
 0x391   :  { %4921 = vmatprep.subr.bf16.mxu0 %v12330_v59  ;;  %v9843_v48 = vpop.permute.xlu0 %3555  ;;  %12340 = vst [vmem:[#allocation110_spill] sm:$0xff] %v9846_v6 }
 0x392   :  { %4889 = vmatpush1.bf16.msra.mxu1 %v12331_v5 }
 0x393   :  { %v3885_v53 = vpop.f32.mrf.mxu0  ;;  %5756 = vmatmul.mubr.msk.bf16.vlgmr.msra.gmra.mxu0 %vm649_vm0, %v9759_v39  ;;  %4964 = vmatprep.subr.bf16.mxu1 %v12332_v54  ;;  %v12352_v54 = vld [vmem:[#allocation147_spill] sm:$0xff] }
 0x394   :  { %4922 = vmatpush1.bf16.msra.mxu0 %v12334_v14  ;;  %4096 = vrot.lane.b32.xlu0 %v3885_v53, %s6524_s17  ;;  %v9854_v15 = vpop.permute.xlu1 %3557  ;;  %v12351_v53 = vld [vmem:[#allocation146_spill] sm:$0xff]  ;;  %v12353_v14 = vld [vmem:[#allocation149_spill] sm:$0xff] }
 0x395   :  { %v3887_v3 = vpop.f32.mrf.mxu0  ;;  %v3928_v31 = vpop.f32.mrf.mxu1  ;;  %5757 = vmatmul.mubr.msk.bf16.vlgmr.msra.gmra.mxu1 %vm649_vm0, %v9759_v39  ;;  %4923 = vmatprep.subr.bf16.mxu0 %v12335_v4  ;;  %12344 = vst [vmem:[#allocation111_spill] sm:$0xff] %v9854_v15 }
 0x396   :  { %4965 = vmatpush1.bf16.msra.mxu1 %v12336_v9  ;;  %4949 = vmatprep.mubr.bf16.mxu0 %v11825_v63  ;;  %v9857_v51 = vpop.permute.xlu0 %3563  ;;  %v12356_v9 = vld [vmem:[#allocation153_spill] sm:$0xff] }
 0x397   :  { %v3889_v49 = vpop.f32.mrf.mxu0  ;;  %4966 = vmatprep.subr.bf16.mxu1 %v12337_v33  ;;  %4992 = vmatprep.mubr.bf16.mxu1 %v11825_v63  ;;  %v3930_v50 = vpop.f32.mrf.mxu1  ;;  %v12357_v33 = vld [vmem:[#allocation154_spill] sm:$0xff] }
 0x398   :  { %4924 = vmatpush1.bf16.msra.mxu0 %v12338_v16  ;;  %4104 = vrot.lane.b32.xlu0 %v3928_v31, %s6524_s17  ;;  %v9866_v59 = vpop.permute.xlu1 %3565 }
 0x399   :  { %4098 = vrot.lane.b32.xlu1 %v3889_v49, %s6524_s17  ;;  %4925 = vmatprep.subr.bf16.mxu0 %v12339_v40  ;;  %v3932_v60 = vpop.f32.mrf.mxu1  ;;  %v12359_v40 = vld [vmem:[#allocation157_spill] sm:$0xff] }
 0x39a   :  { %4967 = vmatpush1.bf16.msra.mxu1 %v12280_v34  ;;  %v3891_v34 = vpop.f32.mrf.mxu0  ;;  %v9870_v5 = vpop.permute.xlu0 %3559 }
 0x39b   :  { %4968 = vmatprep.subr.bf16.mxu1 %v12341_v23  ;;  %v12360_v23 = vld [vmem:[#allocation158_spill] sm:$0xff] }
 0x39c   :  { %4926 = vmatpush1.bf16.msra.mxu0 %v12342_v20  ;;  %4100 = vrot.lane.b32.xlu0 %v3887_v3, %s6524_s17  ;;  %v12354_v3 = vld [vmem:[#allocation150_spill] sm:$0xff]  ;;  %v9877_v31 = vpop.permute.xlu1 %3561 }
 0x39d   :  { %4106 = vrot.lane.b32.xlu1 %v3932_v60, %s6524_s17  ;;  %4927 = vmatprep.subr.bf16.mxu0 %v12343_v46  ;;  %12355 = vst [vmem:[#allocation113_spill] sm:$0xff] %v9877_v31  ;;  %v12361_v46 = vld [vmem:[#allocation130_spill] sm:$0xff] }
 0x39e   :  { %4969 = vmatpush1.bf16.msra.mxu1 %v12285_v22  ;;  %v3934_v22 = vpop.f32.mrf.mxu1  ;;  %v9882_v49 = vpop.permute.xlu0 %3567 }
 0x39f   :  { %4970 = vmatprep.subr.bf16.mxu1 %v12286_v52  ;;  %v12350_v52 = vld [vmem:[#allocation145_spill] sm:$0xff] }
 0x3a0   :  { %4928 = vmatpush1.bf16.msra.mxu0 %v12345_v2  ;;  %4108 = vrot.lane.b32.xlu0 %v3930_v50, %s6524_s17  ;;  %v9897_v2 = vpop.permute.xlu1 %3569 }
 0x3a1   :  { %4102 = vrot.lane.b32.xlu1 %v3891_v34, %s6524_s17  ;;  %4929 = vmatprep.subr.bf16.mxu0 %v12346_v57  ;;  %v12362_v57 = vld [vmem:[#allocation189_spill] sm:$0xff] }
 0x3a2   :  { %4971 = vmatpush1.bf16.msra.mxu1 %v12347_v42 }
 0x3a3   :  { %4972 = vmatprep.subr.bf16.mxu1 %v12348_v8  ;;  %v12363_v8 = vld [vmem:[#allocation160_spill] sm:$0xff] }
 0x3a4   :  { %4930 = vmatpush1.bf16.msra.mxu0 %v12349_v37  ;;  %v12365_v37 = vld [vmem:[#allocation190_spill] sm:$0xff] }
 0x3a5   :  { %4110 = vrot.lane.b32.xlu1 %v3934_v22, %s6524_s17  ;;  %4931 = vmatprep.subr.bf16.mxu0 %v12350_v52  ;;  %v12364_v22 = vld [vmem:[#allocation136_spill] sm:$0xff] }
 0x3a6   :  { %4973 = vmatpush1.bf16.msra.mxu1 %v12351_v53  ;;  %v9893_v20 = vpop.permute.xlu0 %3571 }
 0x3a7   :  { %4974 = vmatprep.subr.bf16.mxu1 %v12352_v54  ;;  %v12366_v54 = vld [vmem:[#allocation192_spill] sm:$0xff] }
 0x3a8   :  { %4932 = vmatpush1.bf16.msra.mxu0 %v12353_v14 }
 0x3a9   :  { %5007 = vmatprep.subr.bf16.mxu0 %v12354_v3 }
 0x3aa   :  { %4975 = vmatpush1.bf16.msra.mxu1 %v12302_v27  ;;  %v12358_v27 = vld [vmem:[#allocation155_spill] sm:$0xff]  ;;  %v9909_v52 = vpop.permute.xlu0 %3579 }
 0x3ab   :  { %v3971_v4 = vpop.f32.mrf.mxu0  ;;  %5758 = vmatmul.mubr.msk.bf16.vlgmr.msra.gmra.mxu0 %vm649_vm0, %v9759_v39  ;;  %5050 = vmatprep.subr.bf16.mxu1 %v12356_v9  ;;  %v12371_v9 = vld [vmem:[#allocation152_spill] sm:$0xff] }
 0x3ac   :  { %5008 = vmatpush1.bf16.msra.mxu0 %v12357_v33  ;;  %4112 = vrot.lane.b32.xlu0 %v3971_v4, %s6524_s17  ;;  %v12369_v4 = vld [vmem:[#allocation195_spill] sm:$0xff] }
 0x3ad   :  { %v3973_v16 = vpop.f32.mrf.mxu0  ;;  %v4014_v50 = vpop.f32.mrf.mxu1  ;;  %5759 = vmatmul.mubr.msk.bf16.vlgmr.msra.gmra.mxu1 %vm649_vm0, %v9759_v39  ;;  %5009 = vmatprep.subr.bf16.mxu0 %v12358_v27 }
 0x3ae   :  { %5051 = vmatpush1.bf16.msra.mxu1 %v12359_v40  ;;  %5035 = vmatprep.mubr.bf16.mxu0 %v11825_v63  ;;  %v9921_v3 = vpop.permute.xlu0 %3575 }
 0x3af   :  { %v3975_v60 = vpop.f32.mrf.mxu0  ;;  %5052 = vmatprep.subr.bf16.mxu1 %v12360_v23  ;;  %5078 = vmatprep.mubr.bf16.mxu1 %v11825_v63  ;;  %v4016_v34 = vpop.f32.mrf.mxu1 }
 0x3b0   :  { %5010 = vmatpush1.bf16.msra.mxu0 %v12361_v46  ;;  %4120 = vrot.lane.b32.xlu0 %v4014_v50, %s6524_s17  ;;  %v9905_v63 = vpop.permute.xlu1 %3573 }
 0x3b1   :  { %4114 = vrot.lane.b32.xlu1 %v3975_v60, %s6524_s17  ;;  %5011 = vmatprep.subr.bf16.mxu0 %v12362_v57  ;;  %v4018_v42 = vpop.f32.mrf.mxu1  ;;  %v3977_v53 = vpop.f32.mrf.mxu0 }
 0x3b2   :  { %5053 = vmatpush1.bf16.msra.mxu1 %v12363_v8 }
 0x3b3   :  { %5054 = vmatprep.subr.bf16.mxu1 %v9282_v26  ;;  %v12367_v26 = vld [vmem:[#allocation193_spill] sm:$0xff] }
 0x3b4   :  { %5012 = vmatpush1.bf16.msra.mxu0 %v12364_v22  ;;  %4116 = vrot.lane.b32.xlu0 %v3973_v16, %s6524_s17  ;;  %v9918_v14 = vpop.permute.xlu1 %3581  ;;  %v12373_v16 = vld [vmem:[#allocation201_spill] sm:$0xff]  ;;  %v12379_v22 = vld [vmem:[#allocation27_spill] sm:$0xff] }
 0x3b5   :  { %4122 = vrot.lane.b32.xlu1 %v4018_v42, %s6524_s17  ;;  %5013 = vmatprep.subr.bf16.mxu0 %v12365_v37  ;;  %12368 = vst [vmem:[#allocation116_spill] sm:$0xff] %v9918_v14 }
 0x3b6   :  { %5055 = vmatpush1.bf16.msra.mxu1 %v9296_v19  ;;  %v4020_v19 = vpop.f32.mrf.mxu1 }
 0x3b7   :  { %5056 = vmatprep.subr.bf16.mxu1 %v9302_v17  ;;  %v12370_v17 = vld [vmem:[#allocation197_spill] sm:$0xff] }
 0x3b8   :  { %5014 = vmatpush1.bf16.msra.mxu0 %v12366_v54  ;;  %4124 = vrot.lane.b32.xlu0 %v4016_v34, %s6524_s17  ;;  %v12381_v54 = vld [vmem:[#allocation5_spill] sm:$0xff] }
 0x3b9   :  { %4118 = vrot.lane.b32.xlu1 %v3977_v53, %s6524_s17  ;;  %5015 = vmatprep.subr.bf16.mxu0 %v12367_v26  ;;  %v12382_v26 = vld [vmem:[#allocation12_spill] sm:$0xff] }
 0x3ba   :  { %5057 = vmatpush1.bf16.msra.mxu1 %v9316_v45  ;;  %v9929_v45 = vpop.permute.xlu1 %3577 }
 0x3bb   :  { %5058 = vmatprep.subr.bf16.mxu1 %v9322_v0  ;;  %12372 = vst [vmem:[#allocation117_spill] sm:$0xff] %v9929_v45  ;;  %v9932_v0 = vpop.permute.xlu0 %3583 }
 0x3bc   :  { %5016 = vmatpush1.bf16.msra.mxu0 %v12369_v4  ;;  %v12383_v4 = vld [vmem:[#allocation36_spill] sm:$0xff] }
 0x3bd   :  { %4126 = vrot.lane.b32.xlu1 %v4020_v19, %s6524_s17  ;;  %5017 = vmatprep.subr.bf16.mxu0 %v12370_v17  ;;  %v12384_v17 = vld [vmem:[#allocation19_spill] sm:$0xff] }
 0x3be   :  { %5059 = vmatpush1.bf16.msra.mxu1 %v9333_v61  ;;  %v9946_v27 = vpop.permute.xlu1 %3585 }
 0x3bf   :  { %5060 = vmatprep.subr.bf16.mxu1 %v9339_v29  ;;  %v9942_v50 = vpop.permute.xlu0 %3587  ;;  %12374 = vst [vmem:[#allocation119_spill] sm:$0xff] %v9946_v27 }
 0x3c0   :  { %5018 = vmatpush1.bf16.msra.mxu0 %v12371_v9 }
 0x3c1   :  { %5988 = vmatprep.subr.bf16.mxu0 %v12052_v62 }
 0x3c2   :  { %5061 = vmatpush1.bf16.msra.mxu1 %v9696_v11  ;;  %v1106_v11 = vlaneseq }
 0x3c3   :  { %v4057_v33 = vpop.f32.mrf.mxu0  ;;  %5760 = vmatmul.mubr.msk.bf16.vlgmr.msra.gmra.mxu0 %vm649_vm0, %v9759_v39  ;;  %v9954_v57 = vpop.permute.xlu1 %3589 }
 0x3c4   :  { %5989 = vmatpush3.bf16.msra.mxu0 %v12373_v16  ;;  %4128 = vrot.lane.b32.xlu0 %v4057_v33, %s6524_s17  ;;  %v9952_v34 = vand.u32 127, %v1106_v11  ;;  %12375 = vst [vmem:[#allocation120_spill] sm:$0xff] %v9954_v57  ;;  %v9956_v42 = vpop.permute.xlu0 %3595  ;;  %v12385_v33 = vld [vmem:[#allocation208_spill] sm:$0xff]  ;;  %v12405_v57 = vld [vmem:[#allocation185_spill] sm:$0xff] }
 0x3c5   :  { %v5970_v61 = vpop.f32.mrf.mxu0  ;;  %v4246_v29 = vpop.f32.mrf.mxu1  ;;  %5761 = vmatmul.mubr.msk.bf16.vlgmr.msra.gmra.mxu1 %vm649_vm0, %v9759_v39  ;;  %5990 = vmatprep.subr.bf16.mxu0 %v12052_v62  ;;  %12376 = vst [vmem:[#allocation122_spill] sm:$0xff] %v9956_v42  ;;  %v12386_v16 = vld [vmem:[#allocation8_spill] sm:$0xff] }
 0x3c6   :  { %6000 = vmatprep.mubr.msk.bf16.mxu0 %vm6518_vm1, %v12052_v62  ;;  %vm1108_vm2 = vcmp.lt.s32.totalorder %v9952_v34, 127  ;;  %vm2000_vm3 = vcmp.lt.s32.totalorder %v9952_v34, 126  ;;  %vm2533_vm4 = vcmp.lt.s32.totalorder %v9952_v34, 82  ;;  %vm3066_vm5 = vcmp.lt.s32.totalorder %v9952_v34, 81 }
 0x3c7   :  { %v4060_v40 = vpop.f32.mrf.mxu0  ;;  %v4248_v60 = vpop.f32.mrf.mxu1  ;;  %v1135_v19 = vsel %vm1108_vm2, %v12381_v54, %v12382_v26  ;;  %v2031_v9 = vsel %vm2000_vm3, %v12384_v17, %v12383_v4  ;;  %vm3599_vm6 = vcmp.lt.s32.totalorder %v9952_v34, 80  ;;  %v12404_v17 = vld [vmem:[#allocation102_spill] sm:$0xff]  ;;  %vm4132_vm7 = vcmp.lt.s32.totalorder %v9952_v34, 36 }
 0x3c8   :  { %5991 = vmatpush3.bf16.msra.mxu0 %v9649_v55  ;;  %4597 = vrot.lane.b32.xlu0 %v4246_v29, %s6525_s1  ;;  %v9965_v8 = vpop.permute.xlu1 %3597  ;;  %v9973_v53 = vpop.permute.xlu0 %3591  ;;  %v12387_v29 = vld [vmem:[#allocation26_spill] sm:$0xff]  ;;  %vm4665_vm8 = vcmp.lt.s32.totalorder %v9952_v34, 35  ;;  %vm5198_vm9 = vcmp.lt.s32.totalorder %v9952_v34, 34 }
 0x3c9   :  { %4130 = vrot.lane.b32.xlu1 %v4060_v40, %s6524_s17  ;;  %v5971_v23 = vpop.f32.mrf.mxu0  ;;  %5992 = vmatprep.subr.bf16.mxu0 %v12052_v62  ;;  %v4250_v46 = vpop.f32.mrf.mxu1  ;;  %12377 = vst [vmem:[#allocation123_spill] sm:$0xff] %v9965_v8  ;;  %12380 = vst [vmem:[#allocation124_spill] sm:$0xff] %v9973_v53  ;;  %v2029_v11 = vsel %vm2000_vm3, %v12383_v4, %v12387_v29  ;;  %v12388_v40 = vld [vmem:[#allocation28_spill] sm:$0xff]  ;;  %v12393_v8 = vld [vmem:[#allocation126_spill] sm:$0xff]  ;;  %v2027_v42 = vsel %vm2000_vm3, %v12387_v29, %v12396_v56 }
 0x3ca   :  { %v12389_v23 = vld [vmem:[#allocation18_spill] sm:$0xff] }
 0x3cb   :  { %v4252_v55 = vpop.f32.mrf.mxu1 }
 0x3cc   :  { %5993 = vmatpush3.bf16.msra.mxu0 %v9662_v13  ;;  %4601 = vrot.lane.b32.xlu0 %v4248_v60, %s6525_s1  ;;  %v12378_v13 = vld [vmem:[#allocation3_spill] sm:$0xff] }
 0x3cd   :  { %4599 = vrot.lane.b32.xlu1 %v4250_v46, %s6525_s1  ;;  %5994 = vmatprep.subr.bf16.mxu0 %v12052_v62  ;;  %v1139_v37 = vsel %vm1108_vm2, %v12379_v22, %v12378_v13  ;;  %v12390_v46 = vld [vmem:[#allocation21_spill] sm:$0xff] }
 0x3ce   :  { %v1186_v61 = vadd.f32 %v12386_v16, %v1139_v37  ;;  %v12392_v16 = vld [vmem:[#allocation134_spill] sm:$0xff] }
 0x3cf   :  { %v2564_v4 = vsel %vm2533_vm4, %v12393_v8, %v12392_v16  ;;  %v12402_v8 = vld [vmem:[#allocation10_spill] sm:$0xff] }
 0x3d0   :  { %5995 = vmatpush3.bf16.msra.mxu0 %v9676_v12  ;;  %v1137_v12 = vsel %vm1108_vm2, %v12378_v13, %v12381_v54  ;;  %v12391_v54 = vld [vmem:[#allocation16_spill] sm:$0xff] }
 0x3d1   :  { %4603 = vrot.lane.b32.xlu1 %v4252_v55, %s6525_s1  ;;  %5996 = vmatprep.subr.bf16.mxu0 %v12052_v62  ;;  %v1188_v60 = vadd.f32 %v12388_v40, %v1137_v12  ;;  %v1140_v55 = vsel %vm1108_vm2, %v12390_v46, %v12389_v23  ;;  %v1229_v37 = vadd.f32 %v12391_v54, %v1135_v19  ;;  %v10012_v40 = vpop.permute.xlu1 %3593  ;;  %v12397_v19 = vld [vmem:[#allocation37_spill] sm:$0xff]  ;;  %v12399_v54 = vld [vmem:[#allocation210_spill] sm:$0xff] }
 0x3d2   :  { %12395 = vst [vmem:[#allocation125_spill] sm:$0xff] %v10012_v40  ;;  %v1190_v46 = vadd.f32 %v12400_v44, %v1140_v55  ;;  %v12406_v40 = vld [vmem:[#allocation137_spill] sm:$0xff] }
 0x3d3   :  { %v2036_v23 = vadd.f32 %v2029_v11, %v1188_v60  ;;  %v12403_v60 = vld [vmem:[#allocation85_spill] sm:$0xff]  ;;  %v2037_v38 = vadd.f32 %v2027_v42, %v1229_v37  ;;  %v12410_v37 = vld [vmem:[#allocation34_spill] sm:$0xff] }
 0x3d4   :  { %5997 = vmatpush3.bf16.msra.mxu0 %v12385_v33  ;;  %v2035_v33 = vadd.f32 %v2031_v9, %v1186_v61  ;;  %v12398_v9 = vld [vmem:[#allocation20_spill] sm:$0xff]  ;;  %v3095_v29 = vsel %vm3066_vm5, %v12404_v17, %v12403_v60  ;;  %v12409_v42 = vld [vmem:[#allocation105_spill] sm:$0xff] }
 0x3d5   :  { %5998 = vmatprep.subr.bf16.mxu0 %v12052_v62  ;;  %v12394_v62 = vld [vmem:[#allocation140_spill] sm:$0xff]  ;;  %v2032_v61 = vsel %vm2000_vm3, %v12398_v9, %v12397_v19  ;;  %v3097_v19 = vsel %vm3066_vm5, %v12405_v57, %v12404_v17  ;;  %v3630_v17 = vsel %vm3599_vm6, %v9766_v43, %v9783_v7 }
 0x3d6   :  { %v10001_v13 = vpop.permute.xlu0 %4064  ;;  %v2562_v12 = vsel %vm2533_vm4, %v12392_v16, %v12394_v62  ;;  %v12401_v16 = vld [vmem:[#allocation31_spill] sm:$0xff]  ;;  %v2568_v9 = vadd.f32 %v2564_v4, %v2035_v33  ;;  %v2052_v22 = vadd.f32 %v2032_v61, %v1190_v46  ;;  %v3628_v33 = vsel %vm3599_vm6, %v9783_v7, %v9793_v30  ;;  %v12411_v7 = vld [vmem:[#allocation45_spill] sm:$0xff]  ;;  %v12415_v57 = vld [vmem:[#allocation104_spill] sm:$0xff] }
 0x3d7   :  { %v1136_v11 = vsel %vm1108_vm2, %v12402_v8, %v12401_v16  ;;  %v2569_v55 = vadd.f32 %v2562_v12, %v2036_v23  ;;  %v2560_v16 = vsel %vm2533_vm4, %v12394_v62, %v12408_v10  ;;  %v3093_v46 = vsel %vm3066_vm5, %v12403_v60, %v12409_v42 }
 0x3d8   :  { %5999 = vmatpush3.bf16.msra.mxu0 %v12399_v54  ;;  %v12407_v54 = vld [vmem:[#allocation129_spill] sm:$0xff]  ;;  %v3101_v62 = vadd.f32 %v3097_v19, %v2568_v9  ;;  %v1233_v61 = vadd.f32 %v12410_v37, %v1136_v11 }
 0x3d9   :  { %v2565_v44 = vsel %vm2533_vm4, %v12407_v54, %v12406_v40  ;;  %v3102_v12 = vadd.f32 %v3095_v29, %v2569_v55  ;;  %v12412_v40 = vld [vmem:[#allocation30_spill] sm:$0xff]  ;;  %v12413_v29 = vld [vmem:[#allocation159_spill] sm:$0xff] }
 0x3da   :  { %v4073_v8 = vpop.permute.xlu0 %4072  ;;  %v2028_v54 = vsel %vm2000_vm3, %v12412_v40, %v12411_v7  ;;  %v2585_v43 = vadd.f32 %v2565_v44, %v2052_v22  ;;  %v12414_v55 = vld [vmem:[#allocation143_spill] sm:$0xff]  ;;  %v3634_v11 = vadd.f32 %v3630_v17, %v3101_v62  ;;  %v3631_v17 = vsel %vm3599_vm6, %v9777_v35, %v9791_v25  ;;  %v12421_v25 = vld [vmem:[#allocation41_spill] sm:$0xff] }
 0x3db   :  { %v10053_v4 = vpop.permute.xlu1 %4066  ;;  %v4289_v23 = vpop.f32.mrf.mxu0  ;;  %6001 = vmatmul.mubr.msk.bf16.vlgmr.msra.gmra.mxu0 %vm649_vm0, %v9759_v39  ;;  %v2570_v39 = vadd.f32 %v2560_v16, %v2037_v38  ;;  %v2561_v60 = vsel %vm2533_vm4, %v12414_v55, %v12413_v29  ;;  %v3635_v37 = vadd.f32 %v3628_v33, %v3102_v12  ;;  %v3626_v38 = vsel %vm3599_vm6, %v9793_v30, %v9818_v58 }
 0x3dc   :  { %4605 = vrot.lane.b32.xlu0 %v4289_v23, %s6525_s1  ;;  %v12416_v23 = vld [vmem:[#allocation84_spill] sm:$0xff]  ;;  %v2054_v12 = vadd.f32 %v2028_v54, %v1233_v61 }
 0x3dd   :  { %v4291_v19 = vpop.f32.mrf.mxu0  ;;  %v4332_v9 = vpop.f32.mrf.mxu1  ;;  %v3098_v14 = vsel %vm3066_vm5, %v12416_v23, %v12415_v57  ;;  %v3103_v53 = vadd.f32 %v3093_v46, %v2570_v39  ;;  %v12420_v39 = vld [vmem:[#allocation15_spill] sm:$0xff] }
 0x3de   :  { %v4069_v27 = vpop.permute.xlu0 %4068  ;;  %v3118_v46 = vadd.f32 %v3098_v14, %v2585_v43  ;;  %v3627_v43 = vsel %vm3599_vm6, %v9801_v18, %v9826_v21  ;;  %v12446_v21 = vld [vmem:[#allocation95_spill] sm:$0xff] }
 0x3df   :  { %v4161_v22 = vsel %vm4132_vm7, %v4069_v27, %v4073_v8  ;;  %v4163_v16 = vsel %vm4132_vm7, %v10001_v13, %v4069_v27  ;;  %v10085_v44 = vpop.permute.xlu1 %4074  ;;  %v4293_v29 = vpop.f32.mrf.mxu0  ;;  %v12419_v27 = vld [vmem:[#allocation108_spill] sm:$0xff]  ;;  %v3636_v57 = vadd.f32 %v3626_v38, %v3103_v53  ;;  %v12425_v38 = vld [vmem:[#allocation22_spill] sm:$0xff] }
 0x3e0   :  { %12417 = vst [vmem:[#allocation127_spill] sm:$0xff] %v10085_v44  ;;  %v10091_v33 = vadd.f32 %v4163_v16, %v3634_v11  ;;  %v10093_v62 = vadd.f32 %v4161_v22, %v3635_v37  ;;  %4613 = vrot.lane.b32.xlu0 %v4332_v9, %s6525_s1  ;;  %4607 = vrot.lane.b32.xlu1 %v4293_v29, %s6525_s1  ;;  %v4334_v30 = vpop.f32.mrf.mxu1  ;;  %v12426_v22 = vld [vmem:[#allocation148_spill] sm:$0xff] }
 0x3e1   :  { %v3094_v7 = vsel %vm3066_vm5, %v12420_v39, %v12419_v27  ;;  %v1133_v11 = vsel %vm1108_vm2, %v12382_v26, %v12421_v25  ;;  %v2587_v37 = vadd.f32 %v2561_v60, %v2054_v12  ;;  %v3651_v9 = vadd.f32 %v3631_v17, %v3118_v46  ;;  %v12424_v26 = vld [vmem:[#allocation46_spill] sm:$0xff]  ;;  %v4295_v12 = vpop.f32.mrf.mxu0 }
 0x3e2   :  { %12418 = vst [vmem:[#allocation128_spill] sm:$0xff] %v10093_v62  ;;  %v4077_v55 = vpop.permute.xlu0 %4076  ;;  %v4336_v40 = vpop.f32.mrf.mxu1  ;;  %v2558_v16 = vsel %vm2533_vm4, %v12408_v10, %v12426_v22  ;;  %v12429_v10 = vld [vmem:[#allocation92_spill] sm:$0xff] }
 0x3e3   :  { %v4159_v29 = vsel %vm4132_vm7, %v4073_v8, %v4077_v55  ;;  %v10107_v54 = vpop.permute.xlu1 %4070  ;;  %v2025_v8 = vsel %vm2000_vm3, %v12396_v56, %v12424_v26  ;;  %v3120_v61 = vadd.f32 %v3094_v7, %v2587_v37  ;;  %v12427_v56 = vld [vmem:[#allocation114_spill] sm:$0xff]  ;;  %v1131_v37 = vsel %vm1108_vm2, %v12421_v25, %v12429_v10 }
 0x3e4   :  { %12422 = vst [vmem:[#allocation131_spill] sm:$0xff] %v10107_v54  ;;  %v10113_v14 = vadd.f32 %v4159_v29, %v3636_v57  ;;  %v4164_v53 = vsel %vm4132_vm7, %v10053_v4, %v10107_v54  ;;  %4609 = vrot.lane.b32.xlu0 %v4291_v19, %s6525_s1  ;;  %4615 = vrot.lane.b32.xlu1 %v4336_v40, %s6525_s1  ;;  %v12430_v29 = vld [vmem:[#allocation90_spill] sm:$0xff] }
 0x3e5   :  { %v10125_v60 = vadd.f32 %v4164_v53, %v3651_v9  ;;  %v1231_v57 = vadd.f32 %v12425_v38, %v1133_v11  ;;  %v3653_v17 = vadd.f32 %v3627_v43, %v3120_v61  ;;  %v3091_v7 = vsel %vm3066_vm5, %v12409_v42, %v12427_v56  ;;  %v12431_v43 = vld [vmem:[#allocation94_spill] sm:$0xff] }
 0x3e6   :  { %12423 = vst [vmem:[#allocation132_spill] sm:$0xff] %v10113_v14  ;;  %v1127_v53 = vsel %vm1108_vm2, %v12430_v29, %v12431_v43  ;;  %v3624_v42 = vsel %vm3599_vm6, %v9818_v58, %v9807_v1  ;;  %v12432_v61 = vld [vmem:[#allocation58_spill] sm:$0xff] }
 0x3e7   :  { %v4079_v19 = vpop.permute.xlu1 %4078  ;;  %v2038_v46 = vadd.f32 %v2025_v8, %v1231_v57  ;;  %v4338_v8 = vpop.f32.mrf.mxu1  ;;  %v2023_v25 = vsel %vm2000_vm3, %v12424_v26, %v12432_v61  ;;  %v12433_v57 = vld [vmem:[#allocation4_spill] sm:$0xff] }
 0x3e8   :  { %v4160_v40 = vsel %vm4132_vm7, %v10085_v44, %v4079_v19  ;;  %4617 = vrot.lane.b32.xlu0 %v4334_v30, %s6525_s1  ;;  %4611 = vrot.lane.b32.xlu1 %v4295_v12, %s6525_s1  ;;  %v1129_v30 = vsel %vm1108_vm2, %v12429_v10, %v12430_v29  ;;  %v12436_v10 = vld [vmem:[#allocation49_spill] sm:$0xff]  ;;  %v12459_v44 = vld [vmem:[#allocation164_spill] sm:$0xff] }
 0x3e9   :  { %v10141_v11 = vadd.f32 %v4160_v40, %v3653_v17  ;;  %v2571_v9 = vadd.f32 %v2558_v16, %v2038_v46  ;;  %v1272_v16 = vadd.f32 %v12433_v57, %v1131_v37  ;;  %v12434_v17 = vld [vmem:[#allocation53_spill] sm:$0xff]  ;;  %v12435_v46 = vld [vmem:[#allocation11_spill] sm:$0xff]  ;;  %v1315_v58 = vadd.f32 %v12436_v10, %v1127_v53 }
 0x3ea   :  { %v2021_v12 = vsel %vm2000_vm3, %v12432_v61, %v12434_v17  ;;  %v1274_v40 = vadd.f32 %v12435_v46, %v1129_v30  ;;  %v12437_v29 = vld [vmem:[#allocation93_spill] sm:$0xff]  ;;  %v12440_v57 = vld [vmem:[#allocation163_spill] sm:$0xff]  ;;  %v12441_v46 = vld [vmem:[#allocation62_spill] sm:$0xff] }
 0x3eb   :  { %12428 = vst [vmem:[#allocation133_spill] sm:$0xff] %v10141_v11  ;;  %v3104_v38 = vadd.f32 %v3091_v7, %v2571_v9  ;;  %v12438_v11 = vld [vmem:[#allocation89_spill] sm:$0xff]  ;;  %v2039_v9 = vadd.f32 %v2023_v25, %v1272_v16  ;;  %v12442_v25 = vld [vmem:[#allocation60_spill] sm:$0xff] }
 0x3ec   :  { %4619 = vrot.lane.b32.xlu1 %v4338_v8, %s6525_s1  ;;  %v1132_v14 = vsel %vm1108_vm2, %v12438_v11, %v12437_v29  ;;  %v12439_v8 = vld [vmem:[#allocation161_spill] sm:$0xff]  ;;  %v2040_v61 = vadd.f32 %v2021_v12, %v1274_v40  ;;  %v12448_v12 = vld [vmem:[#allocation187_spill] sm:$0xff] }
 0x3ed   :  { %v3637_v26 = vadd.f32 %v3624_v42, %v3104_v38  ;;  %v2556_v37 = vsel %vm2533_vm4, %v12426_v22, %v12439_v8  ;;  %v2554_v30 = vsel %vm2533_vm4, %v12439_v8, %v12440_v57  ;;  %v2019_v42 = vsel %vm2000_vm3, %v12434_v17, %v12441_v46  ;;  %v12443_v38 = vld [vmem:[#allocation51_spill] sm:$0xff]  ;;  %v12445_v10 = vld [vmem:[#allocation17_spill] sm:$0xff] }
 0x3ee   :  { %v4081_v7 = vpop.permute.xlu0 %4080  ;;  %v2024_v16 = vsel %vm2000_vm3, %v12443_v38, %v12442_v25  ;;  %v1276_v29 = vadd.f32 %v12445_v10, %v1132_v14  ;;  %v12447_v8 = vld [vmem:[#allocation91_spill] sm:$0xff]  ;;  %v2572_v25 = vadd.f32 %v2556_v37, %v2039_v9  ;;  %v2573_v10 = vadd.f32 %v2554_v30, %v2040_v61 }
 0x3ef   :  { %v4157_v53 = vsel %vm4132_vm7, %v4077_v55, %v4081_v7  ;;  %v1128_v55 = vsel %vm1108_vm2, %v12447_v8, %v12446_v21  ;;  %v12449_v40 = vld [vmem:[#allocation135_spill] sm:$0xff]  ;;  %v2041_v62 = vadd.f32 %v2019_v42, %v1315_v58  ;;  %v3620_v9 = vsel %vm3599_vm6, %v9833_v47, %v9843_v48  ;;  %v12456_v42 = vld [vmem:[#allocation64_spill] sm:$0xff] }
 0x3f0   :  { %v10193_v22 = vadd.f32 %v4157_v53, %v3637_v26  ;;  %v3087_v27 = vsel %vm3066_vm5, %v12449_v40, %v12448_v12  ;;  %v3089_v17 = vsel %vm3066_vm5, %v12427_v56, %v12449_v40  ;;  %v12450_v26 = vld [vmem:[#allocation162_spill] sm:$0xff]  ;;  %v12451_v53 = vld [vmem:[#allocation151_spill] sm:$0xff]  ;;  %v2056_v54 = vadd.f32 %v2024_v16, %v1276_v29  ;;  %v12457_v16 = vld [vmem:[#allocation56_spill] sm:$0xff] }
 0x3f1   :  { %v2557_v14 = vsel %vm2533_vm4, %v12451_v53, %v12450_v26  ;;  %v3622_v56 = vsel %vm3599_vm6, %v9807_v1, %v9833_v47  ;;  %v3105_v61 = vadd.f32 %v3089_v17, %v2572_v25  ;;  %v3106_v40 = vadd.f32 %v3087_v27, %v2573_v10  ;;  %v12453_v26 = vld [vmem:[#allocation194_spill] sm:$0xff]  ;;  %v12455_v1 = vld [vmem:[#allocation59_spill] sm:$0xff]  ;;  %v12458_v53 = vld [vmem:[#allocation168_spill] sm:$0xff] }
 0x3f2   :  { %12444 = vst [vmem:[#allocation138_spill] sm:$0xff] %v10193_v22  ;;  %v12452_v22 = vld [vmem:[#allocation167_spill] sm:$0xff]  ;;  %v4089_v8 = vpop.permute.xlu0 %4088  ;;  %v3085_v58 = vsel %vm3066_vm5, %v12448_v12, %v12453_v26  ;;  %v2020_v47 = vsel %vm2000_vm3, %v12457_v16, %v12456_v42  ;;  %v2589_v25 = vadd.f32 %v2557_v14, %v2056_v54  ;;  %v2553_v12 = vsel %vm2533_vm4, %v12459_v44, %v12458_v53  ;;  %v12465_v42 = vld [vmem:[#allocation188_spill] sm:$0xff] }
 0x3f3   :  { %v2552_v21 = vsel %vm2533_vm4, %v12440_v57, %v12452_v22  ;;  %v4083_v37 = vpop.permute.xlu1 %4082  ;;  %v4375_v30 = vpop.f32.mrf.mxu0  ;;  %v1319_v57 = vadd.f32 %v12455_v1, %v1128_v55  ;;  %v3638_v55 = vadd.f32 %v3622_v56, %v3105_v61  ;;  %v3639_v1 = vadd.f32 %v3620_v9, %v3106_v40 }
 0x3f4   :  { %v10230_v29 = vsel %vm4132_vm7, %v4079_v19, %v4083_v37  ;;  %4621 = vrot.lane.b32.xlu0 %v4375_v30, %s6525_s1  ;;  %v2574_v27 = vadd.f32 %v2552_v21, %v2041_v62  ;;  %v12460_v19 = vld [vmem:[#allocation191_spill] sm:$0xff]  ;;  %v3618_v21 = vsel %vm3599_vm6, %v9843_v48, %v9870_v5  ;;  %v3623_v56 = vsel %vm3599_vm6, %v9814_v36, %v9846_v6  ;;  %v12503_v6 = vld [vmem:[#allocation172_spill] sm:$0xff] }
 0x3f5   :  { %12454 = vst [vmem:[#allocation139_spill] sm:$0xff] %v10230_v29  ;;  %v4377_v17 = vpop.f32.mrf.mxu0  ;;  %v4418_v10 = vpop.f32.mrf.mxu1  ;;  %v12461_v29 = vld [vmem:[#allocation186_spill] sm:$0xff]  ;;  %v2058_v40 = vadd.f32 %v2020_v47, %v1319_v57 }
 0x3f6   :  { %v3090_v30 = vsel %vm3066_vm5, %v12461_v29, %v12460_v19  ;;  %v4085_v38 = vpop.permute.xlu0 %4084  ;;  %v3107_v18 = vadd.f32 %v3085_v58, %v2574_v27  ;;  %v12463_v27 = vld [vmem:[#allocation96_spill] sm:$0xff] }
 0x3f7   :  { %v4153_v62 = vsel %vm4132_vm7, %v4085_v38, %v4089_v8  ;;  %v4155_v54 = vsel %vm4132_vm7, %v4081_v7, %v4085_v38  ;;  %v4091_v14 = vpop.permute.xlu1 %4090  ;;  %v4379_v53 = vpop.f32.mrf.mxu0  ;;  %v3122_v58 = vadd.f32 %v3090_v30, %v2589_v25  ;;  %v1125_v7 = vsel %vm1108_vm2, %v12431_v43, %v12463_v27  ;;  %v12464_v38 = vld [vmem:[#allocation196_spill] sm:$0xff] }
 0x3f8   :  { %v10258_v9 = vadd.f32 %v4155_v54, %v3638_v55  ;;  %v10260_v61 = vadd.f32 %v4153_v62, %v3639_v1  ;;  %4629 = vrot.lane.b32.xlu0 %v4418_v10, %s6525_s1  ;;  %4623 = vrot.lane.b32.xlu1 %v4379_v53, %s6525_s1  ;;  %v4420_v48 = vpop.f32.mrf.mxu1  ;;  %v3086_v55 = vsel %vm3066_vm5, %v12465_v42, %v12464_v38 }
 0x3f9   :  { %v3640_v54 = vadd.f32 %v3618_v21, %v3107_v18  ;;  %v3655_v10 = vadd.f32 %v3623_v56, %v3122_v58  ;;  %v3619_v53 = vsel %vm3599_vm6, %v9854_v15, %v9877_v31  ;;  %v12469_v56 = vld [vmem:[#allocation54_spill] sm:$0xff]  ;;  %v12470_v58 = vld [vmem:[#allocation165_spill] sm:$0xff] }
 0x3fa   :  { %12462 = vst [vmem:[#allocation141_spill] sm:$0xff] %v10260_v61  ;;  %v4093_v1 = vpop.permute.xlu0 %4092  ;;  %v4422_v62 = vpop.f32.mrf.mxu1  ;;  %v2591_v61 = vadd.f32 %v2553_v12, %v2058_v40  ;;  %v12468_v12 = vld [vmem:[#allocation67_spill] sm:$0xff]  ;;  %v1317_v40 = vadd.f32 %v12469_v56, %v1125_v7  ;;  %v12490_v31 = vld [vmem:[#allocation33_spill] sm:$0xff] }
 0x3fb   :  { %v4151_v57 = vsel %vm4132_vm7, %v4089_v8, %v4093_v1  ;;  %v4087_v47 = vpop.permute.xlu1 %4086  ;;  %v2017_v30 = vsel %vm2000_vm3, %v12441_v46, %v12468_v12  ;;  %v12471_v46 = vld [vmem:[#allocation198_spill] sm:$0xff] }
 0x3fc   :  { %v10278_v43 = vadd.f32 %v4151_v57, %v3640_v54  ;;  %v10282_v25 = vsel %vm4132_vm7, %v4087_v47, %v4091_v14  ;;  %v4156_v18 = vsel %vm4132_vm7, %v4083_v37, %v4087_v47  ;;  %4625 = vrot.lane.b32.xlu0 %v4377_v17, %s6525_s1  ;;  %4631 = vrot.lane.b32.xlu1 %v4422_v62, %s6525_s1  ;;  %v4381_v57 = vpop.f32.mrf.mxu0 }
 0x3fd   :  { %12467 = vst [vmem:[#allocation144_spill] sm:$0xff] %v10282_v25  ;;  %v3124_v8 = vadd.f32 %v3086_v55, %v2591_v61  ;;  %v10292_v21 = vadd.f32 %v4156_v18, %v3655_v10  ;;  %v2550_v54 = vsel %vm2533_vm4, %v12452_v22, %v12470_v58  ;;  %v2042_v47 = vadd.f32 %v2017_v30, %v1317_v40  ;;  %v12473_v55 = vld [vmem:[#allocation100_spill] sm:$0xff]  ;;  %v4424_v30 = vpop.f32.mrf.mxu1  ;;  %v12477_v40 = vld [vmem:[#allocation29_spill] sm:$0xff] }
 0x3fe   :  { %12466 = vst [vmem:[#allocation142_spill] sm:$0xff] %v10278_v43  ;;  %v3083_v61 = vsel %vm3066_vm5, %v12453_v26, %v12471_v46  ;;  %v1123_v22 = vsel %vm1108_vm2, %v12463_v27, %v12473_v55  ;;  %v3616_v26 = vsel %vm3599_vm6, %v9870_v5, %v9857_v51 }
 0x3ff   :  { %v3657_v37 = vadd.f32 %v3619_v53, %v3124_v8  ;;  %v4095_v17 = vpop.permute.xlu1 %4094  ;;  %v2575_v10 = vadd.f32 %v2550_v54, %v2042_v47  ;;  %v12474_v53 = vld [vmem:[#allocation98_spill] sm:$0xff]  ;;  %v12476_v8 = vld [vmem:[#allocation75_spill] sm:$0xff]  ;;  %v1358_v54 = vadd.f32 %v12477_v40, %v1123_v22 }
 0x400   :  { %v4152_v62 = vsel %vm4132_vm7, %v4091_v14, %v4095_v17  ;;  %4633 = vrot.lane.b32.xlu0 %v4420_v48, %s6525_s1  ;;  %4627 = vrot.lane.b32.xlu1 %v4381_v57, %s6525_s1  ;;  %v1121_v14 = vsel %vm1108_vm2, %v12473_v55, %v12474_v53  ;;  %v12475_v48 = vld [vmem:[#allocation32_spill] sm:$0xff]  ;;  %v2015_v27 = vsel %vm2000_vm3, %v12468_v12, %v12476_v8  ;;  %v12479_v47 = vld [vmem:[#allocation39_spill] sm:$0xff]  ;;  %v12480_v55 = vld [vmem:[#allocation65_spill] sm:$0xff] }
 0x401   :  { %v10307_v7 = vadd.f32 %v4152_v62, %v3657_v37  ;;  %v1119_v18 = vsel %vm1108_vm2, %v12474_v53, %v12475_v48  ;;  %v3108_v56 = vadd.f32 %v3083_v61, %v2575_v10  ;;  %v12478_v37 = vld [vmem:[#allocation71_spill] sm:$0xff]  ;;  %v1360_v62 = vadd.f32 %v12479_v47, %v1121_v14  ;;  %v12481_v53 = vld [vmem:[#allocation101_spill] sm:$0xff] }
 0x402   :  { %v2013_v57 = vsel %vm2000_vm3, %v12476_v8, %v12478_v37  ;;  %v1401_v5 = vadd.f32 %v12480_v55, %v1119_v18  ;;  %v2043_v10 = vadd.f32 %v2015_v27, %v1358_v54  ;;  %v12484_v40 = vld [vmem:[#allocation171_spill] sm:$0xff]  ;;  %v12485_v47 = vld [vmem:[#allocation25_spill] sm:$0xff]  ;;  %v12486_v27 = vld [vmem:[#allocation76_spill] sm:$0xff] }
 0x403   :  { %12472 = vst [vmem:[#allocation145_spill] sm:$0xff] %v10307_v7  ;;  %v12482_v7 = vld [vmem:[#allocation97_spill] sm:$0xff]  ;;  %v3641_v12 = vadd.f32 %v3616_v26, %v3108_v56  ;;  %v2044_v8 = vadd.f32 %v2013_v57, %v1360_v62  ;;  %v2011_v26 = vsel %vm2000_vm3, %v12478_v37, %v12485_v47  ;;  %v12487_v56 = vld [vmem:[#allocation68_spill] sm:$0xff]  ;;  %v12489_v55 = vld [vmem:[#allocation50_spill] sm:$0xff] }
 0x404   :  { %4635 = vrot.lane.b32.xlu1 %v4424_v30, %s6525_s1  ;;  %v1124_v43 = vsel %vm1108_vm2, %v12482_v7, %v12481_v53  ;;  %v12483_v30 = vld [vmem:[#allocation169_spill] sm:$0xff]  ;;  %v2016_v54 = vsel %vm2000_vm3, %v12487_v56, %v12486_v27  ;;  %v12492_v57 = vld [vmem:[#allocation200_spill] sm:$0xff]  ;;  %v12493_v62 = vld [vmem:[#allocation203_spill] sm:$0xff]  ;;  %v2045_v25 = vadd.f32 %v2011_v26, %v1401_v5 }
 0x405   :  { %v2548_v22 = vsel %vm2533_vm4, %v12470_v58, %v12483_v30  ;;  %v2546_v14 = vsel %vm2533_vm4, %v12483_v30, %v12484_v40  ;;  %v1362_v53 = vadd.f32 %v12489_v55, %v1124_v43  ;;  %v12491_v30 = vld [vmem:[#allocation99_spill] sm:$0xff]  ;;  %v3079_v38 = vsel %vm3066_vm5, %v12493_v62, %v12492_v57 }
 0x406   :  { %v4097_v61 = vpop.permute.xlu0 %4096  ;;  %v3081_v37 = vsel %vm3066_vm5, %v12471_v46, %v12493_v62  ;;  %v2576_v27 = vadd.f32 %v2548_v22, %v2043_v10  ;;  %v2577_v55 = vadd.f32 %v2546_v14, %v2044_v8  ;;  %v3614_v46 = vsel %vm3599_vm6, %v9857_v51, %v9882_v49  ;;  %v12499_v51 = vld [vmem:[#allocation74_spill] sm:$0xff]  ;;  %v12500_v26 = vld [vmem:[#allocation79_spill] sm:$0xff] }
 0x407   :  { %v4149_v18 = vsel %vm4132_vm7, %v4093_v1, %v4097_v61  ;;  %v1120_v1 = vsel %vm1108_vm2, %v12491_v30, %v12490_v31  ;;  %v2060_v56 = vadd.f32 %v2016_v54, %v1362_v53  ;;  %v3612_v10 = vsel %vm3599_vm6, %v9882_v49, %v9893_v20  ;;  %v12501_v54 = vld [vmem:[#allocation72_spill] sm:$0xff] }
 0x408   :  { %v10359_v58 = vadd.f32 %v4149_v18, %v3641_v12  ;;  %v12494_v12 = vld [vmem:[#allocation170_spill] sm:$0xff]  ;;  %v3109_v8 = vadd.f32 %v3081_v37, %v2576_v27  ;;  %v3110_v62 = vadd.f32 %v3079_v38, %v2577_v55  ;;  %v2012_v49 = vsel %vm2000_vm3, %v12501_v54, %v12500_v26 }
 0x409   :  { %v12495_v18 = vld [vmem:[#allocation166_spill] sm:$0xff] }
 0x40a   :  { %12488 = vst [vmem:[#allocation146_spill] sm:$0xff] %v10359_v58  ;;  %v2549_v43 = vsel %vm2533_vm4, %v12495_v18, %v12494_v12  ;;  %v12496_v58 = vld [vmem:[#allocation175_spill] sm:$0xff]  ;;  %v4105_v30 = vpop.permute.xlu0 %4104  ;;  %v12497_v12 = vld [vmem:[#allocation205_spill] sm:$0xff]  ;;  %v12502_v18 = vld [vmem:[#allocation176_spill] sm:$0xff] }
 0x40b   :  { %v2544_v31 = vsel %vm2533_vm4, %v12484_v40, %v12496_v58  ;;  %v4099_v22 = vpop.permute.xlu1 %4098  ;;  %v4461_v14 = vpop.f32.mrf.mxu0  ;;  %v3077_v5 = vsel %vm3066_vm5, %v12492_v57, %v12497_v12  ;;  %v1405_v40 = vadd.f32 %v12499_v51, %v1120_v1  ;;  %v2593_v27 = vadd.f32 %v2549_v43, %v2060_v56  ;;  %v12509_v26 = vld [vmem:[#allocation202_spill] sm:$0xff] }
 0x40c   :  { %v10396_v53 = vsel %vm4132_vm7, %v4095_v17, %v4099_v22  ;;  %4637 = vrot.lane.b32.xlu0 %v4461_v14, %s6525_s1  ;;  %v2578_v38 = vadd.f32 %v2544_v31, %v2045_v25  ;;  %v2545_v57 = vsel %vm2533_vm4, %v12503_v6, %v12502_v18  ;;  %v12504_v17 = vld [vmem:[#allocation204_spill] sm:$0xff]  ;;  %v3642_v1 = vadd.f32 %v3614_v46, %v3109_v8 }
 0x40d   :  { %12498 = vst [vmem:[#allocation147_spill] sm:$0xff] %v10396_v53  ;;  %v4463_v37 = vpop.f32.mrf.mxu0  ;;  %v4504_v55 = vpop.f32.mrf.mxu1  ;;  %v12505_v53 = vld [vmem:[#allocation199_spill] sm:$0xff]  ;;  %v3643_v51 = vadd.f32 %v3612_v10, %v3110_v62  ;;  %v3610_v31 = vsel %vm3599_vm6, %v9893_v20, %v9921_v3  ;;  %v3615_v46 = vsel %vm3599_vm6, %v9866_v59, %v9897_v2  ;;  %v2062_v62 = vadd.f32 %v2012_v49, %v1405_v40 }
 0x40e   :  { %v3082_v14 = vsel %vm3066_vm5, %v12505_v53, %v12504_v17  ;;  %v4101_v15 = vpop.permute.xlu0 %4100  ;;  %v3111_v7 = vadd.f32 %v3077_v5, %v2578_v38  ;;  %v12507_v38 = vld [vmem:[#allocation35_spill] sm:$0xff] }
 0x40f   :  { %v4145_v25 = vsel %vm4132_vm7, %v4101_v15, %v4105_v30  ;;  %v4147_v56 = vsel %vm4132_vm7, %v4097_v61, %v4101_v15  ;;  %v4107_v43 = vpop.permute.xlu1 %4106  ;;  %v4465_v18 = vpop.f32.mrf.mxu0  ;;  %v3126_v5 = vadd.f32 %v3082_v14, %v2593_v27  ;;  %v1117_v15 = vsel %vm1108_vm2, %v12475_v48, %v12507_v38  ;;  %v12508_v61 = vld [vmem:[#allocation206_spill] sm:$0xff] }
 0x410   :  { %v10424_v10 = vadd.f32 %v4147_v56, %v3642_v1  ;;  %v10426_v8 = vadd.f32 %v4145_v25, %v3643_v51  ;;  %4645 = vrot.lane.b32.xlu0 %v4504_v55, %s6525_s1  ;;  %4639 = vrot.lane.b32.xlu1 %v4465_v18, %s6525_s1  ;;  %v4506_v20 = vpop.f32.mrf.mxu1  ;;  %v3078_v1 = vsel %vm3066_vm5, %v12509_v26, %v12508_v61 }
 0x411   :  { %v3644_v56 = vadd.f32 %v3610_v31, %v3111_v7  ;;  %v3659_v55 = vadd.f32 %v3615_v46, %v3126_v5  ;;  %v3611_v18 = vsel %vm3599_vm6, %v9905_v63, %v9929_v45  ;;  %v12513_v46 = vld [vmem:[#allocation69_spill] sm:$0xff] }
 0x412   :  { %12506 = vst [vmem:[#allocation149_spill] sm:$0xff] %v10426_v8  ;;  %v4109_v51 = vpop.permute.xlu0 %4108  ;;  %v4508_v25 = vpop.f32.mrf.mxu1  ;;  %v2595_v8 = vadd.f32 %v2545_v57, %v2062_v62  ;;  %v12512_v57 = vld [vmem:[#allocation81_spill] sm:$0xff]  ;;  %v1403_v62 = vadd.f32 %v12513_v46, %v1117_v15 }
 0x413   :  { %v4143_v40 = vsel %vm4132_vm7, %v4105_v30, %v4109_v51  ;;  %v4103_v49 = vpop.permute.xlu1 %4102  ;;  %v2009_v14 = vsel %vm2000_vm3, %v12485_v47, %v12512_v57  ;;  %v12514_v5 = vld [vmem:[#allocation173_spill] sm:$0xff]  ;;  %v12515_v47 = vld [vmem:[#allocation207_spill] sm:$0xff] }
 0x414   :  { %v10444_v48 = vadd.f32 %v4143_v40, %v3644_v56  ;;  %v10448_v27 = vsel %vm4132_vm7, %v4103_v49, %v4107_v43  ;;  %v4148_v7 = vsel %vm4132_vm7, %v4099_v22, %v4103_v49  ;;  %4641 = vrot.lane.b32.xlu0 %v4463_v37, %s6525_s1  ;;  %4647 = vrot.lane.b32.xlu1 %v4508_v25, %s6525_s1  ;;  %v4467_v40 = vpop.f32.mrf.mxu0  ;;  %v12534_v45 = vld [vmem:[#allocation9_spill] sm:$0xff] }
 0x415   :  { %12511 = vst [vmem:[#allocation153_spill] sm:$0xff] %v10448_v27  ;;  %v3128_v30 = vadd.f32 %v3078_v1, %v2595_v8  ;;  %v10458_v31 = vadd.f32 %v4148_v7, %v3659_v55  ;;  %v2542_v56 = vsel %vm2533_vm4, %v12496_v58, %v12514_v5  ;;  %v2046_v49 = vadd.f32 %v2009_v14, %v1403_v62  ;;  %v12517_v1 = vld [vmem:[#allocation48_spill] sm:$0xff]  ;;  %v4510_v14 = vpop.f32.mrf.mxu1  ;;  %v12521_v62 = vld [vmem:[#allocation57_spill] sm:$0xff] }
 0x416   :  { %12510 = vst [vmem:[#allocation150_spill] sm:$0xff] %v10444_v48  ;;  %v3075_v8 = vsel %vm3066_vm5, %v12497_v12, %v12515_v47  ;;  %v1115_v58 = vsel %vm1108_vm2, %v12507_v38, %v12517_v1  ;;  %v3608_v12 = vsel %vm3599_vm6, %v9921_v3, %v9909_v52  ;;  %v12544_v27 = vld [vmem:[#allocation180_spill] sm:$0xff] }
 0x417   :  { %v3661_v22 = vadd.f32 %v3611_v18, %v3128_v30  ;;  %v4111_v37 = vpop.permute.xlu1 %4110  ;;  %v2579_v55 = vadd.f32 %v2542_v56, %v2046_v49  ;;  %v12518_v18 = vld [vmem:[#allocation44_spill] sm:$0xff]  ;;  %v12520_v30 = vld [vmem:[#allocation106_spill] sm:$0xff]  ;;  %v1444_v56 = vadd.f32 %v12521_v62, %v1115_v58  ;;  %v12523_v49 = vld [vmem:[#allocation61_spill] sm:$0xff] }
 0x418   :  { %v4144_v25 = vsel %vm4132_vm7, %v4107_v43, %v4111_v37  ;;  %4649 = vrot.lane.b32.xlu0 %v4506_v20, %s6525_s1  ;;  %4643 = vrot.lane.b32.xlu1 %v4467_v40, %s6525_s1  ;;  %v1113_v43 = vsel %vm1108_vm2, %v12517_v1, %v12518_v18  ;;  %v12519_v20 = vld [vmem:[#allocation6_spill] sm:$0xff]  ;;  %v2007_v38 = vsel %vm2000_vm3, %v12512_v57, %v12520_v30  ;;  %v12524_v1 = vld [vmem:[#allocation80_spill] sm:$0xff]  ;;  %v12528_v62 = vld [vmem:[#allocation179_spill] sm:$0xff] }
 0x419   :  { %v10473_v15 = vadd.f32 %v4144_v25, %v3661_v22  ;;  %v1111_v7 = vsel %vm1108_vm2, %v12518_v18, %v12519_v20  ;;  %v3112_v46 = vadd.f32 %v3075_v8, %v2579_v55  ;;  %v12522_v22 = vld [vmem:[#allocation87_spill] sm:$0xff]  ;;  %v1446_v25 = vadd.f32 %v12523_v49, %v1113_v43  ;;  %v12525_v18 = vld [vmem:[#allocation2_spill] sm:$0xff]  ;;  %v12529_v49 = vld [vmem:[#allocation112_spill] sm:$0xff] }
 0x41a   :  { %v2005_v40 = vsel %vm2000_vm3, %v12520_v30, %v12522_v22  ;;  %v1487_v3 = vadd.f32 %v12524_v1, %v1111_v7  ;;  %v2047_v55 = vadd.f32 %v2007_v38, %v1444_v56  ;;  %v12530_v38 = vld [vmem:[#allocation107_spill] sm:$0xff]  ;;  %v12533_v1 = vld [vmem:[#allocation66_spill] sm:$0xff] }
 0x41b   :  { %12516 = vst [vmem:[#allocation154_spill] sm:$0xff] %v10473_v15  ;;  %v12526_v15 = vld [vmem:[#allocation43_spill] sm:$0xff]  ;;  %v3645_v57 = vadd.f32 %v3608_v12, %v3112_v46  ;;  %v2048_v30 = vadd.f32 %v2005_v40, %v1446_v25  ;;  %v2003_v12 = vsel %vm2000_vm3, %v12522_v22, %v12529_v49  ;;  %v12531_v46 = vld [vmem:[#allocation82_spill] sm:$0xff]  ;;  %v3071_v40 = vsel %vm3066_vm5, %v9728_v32, %v9711_v24 }
 0x41c   :  { %4651 = vrot.lane.b32.xlu1 %v4510_v14, %s6525_s1  ;;  %v1116_v48 = vsel %vm1108_vm2, %v12526_v15, %v12525_v18  ;;  %v12527_v14 = vld [vmem:[#allocation177_spill] sm:$0xff]  ;;  %v2008_v56 = vsel %vm2000_vm3, %v12531_v46, %v12530_v38  ;;  %v3073_v22 = vsel %vm3066_vm5, %v12515_v47, %v9728_v32  ;;  %v12538_v38 = vld [vmem:[#allocation183_spill] sm:$0xff]  ;;  %v3606_v32 = vsel %vm3599_vm6, %v9909_v52, %v9932_v0  ;;  %v12540_v52 = vld [vmem:[#allocation86_spill] sm:$0xff] }
 0x41d   :  { %v2540_v58 = vsel %vm2533_vm4, %v12514_v5, %v12527_v14  ;;  %v2538_v43 = vsel %vm2533_vm4, %v12527_v14, %v12528_v62  ;;  %v1448_v18 = vadd.f32 %v12533_v1, %v1116_v48  ;;  %v12535_v14 = vld [vmem:[#allocation47_spill] sm:$0xff]  ;;  %v3604_v47 = vsel %vm3599_vm6, %v9932_v0, %v9942_v50  ;;  %v12546_v46 = vld [vmem:[#allocation124_spill] sm:$0xff] }
 0x41e   :  { %v4113_v8 = vpop.permute.xlu0 %4112  ;;  %v2580_v25 = vadd.f32 %v2540_v58, %v2047_v55  ;;  %v2581_v1 = vadd.f32 %v2538_v43, %v2048_v30 }
 0x41f   :  { %v4141_v7 = vsel %vm4132_vm7, %v4109_v51, %v4113_v8  ;;  %v1112_v51 = vsel %vm1108_vm2, %v12535_v14, %v12534_v45  ;;  %v2536_v45 = vsel %vm2533_vm4, %v12528_v62, %v12538_v38  ;;  %v2064_v61 = vadd.f32 %v2008_v56, %v1448_v18  ;;  %v12542_v56 = vld [vmem:[#allocation103_spill] sm:$0xff] }
 0x420   :  { %v10525_v5 = vadd.f32 %v4141_v7, %v3645_v57  ;;  %v12536_v57 = vld [vmem:[#allocation178_spill] sm:$0xff]  ;;  %v3113_v43 = vadd.f32 %v3073_v22, %v2580_v25  ;;  %v3114_v30 = vadd.f32 %v3071_v40, %v2581_v1  ;;  %v1491_v62 = vadd.f32 %v12540_v52, %v1112_v51 }
 0x421   :  { %v12537_v7 = vld [vmem:[#allocation174_spill] sm:$0xff] }
 0x422   :  { %12532 = vst [vmem:[#allocation155_spill] sm:$0xff] %v10525_v5  ;;  %v2541_v48 = vsel %vm2533_vm4, %v12537_v7, %v12536_v57  ;;  %v4121_v14 = vpop.permute.xlu0 %4120  ;;  %v2049_v5 = vadd.f32 %v2003_v12, %v1487_v3  ;;  %v3069_v3 = vsel %vm3066_vm5, %v9711_v24, %v9740_v41  ;;  %v12541_v12 = vld [vmem:[#allocation115_spill] sm:$0xff]  ;;  %v12543_v57 = vld [vmem:[#allocation184_spill] sm:$0xff]  ;;  %v3646_v51 = vadd.f32 %v3606_v32, %v3113_v43 }
 0x423   :  { %v4115_v55 = vpop.permute.xlu1 %4114  ;;  %v4547_v58 = vpop.f32.mrf.mxu0  ;;  %v2004_v0 = vsel %vm2000_vm3, %v12542_v56, %v12541_v12  ;;  %v2597_v22 = vadd.f32 %v2541_v48, %v2064_v61  ;;  %v2537_v24 = vsel %vm2533_vm4, %v12544_v27, %v12543_v57  ;;  %v3647_v52 = vadd.f32 %v3604_v47, %v3114_v30  ;;  %v12547_v12 = vld [vmem:[#allocation119_spill] sm:$0xff]  ;;  %v12548_v27 = vld [vmem:[#allocation116_spill] sm:$0xff] }
 0x424   :  { %v10562_v18 = vsel %vm4132_vm7, %v4111_v37, %v4115_v55  ;;  %4653 = vrot.lane.b32.xlu0 %v4547_v58, %s6525_s1  ;;  %v2582_v40 = vadd.f32 %v2536_v45, %v2049_v5  ;;  %v12545_v37 = vld [vmem:[#allocation209_spill] sm:$0xff]  ;;  %v3602_v45 = vsel %vm3599_vm6, %v9942_v50, %v12546_v46  ;;  %v3607_v32 = vsel %vm3599_vm6, %v12548_v27, %v12547_v12 }
 0x425   :  { %12539 = vst [vmem:[#allocation157_spill] sm:$0xff] %v10562_v18  ;;  %v4549_v25 = vpop.f32.mrf.mxu0  ;;  %v4590_v1 = vpop.f32.mrf.mxu1  ;;  %v3074_v58 = vsel %vm3066_vm5, %v12545_v37, %v9734_v28  ;;  %v2066_v30 = vadd.f32 %v2004_v0, %v1491_v62 }
 0x426   :  { %v4117_v18 = vpop.permute.xlu0 %4116  ;;  %v3115_v7 = vadd.f32 %v3069_v3, %v2582_v40  ;;  %v3130_v3 = vadd.f32 %v3074_v58, %v2597_v22  ;;  %v12550_v40 = vld [vmem:[#allocation13_spill] sm:$0xff]  ;;  %v12555_v58 = vld [vmem:[#allocation120_spill] sm:$0xff] }
 0x427   :  { %v4137_v61 = vsel %vm4132_vm7, %v4117_v18, %v4121_v14  ;;  %v4139_v5 = vsel %vm4132_vm7, %v4113_v8, %v4117_v18  ;;  %v4123_v48 = vpop.permute.xlu1 %4122  ;;  %v4551_v57 = vpop.f32.mrf.mxu0  ;;  %v1109_v8 = vsel %vm1108_vm2, %v12519_v20, %v12550_v40  ;;  %v12551_v18 = vld [vmem:[#allocation27_spill] sm:$0xff]  ;;  %v2599_v62 = vadd.f32 %v2537_v24, %v2066_v30  ;;  %v12554_v22 = vld [vmem:[#allocation125_spill] sm:$0xff] }
 0x428   :  { %v10590_v47 = vadd.f32 %v4139_v5, %v3646_v51  ;;  %v10592_v43 = vadd.f32 %v4137_v61, %v3647_v52  ;;  %4661 = vrot.lane.b32.xlu0 %v4590_v1, %s6525_s1  ;;  %4655 = vrot.lane.b32.xlu1 %v4551_v57, %s6525_s1  ;;  %v5986_v50 = vpop.f32.mrf.mxu1  ;;  %v1141_v51 = vsel %vm1108_vm2, %v12550_v40, %v12551_v18  ;;  %v12552_v5 = vld [vmem:[#allocation212_spill] sm:$0xff]  ;;  %v12553_v52 = vld [vmem:[#allocation211_spill] sm:$0xff] }
 0x429   :  { %v3070_v1 = vsel %vm3066_vm5, %v12553_v52, %v12552_v5  ;;  %v3648_v61 = vadd.f32 %v3602_v45, %v3115_v7  ;;  %v3663_v0 = vadd.f32 %v3607_v32, %v3130_v3  ;;  %v3603_v20 = vsel %vm3599_vm6, %v12555_v58, %v12554_v22  ;;  %v12557_v45 = vld [vmem:[#allocation118_spill] sm:$0xff]  ;;  %v12558_v32 = vld [vmem:[#allocation19_spill] sm:$0xff]  ;;  %v4553_v5 = vpop.f32.mrf.mxu0 }
 0x42a   :  { %12549 = vst [vmem:[#allocation158_spill] sm:$0xff] %v10592_v43  ;;  %v4125_v57 = vpop.permute.xlu0 %4124  ;;  %v4593_v50 = vpop.f32.mrf.mxu1  ;;  %v3132_v30 = vadd.f32 %v3070_v1, %v2599_v62  ;;  %v12563_v1 = vld [vmem:[#allocation21_spill] sm:$0xff]  ;;  %v12564_v62 = vld [vmem:[#allocation14_spill] sm:$0xff] }
 0x42b   :  { %v4135_v43 = vsel %vm4132_vm7, %v4121_v14, %v4125_v57  ;;  %v4119_v12 = vpop.permute.xlu1 %4118  ;;  %v2001_v14 = vsel %vm2000_vm3, %v12529_v49, %v12557_v45 }
 0x42c   :  { %v10614_v40 = vadd.f32 %v4135_v43, %v3648_v61  ;;  %v10618_v18 = vsel %vm4132_vm7, %v4119_v12, %v4123_v48  ;;  %v4140_v7 = vsel %vm4132_vm7, %v4115_v55, %v4119_v12  ;;  %4657 = vrot.lane.b32.xlu0 %v4549_v25, %s6525_s1  ;;  %4663 = vrot.lane.b32.xlu1 %v4593_v50, %s6525_s1  ;;  %v5987_v24 = vpop.f32.mrf.mxu1  ;;  %v12559_v61 = vld [vmem:[#allocation83_spill] sm:$0xff]  ;;  %v12560_v12 = vld [vmem:[#allocation73_spill] sm:$0xff] }
 0x42d   :  { %v2033_v43 = vsel %vm2000_vm3, %v12557_v45, %v12558_v32  ;;  %v10632_v3 = vadd.f32 %v4140_v7, %v3663_v0  ;;  %v1489_v55 = vadd.f32 %v12559_v61, %v1109_v8  ;;  %v1530_v25 = vadd.f32 %v12560_v12, %v1141_v51  ;;  %v12562_v50 = vld [vmem:[#allocation181_spill] sm:$0xff]  ;;  %v12567_v61 = vld [vmem:[#allocation20_spill] sm:$0xff] }
 0x42e   :  { %12556 = vst [vmem:[#allocation130_spill] sm:$0xff] %v10614_v40  ;;  %v12561_v40 = vld [vmem:[#allocation126_spill] sm:$0xff]  ;;  %v2534_v49 = vsel %vm2533_vm4, %v12538_v38, %v12562_v50  ;;  %v3665_v22 = vadd.f32 %v3603_v20, %v3132_v30  ;;  %v1142_v8 = vsel %vm1108_vm2, %v12564_v62, %v12563_v1  ;;  %v12566_v20 = vld [vmem:[#allocation185_spill] sm:$0xff] }
 0x42f   :  { %v2566_v24 = vsel %vm2533_vm4, %v12562_v50, %v12561_v40  ;;  %v4127_v45 = vpop.permute.xlu1 %4126  ;;  %v2050_v0 = vadd.f32 %v2001_v14, %v1489_v55  ;;  %v2051_v51 = vadd.f32 %v2033_v43, %v1530_v25  ;;  %v12565_v40 = vld [vmem:[#allocation213_spill] sm:$0xff]  ;;  %v12570_v25 = vld [vmem:[#allocation215_spill] sm:$0xff]  ;;  %v12571_v50 = vld [vmem:[#allocation122_spill] sm:$0xff] }
 0x430   :  { %v4136_v7 = vsel %vm4132_vm7, %v4123_v48, %v4127_v45  ;;  %4659 = vrot.lane.b32.xlu1 %v4553_v5, %s6525_s1  ;;  %v3067_v38 = vsel %vm3066_vm5, %v9740_v41, %v12565_v40  ;;  %v3099_v32 = vsel %vm3066_vm5, %v12565_v40, %v12566_v20  ;;  %v12568_v14 = vld [vmem:[#allocation121_spill] sm:$0xff]  ;;  %v3632_v41 = vsel %vm3599_vm6, %v12571_v50, %v12570_v25 }
 0x431   :  { %v10659_v30 = vadd.f32 %v4136_v7, %v3665_v22  ;;  %v2034_v43 = vsel %vm2000_vm3, %v12568_v14, %v12567_v61  ;;  %v2584_v48 = vadd.f32 %v2566_v24, %v2051_v51  ;;  %v2583_v55 = vadd.f32 %v2534_v49, %v2050_v0  ;;  %v12569_v5 = vld [vmem:[#allocation77_spill] sm:$0xff]  ;;  %v12573_v7 = vld [vmem:[#allocation182_spill] sm:$0xff] }
 0x432   :  { %v1533_v12 = vadd.f32 %v12569_v5, %v1142_v8  ;;  %v3600_v22 = vsel %vm3599_vm6, %v12546_v46, %v12571_v50  ;;  %v12572_v1 = vld [vmem:[#allocation129_spill] sm:$0xff]  ;;  %v12574_v8 = vld [vmem:[#allocation214_spill] sm:$0xff] }
 0x433   :  { %v2567_v40 = vsel %vm2533_vm4, %v12573_v7, %v12572_v1  ;;  %v3116_v20 = vadd.f32 %v3067_v38, %v2583_v55  ;;  %v3117_v24 = vadd.f32 %v3099_v32, %v2584_v48  ;;  %v3100_v0 = vsel %vm3066_vm5, %v12574_v8, %v12416_v23  ;;  %v12575_v38 = vld [vmem:[#allocation123_spill] sm:$0xff] }
 0x434   :  { %v2068_v49 = vadd.f32 %v2034_v43, %v1533_v12  ;;  %v3633_v32 = vsel %vm3599_vm6, %v12575_v38, %v9777_v35 }
 0x435   :  { %v3650_v51 = vadd.f32 %v3632_v41, %v3117_v24  ;;  %v3649_v61 = vadd.f32 %v3600_v22, %v3116_v20 }
 0x436   :  { %v4129_v5 = vpop.permute.xlu0 %4128  ;;  %v2601_v25 = vadd.f32 %v2567_v40, %v2068_v49 }
 0x437   :  { %v4133_v46 = vsel %vm4132_vm7, %v4125_v57, %v4129_v5  ;;  %v4165_v50 = vsel %vm4132_vm7, %v4129_v5, %v10001_v13 }
 0x438   :  { %v10691_v43 = vadd.f32 %v4133_v46, %v3649_v61  ;;  %v10693_v48 = vadd.f32 %v4165_v50, %v3650_v51  ;;  %v3134_v23 = vadd.f32 %v3100_v0, %v2601_v25  ;;  %v12577_v25 = vld [vmem:[#allocation10_spill] sm:$0xff] }
 0x439   :  { %v12578_v46 = vld [vmem:[#allocation18_spill] sm:$0xff] }
 0x43a   :  { %v10695_v55 = vpop.permute.xlu0 %4597  ;;  %v3667_v12 = vadd.f32 %v3633_v32, %v3134_v23  ;;  %v12580_v32 = vld [vmem:[#allocation30_spill] sm:$0xff]  ;;  %v12581_v23 = vld [vmem:[#allocation37_spill] sm:$0xff] }
 0x43b   :  { %v4131_v41 = vpop.permute.xlu1 %4130  ;;  %v4779_v22 = vpop.f32.mrf.mxu0 }
 0x43c   :  { %v10699_v57 = vsel %vm4132_vm7, %v4127_v45, %v4131_v41  ;;  %v4166_v13 = vsel %vm4132_vm7, %v4131_v41, %v10053_v4  ;;  %5130 = vrot.lane.b32.xlu1 %v4779_v22, %s6526_s18  ;;  %v12582_v22 = vld [vmem:[#allocation52_spill] sm:$0xff] }
 0x43d   :  { %v10706_v35 = vadd.f32 %v4166_v13, %v3667_v12  ;;  %v4781_v1 = vpop.f32.mrf.mxu0  ;;  %v4822_v40 = vpop.f32.mrf.mxu1  ;;  %v2030_v12 = vsel %vm2000_vm3, %v12581_v23, %v12580_v32  ;;  %v12588_v32 = vld [vmem:[#allocation216_spill] sm:$0xff] }
 0x43e   :  { %v4602_v20 = vpop.permute.xlu0 %4601 }
 0x43f   :  { %v4696_v24 = vsel %vm4665_vm8, %v10695_v55, %v4602_v20  ;;  %v10711_v45 = vpop.permute.xlu1 %4599  ;;  %v4783_v49 = vpop.f32.mrf.mxu0 }
 0x440   :  { %v10714_v0 = vadd.f32 %v4696_v24, %v10091_v33  ;;  %5138 = vrot.lane.b32.xlu1 %v4822_v40, %s6526_s18  ;;  %5132 = vrot.lane.b32.xlu0 %v4783_v49, %s6526_s18  ;;  %v4824_v4 = vpop.f32.mrf.mxu1  ;;  %v1138_v33 = vsel %vm1108_vm2, %v12578_v46, %v12577_v25  ;;  %v12584_v40 = vld [vmem:[#allocation137_spill] sm:$0xff]  ;;  %v12586_v46 = vld [vmem:[#allocation31_spill] sm:$0xff] }
 0x441   :  { %v4785_v41 = vpop.f32.mrf.mxu0  ;;  %v1192_v13 = vadd.f32 %v12582_v22, %v1138_v33  ;;  %v12587_v33 = vld [vmem:[#allocation217_spill] sm:$0xff]  ;;  %v12589_v22 = vld [vmem:[#allocation51_spill] sm:$0xff] }
 0x442   :  { %12576 = vst [vmem:[#allocation189_spill] sm:$0xff] %v10714_v0  ;;  %v4826_v51 = vpop.f32.mrf.mxu1  ;;  %v3629_v23 = vsel %vm3599_vm6, %v12588_v32, %v12587_v33 }
 0x443   :  { %v4604_v61 = vpop.permute.xlu1 %4603  ;;  %v2053_v49 = vadd.f32 %v2030_v12, %v1192_v13  ;;  %v12590_v13 = vld [vmem:[#allocation45_spill] sm:$0xff] }
 0x444   :  { %v4697_v5 = vsel %vm4665_vm8, %v10711_v45, %v4604_v61  ;;  %5134 = vrot.lane.b32.xlu1 %v4781_v1, %s6526_s18  ;;  %5140 = vrot.lane.b32.xlu0 %v4826_v51, %s6526_s18  ;;  %v12583_v1 = vld [vmem:[#allocation143_spill] sm:$0xff] }
 0x445   :  { %v10728_v50 = vadd.f32 %v4697_v5, %v10125_v60  ;;  %v2563_v24 = vsel %vm2533_vm4, %v12584_v40, %v12583_v1  ;;  %v12585_v60 = vld [vmem:[#allocation104_spill] sm:$0xff]  ;;  %v4828_v5 = vpop.f32.mrf.mxu1  ;;  %v12591_v1 = vld [vmem:[#allocation127_spill] sm:$0xff] }
 0x446   :  { %v3096_v51 = vsel %vm3066_vm5, %v12585_v60, %v12420_v39  ;;  %v2586_v25 = vadd.f32 %v2563_v24, %v2053_v49  ;;  %v2026_v39 = vsel %vm2000_vm3, %v12590_v13, %v12589_v22  ;;  %v12592_v40 = vld [vmem:[#allocation131_spill] sm:$0xff]  ;;  %v12593_v49 = vld [vmem:[#allocation42_spill] sm:$0xff] }
 0x447   :  { %12579 = vst [vmem:[#allocation160_spill] sm:$0xff] %v10728_v50  ;;  %v4162_v24 = vsel %vm4132_vm7, %v12592_v40, %v12591_v1  ;;  %v12597_v1 = vld [vmem:[#allocation108_spill] sm:$0xff] }
 0x448   :  { %5142 = vrot.lane.b32.xlu1 %v4824_v4, %s6526_s18  ;;  %5136 = vrot.lane.b32.xlu0 %v4785_v41, %s6526_s18  ;;  %v1134_v4 = vsel %vm1108_vm2, %v12586_v46, %v12438_v11  ;;  %v3119_v12 = vadd.f32 %v3096_v51, %v2586_v25  ;;  %v12594_v46 = vld [vmem:[#allocation128_spill] sm:$0xff]  ;;  %v12595_v51 = vld [vmem:[#allocation151_spill] sm:$0xff] }
 0x449   :  { %v1235_v60 = vadd.f32 %v12593_v49, %v1134_v4  ;;  %v12596_v25 = vld [vmem:[#allocation159_spill] sm:$0xff] }
 0x44a   :  { %v2559_v32 = vsel %vm2533_vm4, %v12596_v25, %v12595_v51 }
 0x44b   :  { %v2055_v22 = vadd.f32 %v2026_v39, %v1235_v60 }
 0x44c   :  { %5144 = vrot.lane.b32.xlu0 %v4828_v5, %s6526_s18  ;;  %v3652_v5 = vadd.f32 %v3629_v23, %v3119_v12 }
 0x44d   :  { %v2588_v12 = vadd.f32 %v2559_v32, %v2055_v22  ;;  %v12599_v22 = vld [vmem:[#allocation132_spill] sm:$0xff] }
 0x44e   :  { %v4606_v41 = vpop.permute.xlu0 %4605  ;;  %v4185_v13 = vadd.f32 %v4162_v24, %v3652_v5 }
 0x44f   :  { %v4694_v11 = vsel %vm4665_vm8, %v4602_v20, %v4606_v41  ;;  %v3092_v20 = vsel %vm3066_vm5, %v12597_v1, %v12461_v29  ;;  %v12600_v1 = vld [vmem:[#allocation138_spill] sm:$0xff] }
 0x450   :  { %v10766_v33 = vadd.f32 %v4694_v11, %v12594_v46  ;;  %v12598_v11 = vld [vmem:[#allocation109_spill] sm:$0xff]  ;;  %v3121_v60 = vadd.f32 %v3092_v20, %v2588_v12  ;;  %v12601_v20 = vld [vmem:[#allocation139_spill] sm:$0xff] }
 0x451   :  { %v3625_v39 = vsel %vm3599_vm6, %v12598_v11, %v9814_v36 }
 0x452   :  { %v4614_v50 = vpop.permute.xlu0 %4613  ;;  %v4608_v0 = vpop.permute.xlu1 %4607  ;;  %v3654_v32 = vadd.f32 %v3625_v39, %v3121_v60 }
 0x453   :  { %v4695_v4 = vsel %vm4665_vm8, %v4604_v61, %v4608_v0  ;;  %v4865_v23 = vpop.f32.mrf.mxu0 }
 0x454   :  { %v10778_v40 = vadd.f32 %v4695_v4, %v4185_v13  ;;  %5146 = vrot.lane.b32.xlu1 %v4865_v23, %s6526_s18  ;;  %v4187_v23 = vadd.f32 %v12601_v20, %v3654_v32 }
 0x455   :  { %v4867_v24 = vpop.f32.mrf.mxu0  ;;  %v4908_v49 = vpop.f32.mrf.mxu1 }
 0x456   :  { %v4610_v5 = vpop.permute.xlu0 %4609  ;;  %v4616_v46 = vpop.permute.xlu1 %4615 }
 0x457   :  { %v4690_v29 = vsel %vm4665_vm8, %v4610_v5, %v4614_v50  ;;  %v4692_v61 = vsel %vm4665_vm8, %v4606_v41, %v4610_v5  ;;  %v4869_v51 = vpop.f32.mrf.mxu0  ;;  %v4910_v25 = vpop.f32.mrf.mxu1 }
 0x458   :  { %v10790_v13 = vadd.f32 %v4692_v61, %v12599_v22  ;;  %v10793_v4 = vadd.f32 %v4690_v29, %v12600_v1  ;;  %5154 = vrot.lane.b32.xlu1 %v4908_v49, %s6526_s18  ;;  %5148 = vrot.lane.b32.xlu0 %v4869_v51, %s6526_s18  ;;  %v12602_v49 = vld [vmem:[#allocation133_spill] sm:$0xff]  ;;  %v12603_v51 = vld [vmem:[#allocation91_spill] sm:$0xff] }
 0x459   :  { %v4912_v36 = vpop.f32.mrf.mxu1  ;;  %v4871_v1 = vpop.f32.mrf.mxu0 }
 0x45a   :  { %v4618_v12 = vpop.permute.xlu0 %4617  ;;  %v4612_v11 = vpop.permute.xlu1 %4611 }
 0x45b   :  { %v4688_v41 = vsel %vm4665_vm8, %v4614_v50, %v4618_v12  ;;  %v4691_v39 = vsel %vm4665_vm8, %v4612_v11, %v4616_v46  ;;  %v4693_v60 = vsel %vm4665_vm8, %v4608_v0, %v4612_v11  ;;  %v12604_v50 = vld [vmem:[#allocation93_spill] sm:$0xff]  ;;  %v12605_v0 = vld [vmem:[#allocation60_spill] sm:$0xff] }
 0x45c   :  { %v10805_v5 = vadd.f32 %v4688_v41, %v10258_v9  ;;  %v10808_v29 = vadd.f32 %v4693_v60, %v12602_v49  ;;  %v10810_v61 = vadd.f32 %v4691_v39, %v4187_v23  ;;  %5150 = vrot.lane.b32.xlu1 %v4867_v24, %s6526_s18  ;;  %5156 = vrot.lane.b32.xlu0 %v4912_v36, %s6526_s18  ;;  %v12606_v23 = vld [vmem:[#allocation24_spill] sm:$0xff]  ;;  %v12607_v36 = vld [vmem:[#allocation162_spill] sm:$0xff]  ;;  %v12609_v49 = vld [vmem:[#allocation95_spill] sm:$0xff] }
 0x45d   :  { %v1130_v32 = vsel %vm1108_vm2, %v12604_v50, %v12603_v51  ;;  %v2022_v9 = vsel %vm2000_vm3, %v12605_v0, %v12457_v16  ;;  %v2555_v41 = vsel %vm2533_vm4, %v12607_v36, %v12459_v44  ;;  %v3088_v16 = vsel %vm3066_vm5, %v12460_v19, %v12465_v42  ;;  %v12610_v51 = vld [vmem:[#allocation111_spill] sm:$0xff]  ;;  %v12611_v50 = vld [vmem:[#allocation110_spill] sm:$0xff]  ;;  %v12615_v36 = vld [vmem:[#allocation141_spill] sm:$0xff] }
 0x45e   :  { %v4620_v22 = vpop.permute.xlu1 %4619  ;;  %v1278_v11 = vadd.f32 %v12606_v23, %v1130_v32  ;;  %v3621_v44 = vsel %vm3599_vm6, %v12611_v50, %v12610_v51 }
 0x45f   :  { %v4689_v20 = vsel %vm4665_vm8, %v4616_v46, %v4620_v22  ;;  %v4914_v46 = vpop.f32.mrf.mxu1 }
 0x460   :  { %v10826_v24 = vadd.f32 %v4689_v20, %v10292_v21  ;;  %5158 = vrot.lane.b32.xlu1 %v4910_v25, %s6526_s18  ;;  %5152 = vrot.lane.b32.xlu0 %v4871_v1, %s6526_s18  ;;  %v2057_v39 = vadd.f32 %v2022_v9, %v1278_v11  ;;  %v12608_v21 = vld [vmem:[#allocation97_spill] sm:$0xff]  ;;  %v12612_v9 = vld [vmem:[#allocation68_spill] sm:$0xff]  ;;  %v12614_v20 = vld [vmem:[#allocation63_spill] sm:$0xff] }
 0x461   :  { %v1126_v25 = vsel %vm1108_vm2, %v12609_v49, %v12608_v21  ;;  %v12613_v1 = vld [vmem:[#allocation64_spill] sm:$0xff] }
 0x462   :  { %v2590_v60 = vadd.f32 %v2555_v41, %v2057_v39  ;;  %v2018_v42 = vsel %vm2000_vm3, %v12613_v1, %v12612_v9  ;;  %v1321_v23 = vadd.f32 %v12614_v20, %v1126_v25  ;;  %v12616_v39 = vld [vmem:[#allocation166_spill] sm:$0xff]  ;;  %v12618_v21 = vld [vmem:[#allocation144_spill] sm:$0xff] }
 0x463   :  { %v12619_v9 = vld [vmem:[#allocation196_spill] sm:$0xff] }
 0x464   :  { %5160 = vrot.lane.b32.xlu0 %v4914_v46, %s6526_s18  ;;  %v3123_v32 = vadd.f32 %v3088_v16, %v2590_v60  ;;  %v12617_v46 = vld [vmem:[#allocation168_spill] sm:$0xff]  ;;  %v2059_v60 = vadd.f32 %v2018_v42, %v1321_v23  ;;  %v12620_v42 = vld [vmem:[#allocation113_spill] sm:$0xff] }
 0x465   :  { %v2551_v16 = vsel %vm2533_vm4, %v12617_v46, %v12616_v39 }
 0x466   :  { %v4622_v0 = vpop.permute.xlu0 %4621  ;;  %v3656_v11 = vadd.f32 %v3621_v44, %v3123_v32  ;;  %v2592_v32 = vadd.f32 %v2551_v16, %v2059_v60 }
 0x467   :  { %v4686_v19 = vsel %vm4665_vm8, %v4618_v12, %v4622_v0  ;;  %v3084_v12 = vsel %vm3066_vm5, %v12619_v9, %v12505_v53  ;;  %v12622_v9 = vld [vmem:[#allocation146_spill] sm:$0xff] }
 0x468   :  { %v10855_v41 = vadd.f32 %v4686_v19, %v12615_v36  ;;  %v4189_v49 = vadd.f32 %v12618_v21, %v3656_v11  ;;  %v3617_v19 = vsel %vm3599_vm6, %v12620_v42, %v9866_v59  ;;  %v3125_v11 = vadd.f32 %v3084_v12, %v2592_v32  ;;  %v12621_v21 = vld [vmem:[#allocation142_spill] sm:$0xff]  ;;  %v12623_v12 = vld [vmem:[#allocation147_spill] sm:$0xff] }
 0x46a   :  { %v4630_v51 = vpop.permute.xlu0 %4629  ;;  %v4624_v50 = vpop.permute.xlu1 %4623  ;;  %v3658_v60 = vadd.f32 %v3617_v19, %v3125_v11 }
 0x46b   :  { %v4687_v25 = vsel %vm4665_vm8, %v4620_v22, %v4624_v50  ;;  %v4951_v44 = vpop.f32.mrf.mxu0 }
 0x46c   :  { %v10868_v1 = vadd.f32 %v4687_v25, %v4189_v49  ;;  %5162 = vrot.lane.b32.xlu1 %v4951_v44, %s6526_s18  ;;  %v4191_v44 = vadd.f32 %v12623_v12, %v3658_v60 }
 0x46d   :  { %v4953_v20 = vpop.f32.mrf.mxu0  ;;  %v4994_v23 = vpop.f32.mrf.mxu1 }
 0x46e   :  { %v4626_v36 = vpop.permute.xlu0 %4625  ;;  %v4632_v39 = vpop.permute.xlu1 %4631 }
 0x46f   :  { %v4682_v53 = vsel %vm4665_vm8, %v4626_v36, %v4630_v51  ;;  %v4684_v22 = vsel %vm4665_vm8, %v4622_v0, %v4626_v36  ;;  %v4955_v46 = vpop.f32.mrf.mxu0  ;;  %v4996_v16 = vpop.f32.mrf.mxu1 }
 0x470   :  { %v10880_v49 = vadd.f32 %v4684_v22, %v12621_v21  ;;  %v10883_v25 = vadd.f32 %v4682_v53, %v12622_v9  ;;  %5170 = vrot.lane.b32.xlu1 %v4994_v23, %s6526_s18  ;;  %5164 = vrot.lane.b32.xlu0 %v4955_v46, %s6526_s18  ;;  %v12624_v23 = vld [vmem:[#allocation145_spill] sm:$0xff]  ;;  %v12625_v46 = vld [vmem:[#allocation99_spill] sm:$0xff] }
 0x471   :  { %v4998_v59 = vpop.f32.mrf.mxu1  ;;  %v4957_v9 = vpop.f32.mrf.mxu0 }
 0x472   :  { %v4634_v32 = vpop.permute.xlu0 %4633  ;;  %v4628_v42 = vpop.permute.xlu1 %4627 }
 0x473   :  { %v4680_v0 = vsel %vm4665_vm8, %v4630_v51, %v4634_v32  ;;  %v4683_v19 = vsel %vm4665_vm8, %v4628_v42, %v4632_v39  ;;  %v4685_v11 = vsel %vm4665_vm8, %v4624_v50, %v4628_v42  ;;  %v12626_v51 = vld [vmem:[#allocation101_spill] sm:$0xff]  ;;  %v12627_v50 = vld [vmem:[#allocation76_spill] sm:$0xff] }
 0x474   :  { %v10895_v36 = vadd.f32 %v4680_v0, %v10424_v10  ;;  %v10898_v53 = vadd.f32 %v4685_v11, %v12624_v23  ;;  %v10900_v22 = vadd.f32 %v4683_v19, %v4191_v44  ;;  %5166 = vrot.lane.b32.xlu1 %v4953_v20, %s6526_s18  ;;  %5172 = vrot.lane.b32.xlu0 %v4998_v59, %s6526_s18  ;;  %v12628_v44 = vld [vmem:[#allocation55_spill] sm:$0xff]  ;;  %v12629_v59 = vld [vmem:[#allocation170_spill] sm:$0xff] }
 0x475   :  { %v1122_v60 = vsel %vm1108_vm2, %v12626_v51, %v12625_v46  ;;  %v2014_v10 = vsel %vm2000_vm3, %v12627_v50, %v12501_v54  ;;  %v2547_v0 = vsel %vm2533_vm4, %v12629_v59, %v12503_v6  ;;  %v3080_v54 = vsel %vm3066_vm5, %v12504_v17, %v12509_v26  ;;  %v12631_v51 = vld [vmem:[#allocation82_spill] sm:$0xff]  ;;  %v12637_v59 = vld [vmem:[#allocation153_spill] sm:$0xff] }
 0x476   :  { %v4636_v21 = vpop.permute.xlu1 %4635  ;;  %v1364_v42 = vadd.f32 %v12628_v44, %v1122_v60  ;;  %v3613_v6 = vsel %vm3599_vm6, %v9897_v2, %v9905_v63  ;;  %v12632_v60 = vld [vmem:[#allocation79_spill] sm:$0xff]  ;;  %v12633_v50 = vld [vmem:[#allocation78_spill] sm:$0xff] }
 0x477   :  { %v4681_v12 = vsel %vm4665_vm8, %v4632_v39, %v4636_v21  ;;  %v5000_v39 = vpop.f32.mrf.mxu1  ;;  %v2010_v26 = vsel %vm2000_vm3, %v12632_v60, %v12631_v51  ;;  %v12635_v44 = vld [vmem:[#allocation174_spill] sm:$0xff] }
 0x478   :  { %v10916_v20 = vadd.f32 %v4681_v12, %v10458_v31  ;;  %5174 = vrot.lane.b32.xlu1 %v4996_v16, %s6526_s18  ;;  %5168 = vrot.lane.b32.xlu0 %v4957_v9, %s6526_s18  ;;  %v2061_v19 = vadd.f32 %v2014_v10, %v1364_v42  ;;  %v12630_v31 = vld [vmem:[#allocation33_spill] sm:$0xff]  ;;  %v12636_v42 = vld [vmem:[#allocation176_spill] sm:$0xff] }
 0x479   :  { %v1118_v16 = vsel %vm1108_vm2, %v12630_v31, %v12526_v15  ;;  %v12634_v12 = vld [vmem:[#allocation149_spill] sm:$0xff]  ;;  %v2543_v2 = vsel %vm2533_vm4, %v12636_v42, %v12635_v44  ;;  %v12640_v42 = vld [vmem:[#allocation150_spill] sm:$0xff] }
 0x47a   :  { %v2594_v11 = vadd.f32 %v2547_v0, %v2061_v19  ;;  %v1407_v10 = vadd.f32 %v12633_v50, %v1118_v16 }
 0x47c   :  { %5176 = vrot.lane.b32.xlu0 %v5000_v39, %s6526_s18  ;;  %v3127_v23 = vadd.f32 %v3080_v54, %v2594_v11  ;;  %v2063_v63 = vadd.f32 %v2010_v26, %v1407_v10  ;;  %v12638_v39 = vld [vmem:[#allocation206_spill] sm:$0xff] }
 0x47e   :  { %v4638_v46 = vpop.permute.xlu0 %4637  ;;  %v3660_v9 = vadd.f32 %v3613_v6, %v3127_v23  ;;  %v2596_v16 = vadd.f32 %v2543_v2, %v2063_v63  ;;  %v12639_v23 = vld [vmem:[#allocation117_spill] sm:$0xff]  ;;  %v12641_v63 = vld [vmem:[#allocation155_spill] sm:$0xff] }
 0x47f   :  { %v4678_v17 = vsel %vm4665_vm8, %v4634_v32, %v4638_v46  ;;  %v3076_v32 = vsel %vm3066_vm5, %v12638_v39, %v12545_v37  ;;  %v3609_v51 = vsel %vm3599_vm6, %v12639_v23, %v12548_v27 }
 0x480   :  { %v10945_v15 = vadd.f32 %v4678_v17, %v12634_v12  ;;  %v4193_v0 = vadd.f32 %v12637_v59, %v3660_v9  ;;  %v3129_v17 = vadd.f32 %v3076_v32, %v2596_v16 }
 0x482   :  { %v4646_v19 = vpop.permute.xlu0 %4645  ;;  %v4640_v54 = vpop.permute.xlu1 %4639  ;;  %v3662_v44 = vadd.f32 %v3609_v51, %v3129_v17  ;;  %v12643_v51 = vld [vmem:[#allocation154_spill] sm:$0xff] }
 0x483   :  { %v4679_v11 = vsel %vm4665_vm8, %v4636_v21, %v4640_v54  ;;  %v5037_v31 = vpop.f32.mrf.mxu0 }
 0x484   :  { %v10958_v6 = vadd.f32 %v4679_v11, %v4193_v0  ;;  %5178 = vrot.lane.b32.xlu1 %v5037_v31, %s6526_s18  ;;  %v12642_v0 = vld [vmem:[#allocation157_spill] sm:$0xff] }
 0x485   :  { %v5039_v60 = vpop.f32.mrf.mxu0  ;;  %v5080_v26 = vpop.f32.mrf.mxu1  ;;  %v4195_v39 = vadd.f32 %v12642_v0, %v3662_v44  ;;  %v12649_v0 = vld [vmem:[#allocation178_spill] sm:$0xff] }
 0x486   :  { %v4642_v50 = vpop.permute.xlu0 %4641  ;;  %v4648_v10 = vpop.permute.xlu1 %4647 }
 0x487   :  { %v4674_v37 = vsel %vm4665_vm8, %v4642_v50, %v4646_v19  ;;  %v4676_v21 = vsel %vm4665_vm8, %v4638_v46, %v4642_v50  ;;  %v5041_v9 = vpop.f32.mrf.mxu0  ;;  %v5082_v12 = vpop.f32.mrf.mxu1  ;;  %v12644_v50 = vld [vmem:[#allocation47_spill] sm:$0xff] }
 0x488   :  { %v10970_v2 = vadd.f32 %v4676_v21, %v12640_v42  ;;  %v10973_v59 = vadd.f32 %v4674_v37, %v12641_v63  ;;  %5186 = vrot.lane.b32.xlu1 %v5080_v26, %s6526_s18  ;;  %5180 = vrot.lane.b32.xlu0 %v5041_v9, %s6526_s18  ;;  %v12647_v42 = vld [vmem:[#allocation70_spill] sm:$0xff] }
 0x489   :  { %v5084_v27 = vpop.f32.mrf.mxu1  ;;  %v5043_v9 = vpop.f32.mrf.mxu0 }
 0x48a   :  { %v4650_v32 = vpop.permute.xlu0 %4649  ;;  %v4644_v11 = vpop.permute.xlu1 %4643 }
 0x48b   :  { %v4672_v46 = vsel %vm4665_vm8, %v4646_v19, %v4650_v32  ;;  %v4675_v31 = vsel %vm4665_vm8, %v4644_v11, %v4648_v10  ;;  %v4677_v16 = vsel %vm4665_vm8, %v4640_v54, %v4644_v11  ;;  %v12645_v19 = vld [vmem:[#allocation2_spill] sm:$0xff]  ;;  %v12646_v54 = vld [vmem:[#allocation107_spill] sm:$0xff] }
 0x48c   :  { %v10985_v23 = vadd.f32 %v4672_v46, %v10590_v47  ;;  %v10988_v26 = vadd.f32 %v4677_v16, %v12643_v51  ;;  %v10990_v17 = vadd.f32 %v4675_v31, %v4195_v39  ;;  %5182 = vrot.lane.b32.xlu1 %v5039_v60, %s6526_s18  ;;  %5188 = vrot.lane.b32.xlu0 %v5084_v27, %s6526_s18  ;;  %v12648_v27 = vld [vmem:[#allocation180_spill] sm:$0xff]  ;;  %v12651_v31 = vld [vmem:[#allocation119_spill] sm:$0xff] }
 0x48d   :  { %v1114_v37 = vsel %vm1108_vm2, %v12645_v19, %v12644_v50  ;;  %v2006_v47 = vsel %vm2000_vm3, %v12646_v54, %v12542_v56  ;;  %v2539_v39 = vsel %vm2533_vm4, %v12649_v0, %v12648_v27  ;;  %v3072_v56 = vsel %vm3066_vm5, %v9734_v28, %v12553_v52  ;;  %v12652_v19 = vld [vmem:[#allocation115_spill] sm:$0xff] }
 0x48e   :  { %v4652_v21 = vpop.permute.xlu1 %4651  ;;  %v1450_v63 = vadd.f32 %v12647_v42, %v1114_v37  ;;  %v3605_v16 = vsel %vm3599_vm6, %v12651_v31, %v12555_v58  ;;  %v2002_v28 = vsel %vm2000_vm3, %v12652_v19, %v12568_v14  ;;  %v12653_v37 = vld [vmem:[#allocation88_spill] sm:$0xff] }
 0x48f   :  { %v4673_v44 = vsel %vm4665_vm8, %v4648_v10, %v4652_v21  ;;  %v5086_v10 = vpop.f32.mrf.mxu1  ;;  %v12656_v14 = vld [vmem:[#allocation212_spill] sm:$0xff] }
 0x490   :  { %v11006_v60 = vadd.f32 %v4673_v44, %v10632_v3  ;;  %5190 = vrot.lane.b32.xlu1 %v5082_v12, %s6526_s18  ;;  %5184 = vrot.lane.b32.xlu0 %v5043_v9, %s6526_s18  ;;  %v2065_v11 = vadd.f32 %v2006_v47, %v1450_v63  ;;  %v12650_v3 = vld [vmem:[#allocation9_spill] sm:$0xff]  ;;  %v12654_v9 = vld [vmem:[#allocation158_spill] sm:$0xff]  ;;  %v12655_v44 = vld [vmem:[#allocation184_spill] sm:$0xff] }
 0x491   :  { %v1110_v12 = vsel %vm1108_vm2, %v12650_v3, %v12564_v62  ;;  %v2535_v58 = vsel %vm2533_vm4, %v12655_v44, %v12573_v7 }
 0x492   :  { %v2598_v46 = vadd.f32 %v2539_v39, %v2065_v11  ;;  %v1493_v54 = vadd.f32 %v12653_v37, %v1110_v12 }
 0x494   :  { %5192 = vrot.lane.b32.xlu0 %v5086_v10, %s6526_s18  ;;  %v3131_v51 = vadd.f32 %v3072_v56, %v2598_v46  ;;  %v2067_v42 = vadd.f32 %v2002_v28, %v1493_v54  ;;  %v12657_v46 = vld [vmem:[#allocation125_spill] sm:$0xff]  ;;  %v12658_v28 = vld [vmem:[#allocation130_spill] sm:$0xff] }
 0x496   :  { %v4654_v50 = vpop.permute.xlu0 %4653  ;;  %v3664_v47 = vadd.f32 %v3605_v16, %v3131_v51  ;;  %v2600_v10 = vadd.f32 %v2535_v58, %v2067_v42 }
 0x497   :  { %v4670_v52 = vsel %vm4665_vm8, %v4650_v32, %v4654_v50  ;;  %v3068_v32 = vsel %vm3066_vm5, %v12656_v14, %v12574_v8  ;;  %v3601_v8 = vsel %vm3599_vm6, %v12657_v46, %v12575_v38 }
 0x498   :  { %v11035_v62 = vadd.f32 %v4670_v52, %v12654_v9  ;;  %v4197_v63 = vadd.f32 %v10618_v18, %v3664_v47  ;;  %v3133_v12 = vadd.f32 %v3068_v32, %v2600_v10 }
 0x49a   :  { %v4662_v27 = vpop.permute.xlu0 %4661  ;;  %v4656_v0 = vpop.permute.xlu1 %4655  ;;  %v3666_v19 = vadd.f32 %v3601_v8, %v3133_v12 }
 0x49b   :  { %v4698_v39 = vsel %vm4665_vm8, %v4662_v27, %v10695_v55  ;;  %v4671_v11 = vsel %vm4665_vm8, %v4652_v21, %v4656_v0  ;;  %v5123_v56 = vpop.f32.mrf.mxu0 }
 0x49c   :  { %v11052_v7 = vadd.f32 %v4698_v39, %v10693_v48  ;;  %v11054_v18 = vadd.f32 %v4671_v11, %v4197_v63  ;;  %5194 = vrot.lane.b32.xlu1 %v5123_v56, %s6526_s18  ;;  %v12660_v39 = vld [vmem:[#allocation7_spill] sm:$0xff] }
 0x49d   :  { %v6002_v3 = vpop.f32.mrf.mxu0 }
 0x49e   :  { %v4658_v55 = vpop.permute.xlu0 %4657  ;;  %v4664_v31 = vpop.permute.xlu1 %4663 }
 0x49f   :  { %v4666_v21 = vsel %vm4665_vm8, %v4658_v55, %v4662_v27  ;;  %v4668_v48 = vsel %vm4665_vm8, %v4654_v50, %v4658_v55  ;;  %v4699_v16 = vsel %vm4665_vm8, %v4664_v31, %v10711_v45  ;;  %v5126_v51 = vpop.f32.mrf.mxu0  ;;  %v4199_v50 = vadd.f32 %v10699_v57, %v3666_v19  ;;  %v12662_v19 = vld [vmem:[#allocation23_spill] sm:$0xff] }
 0x4a0   :  { %v11069_v52 = vadd.f32 %v4668_v48, %v12658_v28  ;;  %v11072_v38 = vadd.f32 %v4666_v21, %v10691_v43  ;;  %v11075_v37 = vadd.f32 %v4699_v16, %v10706_v35  ;;  %5196 = vrot.lane.b32.xlu0 %v5126_v51, %s6526_s18  ;;  %v12661_v21 = vld [vmem:[#allocation160_spill] sm:$0xff] }
 0x4a1   :  { %v6003_v54 = vpop.f32.mrf.mxu0 }
 0x4a2   :  { %v4660_v47 = vpop.permute.xlu1 %4659 }
 0x4a3   :  { %v4667_v45 = vsel %vm4665_vm8, %v4660_v47, %v4664_v31  ;;  %v4669_v9 = vsel %vm4665_vm8, %v4656_v0, %v4660_v47 }
 0x4a4   :  { %v11084_v44 = vadd.f32 %v4669_v9, %v10659_v30  ;;  %v11086_v43 = vadd.f32 %v4667_v45, %v4199_v50  ;;  %v12659_v30 = vld [vmem:[#allocation189_spill] sm:$0xff] }
 0x4ae   :  { %v11088_v58 = vpop.permute.xlu1 %5130 }
 0x4b2   :  { %v5139_v35 = vpop.permute.xlu1 %5138  ;;  %v11090_v42 = vpop.permute.xlu0 %5132 }
 0x4b6   :  { %v5135_v57 = vpop.permute.xlu1 %5134  ;;  %v5141_v63 = vpop.permute.xlu0 %5140 }
 0x4b7   :  { %v5227_v27 = vsel %vm5198_vm9, %v5135_v57, %v5139_v35  ;;  %v5229_v0 = vsel %vm5198_vm9, %v11088_v58, %v5135_v57 }
 0x4b8   :  { %v5233_v14 = vadd.f32 %v5229_v0, %v12659_v30  ;;  %v5234_v32 = vadd.f32 %v5227_v27, %v10766_v33 }
 0x4ba   :  { %v5279_v11 = vadd.f32 %v12660_v39, %v5233_v14  ;;  %v5280_v56 = vadd.f32 %v12660_v39, %v5234_v32  ;;  %v5143_v10 = vpop.permute.xlu1 %5142  ;;  %v5137_v46 = vpop.permute.xlu0 %5136 }
 0x4bb   :  { %v5225_v8 = vsel %vm5198_vm9, %v5139_v35, %v5143_v10  ;;  %v5228_v3 = vsel %vm5198_vm9, %v5137_v46, %v5141_v63  ;;  %v5230_v12 = vsel %vm5198_vm9, %v11090_v42, %v5137_v46 }
 0x4bc   :  { %v5763_v55 = vmul.f32 -1.442695, %v5279_v11  ;;  %v5764_v31 = vmul.f32 -1.442695, %v5280_v56  ;;  %v5235_v33 = vadd.f32 %v5225_v8, %v10790_v13  ;;  %v5250_v48 = vadd.f32 %v5230_v12, %v12661_v21 }
 0x4bd   :  { %v5251_v16 = vadd.f32 %v5228_v3, %v10778_v40 }
 0x4be   :  { %6176 = vpow2.f32 %v5763_v55  ;;  %v5281_v51 = vadd.f32 %v12660_v39, %v5235_v33  ;;  %v5296_v28 = vadd.f32 %v12662_v19, %v5250_v48  ;;  %v5145_v54 = vpop.permute.xlu0 %5144 }
 0x4bf   :  { %6178 = vpow2.f32 %v5764_v31  ;;  %v5297_v50 = vadd.f32 %v12662_v19, %v5251_v16  ;;  %v5226_v47 = vsel %vm5198_vm9, %v5141_v63, %v5145_v54 }
 0x4c0   :  { %v5765_v45 = vmul.f32 -1.442695, %v5281_v51  ;;  %v5780_v9 = vmul.f32 -1.442695, %v5296_v28  ;;  %v5252_v13 = vadd.f32 %v5226_v47, %v10808_v29 }
 0x4c1   :  { %v5781_v35 = vmul.f32 -1.442695, %v5297_v50 }
 0x4c2   :  { %6180 = vpow2.f32 %v5765_v45  ;;  %v5298_v40 = vadd.f32 %v12662_v19, %v5252_v13 }
 0x4c3   :  { %6182 = vpow2.f32 %v5780_v9 }
 0x4c4   :  { %6184 = vpow2.f32 %v5781_v35  ;;  %v5782_v57 = vmul.f32 -1.442695, %v5298_v40 }
 0x4c6   :  { %6186 = vpow2.f32 %v5782_v57  ;;  %v5147_v27 = vpop.permute.xlu1 %5146 }
 0x4c7   :  { %v5223_v0 = vsel %vm5198_vm9, %v5143_v10, %v5147_v27 }
 0x4c8   :  { %v5236_v30 = vadd.f32 %v5223_v0, %v10793_v4 }
 0x4ca   :  { %v5282_v63 = vadd.f32 %v12660_v39, %v5236_v30  ;;  %v5155_v14 = vpop.permute.xlu1 %5154  ;;  %v5149_v32 = vpop.permute.xlu0 %5148 }
 0x4cb   :  { %v6177_v11 = vpop.eup %6176  ;;  %v5224_v29 = vsel %vm5198_vm9, %v5145_v54, %v5149_v32 }
 0x4cc   :  { %v6179_v56 = vpop.eup %6178  ;;  %v5415_v46 = vadd.f32 1.0, %v6177_v11  ;;  %v5766_v8 = vmul.f32 -1.442695, %v5282_v63  ;;  %v5253_v3 = vadd.f32 %v5224_v29, %v10810_v61 }
 0x4cd   :  { %v5416_v12 = vadd.f32 1.0, %v6179_v56 }
 0x4ce   :  { %6188 = vrcp.f32 %v5415_v46  ;;  %v5299_v55 = vadd.f32 %v12662_v19, %v5253_v3  ;;  %v5151_v10 = vpop.permute.xlu1 %5150  ;;  %v5157_v31 = vpop.permute.xlu0 %5156 }
 0x4cf   :  { %v6181_v4 = vpop.eup %6180  ;;  %6190 = vrcp.f32 %v5416_v12  ;;  %v5219_v33 = vsel %vm5198_vm9, %v5151_v10, %v5155_v14  ;;  %v5221_v21 = vsel %vm5198_vm9, %v5147_v27, %v5151_v10 }
 0x4d0   :  { %v6183_v48 = vpop.eup %6182  ;;  %v5417_v16 = vadd.f32 1.0, %v6181_v4  ;;  %6192 = vpow2.f32 %v5766_v8  ;;  %v5237_v51 = vadd.f32 %v5221_v21, %v10805_v5  ;;  %v5783_v54 = vmul.f32 -1.442695, %v5299_v55 }
 0x4d1   :  { %v6185_v61 = vpop.eup %6184  ;;  %v5432_v28 = vadd.f32 1.0, %v6183_v48  ;;  %v5238_v50 = vadd.f32 %v5219_v33, %v10855_v41 }
 0x4d2   :  { %6194 = vrcp.f32 %v5417_v16  ;;  %v5433_v47 = vadd.f32 1.0, %v6185_v61  ;;  %v5283_v45 = vadd.f32 %v12660_v39, %v5237_v51  ;;  %v5159_v9 = vpop.permute.xlu1 %5158  ;;  %v5153_v13 = vpop.permute.xlu0 %5152 }
 0x4d3   :  { %v6187_v35 = vpop.eup %6186  ;;  %6196 = vrcp.f32 %v5432_v28  ;;  %v5284_v40 = vadd.f32 %v12660_v39, %v5238_v50  ;;  %v5217_v57 = vsel %vm5198_vm9, %v5155_v14, %v5159_v9  ;;  %v5220_v5 = vsel %vm5198_vm9, %v5153_v13, %v5157_v31 }
 0x4d4   :  { %6198 = vrcp.f32 %v5433_v47  ;;  %v5434_v27 = vadd.f32 1.0, %v6187_v35  ;;  %v5767_v0 = vmul.f32 -1.442695, %v5283_v45  ;;  %v5239_v41 = vadd.f32 %v5217_v57, %v10880_v49 }
 0x4d5   :  { %6200 = vpow2.f32 %v5783_v54  ;;  %v5768_v30 = vmul.f32 -1.442695, %v5284_v40  ;;  %v5222_v63 = vsel %vm5198_vm9, %v5149_v32, %v5153_v13  ;;  %v5255_v11 = vadd.f32 %v5220_v5, %v10868_v1 }
 0x4d6   :  { %6202 = vrcp.f32 %v5434_v27  ;;  %v5285_v29 = vadd.f32 %v12660_v39, %v5239_v41  ;;  %v5254_v14 = vadd.f32 %v5222_v63, %v10826_v24  ;;  %v5161_v56 = vpop.permute.xlu0 %5160 }
 0x4d7   :  { %6204 = vpow2.f32 %v5767_v0  ;;  %v5301_v46 = vadd.f32 %v12662_v19, %v5255_v11  ;;  %v5218_v8 = vsel %vm5198_vm9, %v5157_v31, %v5161_v56 }
 0x4d8   :  { %6206 = vpow2.f32 %v5768_v30  ;;  %v5769_v49 = vmul.f32 -1.442695, %v5285_v29  ;;  %v5300_v3 = vadd.f32 %v12662_v19, %v5254_v14  ;;  %v5256_v32 = vadd.f32 %v5218_v8, %v10898_v53 }
 0x4d9   :  { %v5785_v12 = vmul.f32 -1.442695, %v5301_v46 }
 0x4da   :  { %6208 = vpow2.f32 %v5769_v49  ;;  %v5784_v1 = vmul.f32 -1.442695, %v5300_v3  ;;  %v5302_v55 = vadd.f32 %v12662_v19, %v5256_v32 }
 0x4db   :  { %v6189_v10 = vpop.eup %6188  ;;  %6210 = vpow2.f32 %v5785_v12 }
 0x4dc   :  { %v6191_v24 = vpop.eup %6190  ;;  %5517 = vst [vmem:[%s11338_s3] sm:$0xff] %v6189_v10  ;;  %6212 = vpow2.f32 %v5784_v1  ;;  %v5786_v31 = vmul.f32 -1.442695, %v5302_v55 }
 0x4dd   :  { %v6193_v4 = vpop.eup %6192  ;;  %5518 = vst [vmem:[%s11338_s3 + $0x8] sm:$0xff] %v6191_v24 }
 0x4de   :  { %v5418_v53 = vadd.f32 1.0, %v6193_v4  ;;  %6214 = vpow2.f32 %v5786_v31  ;;  %v5163_v33 = vpop.permute.xlu1 %5162 }
 0x4df   :  { %v6195_v21 = vpop.eup %6194  ;;  %v5215_v48 = vsel %vm5198_vm9, %v5159_v9, %v5163_v33 }
 0x4e0   :  { %v6197_v16 = vpop.eup %6196  ;;  %5519 = vst [vmem:[%s11338_s3 + $0x10] sm:$0xff] %v6195_v21  ;;  %6216 = vrcp.f32 %v5418_v53  ;;  %v5240_v51 = vadd.f32 %v5215_v48, %v10883_v25 }
 0x4e1   :  { %v6199_v61 = vpop.eup %6198  ;;  %5534 = vst [vmem:[%s11338_s3 + $0x88] sm:$0xff] %v6197_v16 }
 0x4e2   :  { %v6201_v28 = vpop.eup %6200  ;;  %5535 = vst [vmem:[%s11338_s3 + $0x90] sm:$0xff] %v6199_v61  ;;  %v5286_v54 = vadd.f32 %v12660_v39, %v5240_v51  ;;  %v5171_v50 = vpop.permute.xlu1 %5170 }
 0x4e3   :  { %v5165_v47 = vpop.permute.xlu0 %5164  ;;  %v6203_v45 = vpop.eup %6202  ;;  %v5435_v9 = vadd.f32 1.0, %v6201_v28 }
 0x4e4   :  { %v5216_v13 = vsel %vm5198_vm9, %v5161_v56, %v5165_v47  ;;  %v6205_v25 = vpop.eup %6204  ;;  %5536 = vst [vmem:[%s11338_s3 + $0x98] sm:$0xff] %v6203_v45  ;;  %v5770_v35 = vmul.f32 -1.442695, %v5286_v54 }
 0x4e5   :  { %v5257_v40 = vadd.f32 %v5216_v13, %v10900_v22  ;;  %v6207_v57 = vpop.eup %6206  ;;  %6218 = vrcp.f32 %v5435_v9  ;;  %v5419_v5 = vadd.f32 1.0, %v6205_v25 }
 0x4e6   :  { %v5420_v27 = vadd.f32 1.0, %v6207_v57  ;;  %6220 = vpow2.f32 %v5770_v35  ;;  %v5167_v41 = vpop.permute.xlu1 %5166 }
 0x4e7   :  { %v5303_v0 = vadd.f32 %v12662_v19, %v5257_v40  ;;  %v5173_v30 = vpop.permute.xlu0 %5172  ;;  %v6209_v63 = vpop.eup %6208  ;;  %6222 = vrcp.f32 %v5419_v5  ;;  %v5211_v11 = vsel %vm5198_vm9, %v5167_v41, %v5171_v50  ;;  %v5213_v29 = vsel %vm5198_vm9, %v5163_v33, %v5167_v41 }
 0x4e8   :  { %v6211_v14 = vpop.eup %6210  ;;  %6224 = vrcp.f32 %v5420_v27  ;;  %v5421_v22 = vadd.f32 1.0, %v6209_v63  ;;  %v5241_v56 = vadd.f32 %v5213_v29, %v10895_v36  ;;  %v5242_v3 = vadd.f32 %v5211_v11, %v10945_v15 }
 0x4e9   :  { %v6213_v46 = vpop.eup %6212  ;;  %v5437_v8 = vadd.f32 1.0, %v6211_v14  ;;  %v5787_v49 = vmul.f32 -1.442695, %v5303_v0 }
 0x4ea   :  { %6226 = vrcp.f32 %v5421_v22  ;;  %v5436_v32 = vadd.f32 1.0, %v6213_v46  ;;  %v5287_v12 = vadd.f32 %v12660_v39, %v5241_v56  ;;  %v5175_v1 = vpop.permute.xlu1 %5174  ;;  %v5288_v24 = vadd.f32 %v12660_v39, %v5242_v3 }
 0x4eb   :  { %v5169_v55 = vpop.permute.xlu0 %5168  ;;  %v6215_v10 = vpop.eup %6214  ;;  %6228 = vrcp.f32 %v5437_v8  ;;  %v5209_v31 = vsel %vm5198_vm9, %v5171_v50, %v5175_v1 }
 0x4ec   :  { %v5212_v36 = vsel %vm5198_vm9, %v5169_v55, %v5173_v30  ;;  %6230 = vrcp.f32 %v5436_v32  ;;  %v5438_v4 = vadd.f32 1.0, %v6215_v10  ;;  %v5771_v53 = vmul.f32 -1.442695, %v5287_v12 }
 0x4ed   :  { %v5243_v15 = vadd.f32 %v5209_v31, %v10970_v2  ;;  %v6217_v33 = vpop.eup %6216  ;;  %6232 = vpow2.f32 %v5787_v49  ;;  %v5772_v21 = vmul.f32 -1.442695, %v5288_v24  ;;  %v5214_v48 = vsel %vm5198_vm9, %v5165_v47, %v5169_v55 }
 0x4ee   :  { %v5259_v16 = vadd.f32 %v5212_v36, %v10958_v6  ;;  %5520 = vst [vmem:[%s11338_s3 + $0x18] sm:$0xff] %v6217_v33  ;;  %6234 = vrcp.f32 %v5438_v4  ;;  %v5258_v61 = vadd.f32 %v5214_v48, %v10916_v20 }
 0x4ef   :  { %v5289_v51 = vadd.f32 %v12660_v39, %v5243_v15  ;;  %v5177_v28 = vpop.permute.xlu0 %5176  ;;  %6236 = vpow2.f32 %v5771_v53 }
 0x4f0   :  { %v5305_v2 = vadd.f32 %v12662_v19, %v5259_v16  ;;  %v5210_v54 = vsel %vm5198_vm9, %v5173_v30, %v5177_v28  ;;  %6238 = vpow2.f32 %v5772_v21  ;;  %v5304_v6 = vadd.f32 %v12662_v19, %v5258_v61 }
 0x4f1   :  { %v5773_v50 = vmul.f32 -1.442695, %v5289_v51  ;;  %v5260_v47 = vadd.f32 %v5210_v54, %v10988_v26 }
 0x4f2   :  { %v5789_v45 = vmul.f32 -1.442695, %v5305_v2  ;;  %v6219_v9 = vpop.eup %6218  ;;  %v5788_v13 = vmul.f32 -1.442695, %v5304_v6 }
 0x4f3   :  { %6240 = vpow2.f32 %v5773_v50  ;;  %v5306_v25 = vadd.f32 %v12662_v19, %v5260_v47  ;;  %v6221_v20 = vpop.eup %6220  ;;  %5537 = vst [vmem:[%s11338_s3 + $0xa0] sm:$0xff] %v6219_v9 }
 0x4f4   :  { %6242 = vpow2.f32 %v5789_v45  ;;  %v6223_v35 = vpop.eup %6222  ;;  %v5422_v40 = vadd.f32 1.0, %v6221_v20 }
 0x4f5   :  { %6244 = vpow2.f32 %v5788_v13  ;;  %v5790_v57 = vmul.f32 -1.442695, %v5306_v25  ;;  %v6225_v5 = vpop.eup %6224  ;;  %5521 = vst [vmem:[%s11338_s3 + $0x20] sm:$0xff] %v6223_v35 }
 0x4f6   :  { %5522 = vst [vmem:[%s11338_s3 + $0x28] sm:$0xff] %v6225_v5  ;;  %6246 = vrcp.f32 %v5422_v40  ;;  %v5179_v26 = vpop.permute.xlu1 %5178 }
 0x4f7   :  { %v6227_v27 = vpop.eup %6226  ;;  %6248 = vpow2.f32 %v5790_v57  ;;  %v5207_v0 = vsel %vm5198_vm9, %v5175_v1, %v5179_v26 }
 0x4f8   :  { %v6229_v41 = vpop.eup %6228  ;;  %5523 = vst [vmem:[%s11338_s3 + $0x30] sm:$0xff] %v6227_v27  ;;  %v5244_v30 = vadd.f32 %v5207_v0, %v10973_v59 }
 0x4f9   :  { %v6231_v63 = vpop.eup %6230  ;;  %5539 = vst [vmem:[%s11338_s3 + $0xb0] sm:$0xff] %v6229_v41 }
 0x4fa   :  { %v6233_v11 = vpop.eup %6232  ;;  %5538 = vst [vmem:[%s11338_s3 + $0xa8] sm:$0xff] %v6231_v63  ;;  %v5290_v29 = vadd.f32 %v12660_v39, %v5244_v30  ;;  %v5187_v14 = vpop.permute.xlu1 %5186 }
 0x4fb   :  { %v5181_v22 = vpop.permute.xlu0 %5180  ;;  %v6235_v56 = vpop.eup %6234  ;;  %v5439_v46 = vadd.f32 1.0, %v6233_v11 }
 0x4fc   :  { %v5208_v8 = vsel %vm5198_vm9, %v5177_v28, %v5181_v22  ;;  %v6237_v59 = vpop.eup %6236  ;;  %5540 = vst [vmem:[%s11338_s3 + $0xb8] sm:$0xff] %v6235_v56  ;;  %v5774_v49 = vmul.f32 -1.442695, %v5290_v29 }
 0x4fd   :  { %v5261_v3 = vadd.f32 %v5208_v8, %v10990_v17  ;;  %v6239_v32 = vpop.eup %6238  ;;  %6250 = vrcp.f32 %v5439_v46  ;;  %v5423_v12 = vadd.f32 1.0, %v6237_v59 }
 0x4fe   :  { %v5424_v1 = vadd.f32 1.0, %v6239_v32  ;;  %6252 = vpow2.f32 %v5774_v49  ;;  %v5183_v10 = vpop.permute.xlu1 %5182 }
 0x4ff   :  { %v5307_v55 = vadd.f32 %v12662_v19, %v5261_v3  ;;  %v5189_v24 = vpop.permute.xlu0 %5188  ;;  %6254 = vrcp.f32 %v5423_v12  ;;  %v5203_v36 = vsel %vm5198_vm9, %v5183_v10, %v5187_v14  ;;  %v5205_v4 = vsel %vm5198_vm9, %v5179_v26, %v5183_v10 }
 0x500   :  { %v6241_v31 = vpop.eup %6240  ;;  %6256 = vrcp.f32 %v5424_v1  ;;  %v5245_v15 = vadd.f32 %v5205_v4, %v10985_v23  ;;  %v5246_v16 = vadd.f32 %v5203_v36, %v11035_v62 }
 0x501   :  { %v6243_v53 = vpop.eup %6242  ;;  %v5425_v17 = vadd.f32 1.0, %v6241_v31  ;;  %v5791_v48 = vmul.f32 -1.442695, %v5307_v55 }
 0x502   :  { %v6245_v33 = vpop.eup %6244  ;;  %v5441_v21 = vadd.f32 1.0, %v6243_v53  ;;  %v5291_v61 = vadd.f32 %v12660_v39, %v5245_v15  ;;  %v5191_v28 = vpop.permute.xlu1 %5190  ;;  %v5292_v50 = vadd.f32 %v12660_v39, %v5246_v16 }
 0x503   :  { %6258 = vrcp.f32 %v5425_v17  ;;  %v5440_v51 = vadd.f32 1.0, %v6245_v33  ;;  %v5185_v2 = vpop.permute.xlu0 %5184  ;;  %v6247_v54 = vpop.eup %6246  ;;  %v5201_v6 = vsel %vm5198_vm9, %v5187_v14, %v5191_v28 }
 0x504   :  { %6260 = vrcp.f32 %v5441_v21  ;;  %v5204_v23 = vsel %vm5198_vm9, %v5185_v2, %v5189_v24  ;;  %v6249_v47 = vpop.eup %6248  ;;  %5524 = vst [vmem:[%s11338_s3 + $0x38] sm:$0xff] %v6247_v54  ;;  %v5775_v62 = vmul.f32 -1.442695, %v5291_v61  ;;  %v5247_v45 = vadd.f32 %v5201_v6, %v11069_v52 }
 0x505   :  { %6262 = vrcp.f32 %v5440_v51  ;;  %v5206_v9 = vsel %vm5198_vm9, %v5181_v22, %v5185_v2  ;;  %v5442_v13 = vadd.f32 1.0, %v6249_v47  ;;  %v5776_v25 = vmul.f32 -1.442695, %v5292_v50 }
 0x506   :  { %6264 = vpow2.f32 %v5791_v48  ;;  %v5262_v20 = vadd.f32 %v5206_v9, %v11006_v60  ;;  %v5293_v35 = vadd.f32 %v12660_v39, %v5247_v45  ;;  %v5263_v40 = vadd.f32 %v5204_v23, %v11054_v18 }
 0x507   :  { %6266 = vpow2.f32 %v5775_v62  ;;  %v5193_v57 = vpop.permute.xlu0 %5192 }
 0x508   :  { %6268 = vrcp.f32 %v5442_v13  ;;  %v5308_v5 = vadd.f32 %v12662_v19, %v5262_v20  ;;  %v5202_v52 = vsel %vm5198_vm9, %v5189_v24, %v5193_v57  ;;  %v5777_v26 = vmul.f32 -1.442695, %v5293_v35 }
 0x509   :  { %6270 = vpow2.f32 %v5776_v25  ;;  %v5309_v27 = vadd.f32 %v12662_v19, %v5263_v40  ;;  %v5264_v0 = vadd.f32 %v5202_v52, %v11084_v44 }
 0x50a   :  { %v5792_v41 = vmul.f32 -1.442695, %v5308_v5  ;;  %v6251_v60 = vpop.eup %6250  ;;  %6272 = vpow2.f32 %v5777_v26 }
 0x50b   :  { %v5793_v30 = vmul.f32 -1.442695, %v5309_v27  ;;  %v5310_v63 = vadd.f32 %v12662_v19, %v5264_v0  ;;  %v6253_v18 = vpop.eup %6252  ;;  %5541 = vst [vmem:[%s11338_s3 + $0xc0] sm:$0xff] %v6251_v60 }
 0x50c   :  { %6274 = vpow2.f32 %v5792_v41  ;;  %v6255_v11 = vpop.eup %6254  ;;  %v5426_v29 = vadd.f32 1.0, %v6253_v18 }
 0x50d   :  { %6276 = vpow2.f32 %v5793_v30  ;;  %v5794_v14 = vmul.f32 -1.442695, %v5310_v63  ;;  %v6257_v22 = vpop.eup %6256  ;;  %5525 = vst [vmem:[%s11338_s3 + $0x40] sm:$0xff] %v6255_v11 }
 0x50e   :  { %5526 = vst [vmem:[%s11338_s3 + $0x48] sm:$0xff] %v6257_v22  ;;  %6278 = vrcp.f32 %v5426_v29  ;;  %v5195_v44 = vpop.permute.xlu1 %5194 }
 0x50f   :  { %6280 = vpow2.f32 %v5794_v14  ;;  %v5199_v46 = vsel %vm5198_vm9, %v5191_v28, %v5195_v44  ;;  %v5231_v8 = vsel %vm5198_vm9, %v5195_v44, %v11088_v58 }
 0x510   :  { %v6259_v56 = vpop.eup %6258  ;;  %v5248_v49 = vadd.f32 %v5199_v46, %v11072_v38  ;;  %v5249_v3 = vadd.f32 %v5231_v8, %v11052_v7 }
 0x511   :  { %v6261_v59 = vpop.eup %6260  ;;  %5527 = vst [vmem:[%s11338_s3 + $0x50] sm:$0xff] %v6259_v56 }
 0x512   :  { %v6263_v32 = vpop.eup %6262  ;;  %5543 = vst [vmem:[%s11338_s3 + $0xd0] sm:$0xff] %v6261_v59  ;;  %v5294_v58 = vadd.f32 %v12660_v39, %v5248_v49  ;;  %v5295_v1 = vadd.f32 %v12660_v39, %v5249_v3  ;;  %v5197_v55 = vpop.permute.xlu0 %5196 }
 0x513   :  { %v6265_v12 = vpop.eup %6264  ;;  %5542 = vst [vmem:[%s11338_s3 + $0xc8] sm:$0xff] %v6263_v32  ;;  %v5200_v7 = vsel %vm5198_vm9, %v5193_v57, %v5197_v55  ;;  %v5232_v38 = vsel %vm5198_vm9, %v5197_v55, %v11090_v42 }
 0x514   :  { %v6267_v10 = vpop.eup %6266  ;;  %v5443_v24 = vadd.f32 1.0, %v6265_v12  ;;  %v5778_v4 = vmul.f32 -1.442695, %v5294_v58  ;;  %v5265_v53 = vadd.f32 %v5200_v7, %v11086_v43  ;;  %v5779_v39 = vmul.f32 -1.442695, %v5295_v1 }
 0x515   :  { %v6269_v31 = vpop.eup %6268  ;;  %v5427_v36 = vadd.f32 1.0, %v6267_v10  ;;  %v5266_v15 = vadd.f32 %v5232_v38, %v11075_v37 }
 0x516   :  { %v6271_v17 = vpop.eup %6270  ;;  %5544 = vst [vmem:[%s11338_s3 + $0xd8] sm:$0xff] %v6269_v31  ;;  %6282 = vrcp.f32 %v5443_v24  ;;  %v5311_v21 = vadd.f32 %v12662_v19, %v5265_v53 }
 0x517   :  { %v5428_v33 = vadd.f32 1.0, %v6271_v17  ;;  %6284 = vrcp.f32 %v5427_v36  ;;  %v6273_v34 = vpop.eup %6272  ;;  %v5312_v42 = vadd.f32 %v12662_v19, %v5266_v15 }
 0x518   :  { %6286 = vpow2.f32 %v5778_v4  ;;  %v5429_v43 = vadd.f32 1.0, %v6273_v34  ;;  %v5795_v61 = vmul.f32 -1.442695, %v5311_v21 }
 0x519   :  { %v6275_v48 = vpop.eup %6274  ;;  %6288 = vrcp.f32 %v5428_v33  ;;  %v5796_v2 = vmul.f32 -1.442695, %v5312_v42 }
 0x51a   :  { %v6277_v16 = vpop.eup %6276  ;;  %v5444_v51 = vadd.f32 1.0, %v6275_v48  ;;  %6290 = vpow2.f32 %v5779_v39 }
 0x51b   :  { %6292 = vrcp.f32 %v5429_v43  ;;  %v5445_v28 = vadd.f32 1.0, %v6277_v16  ;;  %v6279_v54 = vpop.eup %6278 }
 0x51c   :  { %6294 = vrcp.f32 %v5444_v51  ;;  %v6281_v37 = vpop.eup %6280  ;;  %5528 = vst [vmem:[%s11338_s3 + $0x58] sm:$0xff] %v6279_v54 }
 0x51d   :  { %6296 = vrcp.f32 %v5445_v28  ;;  %v5446_v50 = vadd.f32 1.0, %v6281_v37 }
 0x51e   :  { %6298 = vpow2.f32 %v5795_v61 }
 0x51f   :  { %6300 = vpow2.f32 %v5796_v2 }
 0x520   :  { %6302 = vrcp.f32 %v5446_v50 }
 0x523   :  { %v6283_v19 = vpop.eup %6282 }
 0x524   :  { %v6285_v6 = vpop.eup %6284  ;;  %5545 = vst [vmem:[%s11338_s3 + $0xe0] sm:$0xff] %v6283_v19 }
 0x525   :  { %v6287_v23 = vpop.eup %6286  ;;  %5529 = vst [vmem:[%s11338_s3 + $0x60] sm:$0xff] %v6285_v6 }
 0x526   :  { %v6289_v47 = vpop.eup %6288  ;;  %v5430_v62 = vadd.f32 1.0, %v6287_v23 }
 0x527   :  { %v6291_v45 = vpop.eup %6290  ;;  %5530 = vst [vmem:[%s11338_s3 + $0x68] sm:$0xff] %v6289_v47 }
 0x528   :  { %v6293_v9 = vpop.eup %6292  ;;  %v5431_v13 = vadd.f32 1.0, %v6291_v45  ;;  %6304 = vrcp.f32 %v5430_v62 }
 0x529   :  { %v6295_v25 = vpop.eup %6294  ;;  %5531 = vst [vmem:[%s11338_s3 + $0x70] sm:$0xff] %v6293_v9 }
 0x52a   :  { %v6297_v20 = vpop.eup %6296  ;;  %5546 = vst [vmem:[%s11338_s3 + $0xe8] sm:$0xff] %v6295_v25  ;;  %6306 = vrcp.f32 %v5431_v13 }
 0x52b   :  { %v6299_v35 = vpop.eup %6298  ;;  %5547 = vst [vmem:[%s11338_s3 + $0xf0] sm:$0xff] %v6297_v20 }
 0x52c   :  { %v6301_v40 = vpop.eup %6300  ;;  %v5447_v57 = vadd.f32 1.0, %v6299_v35 }
 0x52d   :  { %v6303_v5 = vpop.eup %6302  ;;  %v5448_v52 = vadd.f32 1.0, %v6301_v40 }
 0x52e   :  { %5548 = vst [vmem:[%s11338_s3 + $0xf8] sm:$0xff] %v6303_v5  ;;  %6308 = vrcp.f32 %v5447_v57 }
 0x52f   :  { %6310 = vrcp.f32 %v5448_v52 }
 0x535   :  { %v6305_v26 = vpop.eup %6304 }
 0x536   :  { %5532 = vst [vmem:[%s11338_s3 + $0x78] sm:$0xff] %v6305_v26 }
 0x537   :  { %v6307_v27 = vpop.eup %6306 }
 0x538   :  { %5533 = vst [vmem:[%s11338_s3 + $0x80] sm:$0xff] %v6307_v27 }
 0x53b   :  { %v6309_v0 = vpop.eup %6308 }
 0x53c   :  { %v6311_v41 = vpop.eup %6310  ;;  %5549 = vst [vmem:[%s11338_s3 + $0x100] sm:$0xff] %v6309_v0 }
 0x53d   :  { %5550 = vst [vmem:[%s11338_s3 + $0x108] sm:$0xff] %v6311_v41 }

</bundles_post_ra>
